<compile_context>
chip_gen: v6e
topology: v6e:2x2x1
jax: 0.10.0
libtpu: 0.0.40
codegen_flags: <defaults>
</compile_context>

<pallas_src>
import functools

import jax
import jax.numpy as jnp
from jax import lax
from jax.experimental import pallas as pl
from jax.experimental.pallas import tpu as pltpu


# ---------------------------------------------------------------------------
# Fused SiamRPN forward kernel (single invocation, whole batch)
# ---------------------------------------------------------------------------
def _siamrpn_kernel(p1_ref, w1_ref, w2_ref, wh_ref, wx_ref, bias_ref, out_ref,
                    *, dims):
    bsz, h1, h2, h3, h4, kt, fc, n_out, out_rows = dims
    pitch = h1                       # row pitch of the flattened feature maps
    img = h1 * h1                    # rows per batch element in the stack

    def conv_taps(x, k, n_rows):
        """x: (rows, C) pitched-image stack (pixel (b, y, xx) lives at row
        b*img + y*pitch + xx).  One contiguous row slice per tap + one lane
        concat -> (n_rows, k*k*C) patch matrix for the whole batch."""
        taps = [x[i * pitch + j: i * pitch + j + n_rows, :]
                for i in range(k) for j in range(k)]
        return jnp.concatenate(taps, axis=1)

    bias = bias_ref[...]                                   # (3, 128) packed

    # ---- backbone conv1 (3x3, stride 2, ReLU); bias folded via ones column --
    a1 = jnp.dot(p1_ref[...], w1_ref[...], preferred_element_type=jnp.float32)
    a1 = jnp.maximum(a1, 0.0)                              # (B*h1*h1, c1)

    # ---- backbone conv2 (3x3, ReLU) -> detection_feature --------------------
    n2 = (bsz - 1) * img + (h2 - 1) * pitch + h2
    p2 = conv_taps(a1, 3, n2)                              # (n2, 9*c1)
    o2 = jnp.dot(p2, w2_ref[...], preferred_element_type=jnp.float32)
    o2 = jnp.maximum(o2 + bias[0:1, :fc], 0.0)             # (n2, fc)

    # ---- conv_cls2 | conv_r2 fused into one 3x3 conv (no ReLU) --------------
    n3 = (bsz - 1) * img + (h3 - 1) * pitch + h3
    p3 = conv_taps(o2, 3, n3)                              # (n3, 9*fc)
    o3 = jnp.dot(p3, wh_ref[...], preferred_element_type=jnp.float32)
    o3 = o3 + bias[1:2, :2 * fc]                           # (n3, 2*fc)

    # ---- per-batch xcorr (cls|reg merged, regress_adjust pre-folded) --------
    n4 = (bsz - 1) * img + (h4 - 1) * pitch + h4
    p4 = conv_taps(o3, kt, n4)                             # (n4, kt*kt*2fc)
    l4 = (h4 - 1) * pitch + h4
    out_bias = bias[2:3, :n_out]                           # [0]*n_cls ++ adj_b
    for b in range(bsz):
        r = jnp.dot(p4[b * img: b * img + l4, :], wx_ref[b],
                    preferred_element_type=jnp.float32) + out_bias  # (l4, 30)
        # pad to a lane/sublane-dense (out_rows, 128) slab -> unmasked store
        r = jnp.concatenate(
            [r, jnp.zeros((l4, 128 - n_out), jnp.float32)], axis=1)
        r = jnp.concatenate(
            [r, jnp.zeros((out_rows - l4, 128), jnp.float32)], axis=0)
        out_ref[b] = r.astype(out_ref.dtype)


# ---------------------------------------------------------------------------
# Wrapper-side (pure XLA, one-time) layout prep
# ---------------------------------------------------------------------------
def _prep_conv_weight(w):
    """(OC, IC, KH, KW) -> (KH*KW*IC, OC); K ordered (kh, kw, ic)."""
    oc, ic, kh, kw = w.shape
    return jnp.transpose(w, (2, 3, 1, 0)).reshape(kh * kw * ic, oc)


def _prep_xcorr_weight(z, channels, fc):
    """Template kernels (B, channels*fc, k, k) -> (B, k*k*fc, channels),
    matching PyTorch's z[i].view(channels, fc, k, k)."""
    b, zc, kh, kw = z.shape
    assert zc == channels * fc
    w = z.reshape(b, channels, fc, kh, kw)
    return jnp.transpose(w, (0, 3, 4, 2, 1)).reshape(b, kh * kw * fc, channels)


def _im2col_nhwc(x, kh, kw, stride):
    """x: (N, H, W, C) -> (N, OH*OW, kh*kw*C); K ordered (kh, kw, c)."""
    n, h, w, c = x.shape
    oh = (h - kh) // stride + 1
    ow = (w - kw) // stride + 1
    cols = []
    for i in range(kh):
        for j in range(kw):
            cols.append(x[:, i:i + stride * oh:stride,
                          j:j + stride * ow:stride, :])
    p = jnp.concatenate(cols, axis=-1)                     # (N, OH, OW, K)
    return p.reshape(n, oh * ow, kh * kw * c), oh, ow


# ---------------------------------------------------------------------------
# SiamRPN.forward
# ---------------------------------------------------------------------------
def siamrpn_forward(params, z, detection):
    r1_kernel, cls1_kernel = z
    bsz = detection.shape[0]
    # TODO(synk): builder.<tracker_name>() backbone is external; a small
    # deterministic 2-conv feature net (feature_channel=fc) stands in.
    c1 = params["feat_w1"].shape[0]
    fc = params["feat_w2"].shape[0]                        # feature_channel
    kt = cls1_kernel.shape[-1]
    n_cls = cls1_kernel.shape[1] // fc                     # 10
    n_reg = r1_kernel.shape[1] // fc                       # 20
    n_out = n_cls + n_reg

    # one NCHW->NHWC transpose up front, channels-last everywhere afterwards
    det = jnp.transpose(detection, (0, 2, 3, 1))
    p1, h1, _ = _im2col_nhwc(det, 3, 3, 2)                 # (B, h1*h1, 27)
    img = h1 * h1
    k1 = p1.shape[-1]
    k1p = 8 * ((k1 + 1 + 7) // 8)                          # K + ones col -> 32
    p1 = p1.reshape(bsz * img, k1)
    p1 = jnp.concatenate(
        [p1, jnp.ones((bsz * img, 1), jnp.float32),
         jnp.zeros((bsz * img, k1p - k1 - 1), jnp.float32)], axis=1)

    # conv1 weight with its bias folded in via the ones column
    w1 = jnp.concatenate(
        [_prep_conv_weight(params["feat_w1"]),
         params["feat_b1"].reshape(1, -1),
         jnp.zeros((k1p - k1 - 1, c1), jnp.float32)], axis=0)       # (k1p, c1)

    w2 = _prep_conv_weight(params["feat_w2"])                       # (9*c1, fc)
    # cls2 / r2 heads read identical patches -> concatenate along OC
    wh = jnp.concatenate([_prep_conv_weight(params["cls2_w"]),
                          _prep_conv_weight(params["r2_w"])], axis=1)

    # per-batch xcorr weights: fold regress_adjust into the reg block and
    # merge cls|reg into one per-tap block-diagonal weight (kt*kt*2fc, 30)
    adj_w = _prep_conv_weight(params["adj_w"])                      # (20, 20)
    cls1_w = _prep_xcorr_weight(cls1_kernel, n_cls, fc)             # (B,T*fc,10)
    r1_w = _prep_xcorr_weight(r1_kernel, n_reg, fc) @ adj_w         # (B,T*fc,20)
    taps = kt * kt
    cls_blk = cls1_w.reshape(bsz, taps, fc, n_cls)
    reg_blk = r1_w.reshape(bsz, taps, fc, n_reg)
    top = jnp.concatenate(
        [cls_blk, jnp.zeros((bsz, taps, fc, n_reg), jnp.float32)], axis=3)
    bot = jnp.concatenate(
        [jnp.zeros((bsz, taps, fc, n_cls), jnp.float32), reg_blk], axis=3)
    wx = jnp.concatenate([top, bot], axis=2).reshape(bsz, taps * 2 * fc, n_out)

    # remaining small biases packed into one (3, 128) operand:
    #   row 0 = feat_b2, row 1 = [cls2_b | r2_b], row 2 = [0]*n_cls ++ adj_b
    def _row(v):
        return jnp.concatenate(
            [v.astype(jnp.float32),
             jnp.zeros((128 - v.shape[0],), jnp.float32)])[None, :]
    bias = jnp.concatenate(
        [_row(params["feat_b2"]),
         _row(jnp.concatenate([params["cls2_b"], params["r2_b"]])),
         _row(jnp.concatenate([jnp.zeros((n_cls,), jnp.float32),
                               params["adj_b"]]))], axis=0)         # (3, 128)

    h2, h3 = h1 - 2, h1 - 4
    h4 = h3 - kt + 1
    out_rows = 8 * ((h4 * h1 + 7) // 8)          # 64: dense output slab rows

    kern = functools.partial(
        _siamrpn_kernel, dims=(bsz, h1, h2, h3, h4, kt, fc, n_out, out_rows))
    vmem = pl.BlockSpec(memory_space=pltpu.MemorySpace.VMEM)
    out = pl.pallas_call(
        kern,
        out_shape=jax.ShapeDtypeStruct((bsz, out_rows, 128), jnp.float32),
        in_specs=[vmem] * 6,
        out_specs=vmem,
    )(p1, w1, w2, wh, wx, bias)

    # recover the valid h4 x h4 grid from the pitch-h1 layout, split heads,
    # single NHWC->NCHW fix-up at the very end
    valid = out[:, :h4 * h1, :n_out].reshape(bsz, h4, h1, n_out)[:, :, :h4, :]
    pred_score = jnp.transpose(valid[..., :n_cls], (0, 3, 1, 2))
    pred_regression = jnp.transpose(valid[..., n_cls:], (0, 3, 1, 2))
    return pred_regression, pred_score


# ---------------------------------------------------------------------------
# Pure-JAX reference (for correctness check of the fused kernel)
# ---------------------------------------------------------------------------
def _ref_conv(x, w, b, stride=1, relu=False):
    out = lax.conv_general_dilated(
        x, w, (stride, stride), "VALID",
        dimension_numbers=("NCHW", "OIHW", "NCHW"),
        precision=lax.Precision.HIGHEST)
    out = out + b.reshape(1, -1, 1, 1)
    return jnp.maximum(out, 0.0) if relu else out


def _ref_forward(params, z, detection, fc):
    r1_kernel, cls1_kernel = z
    f = _ref_conv(detection, params["feat_w1"], params["feat_b1"], 2, True)
    df = _ref_conv(f, params["feat_w2"], params["feat_b2"], 1, True)
    cs = _ref_conv(df, params["cls2_w"], params["cls2_b"])
    cr = _ref_conv(df, params["r2_w"], params["r2_b"])

    def xcorr(zk, x, ch):
        k = zk.shape[-1]
        outs = []
        for i in range(x.shape[0]):
            w = zk[i].reshape(ch, fc, k, k)
            outs.append(lax.conv_general_dilated(
                x[i:i + 1], w, (1, 1), "VALID",
                dimension_numbers=("NCHW", "OIHW", "NCHW"),
                precision=lax.Precision.HIGHEST))
        return jnp.concatenate(outs, axis=0)

    pred_score = xcorr(cls1_kernel, cs, 10)
    pred_regression = _ref_conv(xcorr(r1_kernel, cr, 20),
                                params["adj_w"], params["adj_b"])
    return pred_regression, pred_score


# ---------------------------------------------------------------------------
# Deterministic parameter / input construction
# ---------------------------------------------------------------------------
def _init(key, shape, scale=0.05):
    return scale * jax.random.normal(key, shape, dtype=jnp.float32)


def make_params(fc=16):
    keys = jax.random.split(jax.random.PRNGKey(42), 12)
    return {
        "feat_w1": _init(keys[0], (8, 3, 3, 3)),
        "feat_b1": _init(keys[1], (8,)),
        "feat_w2": _init(keys[2], (fc, 8, 3, 3)),
        "feat_b2": _init(keys[3], (fc,)),
        "cls2_w": _init(keys[4], (fc, fc, 3, 3)),
        "cls2_b": _init(keys[5], (fc,)),
        "r2_w": _init(keys[6], (fc, fc, 3, 3)),
        "r2_b": _init(keys[7], (fc,)),
        "adj_w": _init(keys[8], (20, 20, 1, 1)),
        "adj_b": _init(keys[9], (20,)),
    }


if __name__ == "__main__":
    FC = 16        # feature_channel of the synthetic backbone
    B = 2
    K_TMPL = 4     # template kernel spatial size

    params = make_params(FC)

    k_det, k_r1, k_cls1 = jax.random.split(jax.random.PRNGKey(0), 3)
    detection = jax.random.normal(k_det, (B, 3, 26, 26), dtype=jnp.float32)
    # template kernels as produced by temple(): conv_r1 -> 20*fc, conv_cls1 -> 10*fc
    r1_kernel = 0.05 * jax.random.normal(k_r1, (B, 20 * FC, K_TMPL, K_TMPL),
                                         dtype=jnp.float32)
    cls1_kernel = 0.05 * jax.random.normal(k_cls1, (B, 10 * FC, K_TMPL, K_TMPL),
                                           dtype=jnp.float32)

    fwd = jax.jit(siamrpn_forward)
    pred_regression, pred_score = fwd(params, (r1_kernel, cls1_kernel), detection)
    jax.block_until_ready((pred_regression, pred_score))

    assert pred_regression.shape == (B, 20, 5, 5), pred_regression.shape
    assert pred_score.shape == (B, 10, 5, 5), pred_score.shape

    ref_reg, ref_score = _ref_forward(params, (r1_kernel, cls1_kernel),
                                      detection, FC)
    assert jnp.allclose(pred_score, ref_score, rtol=1e-3, atol=1e-4), \
        float(jnp.max(jnp.abs(pred_score - ref_score)))
    assert jnp.allclose(pred_regression, ref_reg, rtol=1e-3, atol=1e-4), \
        float(jnp.max(jnp.abs(pred_regression - ref_reg)))

    print("KERNEL_OK")
</pallas_src>

<mosaic_0001>
module attributes {stable_mosaic.version = 11 : i64} {
  func.func @_siamrpn_kernel(%arg0: memref<288x32xf32, #tpu.memory_space<vmem>>, %arg1: memref<32x8xf32, #tpu.memory_space<vmem>>, %arg2: memref<72x16xf32, #tpu.memory_space<vmem>>, %arg3: memref<144x32xf32, #tpu.memory_space<vmem>>, %arg4: memref<2x512x30xf32, #tpu.memory_space<vmem>>, %arg5: memref<3x128xf32, #tpu.memory_space<vmem>>, %arg6: memref<2x64x128xf32, #tpu.memory_space<vmem>>) attributes {dimension_semantics = [], scalar_prefetch = 0 : i64, scratch_operands = 0 : i64, tpu.core_type = #tpu.core_type<tc>} {
    %c0 = arith.constant 0 : index
    %c0_0 = arith.constant 0 : index
    %0 = vector.load %arg5[%c0, %c0_0] : memref<3x128xf32, #tpu.memory_space<vmem>>, vector<3x128xf32>
    %c0_1 = arith.constant 0 : index
    %c0_2 = arith.constant 0 : index
    %1 = vector.load %arg0[%c0_1, %c0_2] : memref<288x32xf32, #tpu.memory_space<vmem>>, vector<288x32xf32>
    %c0_3 = arith.constant 0 : index
    %c0_4 = arith.constant 0 : index
    %2 = vector.load %arg1[%c0_3, %c0_4] : memref<32x8xf32, #tpu.memory_space<vmem>>, vector<32x8xf32>
    %cst = arith.constant dense<0.000000e+00> : vector<288x8xf32>
    %3 = tpu.matmul %1, %2, %cst {dimension_numbers = #tpu.dot_dimension_numbers<[1], [0], [0], [1], [0, 0, 1, 1], [], []>} : vector<288x32xf32>, vector<32x8xf32>, vector<288x8xf32> -> vector<288x8xf32>
    %cst_5 = arith.constant 0.000000e+00 : f32
    %4 = vector.broadcast %cst_5 : f32 to vector<288x8xf32>
    %5 = arith.maximumf %3, %4 : vector<288x8xf32>
    %6 = vector.extract_strided_slice %5 {offsets = [0, 0], sizes = [262, 8], strides = [1, 1]} : vector<288x8xf32> to vector<262x8xf32>
    %7 = vector.extract_strided_slice %5 {offsets = [1, 0], sizes = [262, 8], strides = [1, 1]} : vector<288x8xf32> to vector<262x8xf32>
    %8 = vector.extract_strided_slice %5 {offsets = [2, 0], sizes = [262, 8], strides = [1, 1]} : vector<288x8xf32> to vector<262x8xf32>
    %9 = vector.extract_strided_slice %5 {offsets = [12, 0], sizes = [262, 8], strides = [1, 1]} : vector<288x8xf32> to vector<262x8xf32>
    %10 = vector.extract_strided_slice %5 {offsets = [13, 0], sizes = [262, 8], strides = [1, 1]} : vector<288x8xf32> to vector<262x8xf32>
    %11 = vector.extract_strided_slice %5 {offsets = [14, 0], sizes = [262, 8], strides = [1, 1]} : vector<288x8xf32> to vector<262x8xf32>
    %12 = vector.extract_strided_slice %5 {offsets = [24, 0], sizes = [262, 8], strides = [1, 1]} : vector<288x8xf32> to vector<262x8xf32>
    %13 = vector.extract_strided_slice %5 {offsets = [25, 0], sizes = [262, 8], strides = [1, 1]} : vector<288x8xf32> to vector<262x8xf32>
    %14 = vector.extract_strided_slice %5 {offsets = [26, 0], sizes = [262, 8], strides = [1, 1]} : vector<288x8xf32> to vector<262x8xf32>
    %15 = tpu.concatenate %6, %7, %8, %9, %10, %11, %12, %13, %14 in 1 : vector<262x8xf32>, vector<262x8xf32>, vector<262x8xf32>, vector<262x8xf32>, vector<262x8xf32>, vector<262x8xf32>, vector<262x8xf32>, vector<262x8xf32>, vector<262x8xf32> -> vector<262x72xf32>
    %c0_6 = arith.constant 0 : index
    %c0_7 = arith.constant 0 : index
    %16 = vector.load %arg2[%c0_6, %c0_7] : memref<72x16xf32, #tpu.memory_space<vmem>>, vector<72x16xf32>
    %cst_8 = arith.constant dense<0.000000e+00> : vector<262x16xf32>
    %17 = tpu.matmul %15, %16, %cst_8 {dimension_numbers = #tpu.dot_dimension_numbers<[1], [0], [0], [1], [0, 0, 1, 1], [], []>} : vector<262x72xf32>, vector<72x16xf32>, vector<262x16xf32> -> vector<262x16xf32>
    %18 = vector.extract_strided_slice %0 {offsets = [0, 0], sizes = [1, 16], strides = [1, 1]} : vector<3x128xf32> to vector<1x16xf32>
    %19 = vector.broadcast %18 : vector<1x16xf32> to vector<262x16xf32>
    %20 = arith.addf %17, %19 : vector<262x16xf32>
    %cst_9 = arith.constant 0.000000e+00 : f32
    %21 = vector.broadcast %cst_9 : f32 to vector<262x16xf32>
    %22 = arith.maximumf %20, %21 : vector<262x16xf32>
    %23 = vector.extract_strided_slice %22 {offsets = [0, 0], sizes = [236, 16], strides = [1, 1]} : vector<262x16xf32> to vector<236x16xf32>
    %24 = vector.extract_strided_slice %22 {offsets = [1, 0], sizes = [236, 16], strides = [1, 1]} : vector<262x16xf32> to vector<236x16xf32>
    %25 = vector.extract_strided_slice %22 {offsets = [2, 0], sizes = [236, 16], strides = [1, 1]} : vector<262x16xf32> to vector<236x16xf32>
    %26 = vector.extract_strided_slice %22 {offsets = [12, 0], sizes = [236, 16], strides = [1, 1]} : vector<262x16xf32> to vector<236x16xf32>
    %27 = vector.extract_strided_slice %22 {offsets = [13, 0], sizes = [236, 16], strides = [1, 1]} : vector<262x16xf32> to vector<236x16xf32>
    %28 = vector.extract_strided_slice %22 {offsets = [14, 0], sizes = [236, 16], strides = [1, 1]} : vector<262x16xf32> to vector<236x16xf32>
    %29 = vector.extract_strided_slice %22 {offsets = [24, 0], sizes = [236, 16], strides = [1, 1]} : vector<262x16xf32> to vector<236x16xf32>
    %30 = vector.extract_strided_slice %22 {offsets = [25, 0], sizes = [236, 16], strides = [1, 1]} : vector<262x16xf32> to vector<236x16xf32>
    %31 = vector.extract_strided_slice %22 {offsets = [26, 0], sizes = [236, 16], strides = [1, 1]} : vector<262x16xf32> to vector<236x16xf32>
    %32 = tpu.concatenate %23, %24, %25, %26, %27, %28, %29, %30, %31 in 1 : vector<236x16xf32>, vector<236x16xf32>, vector<236x16xf32>, vector<236x16xf32>, vector<236x16xf32>, vector<236x16xf32>, vector<236x16xf32>, vector<236x16xf32>, vector<236x16xf32> -> vector<236x144xf32>
    %c0_10 = arith.constant 0 : index
    %c0_11 = arith.constant 0 : index
    %33 = vector.load %arg3[%c0_10, %c0_11] : memref<144x32xf32, #tpu.memory_space<vmem>>, vector<144x32xf32>
    %cst_12 = arith.constant dense<0.000000e+00> : vector<236x32xf32>
    %34 = tpu.matmul %32, %33, %cst_12 {dimension_numbers = #tpu.dot_dimension_numbers<[1], [0], [0], [1], [0, 0, 1, 1], [], []>} : vector<236x144xf32>, vector<144x32xf32>, vector<236x32xf32> -> vector<236x32xf32>
    %35 = vector.extract_strided_slice %0 {offsets = [1, 0], sizes = [1, 32], strides = [1, 1]} : vector<3x128xf32> to vector<1x32xf32>
    %36 = vector.broadcast %35 : vector<1x32xf32> to vector<236x32xf32>
    %37 = arith.addf %34, %36 : vector<236x32xf32>
    %38 = vector.extract_strided_slice %37 {offsets = [0, 0], sizes = [197, 32], strides = [1, 1]} : vector<236x32xf32> to vector<197x32xf32>
    %39 = vector.extract_strided_slice %37 {offsets = [1, 0], sizes = [197, 32], strides = [1, 1]} : vector<236x32xf32> to vector<197x32xf32>
    %40 = vector.extract_strided_slice %37 {offsets = [2, 0], sizes = [197, 32], strides = [1, 1]} : vector<236x32xf32> to vector<197x32xf32>
    %41 = vector.extract_strided_slice %37 {offsets = [3, 0], sizes = [197, 32], strides = [1, 1]} : vector<236x32xf32> to vector<197x32xf32>
    %42 = vector.extract_strided_slice %37 {offsets = [12, 0], sizes = [197, 32], strides = [1, 1]} : vector<236x32xf32> to vector<197x32xf32>
    %43 = vector.extract_strided_slice %37 {offsets = [13, 0], sizes = [197, 32], strides = [1, 1]} : vector<236x32xf32> to vector<197x32xf32>
    %44 = vector.extract_strided_slice %37 {offsets = [14, 0], sizes = [197, 32], strides = [1, 1]} : vector<236x32xf32> to vector<197x32xf32>
    %45 = vector.extract_strided_slice %37 {offsets = [15, 0], sizes = [197, 32], strides = [1, 1]} : vector<236x32xf32> to vector<197x32xf32>
    %46 = vector.extract_strided_slice %37 {offsets = [24, 0], sizes = [197, 32], strides = [1, 1]} : vector<236x32xf32> to vector<197x32xf32>
    %47 = vector.extract_strided_slice %37 {offsets = [25, 0], sizes = [197, 32], strides = [1, 1]} : vector<236x32xf32> to vector<197x32xf32>
    %48 = vector.extract_strided_slice %37 {offsets = [26, 0], sizes = [197, 32], strides = [1, 1]} : vector<236x32xf32> to vector<197x32xf32>
    %49 = vector.extract_strided_slice %37 {offsets = [27, 0], sizes = [197, 32], strides = [1, 1]} : vector<236x32xf32> to vector<197x32xf32>
    %50 = vector.extract_strided_slice %37 {offsets = [36, 0], sizes = [197, 32], strides = [1, 1]} : vector<236x32xf32> to vector<197x32xf32>
    %51 = vector.extract_strided_slice %37 {offsets = [37, 0], sizes = [197, 32], strides = [1, 1]} : vector<236x32xf32> to vector<197x32xf32>
    %52 = vector.extract_strided_slice %37 {offsets = [38, 0], sizes = [197, 32], strides = [1, 1]} : vector<236x32xf32> to vector<197x32xf32>
    %53 = vector.extract_strided_slice %37 {offsets = [39, 0], sizes = [197, 32], strides = [1, 1]} : vector<236x32xf32> to vector<197x32xf32>
    %54 = tpu.concatenate %38, %39, %40, %41, %42, %43, %44, %45, %46, %47, %48, %49, %50, %51, %52, %53 in 1 : vector<197x32xf32>, vector<197x32xf32>, vector<197x32xf32>, vector<197x32xf32>, vector<197x32xf32>, vector<197x32xf32>, vector<197x32xf32>, vector<197x32xf32>, vector<197x32xf32>, vector<197x32xf32>, vector<197x32xf32>, vector<197x32xf32>, vector<197x32xf32>, vector<197x32xf32>, vector<197x32xf32>, vector<197x32xf32> -> vector<197x512xf32>
    %55 = vector.extract_strided_slice %0 {offsets = [2, 0], sizes = [1, 30], strides = [1, 1]} : vector<3x128xf32> to vector<1x30xf32>
    %56 = vector.extract_strided_slice %54 {offsets = [0, 0], sizes = [53, 512], strides = [1, 1]} : vector<197x512xf32> to vector<53x512xf32>
    %c0_13 = arith.constant 0 : index
    %c0_14 = arith.constant 0 : index
    %c0_15 = arith.constant 0 : index
    %57 = vector.load %arg4[%c0_13, %c0_14, %c0_15] : memref<2x512x30xf32, #tpu.memory_space<vmem>>, vector<1x512x30xf32>
    %58 = vector.shape_cast %57 : vector<1x512x30xf32> to vector<512x30xf32>
    %cst_16 = arith.constant dense<0.000000e+00> : vector<53x30xf32>
    %59 = tpu.matmul %56, %58, %cst_16 {dimension_numbers = #tpu.dot_dimension_numbers<[1], [0], [0], [1], [0, 0, 1, 1], [], []>} : vector<53x512xf32>, vector<512x30xf32>, vector<53x30xf32> -> vector<53x30xf32>
    %60 = vector.broadcast %55 : vector<1x30xf32> to vector<53x30xf32>
    %61 = arith.addf %59, %60 : vector<53x30xf32>
    %cst_17 = arith.constant 0.000000e+00 : f32
    %62 = vector.broadcast %cst_17 : f32 to vector<53x98xf32>
    %63 = tpu.concatenate %61, %62 in 1 : vector<53x30xf32>, vector<53x98xf32> -> vector<53x128xf32>
    %cst_18 = arith.constant 0.000000e+00 : f32
    %64 = vector.broadcast %cst_18 : f32 to vector<11x128xf32>
    %65 = tpu.concatenate %63, %64 in 0 : vector<53x128xf32>, vector<11x128xf32> -> vector<64x128xf32>
    %c0_19 = arith.constant 0 : index
    %c0_20 = arith.constant 0 : index
    %c0_21 = arith.constant 0 : index
    %66 = vector.load %arg6[%c0_19, %c0_20, %c0_21] : memref<2x64x128xf32, #tpu.memory_space<vmem>>, vector<1x64x128xf32>
    %67 = vector.shape_cast %66 : vector<1x64x128xf32> to vector<64x128xf32>
    %68 = vector.shape_cast %65 : vector<64x128xf32> to vector<1x64x128xf32>
    tpu.vector_store %arg6[%c0_19, %c0_20, %c0_21], %68 {strides = array<i32>} : memref<2x64x128xf32, #tpu.memory_space<vmem>>, vector<1x64x128xf32>,
    %69 = vector.extract_strided_slice %54 {offsets = [144, 0], sizes = [53, 512], strides = [1, 1]} : vector<197x512xf32> to vector<53x512xf32>
    %c1 = arith.constant 1 : index
    %c0_22 = arith.constant 0 : index
    %c0_23 = arith.constant 0 : index
    %70 = vector.load %arg4[%c1, %c0_22, %c0_23] : memref<2x512x30xf32, #tpu.memory_space<vmem>>, vector<1x512x30xf32>
    %71 = vector.shape_cast %70 : vector<1x512x30xf32> to vector<512x30xf32>
    %cst_24 = arith.constant dense<0.000000e+00> : vector<53x30xf32>
    %72 = tpu.matmul %69, %71, %cst_24 {dimension_numbers = #tpu.dot_dimension_numbers<[1], [0], [0], [1], [0, 0, 1, 1], [], []>} : vector<53x512xf32>, vector<512x30xf32>, vector<53x30xf32> -> vector<53x30xf32>
    %73 = vector.broadcast %55 : vector<1x30xf32> to vector<53x30xf32>
    %74 = arith.addf %72, %73 : vector<53x30xf32>
    %cst_25 = arith.constant 0.000000e+00 : f32
    %75 = vector.broadcast %cst_25 : f32 to vector<53x98xf32>
    %76 = tpu.concatenate %74, %75 in 1 : vector<53x30xf32>, vector<53x98xf32> -> vector<53x128xf32>
    %cst_26 = arith.constant 0.000000e+00 : f32
    %77 = vector.broadcast %cst_26 : f32 to vector<11x128xf32>
    %78 = tpu.concatenate %76, %77 in 0 : vector<53x128xf32>, vector<11x128xf32> -> vector<64x128xf32>
    %c1_27 = arith.constant 1 : index
    %c0_28 = arith.constant 0 : index
    %c0_29 = arith.constant 0 : index
    %79 = vector.load %arg6[%c1_27, %c0_28, %c0_29] : memref<2x64x128xf32, #tpu.memory_space<vmem>>, vector<1x64x128xf32>
    %80 = vector.shape_cast %79 : vector<1x64x128xf32> to vector<64x128xf32>
    %81 = vector.shape_cast %78 : vector<64x128xf32> to vector<1x64x128xf32>
    tpu.vector_store %arg6[%c1_27, %c0_28, %c0_29], %81 {strides = array<i32>} : memref<2x64x128xf32, #tpu.memory_space<vmem>>, vector<1x64x128xf32>,
    return
  }
}

</mosaic_0001>

<bundles_post_ra>
// kernel: siamrpn_forward.1
= control target key start
LH: loop header
LB: loop body
LE: loop exit
PB: predicated region body
PF: predicated region fallthrough
CT: control target
= control target key end

     0   :  { %vm64_vm0 = vcmask 261120   ;;  %vm652_vm1 = vcmask 1045504   ;;  %vm487_vm2 = vcmask 1046528   ;;  %s6654_s26 = smov 8   ;;  %vm819_vm3 = vcmask 1043456   ;;  %s6655_s27 = smov 24   ;;  %s11464_s1 = inlined_call_operand.vmem [shape: f32[32,8], index: 1, kind: input, shape index: {}]   ;;  %s11465_s0 = inlined_call_operand.vmem [shape: f32[288,32], index: 0, kind: input, shape index: {}]   ;;  %s11466_s2 = inlined_call_operand.vmem [shape: f32[72,16], index: 2, kind: input, shape index: {}]   ;;  %s11467_s3 = inlined_call_operand.vmem [shape: f32[144,32], index: 3, kind: input, shape index: {}]   ;;  %s11468_s5 = inlined_call_operand.vmem [shape: f32[3,128], index: 5, kind: input, shape index: {}]   ;;  %s11469_s4 = inlined_call_operand.vmem [shape: f32[2,512,30], index: 4, kind: input, shape index: {}]   ;;  %s11470_s6 = inlined_call_operand.vmem [shape: f32[2,64,128], index: 6, kind: output, shape index: {}]  }
   0x1   :  { %v63_v0 = vld [vmem:[%s11464_s1 + $0x18] sm:$0xff]  ;;  %v62_v1 = vld [vmem:[%s11464_s1 + $0x10] sm:$0xff]  ;;  %v24_v2 = vld [vmem:[%s11465_s0] sm:$0xff]  ;;  %vm986_vm4 = vcmask 1042432   ;;  %s6656_s28 = smov 32   ;;  %vm1153_vm5 = vcmask 1041408  }
   0x2   :  { %5617 = vmatprep.subr.mxu0 %v63_v0  ;;  %v61_v3 = vld [vmem:[%s11464_s1 + $0x8] sm:$0xff]  ;;  %5625 = vmatprep.mubr.msk.f32.mxu0 %vm64_vm0, %v24_v2  ;;  %v60_v4 = vld [vmem:[%s11464_s1] sm:$0xff]  ;;  %v26_v6 = vld [vmem:[%s11465_s0 + $0x10] sm:$0xff]  ;;  %s6657_s29 = smov 40   ;;  %vm6659_vm6 = vmmov 0   ;;  %s6660_s23 = smov 48  }
   0x3   :  { %5618 = vmatpush3.msra.mxu0 %v63_v0  ;;  %v25_v5 = vld [vmem:[%s11465_s0 + $0x8] sm:$0xff]  ;;  %v27_v7 = vld [vmem:[%s11465_s0 + $0x18] sm:$0xff]  ;;  %v28_v8 = vld [vmem:[%s11465_s0 + $0x20] sm:$0xff]  ;;  %s6662_s24 = smov 56   ;;  %vm1630_vm7 = vcmask 64512   ;;  %vm1664_vm8 = vcmask 130048  }
   0x4   :  { %5619 = vmatprep.subr.mxu0 %v62_v1  ;;  %v29_v9 = vld [vmem:[%s11465_s0 + $0x28] sm:$0xff]  ;;  %v30_v10 = vld [vmem:[%s11465_s0 + $0x30] sm:$0xff]  ;;  %v31_v11 = vld [vmem:[%s11465_s0 + $0x38] sm:$0xff]  ;;  %vm1698_vm9 = vcmask 195584   ;;  %vm1765_vm10 = vcmask 326656   ;;  %vm1799_vm11 = vcmask 392192  }
   0x5   :  { %5620 = vmatpush3.msra.mxu0 %v62_v1  ;;  %v32_v12 = vld [vmem:[%s11465_s0 + $0x40] sm:$0xff]  ;;  %v33_v13 = vld [vmem:[%s11465_s0 + $0x48] sm:$0xff]  ;;  %v34_v14 = vld [vmem:[%s11465_s0 + $0x50] sm:$0xff]  ;;  %vm1833_vm12 = vcmask 457728   ;;  %vm1867_vm13 = vcmask 523264   ;;  %vm1914_vm14 = vcmask 588800  }
   0x6   :  { %5621 = vmatprep.subr.mxu0 %v61_v3  ;;  %v35_v15 = vld [vmem:[%s11465_s0 + $0x58] sm:$0xff]  ;;  %v36_v16 = vld [vmem:[%s11465_s0 + $0x60] sm:$0xff]  ;;  %v37_v17 = vld [vmem:[%s11465_s0 + $0x68] sm:$0xff]  ;;  %s6663_s1 = smov 96   ;;  %s6664_s13 = smov 80   ;;  %vm3371_vm15 = vcmask 654336  }
   0x7   :  { %5622 = vmatpush3.msra.mxu0 %v61_v3  ;;  %v38_v18 = vld [vmem:[%s11465_s0 + $0x70] sm:$0xff]  ;;  %v39_v19 = vld [vmem:[%s11465_s0 + $0x78] sm:$0xff]  ;;  %v40_v20 = vld [vmem:[%s11465_s0 + $0x80] sm:$0xff] }
   0x8   :  { %5623 = vmatprep.subr.mxu0 %v60_v4  ;;  %v41_v21 = vld [vmem:[%s11465_s0 + $0x88] sm:$0xff]  ;;  %v42_v22 = vld [vmem:[%s11465_s0 + $0x90] sm:$0xff]  ;;  %v43_v23 = vld [vmem:[%s11465_s0 + $0x98] sm:$0xff] }
   0x9   :  { %5624 = vmatpush3.msra.mxu0 %v60_v4  ;;  %v44_v24 = vld [vmem:[%s11465_s0 + $0xa0] sm:$0xff]  ;;  %v45_v25 = vld [vmem:[%s11465_s0 + $0xa8] sm:$0xff]  ;;  %v46_v26 = vld [vmem:[%s11465_s0 + $0xb0] sm:$0xff] }
   0xa   :  { %5626 = vmatmul.mubr.msk.f32.vlgmr.msra.gmra.mxu0 %vm64_vm0, %v25_v5  ;;  %v47_v27 = vld [vmem:[%s11465_s0 + $0xb8] sm:$0xff]  ;;  %v48_v28 = vld [vmem:[%s11465_s0 + $0xc0] sm:$0xff]  ;;  %v49_v29 = vld [vmem:[%s11465_s0 + $0xc8] sm:$0xff] }
   0xb   :  { %5628 = vmatprep.mubr.msk.f32.mxu0 %vm64_vm0, %v26_v6  ;;  %v50_v30 = vld [vmem:[%s11465_s0 + $0xd0] sm:$0xff]  ;;  %v51_v31 = vld [vmem:[%s11465_s0 + $0xd8] sm:$0xff]  ;;  %v52_v32 = vld [vmem:[%s11465_s0 + $0xe0] sm:$0xff] }
   0xc   :  { %v53_v33 = vld [vmem:[%s11465_s0 + $0xe8] sm:$0xff]  ;;  %v54_v34 = vld [vmem:[%s11465_s0 + $0xf0] sm:$0xff]  ;;  %v55_v35 = vld [vmem:[%s11465_s0 + $0xf8] sm:$0xff] }
   0xd   :  { %v56_v36 = vld [vmem:[%s11465_s0 + $0x100] sm:$0xff]  ;;  %v57_v37 = vld [vmem:[%s11465_s0 + $0x108] sm:$0xff]  ;;  %v58_v38 = vld [vmem:[%s11465_s0 + $0x110] sm:$0xff] }
   0xe   :  { %5629 = vmatmul.mubr.msk.f32.gmra.mxu0 %vm64_vm0, %v27_v7  ;;  %v59_v39 = vld [vmem:[%s11465_s0 + $0x118] sm:$0xff]  ;;  %s6653_s0 = smov 16  }
   0xf   :  { %5631 = vmatprep.mubr.msk.f32.mxu0 %vm64_vm0, %v28_v8 }
  0x12   :  { %5632 = vmatmul.mubr.msk.f32.gmra.mxu0 %vm64_vm0, %v29_v9 }
  0x13   :  { %5634 = vmatprep.mubr.msk.f32.mxu0 %vm64_vm0, %v30_v10 }
  0x16   :  { %5635 = vmatmul.mubr.msk.f32.gmra.mxu0 %vm64_vm0, %v31_v11 }
  0x17   :  { %5637 = vmatprep.mubr.msk.f32.mxu0 %vm64_vm0, %v32_v12 }
  0x1a   :  { %5638 = vmatmul.mubr.msk.f32.gmra.mxu0 %vm64_vm0, %v33_v13 }
  0x1b   :  { %5640 = vmatprep.mubr.msk.f32.mxu0 %vm64_vm0, %v34_v14 }
  0x1e   :  { %5641 = vmatmul.mubr.msk.f32.gmra.mxu0 %vm64_vm0, %v35_v15 }
  0x1f   :  { %5643 = vmatprep.mubr.msk.f32.mxu0 %vm64_vm0, %v36_v16 }
  0x22   :  { %5644 = vmatmul.mubr.msk.f32.gmra.mxu0 %vm64_vm0, %v37_v17 }
  0x23   :  { %5646 = vmatprep.mubr.msk.f32.mxu0 %vm64_vm0, %v38_v18 }
  0x26   :  { %5647 = vmatmul.mubr.msk.f32.gmra.mxu0 %vm64_vm0, %v39_v19 }
  0x27   :  { %5649 = vmatprep.mubr.msk.f32.mxu0 %vm64_vm0, %v40_v20 }
  0x2a   :  { %5650 = vmatmul.mubr.msk.f32.gmra.mxu0 %vm64_vm0, %v41_v21 }
  0x2b   :  { %5652 = vmatprep.mubr.msk.f32.mxu0 %vm64_vm0, %v42_v22 }
  0x2e   :  { %5653 = vmatmul.mubr.msk.f32.gmra.mxu0 %vm64_vm0, %v43_v23 }
  0x2f   :  { %5655 = vmatprep.mubr.msk.f32.mxu0 %vm64_vm0, %v44_v24 }
  0x32   :  { %5656 = vmatmul.mubr.msk.f32.gmra.mxu0 %vm64_vm0, %v45_v25 }
  0x33   :  { %5658 = vmatprep.mubr.msk.f32.mxu0 %vm64_vm0, %v46_v26 }
  0x36   :  { %5659 = vmatmul.mubr.msk.f32.gmra.mxu0 %vm64_vm0, %v47_v27 }
  0x37   :  { %5661 = vmatprep.mubr.msk.f32.mxu0 %vm64_vm0, %v48_v28 }
  0x3a   :  { %5662 = vmatmul.mubr.msk.f32.gmra.mxu0 %vm64_vm0, %v49_v29 }
  0x3b   :  { %5664 = vmatprep.mubr.msk.f32.mxu0 %vm64_vm0, %v50_v30 }
  0x3e   :  { %5665 = vmatmul.mubr.msk.f32.gmra.mxu0 %vm64_vm0, %v51_v31 }
  0x3f   :  { %5667 = vmatprep.mubr.msk.f32.mxu0 %vm64_vm0, %v52_v32 }
  0x42   :  { %5668 = vmatmul.mubr.msk.f32.gmra.mxu0 %vm64_vm0, %v53_v33 }
  0x43   :  { %5670 = vmatprep.mubr.msk.f32.mxu0 %vm64_vm0, %v54_v34 }
  0x46   :  { %5671 = vmatmul.mubr.msk.f32.gmra.mxu0 %vm64_vm0, %v55_v35 }
  0x47   :  { %5673 = vmatprep.mubr.msk.f32.mxu0 %vm64_vm0, %v56_v36 }
  0x4a   :  { %5674 = vmatmul.mubr.msk.f32.gmra.mxu0 %vm64_vm0, %v57_v37 }
  0x4b   :  { %5676 = vmatprep.mubr.msk.f32.mxu0 %vm64_vm0, %v58_v38 }
  0x4e   :  { %5677 = vmatmul.mubr.msk.f32.gmra.mxu0 %vm64_vm0, %v59_v39 }
  0xca   :  { %v5627_v40 = vpop.f32.mrf.mxu0 }
  0xcb   :  { %v6857_v41 = vmax.f32 %v5627_v40, 0.0 }
  0xcc   :  { %v239_v42 = vpop.f32.mrf.mxu0 }
  0xcd   :  { %11560 = vst [vmem:[#allocation2_spill] sm:$0xff] %v6857_v41  ;;  %v6859_v43 = vmax.f32 %v239_v42, 0.0  ;;  %v654_v45 = vrot.slane %v6857_v41, 2  ;;  %v489_v49 = vrot.slane %v6857_v41, 1  ;;  %v820_v1 = vrot.slane %v6857_v41, 4 }
  0xce   :  { %v5630_v44 = vpop.f32.mrf.mxu0  ;;  %v987_v6 = vrot.slane %v6857_v41, 5  ;;  %v1154_v14 = vrot.slane %v6857_v41, 6 }
  0xcf   :  { %11561 = vst [vmem:[#allocation3_spill] sm:$0xff] %v6859_v43  ;;  %v6862_v46 = vmax.f32 %v5630_v44, 0.0  ;;  %v653_v47 = vrot.slane %v6859_v43, 2  ;;  %v488_v48 = vrot.slane %v6859_v43, 1 }
  0xd0   :  { %v249_v50 = vpop.f32.mrf.mxu0 }
  0xd1   :  { %v6867_v51 = vmax.f32 %v249_v50, 0.0  ;;  %v655_v52 = vsel %vm652_vm1, %v653_v47, %v654_v45  ;;  %v490_v53 = vsel %vm487_vm2, %v488_v48, %v489_v49  ;;  %v493_v55 = vrot.slane %v6862_v46, 1 }
  0xd2   :  { %718 = vrot.lane.b32.xlu1 %v655_v52, %s6653_s0  ;;  %553 = vrot.lane.b32.xlu0 %v490_v53, %s6654_s26  ;;  %v658_v59 = vrot.slane %v6862_v46, 2  ;;  %v5633_v63 = vpop.f32.mrf.mxu0  ;;  %v823_v0 = vrot.slane %v6862_v46, 4  ;;  %v990_v7 = vrot.slane %v6862_v46, 5  ;;  %v1157_v13 = vrot.slane %v6862_v46, 6 }
  0xd3   :  { %11562 = vst [vmem:[#allocation4_spill] sm:$0xff] %v6867_v51  ;;  %v491_v54 = vrot.slane %v6867_v51, 1  ;;  %v656_v58 = vrot.slane %v6867_v51, 2  ;;  %v821_v62 = vrot.slane %v6867_v51, 4  ;;  %v988_v4 = vrot.slane %v6867_v51, 5 }
  0xd4   :  { %v259_v5 = vpop.f32.mrf.mxu0  ;;  %v6895_v8 = vmax.f32 %v5633_v63, 0.0  ;;  %v1155_v12 = vrot.slane %v6867_v51, 6 }
  0xd5   :  { %v494_v56 = vsel %vm487_vm2, %v491_v54, %v493_v55  ;;  %v492_v57 = vsel %vm487_vm2, %v489_v49, %v491_v54  ;;  %v659_v60 = vsel %vm652_vm1, %v656_v58, %v658_v59  ;;  %v657_v61 = vsel %vm652_vm1, %v654_v45, %v656_v58 }
  0xd6   :  { %557 = vrot.lane.b32.xlu1 %v494_v56, %s6654_s26  ;;  %555 = vrot.lane.b32.xlu0 %v492_v57, %s6654_s26  ;;  %v824_v2 = vsel %vm819_vm3, %v821_v62, %v823_v0  ;;  %v822_v3 = vsel %vm819_vm3, %v820_v1, %v821_v62  ;;  %v6897_v9 = vmax.f32 %v259_v5, 0.0  ;;  %v989_v10 = vsel %vm986_vm4, %v987_v6, %v988_v4  ;;  %v5636_v23 = vpop.f32.mrf.mxu0 }
  0xd7   :  { %v991_v11 = vsel %vm986_vm4, %v988_v4, %v990_v7  ;;  %v1158_v15 = vsel %vm1153_vm5, %v1155_v12, %v1157_v13  ;;  %v1156_v16 = vsel %vm1153_vm5, %v1154_v14, %v1155_v12  ;;  %v497_v18 = vrot.slane %v6895_v8, 1 }
  0xd8   :  { %v495_v17 = vrot.slane %v6897_v9, 1  ;;  %v660_v21 = vrot.slane %v6897_v9, 2  ;;  %v662_v22 = vrot.slane %v6895_v8, 2  ;;  %v825_v26 = vrot.slane %v6897_v9, 4  ;;  %v269_v28 = vpop.f32.mrf.mxu0 }
  0xd9   :  { %v827_v27 = vrot.slane %v6895_v8, 4  ;;  %v992_v31 = vrot.slane %v6897_v9, 5  ;;  %v994_v32 = vrot.slane %v6895_v8, 5  ;;  %v6942_v33 = vmax.f32 %v5636_v23, 0.0 }
  0xda   :  { %722 = vrot.lane.b32.xlu1 %v659_v60, %s6653_s0  ;;  %720 = vrot.lane.b32.xlu0 %v657_v61, %s6653_s0  ;;  %v6913_v19 = vsel %vm487_vm2, %v495_v17, %v497_v18  ;;  %v6916_v20 = vsel %vm487_vm2, %v493_v55, %v495_v17  ;;  %v6925_v24 = vsel %vm652_vm1, %v658_v59, %v660_v21  ;;  %v6944_v34 = vmax.f32 %v269_v28, 0.0  ;;  %v5639_v50 = vpop.f32.mrf.mxu0 }
  0xdb   :  { %v6928_v25 = vsel %vm652_vm1, %v660_v21, %v662_v22  ;;  %v826_v29 = vsel %vm819_vm3, %v823_v0, %v825_v26  ;;  %v828_v30 = vsel %vm819_vm3, %v825_v26, %v827_v27  ;;  %v995_v35 = vsel %vm986_vm4, %v992_v31, %v994_v32 }
  0xdc   :  { %v993_v36 = vsel %vm986_vm4, %v990_v7, %v992_v31  ;;  %v1159_v37 = vrot.slane %v6897_v9, 6  ;;  %v1161_v38 = vrot.slane %v6895_v8, 6  ;;  %v499_v42 = vrot.slane %v6944_v34, 1  ;;  %v279_v56 = vpop.f32.mrf.mxu0 }
  0xdd   :  { %v501_v44 = vrot.slane %v6942_v33, 1  ;;  %v664_v48 = vrot.slane %v6944_v34, 2  ;;  %v666_v49 = vrot.slane %v6942_v33, 2  ;;  %v829_v54 = vrot.slane %v6944_v34, 4 }
  0xde   :  { %889 = vrot.lane.b32.xlu1 %v824_v2, %s6655_s27  ;;  %887 = vrot.lane.b32.xlu0 %v822_v3, %s6655_s27  ;;  %v1160_v39 = vsel %vm1153_vm5, %v1157_v13, %v1159_v37  ;;  %v1162_v40 = vsel %vm1153_vm5, %v1159_v37, %v1161_v38  ;;  %v6962_v47 = vsel %vm487_vm2, %v497_v18, %v499_v42  ;;  %v831_v55 = vrot.slane %v6942_v33, 4  ;;  %v5642_v13 = vpop.f32.mrf.mxu0 }
  0xdf   :  { %v6959_v45 = vsel %vm487_vm2, %v499_v42, %v501_v44  ;;  %v6971_v52 = vsel %vm652_vm1, %v662_v22, %v664_v48  ;;  %v6974_v53 = vsel %vm652_vm1, %v664_v48, %v666_v49  ;;  %v830_v57 = vsel %vm819_vm3, %v827_v27, %v829_v54 }
  0xe0   :  { %v832_v58 = vsel %vm819_vm3, %v829_v54, %v831_v55  ;;  %v996_v59 = vrot.slane %v6944_v34, 5  ;;  %v998_v60 = vrot.slane %v6942_v33, 5  ;;  %v6988_v61 = vmax.f32 %v5639_v50, 0.0  ;;  %v289_v18 = vpop.f32.mrf.mxu0 }
  0xe1   :  { %v6990_v62 = vmax.f32 %v279_v56, 0.0  ;;  %v1163_v1 = vrot.slane %v6944_v34, 6  ;;  %v1165_v2 = vrot.slane %v6942_v33, 6  ;;  %v7034_v27 = vmax.f32 %v5642_v13, 0.0 }
  0xe2   :  { %1054 = vrot.lane.b32.xlu1 %v989_v10, %s6656_s28  ;;  %1056 = vrot.lane.b32.xlu0 %v991_v11, %s6656_s28  ;;  %v999_v63 = vsel %vm986_vm4, %v996_v59, %v998_v60  ;;  %v997_v0 = vsel %vm986_vm4, %v994_v32, %v996_v59  ;;  %v505_v6 = vrot.slane %v6988_v61, 1  ;;  %v670_v12 = vrot.slane %v6988_v61, 2 }
  0xe3   :  { %v1164_v3 = vsel %vm1153_vm5, %v1161_v38, %v1163_v1  ;;  %v1166_v4 = vsel %vm1153_vm5, %v1163_v1, %v1165_v2  ;;  %v503_v5 = vrot.slane %v6990_v62, 1  ;;  %v668_v11 = vrot.slane %v6990_v62, 2 }
  0xe4   :  { %v835_v17 = vrot.slane %v6988_v61, 4  ;;  %v1000_v23 = vrot.slane %v6990_v62, 5  ;;  %v1002_v26 = vrot.slane %v6988_v61, 5  ;;  %v7036_v28 = vmax.f32 %v289_v18, 0.0 }
  0xe5   :  { %v7005_v7 = vsel %vm487_vm2, %v503_v5, %v505_v6  ;;  %v7008_v10 = vsel %vm487_vm2, %v501_v44, %v503_v5  ;;  %v7017_v14 = vsel %vm652_vm1, %v666_v49, %v668_v11  ;;  %v1167_v31 = vrot.slane %v6990_v62, 6 }
  0xe6   :  { %1223 = vrot.lane.b32.xlu1 %v1158_v15, %s6657_s29  ;;  %1221 = vrot.lane.b32.xlu0 %v1156_v16, %s6657_s29  ;;  %v7020_v15 = vsel %vm652_vm1, %v668_v11, %v670_v12  ;;  %v833_v16 = vrot.slane %v6990_v62, 4  ;;  %v11471_v32 = vrot.slane %v6988_v61, 6  ;;  %v507_v37 = vrot.slane %v7036_v28, 1 }
  0xe7   :  { %v509_v38 = vrot.slane %v7034_v27, 1  ;;  %v672_v44 = vrot.slane %v7036_v28, 2  ;;  %v674_v48 = vrot.slane %v7034_v27, 2  ;;  %v839_v56 = vrot.slane %v7034_v27, 4 }
  0xe8   :  { %v834_v21 = vsel %vm819_vm3, %v831_v55, %v833_v16  ;;  %v836_v22 = vsel %vm819_vm3, %v833_v16, %v835_v17  ;;  %v7056_v42 = vsel %vm487_vm2, %v505_v6, %v507_v37  ;;  %v837_v55 = vrot.slane %v7036_v28, 4 }
  0xe9   :  { %v7065_v50 = vsel %vm652_vm1, %v670_v12, %v672_v44  ;;  %v7068_v54 = vsel %vm652_vm1, %v672_v44, %v674_v48 }
  0xea   :  { %561 = vrot.lane.b32.xlu0 %v6913_v19, %s6654_s26  ;;  %559 = vrot.lane.b32.xlu1 %v6916_v20, %s6654_s26  ;;  %v838_v59 = vsel %vm819_vm3, %v835_v17, %v837_v55 }
  0xee   :  { %724 = vrot.lane.b32.xlu0 %v6925_v24, %s6653_s0  ;;  %726 = vrot.lane.b32.xlu1 %v6928_v25, %s6653_s0 }
  0xf2   :  { %891 = vrot.lane.b32.xlu0 %v826_v29, %s6655_s27  ;;  %893 = vrot.lane.b32.xlu1 %v828_v30, %s6655_s27  ;;  %v1003_v29 = vsel %vm986_vm4, %v1000_v23, %v1002_v26  ;;  %v1001_v30 = vsel %vm986_vm4, %v998_v60, %v1000_v23  ;;  %v840_v60 = vsel %vm819_vm3, %v837_v55, %v839_v56 }
  0xf6   :  { %1060 = vrot.lane.b32.xlu0 %v995_v35, %s6656_s28  ;;  %1058 = vrot.lane.b32.xlu1 %v993_v36, %s6656_s28  ;;  %v1168_v35 = vsel %vm1153_vm5, %v1165_v2, %v1167_v31  ;;  %v1170_v36 = vsel %vm1153_vm5, %v1167_v31, %v11471_v32 }
  0xfa   :  { %1225 = vrot.lane.b32.xlu0 %v1160_v39, %s6657_s29  ;;  %1227 = vrot.lane.b32.xlu1 %v1162_v40, %s6657_s29  ;;  %v5645_v39 = vpop.f32.mrf.mxu0  ;;  %v7053_v40 = vsel %vm487_vm2, %v507_v37, %v509_v38 }
  0xfc   :  { %v299_v49 = vpop.f32.mrf.mxu0 }
  0xfe   :  { %565 = vrot.lane.b32.xlu0 %v6959_v45, %s6654_s26  ;;  %563 = vrot.lane.b32.xlu1 %v6962_v47, %s6654_s26  ;;  %v5648_v5 = vpop.f32.mrf.mxu0 }
  0xff   :  { %v7116_v23 = vmax.f32 %v5648_v5, 0.0 }
 0x100   :  { %v309_v16 = vpop.f32.mrf.mxu0 }
 0x101   :  { %v847_v5 = vrot.slane %v7116_v23, 4 }
 0x102   :  { %728 = vrot.lane.b32.xlu0 %v6971_v52, %s6653_s0  ;;  %730 = vrot.lane.b32.xlu1 %v6974_v53, %s6653_s0 }
 0x106   :  { %895 = vrot.lane.b32.xlu0 %v830_v57, %s6655_s27  ;;  %897 = vrot.lane.b32.xlu1 %v832_v58, %s6655_s27  ;;  %v7076_v57 = vmax.f32 %v5645_v39, 0.0  ;;  %v7078_v58 = vmax.f32 %v299_v49, 0.0  ;;  %v517_v39 = vrot.slane %v7116_v23, 1  ;;  %v5651_v49 = vpop.f32.mrf.mxu0 }
 0x108   :  { %v676_v12 = vrot.slane %v7078_v58, 2  ;;  %v678_v13 = vrot.slane %v7076_v57, 2  ;;  %v1008_v31 = vrot.slane %v7078_v58, 5 }
 0x10a   :  { %1064 = vrot.lane.b32.xlu0 %v999_v63, %s6656_s28  ;;  %1062 = vrot.lane.b32.xlu1 %v997_v0, %s6656_s28  ;;  %v1004_v63 = vrot.slane %v7036_v28, 5  ;;  %v1006_v0 = vrot.slane %v7034_v27, 5  ;;  %v7105_v17 = vsel %vm652_vm1, %v674_v48, %v676_v12  ;;  %v7108_v18 = vsel %vm652_vm1, %v676_v12, %v678_v13 }
 0x10b   :  { %v7164_v12 = vmax.f32 %v5651_v49, 0.0 }
 0x10c   :  { %v1007_v1 = vsel %vm986_vm4, %v1004_v63, %v1006_v0  ;;  %v1005_v2 = vsel %vm986_vm4, %v1002_v26, %v1004_v63  ;;  %v7118_v26 = vmax.f32 %v309_v16, 0.0  ;;  %v1009_v37 = vsel %vm986_vm4, %v1006_v0, %v1008_v31 }
 0x10e   :  { %1229 = vrot.lane.b32.xlu0 %v1164_v3, %s6657_s29  ;;  %1231 = vrot.lane.b32.xlu1 %v1166_v4, %s6657_s29  ;;  %v511_v3 = vrot.slane %v7078_v58, 1  ;;  %v513_v4 = vrot.slane %v7076_v57, 1 }
 0x110   :  { %v7093_v6 = vsel %vm487_vm2, %v511_v3, %v513_v4  ;;  %v7096_v11 = vsel %vm487_vm2, %v509_v38, %v511_v3  ;;  %v515_v38 = vrot.slane %v7118_v26, 1 }
 0x112   :  { %569 = vrot.lane.b32.xlu0 %v7005_v7, %s6654_s26  ;;  %567 = vrot.lane.b32.xlu1 %v7008_v10, %s6654_s26  ;;  %v7137_v55 = vsel %vm487_vm2, %v515_v38, %v517_v39 }
 0x116   :  { %732 = vrot.lane.b32.xlu0 %v7017_v14, %s6653_s0  ;;  %734 = vrot.lane.b32.xlu1 %v7020_v15, %s6653_s0 }
 0x11a   :  { %899 = vrot.lane.b32.xlu0 %v834_v21, %s6655_s27  ;;  %901 = vrot.lane.b32.xlu1 %v836_v22, %s6655_s27  ;;  %v841_v21 = vrot.slane %v7078_v58, 4  ;;  %v843_v22 = vrot.slane %v7076_v57, 4 }
 0x11e   :  { %1068 = vrot.lane.b32.xlu0 %v1003_v29, %s6656_s28  ;;  %1066 = vrot.lane.b32.xlu1 %v1001_v30, %s6656_s28  ;;  %v842_v29 = vsel %vm819_vm3, %v839_v56, %v841_v21  ;;  %v844_v30 = vsel %vm819_vm3, %v841_v21, %v843_v22  ;;  %v7140_v56 = vsel %vm487_vm2, %v513_v4, %v515_v38  ;;  %v845_v4 = vrot.slane %v7118_v26, 4 }
 0x122   :  { %1233 = vrot.lane.b32.xlu0 %v1168_v35, %s6657_s29  ;;  %1235 = vrot.lane.b32.xlu1 %v1170_v36, %s6657_s29  ;;  %v1010_v35 = vrot.slane %v7076_v57, 5 }
 0x124   :  { %v1011_v36 = vsel %vm986_vm4, %v1008_v31, %v1010_v35  ;;  %v1012_v31 = vrot.slane %v7118_v26, 5 }
 0x126   :  { %573 = vrot.lane.b32.xlu0 %v7053_v40, %s6654_s26  ;;  %571 = vrot.lane.b32.xlu1 %v7056_v42, %s6654_s26 }
 0x12a   :  { %736 = vrot.lane.b32.xlu0 %v7065_v50, %s6653_s0  ;;  %738 = vrot.lane.b32.xlu1 %v7068_v54, %s6653_s0 }
 0x12e   :  { %903 = vrot.lane.b32.xlu0 %v838_v59, %s6655_s27  ;;  %905 = vrot.lane.b32.xlu1 %v840_v60, %s6655_s27  ;;  %v680_v59 = vrot.slane %v7118_v26, 2  ;;  %v682_v60 = vrot.slane %v7116_v23, 2 }
 0x130   :  { %v7156_v3 = vsel %vm652_vm1, %v680_v59, %v682_v60 }
 0x132   :  { %1072 = vrot.lane.b32.xlu0 %v1007_v1, %s6656_s28  ;;  %1070 = vrot.lane.b32.xlu1 %v1005_v2, %s6656_s28  ;;  %v319_v1 = vpop.f32.mrf.mxu0  ;;  %v7153_v2 = vsel %vm652_vm1, %v678_v13, %v680_v59  ;;  %v1013_v59 = vsel %vm986_vm4, %v1010_v35, %v1012_v31 }
 0x133   :  { %v7166_v16 = vmax.f32 %v319_v1, 0.0  ;;  %v521_v1 = vrot.slane %v7164_v12, 1 }
 0x135   :  { %v684_v35 = vrot.slane %v7166_v16, 2 }
 0x136   :  { %577 = vrot.lane.b32.xlu0 %v7093_v6, %s6654_s26  ;;  %575 = vrot.lane.b32.xlu1 %v7096_v11, %s6654_s26 }
 0x13a   :  { %740 = vrot.lane.b32.xlu0 %v7105_v17, %s6653_s0  ;;  %742 = vrot.lane.b32.xlu1 %v7108_v18, %s6653_s0 }
 0x13e   :  { %907 = vrot.lane.b32.xlu0 %v842_v29, %s6655_s27  ;;  %909 = vrot.lane.b32.xlu1 %v844_v30, %s6655_s27  ;;  %v846_v29 = vsel %vm819_vm3, %v843_v22, %v845_v4  ;;  %v848_v30 = vsel %vm819_vm3, %v845_v4, %v847_v5  ;;  %v519_v22 = vrot.slane %v7166_v16, 1 }
 0x140   :  { %v7193_v32 = vsel %vm487_vm2, %v519_v22, %v521_v1 }
 0x142   :  { %1076 = vrot.lane.b32.xlu0 %v1011_v36, %s6656_s28  ;;  %1074 = vrot.lane.b32.xlu1 %v1009_v37, %s6656_s28  ;;  %v1014_v36 = vrot.slane %v7116_v23, 5 }
 0x144   :  { %v7132_v44 = vpop.permute.xlu1 %718  ;;  %v7134_v48 = vpop.permute.xlu0 %553  ;;  %v1015_v49 = vsel %vm986_vm4, %v1012_v31, %v1014_v36  ;;  %v686_v31 = vrot.slane %v7164_v12, 2 }
 0x145   :  { %11563 = vst [vmem:[#allocation5_spill] sm:$0xff] %v7132_v44  ;;  %11564 = vst [vmem:[#allocation6_spill] sm:$0xff] %v7134_v48 }
 0x146   :  { %581 = vrot.lane.b32.xlu0 %v7137_v55, %s6654_s26  ;;  %579 = vrot.lane.b32.xlu1 %v7140_v56, %s6654_s26 }
 0x148   :  { %v7148_v63 = vpop.permute.xlu1 %557  ;;  %v7150_v0 = vpop.permute.xlu0 %555 }
 0x149   :  { %11565 = vst [vmem:[#allocation7_spill] sm:$0xff] %v7148_v63  ;;  %11566 = vst [vmem:[#allocation8_spill] sm:$0xff] %v7150_v0  ;;  %v7209_v63 = vsel %vm652_vm1, %v682_v60, %v684_v35  ;;  %v1016_v0 = vrot.slane %v7166_v16, 5 }
 0x14a   :  { %744 = vrot.lane.b32.xlu0 %v7153_v2, %s6653_s0  ;;  %746 = vrot.lane.b32.xlu1 %v7156_v3, %s6653_s0 }
 0x14c   :  { %v7168_v21 = vpop.permute.xlu1 %722  ;;  %v7170_v13 = vpop.permute.xlu0 %720 }
 0x14d   :  { %11567 = vst [vmem:[#allocation9_spill] sm:$0xff] %v7168_v21  ;;  %11568 = vst [vmem:[#allocation10_spill] sm:$0xff] %v7170_v13  ;;  %v7196_v21 = vsel %vm487_vm2, %v517_v39, %v519_v22  ;;  %v7212_v39 = vsel %vm652_vm1, %v684_v35, %v686_v31  ;;  %v849_v22 = vrot.slane %v7166_v16, 4 }
 0x14e   :  { %911 = vrot.lane.b32.xlu0 %v846_v29, %s6655_s27  ;;  %913 = vrot.lane.b32.xlu1 %v848_v30, %s6655_s27  ;;  %v5654_v30 = vpop.f32.mrf.mxu0 }
 0x14f   :  { %v850_v35 = vsel %vm819_vm3, %v847_v5, %v849_v22 }
 0x150   :  { %v7178_v37 = vpop.permute.xlu1 %889  ;;  %v7180_v38 = vpop.permute.xlu0 %887 }
 0x151   :  { %11569 = vst [vmem:[#allocation11_spill] sm:$0xff] %v7178_v37  ;;  %11570 = vst [vmem:[#allocation12_spill] sm:$0xff] %v7180_v38  ;;  %v329_v51 = vpop.f32.mrf.mxu0 }
 0x152   :  { %1080 = vrot.lane.b32.xlu0 %v1015_v49, %s6656_s28  ;;  %1078 = vrot.lane.b32.xlu1 %v1013_v59, %s6656_s28  ;;  %v7222_v37 = vmax.f32 %v329_v51, 0.0 }
 0x154   :  { %v7188_v4 = vpop.permute.xlu1 %1054  ;;  %v7190_v29 = vpop.permute.xlu0 %1056  ;;  %11576 = vst [vmem:[#allocation18_spill] sm:$0xff] %v7222_v37  ;;  %v523_v5 = vrot.slane %v7222_v37, 1  ;;  %v1020_v48 = vrot.slane %v7222_v37, 5 }
 0x155   :  { %11571 = vst [vmem:[#allocation13_spill] sm:$0xff] %v7188_v4  ;;  %11572 = vst [vmem:[#allocation14_spill] sm:$0xff] %v7190_v29  ;;  %v851_v29 = vrot.slane %v7164_v12, 4 }
 0x156   :  { %585 = vrot.lane.b32.xlu0 %v7193_v32, %s6654_s26  ;;  %583 = vrot.lane.b32.xlu1 %v7196_v21, %s6654_s26 }
 0x157   :  { %v852_v41 = vsel %vm819_vm3, %v849_v22, %v851_v29 }
 0x158   :  { %v7204_v49 = vpop.permute.xlu1 %1223  ;;  %v7206_v59 = vpop.permute.xlu0 %1221 }
 0x159   :  { %11573 = vst [vmem:[#allocation15_spill] sm:$0xff] %v7204_v49  ;;  %11574 = vst [vmem:[#allocation16_spill] sm:$0xff] %v7206_v59  ;;  %v7220_v49 = vmax.f32 %v5654_v30, 0.0  ;;  %v1018_v59 = vrot.slane %v7164_v12, 5 }
 0x15a   :  { %748 = vrot.lane.b32.xlu0 %v7209_v63, %s6653_s0  ;;  %750 = vrot.lane.b32.xlu1 %v7212_v39, %s6653_s0 }
 0x15b   :  { %11575 = vst [vmem:[#allocation17_spill] sm:$0xff] %v7220_v49  ;;  %v525_v22 = vrot.slane %v7220_v49, 1  ;;  %v855_v38 = vrot.slane %v7220_v49, 4 }
 0x15c   :  { %v7224_v13 = vpop.permute.xlu0 %561  ;;  %v7226_v60 = vpop.permute.xlu1 %559 }
 0x15d   :  { %11577 = vst [vmem:[#allocation19_spill] sm:$0xff] %v7224_v13  ;;  %11578 = vst [vmem:[#allocation20_spill] sm:$0xff] %v7226_v60  ;;  %v1019_v13 = vsel %vm986_vm4, %v1016_v0, %v1018_v59  ;;  %v1017_v60 = vsel %vm986_vm4, %v1014_v36, %v1016_v0  ;;  %v688_v0 = vrot.slane %v7222_v37, 2  ;;  %v690_v36 = vrot.slane %v7220_v49, 2 }
 0x15e   :  { %915 = vrot.lane.b32.xlu0 %v850_v35, %s6655_s27  ;;  %917 = vrot.lane.b32.xlu1 %v852_v41, %s6655_s27  ;;  %v5657_v41 = vpop.f32.mrf.mxu0 }
 0x160   :  { %v7234_v30 = vpop.permute.xlu0 %724  ;;  %v7236_v51 = vpop.permute.xlu1 %726 }
 0x161   :  { %11579 = vst [vmem:[#allocation21_spill] sm:$0xff] %v7234_v30  ;;  %11580 = vst [vmem:[#allocation22_spill] sm:$0xff] %v7236_v51  ;;  %v7249_v30 = vsel %vm487_vm2, %v523_v5, %v525_v22  ;;  %v7252_v51 = vsel %vm487_vm2, %v521_v1, %v523_v5  ;;  %v7268_v1 = vsel %vm652_vm1, %v688_v0, %v690_v36  ;;  %v853_v5 = vrot.slane %v7222_v37, 4 }
 0x162   :  { %1084 = vrot.lane.b32.xlu0 %v1019_v13, %s6656_s28  ;;  %1082 = vrot.lane.b32.xlu1 %v1017_v60, %s6656_s28  ;;  %11583 = vst [vmem:[#allocation25_spill] sm:$0xff] %v7249_v30  ;;  %11584 = vst [vmem:[#allocation26_spill] sm:$0xff] %v7252_v51 }
 0x163   :  { %11587 = vst [vmem:[#allocation29_spill] sm:$0xff] %v7268_v1  ;;  %v856_v43 = vsel %vm819_vm3, %v853_v5, %v855_v38 }
 0x164   :  { %v7244_v4 = vpop.permute.xlu0 %891  ;;  %v7246_v35 = vpop.permute.xlu1 %893 }
 0x165   :  { %11581 = vst [vmem:[#allocation23_spill] sm:$0xff] %v7244_v4  ;;  %11582 = vst [vmem:[#allocation24_spill] sm:$0xff] %v7246_v35  ;;  %v339_v35 = vpop.f32.mrf.mxu0  ;;  %v7265_v4 = vsel %vm652_vm1, %v686_v31, %v688_v0  ;;  %v854_v0 = vsel %vm819_vm3, %v851_v29, %v853_v5 }
 0x166   :  { %589 = vrot.lane.b32.xlu0 %v7249_v30, %s6654_s26  ;;  %587 = vrot.lane.b32.xlu1 %v7252_v51, %s6654_s26  ;;  %v1022_v30 = vrot.slane %v7220_v49, 5 }
 0x168   :  { %v7260_v13 = vpop.permute.xlu0 %1060  ;;  %v7262_v60 = vpop.permute.xlu1 %1058 }
 0x169   :  { %11585 = vst [vmem:[#allocation27_spill] sm:$0xff] %v7260_v13  ;;  %11586 = vst [vmem:[#allocation28_spill] sm:$0xff] %v7262_v60  ;;  %v7276_v13 = vmax.f32 %v5657_v41, 0.0  ;;  %v7278_v60 = vmax.f32 %v339_v35, 0.0 }
 0x16a   :  { %752 = vrot.lane.b32.xlu0 %v7265_v4, %s6653_s0  ;;  %754 = vrot.lane.b32.xlu1 %v7268_v1, %s6653_s0 }
 0x16b   :  { %11588 = vst [vmem:[#allocation30_spill] sm:$0xff] %v7276_v13  ;;  %11589 = vst [vmem:[#allocation31_spill] sm:$0xff] %v7278_v60  ;;  %v527_v29 = vrot.slane %v7278_v60, 1  ;;  %v529_v5 = vrot.slane %v7276_v13, 1  ;;  %v859_v1 = vrot.slane %v7276_v13, 4  ;;  %v1024_v37 = vrot.slane %v7278_v60, 5 }
 0x16c   :  { %v7280_v44 = vpop.permute.xlu0 %1225  ;;  %v7282_v31 = vpop.permute.xlu1 %1227  ;;  %v1026_v51 = vrot.slane %v7276_v13, 5 }
 0x16d   :  { %11590 = vst [vmem:[#allocation32_spill] sm:$0xff] %v7280_v44  ;;  %11591 = vst [vmem:[#allocation33_spill] sm:$0xff] %v7282_v31  ;;  %v1023_v44 = vsel %vm986_vm4, %v1020_v48, %v1022_v30  ;;  %v1021_v31 = vsel %vm986_vm4, %v1018_v59, %v1020_v48  ;;  %v692_v48 = vrot.slane %v7278_v60, 2  ;;  %v694_v59 = vrot.slane %v7276_v13, 2 }
 0x16e   :  { %919 = vrot.lane.b32.xlu0 %v854_v0, %s6655_s27  ;;  %921 = vrot.lane.b32.xlu1 %v856_v43, %s6655_s27  ;;  %v5660_v43 = vpop.f32.mrf.mxu0 }
 0x170   :  { %v7290_v41 = vpop.permute.xlu0 %565  ;;  %v7292_v35 = vpop.permute.xlu1 %563 }
 0x171   :  { %11592 = vst [vmem:[#allocation34_spill] sm:$0xff] %v7290_v41  ;;  %11593 = vst [vmem:[#allocation35_spill] sm:$0xff] %v7292_v35  ;;  %v7305_v41 = vsel %vm487_vm2, %v527_v29, %v529_v5  ;;  %v7308_v35 = vsel %vm487_vm2, %v525_v22, %v527_v29  ;;  %v7324_v22 = vsel %vm652_vm1, %v692_v48, %v694_v59  ;;  %v857_v29 = vrot.slane %v7278_v60, 4 }
 0x172   :  { %1088 = vrot.lane.b32.xlu0 %v1023_v44, %s6656_s28  ;;  %1086 = vrot.lane.b32.xlu1 %v1021_v31, %s6656_s28  ;;  %11596 = vst [vmem:[#allocation38_spill] sm:$0xff] %v7305_v41  ;;  %11597 = vst [vmem:[#allocation39_spill] sm:$0xff] %v7308_v35 }
 0x173   :  { %11601 = vst [vmem:[#allocation43_spill] sm:$0xff] %v7324_v22 }
 0x174   :  { %v7300_v49 = vpop.permute.xlu0 %728  ;;  %v7302_v0 = vpop.permute.xlu1 %730 }
 0x175   :  { %11594 = vst [vmem:[#allocation36_spill] sm:$0xff] %v7300_v49  ;;  %11595 = vst [vmem:[#allocation37_spill] sm:$0xff] %v7302_v0  ;;  %v349_v0 = vpop.f32.mrf.mxu0  ;;  %v7321_v49 = vsel %vm652_vm1, %v690_v36, %v692_v48  ;;  %v858_v48 = vsel %vm819_vm3, %v855_v38, %v857_v29 }
 0x176   :  { %593 = vrot.lane.b32.xlu0 %v7305_v41, %s6654_s26  ;;  %591 = vrot.lane.b32.xlu1 %v7308_v35, %s6654_s26  ;;  %11600 = vst [vmem:[#allocation42_spill] sm:$0xff] %v7321_v49  ;;  %v860_v35 = vsel %vm819_vm3, %v857_v29, %v859_v1 }
 0x178   :  { %v7316_v44 = vpop.permute.xlu0 %895  ;;  %v7318_v31 = vpop.permute.xlu1 %897 }
 0x179   :  { %11598 = vst [vmem:[#allocation40_spill] sm:$0xff] %v7316_v44  ;;  %11599 = vst [vmem:[#allocation41_spill] sm:$0xff] %v7318_v31  ;;  %v7332_v44 = vmax.f32 %v5660_v43, 0.0  ;;  %v7334_v31 = vmax.f32 %v349_v0, 0.0 }
 0x17a   :  { %756 = vrot.lane.b32.xlu0 %v7321_v49, %s6653_s0  ;;  %758 = vrot.lane.b32.xlu1 %v7324_v22, %s6653_s0 }
 0x17b   :  { %11602 = vst [vmem:[#allocation44_spill] sm:$0xff] %v7332_v44  ;;  %11603 = vst [vmem:[#allocation45_spill] sm:$0xff] %v7334_v31  ;;  %v531_v38 = vrot.slane %v7334_v31, 1  ;;  %v533_v29 = vrot.slane %v7332_v44, 1  ;;  %v863_v22 = vrot.slane %v7332_v44, 4  ;;  %v1028_v60 = vrot.slane %v7334_v31, 5 }
 0x17c   :  { %v7336_v41 = vpop.permute.xlu0 %1064  ;;  %v7338_v36 = vpop.permute.xlu1 %1062  ;;  %v1030_v49 = vrot.slane %v7332_v44, 5 }
 0x17d   :  { %11604 = vst [vmem:[#allocation46_spill] sm:$0xff] %v7336_v41  ;;  %11605 = vst [vmem:[#allocation47_spill] sm:$0xff] %v7338_v36  ;;  %v1027_v41 = vsel %vm986_vm4, %v1024_v37, %v1026_v51  ;;  %v1025_v36 = vsel %vm986_vm4, %v1022_v30, %v1024_v37  ;;  %v696_v37 = vrot.slane %v7334_v31, 2  ;;  %v698_v30 = vrot.slane %v7332_v44, 2 }
 0x17e   :  { %923 = vrot.lane.b32.xlu0 %v858_v48, %s6655_s27  ;;  %925 = vrot.lane.b32.xlu1 %v860_v35, %s6655_s27  ;;  %v5663_v35 = vpop.f32.mrf.mxu0 }
 0x180   :  { %v7346_v43 = vpop.permute.xlu0 %1229  ;;  %v7348_v0 = vpop.permute.xlu1 %1231 }
 0x181   :  { %11606 = vst [vmem:[#allocation48_spill] sm:$0xff] %v7346_v43  ;;  %11607 = vst [vmem:[#allocation49_spill] sm:$0xff] %v7348_v0  ;;  %v7361_v43 = vsel %vm487_vm2, %v531_v38, %v533_v29  ;;  %v7364_v0 = vsel %vm487_vm2, %v529_v5, %v531_v38  ;;  %v7380_v5 = vsel %vm652_vm1, %v696_v37, %v698_v30  ;;  %v861_v38 = vrot.slane %v7334_v31, 4 }
 0x182   :  { %1092 = vrot.lane.b32.xlu0 %v1027_v41, %s6656_s28  ;;  %1090 = vrot.lane.b32.xlu1 %v1025_v36, %s6656_s28  ;;  %11610 = vst [vmem:[#allocation52_spill] sm:$0xff] %v7361_v43  ;;  %11611 = vst [vmem:[#allocation53_spill] sm:$0xff] %v7364_v0 }
 0x183   :  { %11615 = vst [vmem:[#allocation57_spill] sm:$0xff] %v7380_v5 }
 0x184   :  { %v7356_v13 = vpop.permute.xlu0 %569  ;;  %v7358_v48 = vpop.permute.xlu1 %567 }
 0x185   :  { %11608 = vst [vmem:[#allocation50_spill] sm:$0xff] %v7356_v13  ;;  %11609 = vst [vmem:[#allocation51_spill] sm:$0xff] %v7358_v48  ;;  %v359_v13 = vpop.f32.mrf.mxu0  ;;  %v7377_v48 = vsel %vm652_vm1, %v694_v59, %v696_v37  ;;  %v862_v37 = vsel %vm819_vm3, %v859_v1, %v861_v38 }
 0x186   :  { %597 = vrot.lane.b32.xlu0 %v7361_v43, %s6654_s26  ;;  %595 = vrot.lane.b32.xlu1 %v7364_v0, %s6654_s26  ;;  %11614 = vst [vmem:[#allocation56_spill] sm:$0xff] %v7377_v48  ;;  %v864_v0 = vsel %vm819_vm3, %v861_v38, %v863_v22 }
 0x188   :  { %v7372_v41 = vpop.permute.xlu0 %732  ;;  %v7374_v36 = vpop.permute.xlu1 %734 }
 0x189   :  { %11612 = vst [vmem:[#allocation54_spill] sm:$0xff] %v7372_v41  ;;  %11613 = vst [vmem:[#allocation55_spill] sm:$0xff] %v7374_v36  ;;  %v7388_v41 = vmax.f32 %v5663_v35, 0.0  ;;  %v7390_v36 = vmax.f32 %v359_v13, 0.0 }
 0x18a   :  { %760 = vrot.lane.b32.xlu0 %v7377_v48, %s6653_s0  ;;  %762 = vrot.lane.b32.xlu1 %v7380_v5, %s6653_s0 }
 0x18b   :  { %11616 = vst [vmem:[#allocation58_spill] sm:$0xff] %v7388_v41  ;;  %11617 = vst [vmem:[#allocation59_spill] sm:$0xff] %v7390_v36  ;;  %v535_v1 = vrot.slane %v7390_v36, 1  ;;  %v537_v38 = vrot.slane %v7388_v41, 1  ;;  %v1034_v48 = vrot.slane %v7388_v41, 5 }
 0x18c   :  { %v7392_v43 = vpop.permute.xlu0 %899  ;;  %v7394_v59 = vpop.permute.xlu1 %901 }
 0x18d   :  { %11618 = vst [vmem:[#allocation60_spill] sm:$0xff] %v7392_v43  ;;  %11619 = vst [vmem:[#allocation61_spill] sm:$0xff] %v7394_v59  ;;  %v1031_v43 = vsel %vm986_vm4, %v1028_v60, %v1030_v49  ;;  %v1029_v59 = vsel %vm986_vm4, %v1026_v51, %v1028_v60  ;;  %v700_v51 = vrot.slane %v7390_v36, 2  ;;  %v702_v60 = vrot.slane %v7388_v41, 2 }
 0x18e   :  { %927 = vrot.lane.b32.xlu0 %v862_v37, %s6655_s27  ;;  %929 = vrot.lane.b32.xlu1 %v864_v0, %s6655_s27  ;;  %v7417_v0 = vsel %vm487_vm2, %v535_v1, %v537_v38 }
 0x18f   :  { %11624 = vst [vmem:[#allocation66_spill] sm:$0xff] %v7417_v0 }
 0x190   :  { %v7402_v35 = vpop.permute.xlu0 %1068  ;;  %v7404_v13 = vpop.permute.xlu1 %1066 }
 0x191   :  { %11620 = vst [vmem:[#allocation62_spill] sm:$0xff] %v7402_v35  ;;  %11621 = vst [vmem:[#allocation63_spill] sm:$0xff] %v7404_v13  ;;  %v7420_v35 = vsel %vm487_vm2, %v533_v29, %v535_v1  ;;  %v5666_v13 = vpop.f32.mrf.mxu0  ;;  %v7434_v29 = vsel %vm652_vm1, %v698_v30, %v700_v51  ;;  %v7437_v1 = vsel %vm652_vm1, %v700_v51, %v702_v60  ;;  %v1032_v30 = vrot.slane %v7390_v36, 5 }
 0x192   :  { %1096 = vrot.lane.b32.xlu0 %v1031_v43, %s6656_s28  ;;  %1094 = vrot.lane.b32.xlu1 %v1029_v59, %s6656_s28  ;;  %11625 = vst [vmem:[#allocation67_spill] sm:$0xff] %v7420_v35  ;;  %11628 = vst [vmem:[#allocation70_spill] sm:$0xff] %v7434_v29 }
 0x193   :  { %11629 = vst [vmem:[#allocation71_spill] sm:$0xff] %v7437_v1  ;;  %v369_v5 = vpop.f32.mrf.mxu0 }
 0x194   :  { %v7412_v44 = vpop.permute.xlu0 %1233  ;;  %v7414_v37 = vpop.permute.xlu1 %1235  ;;  %v7452_v51 = vmax.f32 %v369_v5, 0.0 }
 0x195   :  { %11622 = vst [vmem:[#allocation64_spill] sm:$0xff] %v7412_v44  ;;  %11623 = vst [vmem:[#allocation65_spill] sm:$0xff] %v7414_v37  ;;  %v865_v37 = vrot.slane %v7390_v36, 4  ;;  %v867_v44 = vrot.slane %v7388_v41, 4 }
 0x196   :  { %601 = vrot.lane.b32.xlu0 %v7417_v0, %s6654_s26  ;;  %599 = vrot.lane.b32.xlu1 %v7420_v35, %s6654_s26  ;;  %v7450_v35 = vmax.f32 %v5666_v13, 0.0  ;;  %11633 = vst [vmem:[#allocation75_spill] sm:$0xff] %v7452_v51  ;;  %v539_v13 = vrot.slane %v7452_v51, 1 }
 0x197   :  { %v866_v0 = vsel %vm819_vm3, %v863_v22, %v865_v37  ;;  %v868_v31 = vsel %vm819_vm3, %v865_v37, %v867_v44  ;;  %v1035_v22 = vsel %vm986_vm4, %v1032_v30, %v1034_v48 }
 0x198   :  { %v7428_v43 = vpop.permute.xlu0 %573  ;;  %v7430_v59 = vpop.permute.xlu1 %571  ;;  %11632 = vst [vmem:[#allocation74_spill] sm:$0xff] %v7450_v35  ;;  %v541_v5 = vrot.slane %v7450_v35, 1 }
 0x199   :  { %11626 = vst [vmem:[#allocation68_spill] sm:$0xff] %v7428_v43  ;;  %11627 = vst [vmem:[#allocation69_spill] sm:$0xff] %v7430_v59 }
 0x19a   :  { %764 = vrot.lane.b32.xlu0 %v7434_v29, %s6653_s0  ;;  %766 = vrot.lane.b32.xlu1 %v7437_v1, %s6653_s0  ;;  %v1038_v29 = vrot.slane %v7450_v35, 5 }
 0x19c   :  { %v7444_v43 = vpop.permute.xlu0 %736  ;;  %v7446_v59 = vpop.permute.xlu1 %738 }
 0x19d   :  { %11630 = vst [vmem:[#allocation72_spill] sm:$0xff] %v7444_v43  ;;  %11631 = vst [vmem:[#allocation73_spill] sm:$0xff] %v7446_v59  ;;  %v1033_v59 = vsel %vm986_vm4, %v1030_v49, %v1032_v30  ;;  %v704_v49 = vrot.slane %v7452_v51, 2  ;;  %v706_v30 = vrot.slane %v7450_v35, 2 }
 0x19e   :  { %931 = vrot.lane.b32.xlu0 %v866_v0, %s6655_s27  ;;  %933 = vrot.lane.b32.xlu1 %v868_v31, %s6655_s27  ;;  %v7473_v31 = vsel %vm487_vm2, %v539_v13, %v541_v5 }
 0x19f   :  { %11638 = vst [vmem:[#allocation80_spill] sm:$0xff] %v7473_v31 }
 0x1a0   :  { %v7458_v1 = vpop.permute.xlu0 %903  ;;  %v7460_v43 = vpop.permute.xlu1 %905 }
 0x1a1   :  { %11634 = vst [vmem:[#allocation76_spill] sm:$0xff] %v7458_v1  ;;  %11635 = vst [vmem:[#allocation77_spill] sm:$0xff] %v7460_v43  ;;  %v7476_v43 = vsel %vm487_vm2, %v537_v38, %v539_v13  ;;  %v5669_v1 = vpop.f32.mrf.mxu0  ;;  %v7490_v38 = vsel %vm652_vm1, %v702_v60, %v704_v49  ;;  %v7493_v13 = vsel %vm652_vm1, %v704_v49, %v706_v30  ;;  %v1036_v60 = vrot.slane %v7452_v51, 5 }
 0x1a2   :  { %1100 = vrot.lane.b32.xlu0 %v1035_v22, %s6656_s28  ;;  %1098 = vrot.lane.b32.xlu1 %v1033_v59, %s6656_s28  ;;  %11639 = vst [vmem:[#allocation81_spill] sm:$0xff] %v7476_v43  ;;  %11642 = vst [vmem:[#allocation84_spill] sm:$0xff] %v7490_v38 }
 0x1a3   :  { %11643 = vst [vmem:[#allocation85_spill] sm:$0xff] %v7493_v13  ;;  %v379_v41 = vpop.f32.mrf.mxu0 }
 0x1a4   :  { %v7468_v37 = vpop.permute.xlu0 %1072  ;;  %v7470_v0 = vpop.permute.xlu1 %1070  ;;  %v7508_v49 = vmax.f32 %v379_v41, 0.0 }
 0x1a5   :  { %11636 = vst [vmem:[#allocation78_spill] sm:$0xff] %v7468_v37  ;;  %11637 = vst [vmem:[#allocation79_spill] sm:$0xff] %v7470_v0  ;;  %v869_v37 = vrot.slane %v7452_v51, 4  ;;  %v871_v0 = vrot.slane %v7450_v35, 4 }
 0x1a6   :  { %605 = vrot.lane.b32.xlu0 %v7473_v31, %s6654_s26  ;;  %603 = vrot.lane.b32.xlu1 %v7476_v43, %s6654_s26  ;;  %v7506_v43 = vmax.f32 %v5669_v1, 0.0  ;;  %v543_v1 = vrot.slane %v7508_v49, 1 }
 0x1a7   :  { %v870_v31 = vsel %vm819_vm3, %v867_v44, %v869_v37  ;;  %v872_v36 = vsel %vm819_vm3, %v869_v37, %v871_v0  ;;  %v1039_v44 = vsel %vm986_vm4, %v1036_v60, %v1038_v29 }
 0x1a8   :  { %v7484_v59 = vpop.permute.xlu0 %577  ;;  %v7486_v22 = vpop.permute.xlu1 %575  ;;  %11646 = vst [vmem:[#allocation88_spill] sm:$0xff] %v7506_v43  ;;  %v545_v41 = vrot.slane %v7506_v43, 1 }
 0x1a9   :  { %11640 = vst [vmem:[#allocation82_spill] sm:$0xff] %v7484_v59  ;;  %11641 = vst [vmem:[#allocation83_spill] sm:$0xff] %v7486_v22 }
 0x1aa   :  { %768 = vrot.lane.b32.xlu0 %v7490_v38, %s6653_s0  ;;  %770 = vrot.lane.b32.xlu1 %v7493_v13, %s6653_s0  ;;  %v1042_v38 = vrot.slane %v7506_v43, 5 }
 0x1ac   :  { %v7500_v59 = vpop.permute.xlu0 %740  ;;  %v7502_v22 = vpop.permute.xlu1 %742 }
 0x1ad   :  { %11644 = vst [vmem:[#allocation86_spill] sm:$0xff] %v7500_v59  ;;  %11645 = vst [vmem:[#allocation87_spill] sm:$0xff] %v7502_v22  ;;  %v1037_v22 = vsel %vm986_vm4, %v1034_v48, %v1036_v60  ;;  %v708_v48 = vrot.slane %v7508_v49, 2  ;;  %v710_v60 = vrot.slane %v7506_v43, 2 }
 0x1ae   :  { %935 = vrot.lane.b32.xlu0 %v870_v31, %s6655_s27  ;;  %937 = vrot.lane.b32.xlu1 %v872_v36, %s6655_s27  ;;  %v7529_v36 = vsel %vm487_vm2, %v543_v1, %v545_v41 }
 0x1af   :  { %11651 = vst [vmem:[#allocation93_spill] sm:$0xff] %v7529_v36 }
 0x1b0   :  { %v7514_v13 = vpop.permute.xlu0 %907  ;;  %v7516_v59 = vpop.permute.xlu1 %909 }
 0x1b1   :  { %11647 = vst [vmem:[#allocation89_spill] sm:$0xff] %v7514_v13  ;;  %11648 = vst [vmem:[#allocation90_spill] sm:$0xff] %v7516_v59  ;;  %v7532_v59 = vsel %vm487_vm2, %v541_v5, %v543_v1  ;;  %v5672_v13 = vpop.f32.mrf.mxu0  ;;  %v7546_v5 = vsel %vm652_vm1, %v706_v30, %v708_v48  ;;  %v7549_v1 = vsel %vm652_vm1, %v708_v48, %v710_v60  ;;  %v1040_v30 = vrot.slane %v7508_v49, 5 }
 0x1b2   :  { %1104 = vrot.lane.b32.xlu0 %v1039_v44, %s6656_s28  ;;  %1102 = vrot.lane.b32.xlu1 %v1037_v22, %s6656_s28  ;;  %11652 = vst [vmem:[#allocation94_spill] sm:$0xff] %v7532_v59  ;;  %11655 = vst [vmem:[#allocation97_spill] sm:$0xff] %v7549_v1 }
 0x1b3   :  { %v389_v35 = vpop.f32.mrf.mxu0 }
 0x1b4   :  { %v7524_v37 = vpop.permute.xlu0 %1076  ;;  %v7526_v31 = vpop.permute.xlu1 %1074  ;;  %v7564_v48 = vmax.f32 %v389_v35, 0.0 }
 0x1b5   :  { %11649 = vst [vmem:[#allocation91_spill] sm:$0xff] %v7524_v37  ;;  %11650 = vst [vmem:[#allocation92_spill] sm:$0xff] %v7526_v31  ;;  %v873_v37 = vrot.slane %v7508_v49, 4  ;;  %v875_v31 = vrot.slane %v7506_v43, 4 }
 0x1b6   :  { %609 = vrot.lane.b32.xlu0 %v7529_v36, %s6654_s26  ;;  %607 = vrot.lane.b32.xlu1 %v7532_v59, %s6654_s26  ;;  %v7562_v59 = vmax.f32 %v5672_v13, 0.0  ;;  %v547_v13 = vrot.slane %v7564_v48, 1 }
 0x1b7   :  { %v874_v36 = vsel %vm819_vm3, %v871_v0, %v873_v37  ;;  %v876_v51 = vsel %vm819_vm3, %v873_v37, %v875_v31  ;;  %v1043_v0 = vsel %vm986_vm4, %v1040_v30, %v1042_v38 }
 0x1b8   :  { %v7540_v22 = vpop.permute.xlu0 %581  ;;  %v7542_v44 = vpop.permute.xlu1 %579  ;;  %11658 = vst [vmem:[#allocation100_spill] sm:$0xff] %v7562_v59  ;;  %v549_v35 = vrot.slane %v7562_v59, 1  ;;  %v1046_v43 = vrot.slane %v7562_v59, 5 }
 0x1b9   :  { %11653 = vst [vmem:[#allocation95_spill] sm:$0xff] %v7540_v22  ;;  %11654 = vst [vmem:[#allocation96_spill] sm:$0xff] %v7542_v44 }
 0x1ba   :  { %772 = vrot.lane.b32.xlu0 %v7546_v5, %s6653_s0  ;;  %774 = vrot.lane.b32.xlu1 %v7549_v1, %s6653_s0 }
 0x1bc   :  { %v7556_v22 = vpop.permute.xlu0 %744  ;;  %v7558_v44 = vpop.permute.xlu1 %746 }
 0x1bd   :  { %11656 = vst [vmem:[#allocation98_spill] sm:$0xff] %v7556_v22  ;;  %11657 = vst [vmem:[#allocation99_spill] sm:$0xff] %v7558_v44  ;;  %v1041_v44 = vsel %vm986_vm4, %v1038_v29, %v1040_v30  ;;  %v712_v29 = vrot.slane %v7564_v48, 2  ;;  %v714_v30 = vrot.slane %v7562_v59, 2 }
 0x1be   :  { %939 = vrot.lane.b32.xlu0 %v874_v36, %s6655_s27  ;;  %941 = vrot.lane.b32.xlu1 %v876_v51, %s6655_s27  ;;  %v7585_v51 = vsel %vm487_vm2, %v547_v13, %v549_v35 }
 0x1bf   :  { %11663 = vst [vmem:[#allocation105_spill] sm:$0xff] %v7585_v51 }
 0x1c0   :  { %v7570_v1 = vpop.permute.xlu0 %911  ;;  %v7572_v22 = vpop.permute.xlu1 %913 }
 0x1c1   :  { %11659 = vst [vmem:[#allocation101_spill] sm:$0xff] %v7570_v1  ;;  %11660 = vst [vmem:[#allocation102_spill] sm:$0xff] %v7572_v22  ;;  %v7588_v22 = vsel %vm487_vm2, %v545_v41, %v547_v13  ;;  %v7604_v41 = vsel %vm652_vm1, %v712_v29, %v714_v30  ;;  %v877_v13 = vrot.slane %v7564_v48, 4  ;;  %v879_v1 = vrot.slane %v7562_v59, 4 }
 0x1c2   :  { %1108 = vrot.lane.b32.xlu0 %v1043_v0, %s6656_s28  ;;  %1106 = vrot.lane.b32.xlu1 %v1041_v44, %s6656_s28  ;;  %11664 = vst [vmem:[#allocation106_spill] sm:$0xff] %v7588_v22  ;;  %11668 = vst [vmem:[#allocation110_spill] sm:$0xff] %v7604_v41 }
 0x1c4   :  { %v7580_v37 = vpop.permute.xlu0 %1080  ;;  %v7582_v36 = vpop.permute.xlu1 %1078 }
 0x1c5   :  { %11661 = vst [vmem:[#allocation103_spill] sm:$0xff] %v7580_v37  ;;  %11662 = vst [vmem:[#allocation104_spill] sm:$0xff] %v7582_v36  ;;  %v5675_v37 = vpop.f32.mrf.mxu0  ;;  %v7601_v36 = vsel %vm652_vm1, %v710_v60, %v712_v29  ;;  %v878_v60 = vsel %vm819_vm3, %v875_v31, %v877_v13  ;;  %v880_v29 = vsel %vm819_vm3, %v877_v13, %v879_v1  ;;  %v1909_v13 = vld [vmem:[%s11466_s2 + $0x40] sm:$0xff] }
 0x1c6   :  { %613 = vrot.lane.b32.xlu0 %v7585_v51, %s6654_s26  ;;  %611 = vrot.lane.b32.xlu1 %v7588_v22, %s6654_s26  ;;  %11667 = vst [vmem:[#allocation109_spill] sm:$0xff] %v7601_v36  ;;  %v1044_v22 = vrot.slane %v7564_v48, 5 }
 0x1c7   :  { %v399_v51 = vpop.f32.mrf.mxu0 }
 0x1c8   :  { %v7596_v44 = vpop.permute.xlu0 %585  ;;  %v7598_v0 = vpop.permute.xlu1 %583  ;;  %v1045_v31 = vsel %vm986_vm4, %v1042_v38, %v1044_v22 }
 0x1c9   :  { %11665 = vst [vmem:[#allocation107_spill] sm:$0xff] %v7596_v44  ;;  %11666 = vst [vmem:[#allocation108_spill] sm:$0xff] %v7598_v0 }
 0x1ca   :  { %776 = vrot.lane.b32.xlu0 %v7601_v36, %s6653_s0  ;;  %778 = vrot.lane.b32.xlu1 %v7604_v41, %s6653_s0  ;;  %v7622_v36 = vmax.f32 %v399_v51, 0.0 }
 0x1cc   :  { %v7612_v44 = vpop.permute.xlu0 %748  ;;  %v7614_v0 = vpop.permute.xlu1 %750  ;;  %v7645_v38 = vrot.slane %v7622_v36, 1 }
 0x1cd   :  { %11669 = vst [vmem:[#allocation111_spill] sm:$0xff] %v7612_v44  ;;  %11670 = vst [vmem:[#allocation112_spill] sm:$0xff] %v7614_v0  ;;  %v1047_v0 = vsel %vm986_vm4, %v1044_v22, %v1046_v43  ;;  %v1908_v22 = vld [vmem:[%s11466_s2 + $0x38] sm:$0xff] }
 0x1ce   :  { %943 = vrot.lane.b32.xlu0 %v878_v60, %s6655_s27  ;;  %945 = vrot.lane.b32.xlu1 %v880_v29, %s6655_s27  ;;  %v11529_v60 = vmov 0.0   ;;  %11676 = vst [vmem:[#allocation118_spill] sm:$0xff] %v7645_v38 }
 0x1cf   :  { %5679 = vmatprep.subr.mxu1 %v11529_v60  ;;  %3546 = vmatprep.subr.mxu0 %v11529_v60 }
 0x1d0   :  { %v7624_v41 = vpop.permute.xlu0 %915  ;;  %v7626_v44 = vpop.permute.xlu1 %917  ;;  %5680 = vmatpush3.msra.mxu1 %v1909_v13  ;;  %v1907_v13 = vld [vmem:[%s11466_s2 + $0x30] sm:$0xff]  ;;  %5697 = vmatprep.mubr.msk.f32.mxu1 %vm6659_vm6, %v11529_v60 }
 0x1d1   :  { %11671 = vst [vmem:[#allocation113_spill] sm:$0xff] %v7624_v41  ;;  %11672 = vst [vmem:[#allocation114_spill] sm:$0xff] %v7626_v44  ;;  %v7642_v44 = vrot.slane %v7622_v36, 2  ;;  %5681 = vmatprep.subr.mxu1 %v11529_v60  ;;  %v881_v41 = vrot.slane %v7622_v36, 4 }
 0x1d2   :  { %1112 = vrot.lane.b32.xlu0 %v1047_v0, %s6656_s28  ;;  %1110 = vrot.lane.b32.xlu1 %v1045_v31, %s6656_s28  ;;  %v7650_v0 = vmax.f32 %v5675_v37, 0.0  ;;  %v7653_v31 = vpop.f32.mrf.mxu0 }
 0x1d3   :  { %11675 = vst [vmem:[#allocation117_spill] sm:$0xff] %v7642_v44  ;;  %11677 = vst [vmem:[#allocation119_spill] sm:$0xff] %v7653_v31  ;;  %5682 = vmatpush3.msra.mxu1 %v1908_v22  ;;  %v7669_v37 = vsel %vm652_vm1, %v714_v30, %v7642_v44  ;;  %v7673_v31 = vsel %vm487_vm2, %v549_v35, %v7645_v38  ;;  %v1906_v22 = vld [vmem:[%s11466_s2 + $0x28] sm:$0xff] }
 0x1d4   :  { %v7637_v51 = vpop.permute.xlu0 %1084  ;;  %v7639_v29 = vpop.permute.xlu1 %1082  ;;  %5683 = vmatprep.subr.mxu1 %v11529_v60  ;;  %11680 = vst [vmem:[#allocation122_spill] sm:$0xff] %v7669_v37  ;;  %11681 = vst [vmem:[#allocation123_spill] sm:$0xff] %v7673_v31  ;;  %v883_v59 = vrot.slane %v7650_v0, 4 }
 0x1d5   :  { %11673 = vst [vmem:[#allocation115_spill] sm:$0xff] %v7637_v51  ;;  %11674 = vst [vmem:[#allocation116_spill] sm:$0xff] %v7639_v29  ;;  %5684 = vmatpush3.msra.mxu1 %v1907_v13  ;;  %v1905_v13 = vld [vmem:[%s11466_s2 + $0x20] sm:$0xff] }
 0x1d6   :  { %782 = vrot.lane.b32.xlu1 %v7642_v44, %s6653_s0  ;;  %617 = vrot.lane.b32.xlu0 %v7645_v38, %s6654_s26  ;;  %v882_v44 = vsel %vm819_vm3, %v879_v1, %v881_v41 }
 0x1d7   :  { %5685 = vmatprep.subr.mxu1 %v11529_v60 }
 0x1d8   :  { %v7662_v51 = vpop.permute.xlu0 %589  ;;  %v7664_v29 = vpop.permute.xlu1 %587  ;;  %5686 = vmatpush3.msra.mxu1 %v1906_v22  ;;  %v1904_v22 = vld [vmem:[%s11466_s2 + $0x18] sm:$0xff] }
 0x1d9   :  { %11678 = vst [vmem:[#allocation120_spill] sm:$0xff] %v7662_v51  ;;  %11679 = vst [vmem:[#allocation121_spill] sm:$0xff] %v7664_v29  ;;  %v409_v51 = vpop.f32.mrf.mxu0  ;;  %v1048_v29 = vrot.slane %v7622_v36, 5  ;;  %5687 = vmatprep.subr.mxu1 %v11529_v60 }
 0x1da   :  { %780 = vrot.lane.b32.xlu0 %v7669_v37, %s6653_s0  ;;  %615 = vrot.lane.b32.xlu1 %v7673_v31, %s6654_s26  ;;  %v7693_v38 = vmax.f32 %v409_v51, 0.0  ;;  %v884_v37 = vsel %vm819_vm3, %v881_v41, %v883_v59  ;;  %v1050_v31 = vrot.slane %v7650_v0, 5 }
 0x1db   :  { %5688 = vmatpush3.msra.mxu1 %v1905_v13  ;;  %v1049_v1 = vsel %vm986_vm4, %v1046_v43, %v1048_v29  ;;  %v1902_v13 = vld [vmem:[%s11466_s2 + $0x8] sm:$0xff] }
 0x1dc   :  { %v7685_v35 = vpop.permute.xlu0 %752  ;;  %v7687_v30 = vpop.permute.xlu1 %754  ;;  %5689 = vmatprep.subr.mxu1 %v11529_v60  ;;  %v1051_v41 = vsel %vm986_vm4, %v1048_v29, %v1050_v31 }
 0x1dd   :  { %11682 = vst [vmem:[#allocation124_spill] sm:$0xff] %v7685_v35  ;;  %11683 = vst [vmem:[#allocation125_spill] sm:$0xff] %v7687_v30  ;;  %v1052_v35 = vrot.slane %v7693_v38, 5  ;;  %5690 = vmatpush3.msra.mxu1 %v1904_v22 }
 0x1de   :  { %947 = vrot.lane.b32.xlu0 %v882_v44, %s6655_s27  ;;  %949 = vrot.lane.b32.xlu1 %v884_v37, %s6655_s27  ;;  %v885_v44 = vrot.slane %v7693_v38, 4  ;;  %v1903_v37 = vld [vmem:[%s11466_s2 + $0x10] sm:$0xff] }
 0x1df   :  { %5691 = vmatprep.subr.mxu1 %v11529_v60  ;;  %v1053_v22 = vsel %vm986_vm4, %v1050_v31, %v1052_v35 }
 0x1e0   :  { %v7704_v30 = vpop.permute.xlu0 %919  ;;  %v7706_v51 = vpop.permute.xlu1 %921  ;;  %5692 = vmatpush3.msra.mxu1 %v1903_v37  ;;  %v1901_v37 = vld [vmem:[%s11466_s2] sm:$0xff]  ;;  %s6661_s2 = smov 64  }
 0x1e1   :  { %11684 = vst [vmem:[#allocation126_spill] sm:$0xff] %v7706_v51  ;;  %5693 = vmatprep.subr.mxu1 %v11529_v60 }
 0x1e2   :  { %1116 = vrot.lane.b32.xlu0 %v1051_v41, %s6656_s28  ;;  %1114 = vrot.lane.b32.xlu1 %v1049_v1, %s6656_s28  ;;  %v886_v41 = vsel %vm819_vm3, %v883_v59, %v885_v44  ;;  %v11531_v1 = vrot.slane %v7036_v28, 6  ;;  %v11686_v59 = vrot.slane %v6988_v61, 6 }
 0x1e3   :  { %5694 = vmatpush3.msra.mxu1 %v1902_v13 }
 0x1e4   :  { %v7721_v43 = vpop.permute.xlu0 %1088  ;;  %v7723_v29 = vpop.permute.xlu1 %1086  ;;  %5695 = vmatprep.subr.mxu1 %v11529_v60  ;;  %v1172_v31 = vsel %vm1153_vm5, %v11686_v59, %v11531_v1 }
 0x1e5   :  { %11685 = vst [vmem:[#allocation127_spill] sm:$0xff] %v7721_v43  ;;  %5696 = vmatpush3.msra.mxu1 %v1901_v37 }
 0x1e6   :  { %1118 = vrot.lane.b32.xlu1 %v1053_v22, %s6656_s28  ;;  %951 = vrot.lane.b32.xlu0 %v886_v41, %s6655_s27 }
 0x1e8   :  { %v7737_v43 = vpop.permute.xlu0 %593  ;;  %v7739_v51 = vpop.permute.xlu1 %591 }
 0x1ea   :  { %1321 = vrot.lane.b32.xlu1 %v6862_v46, %s6660_s23  ;;  %1237 = vrot.lane.b32.xlu0 %v1172_v31, %s6657_s29 }
 0x1ec   :  { %v7750_v35 = vpop.permute.xlu0 %756  ;;  %v7752_v44 = vpop.permute.xlu1 %758 }
 0x1ee   :  { %1531 = vrot.lane.b32.xlu1 %v6925_v24, %s6661_s2  ;;  %1426 = vrot.lane.b32.xlu0 %v6916_v20, %s6662_s24 }
 0x1f0   :  { %v7758_v13 = vpop.permute.xlu0 %923  ;;  %v7760_v22 = vpop.permute.xlu1 %925 }
 0x1f2   :  { %1428 = vrot.lane.b32.xlu1 %v6913_v19, %s6662_s24  ;;  %1323 = vrot.lane.b32.xlu0 %v6897_v9, %s6660_s23 }
 0x1f4   :  { %v7766_v41 = vpop.permute.xlu0 %1092  ;;  %v7768_v37 = vpop.permute.xlu1 %1090 }
 0x1f6   :  { %1325 = vrot.lane.b32.xlu1 %v6895_v8, %s6660_s23  ;;  %1533 = vrot.lane.b32.xlu0 %v6928_v25, %s6661_s2 }
 0x1f8   :  { %v7774_v20 = vpop.permute.xlu0 %597  ;;  %v7776_v24 = vpop.permute.xlu1 %595 }
 0x1fa   :  { %1535 = vrot.lane.b32.xlu1 %v6971_v52, %s6661_s2  ;;  %1430 = vrot.lane.b32.xlu0 %v6962_v47, %s6662_s24 }
 0x1fc   :  { %v7782_v19 = vpop.permute.xlu0 %760  ;;  %v7784_v59 = vpop.permute.xlu1 %762 }
 0x1fe   :  { %1432 = vrot.lane.b32.xlu1 %v6959_v45, %s6662_s24  ;;  %1327 = vrot.lane.b32.xlu0 %v6944_v34, %s6660_s23 }
 0x200   :  { %v7790_v25 = vpop.permute.xlu0 %927  ;;  %v7792_v31 = vpop.permute.xlu1 %929 }
 0x202   :  { %1329 = vrot.lane.b32.xlu1 %v6942_v33, %s6660_s23  ;;  %1537 = vrot.lane.b32.xlu0 %v6974_v53, %s6661_s2 }
 0x204   :  { %v7798_v47 = vpop.permute.xlu0 %1096  ;;  %v7800_v52 = vpop.permute.xlu1 %1094 }
 0x206   :  { %1539 = vrot.lane.b32.xlu1 %v7017_v14, %s6661_s2  ;;  %1434 = vrot.lane.b32.xlu0 %v7008_v10, %s6662_s24 }
 0x208   :  { %v7806_v45 = vpop.permute.xlu0 %601  ;;  %v7808_v60 = vpop.permute.xlu1 %599 }
 0x209   :  { %11687 = vst [vmem:[#allocation128_spill] sm:$0xff] %v7806_v45  ;;  %11688 = vst [vmem:[#allocation129_spill] sm:$0xff] %v7808_v60  ;;  %v11756_v60 = vld [vmem:[#allocation28_spill] sm:$0xff] }
 0x20a   :  { %1436 = vrot.lane.b32.xlu1 %v7005_v7, %s6662_s24  ;;  %1331 = vrot.lane.b32.xlu0 %v6990_v62, %s6660_s23 }
 0x20c   :  { %v7814_v53 = vpop.permute.xlu0 %764  ;;  %v7816_v1 = vpop.permute.xlu1 %766 }
 0x20d   :  { %11689 = vst [vmem:[#allocation130_spill] sm:$0xff] %v7814_v53  ;;  %11690 = vst [vmem:[#allocation131_spill] sm:$0xff] %v7816_v1 }
 0x20e   :  { %1333 = vrot.lane.b32.xlu1 %v6988_v61, %s6660_s23  ;;  %1541 = vrot.lane.b32.xlu0 %v7020_v15, %s6661_s2 }
 0x210   :  { %v7822_v10 = vpop.permute.xlu0 %931  ;;  %v7824_v14 = vpop.permute.xlu1 %933 }
 0x211   :  { %11691 = vst [vmem:[#allocation132_spill] sm:$0xff] %v7824_v14 }
 0x212   :  { %1543 = vrot.lane.b32.xlu1 %v7065_v50, %s6661_s2  ;;  %1438 = vrot.lane.b32.xlu0 %v7056_v42, %s6662_s24 }
 0x214   :  { %v7830_v7 = vpop.permute.xlu0 %1100  ;;  %v7832_v45 = vpop.permute.xlu1 %1098 }
 0x215   :  { %11692 = vst [vmem:[#allocation133_spill] sm:$0xff] %v7830_v7  ;;  %11693 = vst [vmem:[#allocation134_spill] sm:$0xff] %v7832_v45  ;;  %v1173_v7 = vrot.slane %v7034_v27, 6  ;;  %v11757_v45 = vld [vmem:[#allocation30_spill] sm:$0xff] }
 0x216   :  { %1440 = vrot.lane.b32.xlu1 %v7053_v40, %s6662_s24  ;;  %1335 = vrot.lane.b32.xlu0 %v7036_v28, %s6660_s23 }
 0x218   :  { %v7838_v15 = vpop.permute.xlu0 %605  ;;  %v7840_v1 = vpop.permute.xlu1 %603 }
 0x219   :  { %11694 = vst [vmem:[#allocation135_spill] sm:$0xff] %v7838_v15  ;;  %11695 = vst [vmem:[#allocation136_spill] sm:$0xff] %v7840_v1  ;;  %v11700_v1 = vrot.slane %v7036_v28, 6 }
 0x21a   :  { %1337 = vrot.lane.b32.xlu1 %v7034_v27, %s6660_s23  ;;  %1545 = vrot.lane.b32.xlu0 %v7068_v54, %s6661_s2 }
 0x21b   :  { %v1174_v54 = vsel %vm1153_vm5, %v11700_v1, %v1173_v7 }
 0x21c   :  { %v7846_v42 = vpop.permute.xlu0 %768  ;;  %v7848_v50 = vpop.permute.xlu1 %770 }
 0x21d   :  { %11696 = vst [vmem:[#allocation137_spill] sm:$0xff] %v7846_v42  ;;  %11697 = vst [vmem:[#allocation138_spill] sm:$0xff] %v7848_v50 }
 0x21e   :  { %1547 = vrot.lane.b32.xlu1 %v7105_v17, %s6661_s2  ;;  %1442 = vrot.lane.b32.xlu0 %v7096_v11, %s6662_s24  ;;  %v1175_v17 = vrot.slane %v7078_v58, 6 }
 0x220   :  { %v7855_v40 = vpop.permute.xlu0 %935  ;;  %v7857_v15 = vpop.permute.xlu1 %937 }
 0x221   :  { %11698 = vst [vmem:[#allocation139_spill] sm:$0xff] %v7855_v40  ;;  %11699 = vst [vmem:[#allocation140_spill] sm:$0xff] %v7857_v15  ;;  %v1176_v15 = vsel %vm1153_vm5, %v1173_v7, %v1175_v17  ;;  %v11745_v40 = vld [vmem:[#allocation11_spill] sm:$0xff] }
 0x222   :  { %1339 = vrot.lane.b32.xlu1 %v7078_v58, %s6660_s23  ;;  %1239 = vrot.lane.b32.xlu0 %v1174_v54, %s6657_s29 }
 0x224   :  { %v7865_v50 = vpop.permute.xlu0 %1104  ;;  %v7867_v42 = vpop.permute.xlu1 %1102 }
 0x225   :  { %11701 = vst [vmem:[#allocation141_spill] sm:$0xff] %v7865_v50  ;;  %11702 = vst [vmem:[#allocation142_spill] sm:$0xff] %v7867_v42 }
 0x226   :  { %1549 = vrot.lane.b32.xlu1 %v7108_v18, %s6661_s2  ;;  %1444 = vrot.lane.b32.xlu0 %v7093_v6, %s6662_s24  ;;  %v1177_v18 = vrot.slane %v7076_v57, 6 }
 0x228   :  { %v7874_v11 = vpop.permute.xlu0 %609  ;;  %v7876_v1 = vpop.permute.xlu1 %607 }
 0x229   :  { %11703 = vst [vmem:[#allocation143_spill] sm:$0xff] %v7874_v11  ;;  %11704 = vst [vmem:[#allocation144_spill] sm:$0xff] %v7876_v1  ;;  %v1178_v11 = vsel %vm1153_vm5, %v1175_v17, %v1177_v18  ;;  %v11742_v1 = vld [vmem:[#allocation8_spill] sm:$0xff] }
 0x22a   :  { %1341 = vrot.lane.b32.xlu1 %v7076_v57, %s6660_s23  ;;  %1241 = vrot.lane.b32.xlu0 %v1176_v15, %s6657_s29 }
 0x22c   :  { %v7882_v54 = vpop.permute.xlu0 %772  ;;  %v7884_v50 = vpop.permute.xlu1 %774 }
 0x22d   :  { %11705 = vst [vmem:[#allocation145_spill] sm:$0xff] %v7882_v54  ;;  %11706 = vst [vmem:[#allocation146_spill] sm:$0xff] %v7884_v50  ;;  %v11739_v54 = vld [vmem:[#allocation42_spill] sm:$0xff] }
 0x22e   :  { %1551 = vrot.lane.b32.xlu1 %v7153_v2, %s6661_s2  ;;  %1446 = vrot.lane.b32.xlu0 %v7140_v56, %s6662_s24  ;;  %v1179_v2 = vrot.slane %v7118_v26, 6 }
 0x230   :  { %v7891_v6 = vpop.permute.xlu0 %939  ;;  %v7893_v7 = vpop.permute.xlu1 %941 }
 0x231   :  { %11707 = vst [vmem:[#allocation147_spill] sm:$0xff] %v7891_v6  ;;  %11708 = vst [vmem:[#allocation148_spill] sm:$0xff] %v7893_v7  ;;  %v1180_v7 = vsel %vm1153_vm5, %v1177_v18, %v1179_v2 }
 0x232   :  { %1343 = vrot.lane.b32.xlu1 %v7118_v26, %s6660_s23  ;;  %1243 = vrot.lane.b32.xlu0 %v1178_v11, %s6657_s29 }
 0x234   :  { %v7899_v15 = vpop.permute.xlu0 %1108  ;;  %v7901_v50 = vpop.permute.xlu1 %1106 }
 0x235   :  { %11709 = vst [vmem:[#allocation149_spill] sm:$0xff] %v7899_v15  ;;  %11710 = vst [vmem:[#allocation150_spill] sm:$0xff] %v7901_v50  ;;  %v11743_v50 = vld [vmem:[#allocation2_spill] sm:$0xff] }
 0x236   :  { %1553 = vrot.lane.b32.xlu1 %v7156_v3, %s6661_s2  ;;  %1448 = vrot.lane.b32.xlu0 %v7137_v55, %s6662_s24  ;;  %v1181_v3 = vrot.slane %v7116_v23, 6 }
 0x238   :  { %v7908_v56 = vpop.permute.xlu0 %613  ;;  %v7910_v17 = vpop.permute.xlu1 %611 }
 0x239   :  { %11711 = vst [vmem:[#allocation151_spill] sm:$0xff] %v7908_v56  ;;  %11712 = vst [vmem:[#allocation152_spill] sm:$0xff] %v7910_v17  ;;  %v1182_v56 = vsel %vm1153_vm5, %v1179_v2, %v1181_v3  ;;  %v11734_v17 = vld [vmem:[#allocation3_spill] sm:$0xff] }
 0x23a   :  { %1345 = vrot.lane.b32.xlu1 %v7116_v23, %s6660_s23  ;;  %1245 = vrot.lane.b32.xlu0 %v1180_v7, %s6657_s29 }
 0x23c   :  { %v7916_v11 = vpop.permute.xlu0 %776  ;;  %v7918_v15 = vpop.permute.xlu1 %778 }
 0x23d   :  { %11713 = vst [vmem:[#allocation153_spill] sm:$0xff] %v7916_v11  ;;  %11714 = vst [vmem:[#allocation154_spill] sm:$0xff] %v7918_v15  ;;  %v11733_v11 = vld [vmem:[#allocation6_spill] sm:$0xff] }
 0x23e   :  { %1555 = vrot.lane.b32.xlu1 %v7209_v63, %s6661_s2  ;;  %1450 = vrot.lane.b32.xlu0 %v7196_v21, %s6662_s24  ;;  %v1183_v63 = vrot.slane %v7166_v16, 6 }
 0x240   :  { %v7925_v55 = vpop.permute.xlu0 %943  ;;  %v7927_v18 = vpop.permute.xlu1 %945 }
 0x241   :  { %11715 = vst [vmem:[#allocation155_spill] sm:$0xff] %v7925_v55  ;;  %11716 = vst [vmem:[#allocation156_spill] sm:$0xff] %v7927_v18  ;;  %v1184_v18 = vsel %vm1153_vm5, %v1181_v3, %v1183_v63 }
 0x242   :  { %1347 = vrot.lane.b32.xlu1 %v7166_v16, %s6660_s23  ;;  %1247 = vrot.lane.b32.xlu0 %v1182_v56, %s6657_s29 }
 0x244   :  { %v7933_v7 = vpop.permute.xlu0 %1112  ;;  %v7935_v15 = vpop.permute.xlu1 %1110 }
 0x245   :  { %11717 = vst [vmem:[#allocation157_spill] sm:$0xff] %v7933_v7  ;;  %11718 = vst [vmem:[#allocation158_spill] sm:$0xff] %v7935_v15 }
 0x246   :  { %1557 = vrot.lane.b32.xlu1 %v7212_v39, %s6661_s2  ;;  %1452 = vrot.lane.b32.xlu0 %v7193_v32, %s6662_s24  ;;  %v1185_v39 = vrot.slane %v7164_v12, 6  ;;  %v11723_v32 = vld [vmem:[#allocation26_spill] sm:$0xff] }
 0x248   :  { %v7942_v21 = vpop.permute.xlu1 %782  ;;  %v7944_v2 = vpop.permute.xlu0 %617 }
 0x249   :  { %11719 = vst [vmem:[#allocation159_spill] sm:$0xff] %v7942_v21  ;;  %11720 = vst [vmem:[#allocation160_spill] sm:$0xff] %v7944_v2  ;;  %v1186_v2 = vsel %vm1153_vm5, %v1183_v63, %v1185_v39 }
 0x24a   :  { %1349 = vrot.lane.b32.xlu1 %v7164_v12, %s6660_s23  ;;  %1249 = vrot.lane.b32.xlu0 %v1184_v18, %s6657_s29  ;;  %v11726_v18 = vld [vmem:[#allocation18_spill] sm:$0xff] }
 0x24c   :  { %v7950_v56 = vpop.permute.xlu0 %780  ;;  %v7952_v7 = vpop.permute.xlu1 %615 }
 0x24d   :  { %11721 = vst [vmem:[#allocation161_spill] sm:$0xff] %v7950_v56  ;;  %11722 = vst [vmem:[#allocation162_spill] sm:$0xff] %v7952_v7 }
 0x24e   :  { %1559 = vrot.lane.b32.xlu1 %v7265_v4, %s6661_s2  ;;  %1454 = vrot.lane.b32.xlu0 %v11723_v32, %s6662_s24  ;;  %v1187_v4 = vrot.slane %v11726_v18, 6  ;;  %v11729_v32 = vld [vmem:[#allocation29_spill] sm:$0xff] }
 0x250   :  { %v7959_v21 = vpop.permute.xlu0 %947  ;;  %v7961_v3 = vpop.permute.xlu1 %949 }
 0x251   :  { %11724 = vst [vmem:[#allocation26_spill] sm:$0xff] %v7959_v21  ;;  %11725 = vst [vmem:[#allocation163_spill] sm:$0xff] %v7961_v3  ;;  %v11730_v21 = vld [vmem:[#allocation25_spill] sm:$0xff] }
 0x252   :  { %1351 = vrot.lane.b32.xlu1 %v11726_v18, %s6660_s23  ;;  %1251 = vrot.lane.b32.xlu0 %v1186_v2, %s6657_s29  ;;  %v1631_v2 = vsel %vm1630_vm7, %v11734_v17, %v11733_v11  ;;  %v11738_v11 = vld [vmem:[#allocation13_spill] sm:$0xff] }
 0x254   :  { %v7967_v56 = vpop.permute.xlu0 %1116  ;;  %v7969_v7 = vpop.permute.xlu1 %1114 }
 0x255   :  { %11727 = vst [vmem:[#allocation18_spill] sm:$0xff] %v7967_v56  ;;  %11728 = vst [vmem:[#allocation164_spill] sm:$0xff] %v7969_v7  ;;  %v1188_v56 = vsel %vm1153_vm5, %v1185_v39, %v1187_v4  ;;  %v11735_v7 = vld [vmem:[#allocation17_spill] sm:$0xff] }
 0x256   :  { %1561 = vrot.lane.b32.xlu1 %v11729_v32, %s6661_s2  ;;  %1456 = vrot.lane.b32.xlu0 %v11730_v21, %s6662_s24  ;;  %v11736_v32 = vld [vmem:[#allocation5_spill] sm:$0xff]  ;;  %v1189_v17 = vrot.slane %v11735_v7, 6 }
 0x257   :  { %v1665_v21 = vsel %vm1664_vm8, %v1631_v2, %v11736_v32  ;;  %v11741_v2 = vld [vmem:[#allocation16_spill] sm:$0xff] }
 0x258   :  { %v7976_v3 = vpop.permute.xlu1 %1118  ;;  %v7978_v63 = vpop.permute.xlu0 %951 }
 0x259   :  { %11731 = vst [vmem:[#allocation29_spill] sm:$0xff] %v7976_v3  ;;  %11732 = vst [vmem:[#allocation25_spill] sm:$0xff] %v7978_v63  ;;  %v11737_v63 = vld [vmem:[#allocation12_spill] sm:$0xff] }
 0x25a   :  { %1353 = vrot.lane.b32.xlu1 %v11735_v7, %s6660_s23  ;;  %1253 = vrot.lane.b32.xlu0 %v1188_v56, %s6657_s29  ;;  %v1699_v55 = vsel %vm1698_vm9, %v1665_v21, %v11737_v63  ;;  %v11740_v56 = vld [vmem:[#allocation39_spill] sm:$0xff]  ;;  %v1632_v63 = vsel %vm1630_vm7, %v11743_v50, %v11742_v1  ;;  %v11747_v1 = vld [vmem:[#allocation14_spill] sm:$0xff] }
 0x25b   :  { %v1732_v39 = vsel %vm64_vm0, %v1699_v55, %v11738_v11  ;;  %v11744_v55 = vld [vmem:[#allocation10_spill] sm:$0xff] }
 0x25c   :  { %v1322_v3 = vpop.permute.xlu1 %1321  ;;  %v7989_v15 = vpop.permute.xlu0 %1237  ;;  %v1766_v32 = vsel %vm1765_vm10, %v1732_v39, %v11741_v2  ;;  %v11746_v2 = vld [vmem:[#allocation31_spill] sm:$0xff] }
 0x25d   :  { %v1800_v21 = vsel %vm1799_vm11, %v1766_v32, %v1322_v3  ;;  %v11748_v32 = vld [vmem:[#allocation15_spill] sm:$0xff] }
 0x25e   :  { %1563 = vrot.lane.b32.xlu1 %v11739_v54, %s6661_s2  ;;  %1458 = vrot.lane.b32.xlu0 %v11740_v56, %s6662_s24  ;;  %v1666_v54 = vsel %vm1664_vm8, %v1632_v63, %v11744_v55  ;;  %v1190_v56 = vsel %vm1153_vm5, %v1187_v4, %v1189_v17  ;;  %v1191_v55 = vrot.slane %v11746_v2, 6 }
 0x25f   :  { %v1700_v39 = vsel %vm1698_vm9, %v1666_v54, %v11745_v40  ;;  %v11750_v54 = vld [vmem:[#allocation43_spill] sm:$0xff] }
 0x260   :  { %v1532_v6 = vpop.permute.xlu1 %1531  ;;  %v1427_v42 = vpop.permute.xlu0 %1426  ;;  %v1733_v3 = vsel %vm64_vm0, %v1700_v39, %v11747_v1 }
 0x261   :  { %v1834_v11 = vsel %vm1833_vm12, %v1800_v21, %v1427_v42  ;;  %v1767_v42 = vsel %vm1765_vm10, %v1733_v3, %v11748_v32  ;;  %v11749_v21 = vmov 0.0  }
 0x262   :  { %1355 = vrot.lane.b32.xlu1 %v11746_v2, %s6660_s23  ;;  %1255 = vrot.lane.b32.xlu0 %v1190_v56, %s6657_s29  ;;  %v1868_v50 = vsel %vm1867_vm13, %v1834_v11, %v1532_v6  ;;  %v11751_v6 = vld [vmem:[#allocation38_spill] sm:$0xff]  ;;  %v11752_v11 = vld [vmem:[#allocation7_spill] sm:$0xff]  ;;  %v11753_v56 = vld [vmem:[#allocation4_spill] sm:$0xff] }
 0x263   :  { %5698 = vmatmul.mubr.msk.f32.vlgmr.msra.gmra.mxu1 %vm1914_vm14, %v1868_v50  ;;  %v1633_v39 = vsel %vm1630_vm7, %v11753_v56, %v11752_v11  ;;  %v11754_v50 = vld [vmem:[#allocation9_spill] sm:$0xff]  ;;  %v11758_v11 = vld [vmem:[#allocation32_spill] sm:$0xff] }
 0x264   :  { %v1429_v63 = vpop.permute.xlu1 %1428  ;;  %v1324_v4 = vpop.permute.xlu0 %1323  ;;  %5700 = vmatprep.mubr.msk.f32.mxu1 %vm6659_vm6, %v11749_v21  ;;  %v1667_v1 = vsel %vm1664_vm8, %v1633_v39, %v11754_v50 }
 0x265   :  { %v1801_v40 = vsel %vm1799_vm11, %v1767_v42, %v1324_v4  ;;  %v11755_v42 = vld [vmem:[#allocation23_spill] sm:$0xff] }
 0x266   :  { %1565 = vrot.lane.b32.xlu1 %v11750_v54, %s6661_s2  ;;  %1460 = vrot.lane.b32.xlu0 %v11751_v6, %s6662_s24  ;;  %v1835_v32 = vsel %vm1833_vm12, %v1801_v40, %v1429_v63  ;;  %v1701_v4 = vsel %vm1698_vm9, %v1667_v1, %v11755_v42  ;;  %v1192_v54 = vsel %vm1153_vm5, %v1189_v17, %v1191_v55  ;;  %v11759_v63 = vld [vmem:[#allocation20_spill] sm:$0xff] }
 0x267   :  { %v1734_v6 = vsel %vm64_vm0, %v1701_v4, %v11756_v60  ;;  %v1634_v40 = vsel %vm1630_vm7, %v6862_v46, %v11759_v63  ;;  %v11760_v60 = vld [vmem:[#allocation21_spill] sm:$0xff]  ;;  %v11761_v42 = vld [vmem:[#allocation24_spill] sm:$0xff] }
 0x268   :  { %v1326_v3 = vpop.permute.xlu1 %1325  ;;  %v1534_v14 = vpop.permute.xlu0 %1533  ;;  %v1768_v56 = vsel %vm1765_vm10, %v1734_v6, %v11758_v11  ;;  %v1668_v50 = vsel %vm1664_vm8, %v1634_v40, %v11760_v60  ;;  %v11762_v4 = vld [vmem:[#allocation56_spill] sm:$0xff]  ;;  %v11763_v46 = vld [vmem:[#allocation53_spill] sm:$0xff] }
 0x269   :  { %v1869_v53 = vsel %vm1867_vm13, %v1835_v32, %v1534_v14  ;;  %v1802_v14 = vsel %vm1799_vm11, %v1768_v56, %v1326_v3  ;;  %v1193_v32 = vrot.slane %v11757_v45, 6  ;;  %v11765_v11 = vld [vmem:[#allocation33_spill] sm:$0xff] }
 0x26a   :  { %1357 = vrot.lane.b32.xlu1 %v11757_v45, %s6660_s23  ;;  %1257 = vrot.lane.b32.xlu0 %v1192_v54, %s6657_s29  ;;  %v11764_v54 = vld [vmem:[#allocation27_spill] sm:$0xff]  ;;  %v11766_v60 = vld [vmem:[#allocation45_spill] sm:$0xff] }
 0x26b   :  { %5701 = vmatmul.mubr.msk.f32.gmra.mxu1 %vm1914_vm14, %v1869_v53  ;;  %v1702_v53 = vsel %vm1698_vm9, %v1668_v50, %v11761_v42 }
 0x26c   :  { %v1536_v17 = vpop.permute.xlu1 %1535  ;;  %v1431_v39 = vpop.permute.xlu0 %1430  ;;  %5703 = vmatprep.mubr.msk.f32.mxu1 %vm6659_vm6, %v11749_v21  ;;  %v1735_v6 = vsel %vm64_vm0, %v1702_v53, %v11764_v54 }
 0x26d   :  { %v1836_v1 = vsel %vm1833_vm12, %v1802_v14, %v1431_v39  ;;  %v1769_v56 = vsel %vm1765_vm10, %v1735_v6, %v11765_v11  ;;  %v1194_v39 = vsel %vm1153_vm5, %v1191_v55, %v1193_v32  ;;  %v1195_v6 = vrot.slane %v11766_v60, 6  ;;  %v11770_v11 = vld [vmem:[#allocation47_spill] sm:$0xff] }
 0x26e   :  { %1567 = vrot.lane.b32.xlu1 %v11762_v4, %s6661_s2  ;;  %1462 = vrot.lane.b32.xlu0 %v11763_v46, %s6662_s24  ;;  %v1870_v3 = vsel %vm1867_vm13, %v1836_v1, %v1536_v17  ;;  %v11767_v17 = vld [vmem:[#allocation19_spill] sm:$0xff]  ;;  %v11768_v1 = vld [vmem:[#allocation22_spill] sm:$0xff] }
 0x26f   :  { %5704 = vmatmul.mubr.msk.f32.gmra.mxu1 %vm1914_vm14, %v1870_v3  ;;  %v1635_v50 = vsel %vm1630_vm7, %v6897_v9, %v11767_v17  ;;  %v11769_v3 = vld [vmem:[#allocation40_spill] sm:$0xff] }
 0x270   :  { %v1433_v63 = vpop.permute.xlu1 %1432  ;;  %v1328_v40 = vpop.permute.xlu0 %1327  ;;  %5706 = vmatprep.mubr.msk.f32.mxu1 %vm6659_vm6, %v11749_v21  ;;  %v1669_v42 = vsel %vm1664_vm8, %v1635_v50, %v11768_v1  ;;  %v11772_v9 = vld [vmem:[#allocation52_spill] sm:$0xff] }
 0x271   :  { %v1803_v14 = vsel %vm1799_vm11, %v1769_v56, %v1328_v40  ;;  %v1703_v54 = vsel %vm1698_vm9, %v1669_v42, %v11769_v3  ;;  %v11771_v40 = vld [vmem:[#allocation57_spill] sm:$0xff] }
 0x272   :  { %1359 = vrot.lane.b32.xlu1 %v11766_v60, %s6660_s23  ;;  %1259 = vrot.lane.b32.xlu0 %v1194_v39, %s6657_s29  ;;  %v1837_v4 = vsel %vm1833_vm12, %v1803_v14, %v1433_v63  ;;  %v1736_v56 = vsel %vm64_vm0, %v1703_v54, %v11770_v11  ;;  %v11773_v39 = vld [vmem:[#allocation48_spill] sm:$0xff]  ;;  %v11774_v14 = vld [vmem:[#allocation35_spill] sm:$0xff]  ;;  %v1196_v54 = vsel %vm1153_vm5, %v1193_v32, %v1195_v6  ;;  %v11776_v11 = vld [vmem:[#allocation41_spill] sm:$0xff] }
 0x273   :  { %v1770_v63 = vsel %vm1765_vm10, %v1736_v56, %v11773_v39  ;;  %v1636_v17 = vsel %vm1630_vm7, %v6895_v8, %v11774_v14  ;;  %v11777_v56 = vld [vmem:[#allocation44_spill] sm:$0xff] }
 0x274   :  { %v1330_v53 = vpop.permute.xlu1 %1329  ;;  %v1538_v46 = vpop.permute.xlu0 %1537 }
 0x275   :  { %v1871_v55 = vsel %vm1867_vm13, %v1837_v4, %v1538_v46  ;;  %v1804_v50 = vsel %vm1799_vm11, %v1770_v63, %v1330_v53  ;;  %v11775_v4 = vld [vmem:[#allocation36_spill] sm:$0xff]  ;;  %v11778_v53 = vld [vmem:[#allocation46_spill] sm:$0xff] }
 0x276   :  { %1569 = vrot.lane.b32.xlu1 %v11771_v40, %s6661_s2  ;;  %1464 = vrot.lane.b32.xlu0 %v11772_v9, %s6662_s24  ;;  %v1670_v46 = vsel %vm1664_vm8, %v1636_v17, %v11775_v4  ;;  %v11779_v9 = vld [vmem:[#allocation49_spill] sm:$0xff]  ;;  %v1197_v17 = vrot.slane %v11777_v56, 6 }
 0x277   :  { %5707 = vmatmul.mubr.msk.f32.gmra.mxu1 %vm1914_vm14, %v1871_v55  ;;  %v1704_v55 = vsel %vm1698_vm9, %v1670_v46, %v11776_v11  ;;  %v11783_v46 = vld [vmem:[#allocation37_spill] sm:$0xff] }
 0x278   :  { %v1540_v1 = vpop.permute.xlu1 %1539  ;;  %v1435_v42 = vpop.permute.xlu0 %1434  ;;  %5709 = vmatprep.mubr.msk.f32.mxu1 %vm6659_vm6, %v11749_v21  ;;  %v1737_v40 = vsel %vm64_vm0, %v1704_v55, %v11778_v53 }
 0x279   :  { %v1838_v3 = vsel %vm1833_vm12, %v1804_v50, %v1435_v42  ;;  %v1771_v39 = vsel %vm1765_vm10, %v1737_v40, %v11779_v9  ;;  %v11780_v50 = vld [vmem:[#allocation70_spill] sm:$0xff]  ;;  %v1198_v9 = vsel %vm1153_vm5, %v1195_v6, %v1197_v17 }
 0x27a   :  { %1361 = vrot.lane.b32.xlu1 %v11777_v56, %s6660_s23  ;;  %1261 = vrot.lane.b32.xlu0 %v1196_v54, %s6657_s29  ;;  %v1872_v8 = vsel %vm1867_vm13, %v1838_v3, %v1540_v1  ;;  %v11781_v1 = vld [vmem:[#allocation67_spill] sm:$0xff]  ;;  %v11782_v42 = vld [vmem:[#allocation34_spill] sm:$0xff] }
 0x27b   :  { %5710 = vmatmul.mubr.msk.f32.gmra.mxu1 %vm1914_vm14, %v1872_v8  ;;  %v1637_v4 = vsel %vm1630_vm7, %v6944_v34, %v11782_v42  ;;  %v11784_v8 = vld [vmem:[#allocation60_spill] sm:$0xff] }
 0x27c   :  { %v1437_v63 = vpop.permute.xlu1 %1436  ;;  %v1332_v32 = vpop.permute.xlu0 %1331  ;;  %5712 = vmatprep.mubr.msk.f32.mxu1 %vm6659_vm6, %v11749_v21  ;;  %v1671_v3 = vsel %vm1664_vm8, %v1637_v4, %v11783_v46  ;;  %v11787_v34 = vld [vmem:[#allocation64_spill] sm:$0xff]  ;;  %v11789_v46 = vld [vmem:[#allocation54_spill] sm:$0xff] }
 0x27d   :  { %v1805_v14 = vsel %vm1799_vm11, %v1771_v39, %v1332_v32  ;;  %v1705_v53 = vsel %vm1698_vm9, %v1671_v3, %v11784_v8  ;;  %v11785_v39 = vld [vmem:[#allocation63_spill] sm:$0xff]  ;;  %v11790_v8 = vld [vmem:[#allocation61_spill] sm:$0xff] }
 0x27e   :  { %1571 = vrot.lane.b32.xlu1 %v11780_v50, %s6661_s2  ;;  %1466 = vrot.lane.b32.xlu0 %v11781_v1, %s6662_s24  ;;  %v1839_v11 = vsel %vm1833_vm12, %v1805_v14, %v1437_v63  ;;  %v1738_v32 = vsel %vm64_vm0, %v1705_v53, %v11785_v39  ;;  %v11786_v50 = vld [vmem:[#allocation59_spill] sm:$0xff] }
 0x27f   :  { %v1772_v1 = vsel %vm1765_vm10, %v1738_v32, %v11787_v34  ;;  %v11788_v63 = vld [vmem:[#allocation51_spill] sm:$0xff]  ;;  %v11794_v32 = vld [vmem:[#allocation65_spill] sm:$0xff] }
 0x280   :  { %v1334_v54 = vpop.permute.xlu1 %1333  ;;  %v1542_v55 = vpop.permute.xlu0 %1541  ;;  %v1638_v14 = vsel %vm1630_vm7, %v6942_v33, %v11788_v63  ;;  %v11792_v33 = vld [vmem:[#allocation66_spill] sm:$0xff] }
 0x281   :  { %v1873_v40 = vsel %vm1867_vm13, %v1839_v11, %v1542_v55  ;;  %v1806_v42 = vsel %vm1799_vm11, %v1772_v1, %v1334_v54  ;;  %v1672_v3 = vsel %vm1664_vm8, %v1638_v14, %v11789_v46  ;;  %v1199_v55 = vrot.slane %v11786_v50, 6 }
 0x282   :  { %1363 = vrot.lane.b32.xlu1 %v11786_v50, %s6660_s23  ;;  %1263 = vrot.lane.b32.xlu0 %v1198_v9, %s6657_s29  ;;  %v1706_v53 = vsel %vm1698_vm9, %v1672_v3, %v11790_v8  ;;  %v11793_v9 = vld [vmem:[#allocation62_spill] sm:$0xff]  ;;  %v11797_v3 = vld [vmem:[#allocation55_spill] sm:$0xff] }
 0x283   :  { %5713 = vmatmul.mubr.msk.f32.gmra.mxu1 %vm1914_vm14, %v1873_v40  ;;  %v11791_v40 = vld [vmem:[#allocation71_spill] sm:$0xff]  ;;  %v1739_v39 = vsel %vm64_vm0, %v1706_v53, %v11793_v9 }
 0x284   :  { %v1544_v6 = vpop.permute.xlu1 %1543  ;;  %v1439_v4 = vpop.permute.xlu0 %1438  ;;  %5715 = vmatprep.mubr.msk.f32.mxu1 %vm6659_vm6, %v11749_v21  ;;  %v1773_v34 = vsel %vm1765_vm10, %v1739_v39, %v11794_v32  ;;  %v11799_v39 = vld [vmem:[#allocation79_spill] sm:$0xff] }
 0x285   :  { %v1840_v11 = vsel %vm1833_vm12, %v1806_v42, %v1439_v4  ;;  %v1200_v42 = vsel %vm1153_vm5, %v1197_v17, %v1199_v55  ;;  %v11795_v4 = vld [vmem:[#allocation58_spill] sm:$0xff] }
 0x286   :  { %1573 = vrot.lane.b32.xlu1 %v11791_v40, %s6661_s2  ;;  %1468 = vrot.lane.b32.xlu0 %v11792_v33, %s6662_s24  ;;  %v1874_v54 = vsel %vm1867_vm13, %v1840_v11, %v1544_v6  ;;  %v11796_v6 = vld [vmem:[#allocation50_spill] sm:$0xff]  ;;  %v11798_v33 = vld [vmem:[#allocation76_spill] sm:$0xff]  ;;  %v1201_v9 = vrot.slane %v11795_v4, 6 }
 0x287   :  { %5716 = vmatmul.mubr.msk.f32.gmra.mxu1 %vm1914_vm14, %v1874_v54  ;;  %v1639_v46 = vsel %vm1630_vm7, %v6990_v62, %v11796_v6  ;;  %v11801_v62 = vld [vmem:[#allocation81_spill] sm:$0xff] }
 0x288   :  { %v1441_v1 = vpop.permute.xlu1 %1440  ;;  %v1336_v63 = vpop.permute.xlu0 %1335  ;;  %5718 = vmatprep.mubr.msk.f32.mxu1 %vm6659_vm6, %v11749_v21  ;;  %v1673_v11 = vsel %vm1664_vm8, %v1639_v46, %v11797_v3  ;;  %v11802_v6 = vld [vmem:[#allocation69_spill] sm:$0xff] }
 0x289   :  { %v1807_v14 = vsel %vm1799_vm11, %v1773_v34, %v1336_v63  ;;  %v1707_v54 = vsel %vm1698_vm9, %v1673_v11, %v11798_v33  ;;  %v11800_v34 = vld [vmem:[#allocation84_spill] sm:$0xff]  ;;  %v1640_v46 = vsel %vm1630_vm7, %v6988_v61, %v11802_v6  ;;  %v1202_v11 = vsel %vm1153_vm5, %v1199_v55, %v1201_v9  ;;  %v11805_v33 = vld [vmem:[#allocation77_spill] sm:$0xff]  ;;  %v11806_v61 = vld [vmem:[#allocation78_spill] sm:$0xff] }
 0x28a   :  { %1365 = vrot.lane.b32.xlu1 %v11795_v4, %s6660_s23  ;;  %1265 = vrot.lane.b32.xlu0 %v1200_v42, %s6657_s29  ;;  %v1841_v53 = vsel %vm1833_vm12, %v1807_v14, %v1441_v1  ;;  %v1740_v32 = vsel %vm64_vm0, %v1707_v54, %v11799_v39  ;;  %v11809_v6 = vld [vmem:[#allocation68_spill] sm:$0xff] }
 0x28b   :  { %v1774_v1 = vsel %vm1765_vm10, %v1740_v32, %v7989_v15 }
 0x28c   :  { %v1338_v8 = vpop.permute.xlu1 %1337  ;;  %v1546_v40 = vpop.permute.xlu0 %1545 }
 0x28d   :  { %v1875_v17 = vsel %vm1867_vm13, %v1841_v53, %v1546_v40  ;;  %v1808_v63 = vsel %vm1799_vm11, %v1774_v1, %v1338_v8  ;;  %v11803_v53 = vld [vmem:[#allocation72_spill] sm:$0xff]  ;;  %v11804_v40 = vld [vmem:[#allocation75_spill] sm:$0xff] }
 0x28e   :  { %1575 = vrot.lane.b32.xlu1 %v11800_v34, %s6661_s2  ;;  %1470 = vrot.lane.b32.xlu0 %v11801_v62, %s6662_s24  ;;  %v1674_v15 = vsel %vm1664_vm8, %v1640_v46, %v11803_v53  ;;  %v1203_v34 = vrot.slane %v11804_v40, 6  ;;  %v11807_v62 = vld [vmem:[#allocation85_spill] sm:$0xff]  ;;  %v11808_v1 = vld [vmem:[#allocation80_spill] sm:$0xff]  ;;  %v1641_v46 = vsel %vm1630_vm7, %v7036_v28, %v11809_v6 }
 0x28f   :  { %5719 = vmatmul.mubr.msk.f32.gmra.mxu1 %vm1914_vm14, %v1875_v17  ;;  %v1708_v54 = vsel %vm1698_vm9, %v1674_v15, %v11805_v33  ;;  %v11810_v53 = vld [vmem:[#allocation73_spill] sm:$0xff]  ;;  %v11813_v28 = vld [vmem:[#allocation92_spill] sm:$0xff] }
 0x290   :  { %v1548_v14 = vpop.permute.xlu1 %1547  ;;  %v1443_v42 = vpop.permute.xlu0 %1442  ;;  %5721 = vmatprep.mubr.msk.f32.mxu1 %vm6659_vm6, %v11749_v21  ;;  %v1741_v17 = vsel %vm64_vm0, %v1708_v54, %v11806_v61  ;;  %v1675_v15 = vsel %vm1664_vm8, %v1641_v46, %v11810_v53  ;;  %v11812_v54 = vld [vmem:[#allocation89_spill] sm:$0xff] }
 0x291   :  { %v1842_v3 = vsel %vm1833_vm12, %v1808_v63, %v1443_v42  ;;  %v1709_v61 = vsel %vm1698_vm9, %v1675_v15, %v11812_v54  ;;  %v11817_v15 = vld [vmem:[#allocation90_spill] sm:$0xff] }
 0x292   :  { %1367 = vrot.lane.b32.xlu1 %v11804_v40, %s6660_s23  ;;  %1267 = vrot.lane.b32.xlu0 %v1202_v11, %s6657_s29  ;;  %v1876_v8 = vsel %vm1867_vm13, %v1842_v3, %v1548_v14  ;;  %v1204_v11 = vsel %vm1153_vm5, %v1201_v9, %v1203_v34 }
 0x293   :  { %5722 = vmatmul.mubr.msk.f32.gmra.mxu1 %vm1914_vm14, %v1876_v8  ;;  %v11811_v8 = vld [vmem:[#allocation74_spill] sm:$0xff] }
 0x294   :  { %v1340_v39 = vpop.permute.xlu1 %1339  ;;  %v1240_v55 = vpop.permute.xlu0 %1239  ;;  %5724 = vmatprep.mubr.msk.f32.mxu1 %vm6659_vm6, %v11749_v21 }
 0x295   :  { %v1775_v32 = vsel %vm1765_vm10, %v1741_v17, %v1240_v55  ;;  %v1742_v17 = vsel %vm64_vm0, %v1709_v61, %v11813_v28 }
 0x296   :  { %1577 = vrot.lane.b32.xlu1 %v11807_v62, %s6661_s2  ;;  %1472 = vrot.lane.b32.xlu0 %v11808_v1, %s6662_s24  ;;  %v1809_v14 = vsel %vm1799_vm11, %v1775_v32, %v1340_v39  ;;  %v1205_v32 = vrot.slane %v11811_v8, 6  ;;  %v11814_v62 = vld [vmem:[#allocation94_spill] sm:$0xff] }
 0x298   :  { %v1550_v63 = vpop.permute.xlu1 %1549  ;;  %v1445_v42 = vpop.permute.xlu0 %1444 }
 0x299   :  { %v1843_v3 = vsel %vm1833_vm12, %v1809_v14, %v1445_v42  ;;  %v11815_v42 = vld [vmem:[#allocation83_spill] sm:$0xff] }
 0x29a   :  { %1369 = vrot.lane.b32.xlu1 %v11811_v8, %s6660_s23  ;;  %1269 = vrot.lane.b32.xlu0 %v1204_v11, %s6657_s29  ;;  %v1877_v33 = vsel %vm1867_vm13, %v1843_v3, %v1550_v63  ;;  %v1642_v6 = vsel %vm1630_vm7, %v7034_v27, %v11815_v42  ;;  %v1206_v3 = vsel %vm1153_vm5, %v1203_v34, %v1205_v32  ;;  %v11816_v11 = vld [vmem:[#allocation86_spill] sm:$0xff]  ;;  %v11818_v27 = vld [vmem:[#allocation91_spill] sm:$0xff] }
 0x29b   :  { %5725 = vmatmul.mubr.msk.f32.gmra.mxu1 %vm1914_vm14, %v1877_v33  ;;  %v1676_v53 = vsel %vm1664_vm8, %v1642_v6, %v11816_v11  ;;  %v11823_v11 = vld [vmem:[#allocation88_spill] sm:$0xff] }
 0x29c   :  { %v1342_v39 = vpop.permute.xlu1 %1341  ;;  %v1242_v9 = vpop.permute.xlu0 %1241  ;;  %5727 = vmatprep.mubr.msk.f32.mxu1 %vm6659_vm6, %v11749_v21  ;;  %v1710_v33 = vsel %vm1698_vm9, %v1676_v53, %v11817_v15 }
 0x29d   :  { %v1776_v55 = vsel %vm1765_vm10, %v1742_v17, %v1242_v9  ;;  %v1743_v54 = vsel %vm64_vm0, %v1710_v33, %v11818_v27  ;;  %v1207_v17 = vrot.slane %v7508_v49, 6  ;;  %v11820_v9 = vld [vmem:[#allocation93_spill] sm:$0xff] }
 0x29e   :  { %1579 = vrot.lane.b32.xlu1 %v7546_v5, %s6661_s2  ;;  %1474 = vrot.lane.b32.xlu0 %v11814_v62, %s6662_s24  ;;  %v1810_v63 = vsel %vm1799_vm11, %v1776_v55, %v1342_v39  ;;  %v11819_v39 = vld [vmem:[#allocation97_spill] sm:$0xff] }
 0x29f   :  { %v1208_v6 = vsel %vm1153_vm5, %v1205_v32, %v1207_v17 }
 0x2a0   :  { %v1552_v1 = vpop.permute.xlu1 %1551  ;;  %v1447_v14 = vpop.permute.xlu0 %1446 }
 0x2a1   :  { %v1844_v46 = vsel %vm1833_vm12, %v1810_v63, %v1447_v14  ;;  %v11821_v63 = vld [vmem:[#allocation82_spill] sm:$0xff] }
 0x2a2   :  { %1371 = vrot.lane.b32.xlu1 %v7508_v49, %s6660_s23  ;;  %1271 = vrot.lane.b32.xlu0 %v1206_v3, %s6657_s29  ;;  %v1878_v5 = vsel %vm1867_vm13, %v1844_v46, %v1552_v1  ;;  %v1643_v14 = vsel %vm1630_vm7, %v7078_v58, %v11821_v63  ;;  %v11822_v46 = vld [vmem:[#allocation87_spill] sm:$0xff]  ;;  %v11825_v58 = vld [vmem:[#allocation104_spill] sm:$0xff] }
 0x2a3   :  { %5728 = vmatmul.mubr.msk.f32.gmra.mxu1 %vm1914_vm14, %v1878_v5  ;;  %v1677_v3 = vsel %vm1664_vm8, %v1643_v14, %v11822_v46  ;;  %v11824_v5 = vld [vmem:[#allocation101_spill] sm:$0xff] }
 0x2a4   :  { %v1344_v61 = vpop.permute.xlu1 %1343  ;;  %v1244_v34 = vpop.permute.xlu0 %1243  ;;  %5730 = vmatprep.mubr.msk.f32.mxu1 %vm6659_vm6, %v11749_v21  ;;  %v1711_v15 = vsel %vm1698_vm9, %v1677_v3, %v11824_v5  ;;  %v11830_v3 = vld [vmem:[#allocation102_spill] sm:$0xff] }
 0x2a5   :  { %v1777_v28 = vsel %vm1765_vm10, %v1743_v54, %v1244_v34  ;;  %v1744_v33 = vsel %vm64_vm0, %v1711_v15, %v11825_v58  ;;  %v11826_v34 = vld [vmem:[#allocation109_spill] sm:$0xff] }
 0x2a6   :  { %1581 = vrot.lane.b32.xlu1 %v11819_v39, %s6661_s2  ;;  %1476 = vrot.lane.b32.xlu0 %v11820_v9, %s6662_s24  ;;  %v1811_v62 = vsel %vm1799_vm11, %v1777_v28, %v1344_v61  ;;  %v1209_v61 = vrot.slane %v11823_v11, 6  ;;  %v11827_v28 = vld [vmem:[#allocation106_spill] sm:$0xff] }
 0x2a8   :  { %v1554_v55 = vpop.permute.xlu1 %1553  ;;  %v1449_v1 = vpop.permute.xlu0 %1448  ;;  %v1210_v14 = vsel %vm1153_vm5, %v1207_v17, %v1209_v61 }
 0x2a9   :  { %v1845_v42 = vsel %vm1833_vm12, %v1811_v62, %v1449_v1  ;;  %v11828_v62 = vld [vmem:[#allocation96_spill] sm:$0xff] }
 0x2aa   :  { %1373 = vrot.lane.b32.xlu1 %v11823_v11, %s6660_s23  ;;  %1273 = vrot.lane.b32.xlu0 %v1208_v6, %s6657_s29  ;;  %v1879_v53 = vsel %vm1867_vm13, %v1845_v42, %v1554_v55  ;;  %v1644_v1 = vsel %vm1630_vm7, %v7076_v57, %v11828_v62  ;;  %v11829_v42 = vld [vmem:[#allocation98_spill] sm:$0xff]  ;;  %v11831_v57 = vld [vmem:[#allocation103_spill] sm:$0xff] }
 0x2ab   :  { %5731 = vmatmul.mubr.msk.f32.gmra.mxu1 %vm1914_vm14, %v1879_v53  ;;  %v1678_v6 = vsel %vm1664_vm8, %v1644_v1, %v11829_v42  ;;  %v11835_v1 = vld [vmem:[#allocation99_spill] sm:$0xff] }
 0x2ac   :  { %v1346_v27 = vpop.permute.xlu1 %1345  ;;  %v1246_v32 = vpop.permute.xlu0 %1245  ;;  %5733 = vmatprep.mubr.msk.f32.mxu1 %vm6659_vm6, %v11749_v21  ;;  %v1712_v53 = vsel %vm1698_vm9, %v1678_v6, %v11830_v3  ;;  %v11837_v6 = vld [vmem:[#allocation113_spill] sm:$0xff] }
 0x2ad   :  { %v1778_v54 = vsel %vm1765_vm10, %v1744_v33, %v1246_v32  ;;  %v1745_v5 = vsel %vm64_vm0, %v1712_v53, %v11831_v57  ;;  %v1211_v33 = vrot.slane %v7564_v48, 6  ;;  %v11833_v32 = vld [vmem:[#allocation105_spill] sm:$0xff] }
 0x2ae   :  { %1583 = vrot.lane.b32.xlu1 %v11826_v34, %s6661_s2  ;;  %1478 = vrot.lane.b32.xlu0 %v11827_v28, %s6662_s24  ;;  %v1812_v9 = vsel %vm1799_vm11, %v1778_v54, %v1346_v27  ;;  %v11832_v27 = vld [vmem:[#allocation110_spill] sm:$0xff] }
 0x2af   :  { %v1212_v62 = vsel %vm1153_vm5, %v1209_v61, %v1211_v33 }
 0x2b0   :  { %v1556_v39 = vpop.permute.xlu1 %1555  ;;  %v1451_v55 = vpop.permute.xlu0 %1450 }
 0x2b1   :  { %v1846_v63 = vsel %vm1833_vm12, %v1812_v9, %v1451_v55 }
 0x2b2   :  { %1375 = vrot.lane.b32.xlu1 %v7564_v48, %s6660_s23  ;;  %1275 = vrot.lane.b32.xlu0 %v1210_v14, %s6657_s29  ;;  %v1880_v46 = vsel %vm1867_vm13, %v1846_v63, %v1556_v39  ;;  %v11834_v39 = vld [vmem:[#allocation95_spill] sm:$0xff]  ;;  %v11836_v14 = vld [vmem:[#allocation100_spill] sm:$0xff] }
 0x2b3   :  { %5734 = vmatmul.mubr.msk.f32.gmra.mxu1 %vm1914_vm14, %v1880_v46  ;;  %v1645_v9 = vsel %vm1630_vm7, %v7118_v26, %v11834_v39  ;;  %v11838_v26 = vld [vmem:[#allocation116_spill] sm:$0xff]  ;;  %v1213_v57 = vrot.slane %v11836_v14, 6 }
 0x2b4   :  { %v1348_v15 = vpop.permute.xlu1 %1347  ;;  %v1248_v17 = vpop.permute.xlu0 %1247  ;;  %5736 = vmatprep.mubr.msk.f32.mxu1 %vm6659_vm6, %v11749_v21  ;;  %v1679_v63 = vsel %vm1664_vm8, %v1645_v9, %v11835_v1  ;;  %v1525_v9 = vrot.slane %v7650_v0, 2 }
 0x2b5   :  { %v1779_v58 = vsel %vm1765_vm10, %v1745_v5, %v1248_v17  ;;  %v1713_v46 = vsel %vm1698_vm9, %v1679_v63, %v11837_v6  ;;  %v11840_v17 = vld [vmem:[#allocation123_spill] sm:$0xff]  ;;  %v11843_v63 = vld [vmem:[#allocation114_spill] sm:$0xff] }
 0x2b6   :  { %1585 = vrot.lane.b32.xlu1 %v11832_v27, %s6661_s2  ;;  %1480 = vrot.lane.b32.xlu0 %v11833_v32, %s6662_s24  ;;  %v1813_v34 = vsel %vm1799_vm11, %v1779_v58, %v1348_v15  ;;  %v1746_v3 = vsel %vm64_vm0, %v1713_v46, %v11838_v26  ;;  %v11839_v15 = vld [vmem:[#allocation122_spill] sm:$0xff] }
 0x2b8   :  { %v1558_v54 = vpop.permute.xlu1 %1557  ;;  %v1453_v28 = vpop.permute.xlu0 %1452 }
 0x2b9   :  { %v1847_v55 = vsel %vm1833_vm12, %v1813_v34, %v1453_v28  ;;  %v11841_v34 = vld [vmem:[#allocation108_spill] sm:$0xff] }
 0x2ba   :  { %1377 = vrot.lane.b32.xlu1 %v11836_v14, %s6660_s23  ;;  %1277 = vrot.lane.b32.xlu0 %v1212_v62, %s6657_s29  ;;  %v1881_v42 = vsel %vm1867_vm13, %v1847_v55, %v1558_v54  ;;  %v1214_v54 = vsel %vm1153_vm5, %v1211_v33, %v1213_v57  ;;  %v1646_v28 = vsel %vm1630_vm7, %v7116_v23, %v11841_v34  ;;  %v1420_v55 = vrot.slane %v7650_v0, 1  ;;  %v11842_v62 = vld [vmem:[#allocation111_spill] sm:$0xff] }
 0x2bb   :  { %5737 = vmatmul.mubr.msk.f32.gmra.mxu1 %vm1914_vm14, %v1881_v42  ;;  %v1680_v1 = vsel %vm1664_vm8, %v1646_v28, %v11842_v62  ;;  %v11844_v23 = vld [vmem:[#allocation115_spill] sm:$0xff]  ;;  %v1527_v62 = vrot.slane %v7693_v38, 2 }
 0x2bc   :  { %v1350_v53 = vpop.permute.xlu1 %1349  ;;  %v1250_v61 = vpop.permute.xlu0 %1249  ;;  %5739 = vmatprep.mubr.msk.f32.mxu1 %vm6659_vm6, %v11749_v21  ;;  %v1714_v42 = vsel %vm1698_vm9, %v1680_v1, %v11843_v63  ;;  %v11847_v34 = vld [vmem:[#allocation107_spill] sm:$0xff]  ;;  %v1422_v1 = vrot.slane %v7693_v38, 1 }
 0x2bd   :  { %v1780_v5 = vsel %vm1765_vm10, %v1746_v3, %v1250_v61  ;;  %v1747_v6 = vsel %vm64_vm0, %v1714_v42, %v11844_v23  ;;  %v1215_v3 = vrot.slane %v7622_v36, 6  ;;  %v11845_v61 = vld [vmem:[#allocation117_spill] sm:$0xff]  ;;  %v1647_v28 = vsel %vm1630_vm7, %v7166_v16, %v11847_v34  ;;  %v11849_v16 = vld [vmem:[#allocation119_spill] sm:$0xff]  ;;  %v11851_v34 = vld [vmem:[#allocation124_spill] sm:$0xff] }
 0x2be   :  { %1587 = vrot.lane.b32.xlu1 %v11839_v15, %s6661_s2  ;;  %1482 = vrot.lane.b32.xlu0 %v11840_v17, %s6662_s24  ;;  %v1814_v27 = vsel %vm1799_vm11, %v1780_v5, %v1350_v53  ;;  %v1526_v5 = vsel %vm652_vm1, %v11845_v61, %v1525_v9  ;;  %v11846_v15 = vld [vmem:[#allocation118_spill] sm:$0xff]  ;;  %v453_v23 = vmax.f32 %v11849_v16, 0.0  ;;  %v1528_v61 = vsel %vm652_vm1, %v1525_v9, %v1527_v62 }
 0x2bf   :  { %v1421_v17 = vsel %vm487_vm2, %v11846_v15, %v1420_v55 }
 0x2c0   :  { %v1560_v58 = vpop.permute.xlu1 %1559  ;;  %v1455_v32 = vpop.permute.xlu0 %1454  ;;  %v1424_v15 = vrot.slane %v453_v23, 1 }
 0x2c1   :  { %v1848_v39 = vsel %vm1833_vm12, %v1814_v27, %v1455_v32 }
 0x2c2   :  { %1379 = vrot.lane.b32.xlu1 %v7622_v36, %s6660_s23  ;;  %1279 = vrot.lane.b32.xlu0 %v1214_v54, %s6657_s29  ;;  %v1882_v33 = vsel %vm1867_vm13, %v1848_v39, %v1560_v58  ;;  %v1216_v54 = vsel %vm1153_vm5, %v1213_v57, %v1215_v3 }
 0x2c3   :  { %5740 = vmatmul.mubr.msk.f32.gmra.mxu1 %vm1914_vm14, %v1882_v33  ;;  %v11848_v33 = vld [vmem:[#allocation112_spill] sm:$0xff] }
 0x2c4   :  { %v1352_v46 = vpop.permute.xlu1 %1351  ;;  %v1252_v26 = vpop.permute.xlu0 %1251  ;;  %5742 = vmatprep.mubr.msk.f32.mxu1 %vm6659_vm6, %v11749_v21  ;;  %v1681_v63 = vsel %vm1664_vm8, %v1647_v28, %v11848_v33 }
 0x2c5   :  { %v1781_v53 = vsel %vm1765_vm10, %v1747_v6, %v1252_v26  ;;  %v1715_v42 = vsel %vm1698_vm9, %v1681_v63, %v7704_v30  ;;  %v1217_v30 = vrot.slane %v7650_v0, 6 }
 0x2c6   :  { %1589 = vrot.lane.b32.xlu1 %v1526_v5, %s6661_s2  ;;  %1484 = vrot.lane.b32.xlu0 %v1421_v17, %s6662_s24  ;;  %v1815_v27 = vsel %vm1799_vm11, %v1781_v53, %v1352_v46  ;;  %v1748_v6 = vsel %vm64_vm0, %v1715_v42, %v7723_v29  ;;  %v1423_v5 = vsel %vm487_vm2, %v1420_v55, %v1422_v1 }
 0x2c7   :  { %v1218_v55 = vsel %vm1153_vm5, %v1215_v3, %v1217_v30 }
 0x2c8   :  { %v1562_v58 = vpop.permute.xlu1 %1561  ;;  %v1457_v32 = vpop.permute.xlu0 %1456 }
 0x2c9   :  { %v1849_v39 = vsel %vm1833_vm12, %v1815_v27, %v1457_v32  ;;  %v1529_v27 = vrot.slane %v453_v23, 2  ;;  %v11850_v32 = vld [vmem:[#allocation121_spill] sm:$0xff] }
 0x2ca   :  { %1381 = vrot.lane.b32.xlu1 %v7650_v0, %s6660_s23  ;;  %1281 = vrot.lane.b32.xlu0 %v1216_v54, %s6657_s29  ;;  %v1883_v57 = vsel %vm1867_vm13, %v1849_v39, %v1562_v58  ;;  %v1648_v54 = vsel %vm1630_vm7, %v7164_v12, %v11850_v32  ;;  %v11852_v39 = vld [vmem:[#allocation126_spill] sm:$0xff]  ;;  %v11853_v12 = vld [vmem:[#allocation127_spill] sm:$0xff] }
 0x2cb   :  { %5743 = vmatmul.mubr.msk.f32.gmra.mxu1 %vm1914_vm14, %v1883_v57  ;;  %v1682_v0 = vsel %vm1664_vm8, %v1648_v54, %v11851_v34  ;;  %v1530_v16 = vsel %vm652_vm1, %v1527_v62, %v1529_v27  ;;  %v1650_v34 = vsel %vm1630_vm7, %v11735_v7, %v7739_v51 }
 0x2cc   :  { %v1354_v46 = vpop.permute.xlu1 %1353  ;;  %v1254_v26 = vpop.permute.xlu0 %1253  ;;  %5745 = vmatprep.mubr.msk.f32.mxu1 %vm6659_vm6, %v11749_v21  ;;  %v1716_v33 = vsel %vm1698_vm9, %v1682_v0, %v11852_v39  ;;  %v1684_v0 = vsel %vm1664_vm8, %v1650_v34, %v7750_v35 }
 0x2cd   :  { %v1782_v53 = vsel %vm1765_vm10, %v1748_v6, %v1254_v26  ;;  %v1749_v63 = vsel %vm64_vm0, %v1716_v33, %v11853_v12  ;;  %v1425_v6 = vsel %vm487_vm2, %v1422_v1, %v1424_v15 }
 0x2ce   :  { %1591 = vrot.lane.b32.xlu1 %v1528_v61, %s6661_s2  ;;  %1486 = vrot.lane.b32.xlu0 %v1423_v5, %s6662_s24  ;;  %v1816_v29 = vsel %vm1799_vm11, %v1782_v53, %v1354_v46  ;;  %v1219_v46 = vrot.slane %v7693_v38, 6  ;;  %v11854_v5 = vld [vmem:[#allocation120_spill] sm:$0xff] }
 0x2d0   :  { %v1564_v17 = vpop.permute.xlu1 %1563  ;;  %v1459_v58 = vpop.permute.xlu0 %1458  ;;  %v1220_v62 = vsel %vm1153_vm5, %v1217_v30, %v1219_v46 }
 0x2d1   :  { %v1850_v9 = vsel %vm1833_vm12, %v1816_v29, %v1459_v58  ;;  %v11855_v58 = vld [vmem:[#allocation125_spill] sm:$0xff] }
 0x2d2   :  { %1383 = vrot.lane.b32.xlu1 %v7693_v38, %s6660_s23  ;;  %1283 = vrot.lane.b32.xlu0 %v1218_v55, %s6657_s29  ;;  %v1884_v28 = vsel %vm1867_vm13, %v1850_v9, %v1564_v17  ;;  %v1649_v17 = vsel %vm1630_vm7, %v11726_v18, %v11854_v5 }
 0x2d3   :  { %5746 = vmatmul.mubr.msk.f32.gmra.mxu1 %vm1914_vm14, %v1884_v28  ;;  %v1683_v1 = vsel %vm1664_vm8, %v1649_v17, %v11855_v58 }
 0x2d4   :  { %v1356_v57 = vpop.permute.xlu1 %1355  ;;  %v1256_v3 = vpop.permute.xlu0 %1255  ;;  %5748 = vmatprep.mubr.msk.f32.mxu1 %vm6659_vm6, %v11749_v21  ;;  %v1717_v32 = vsel %vm1698_vm9, %v1683_v1, %v7758_v13 }
 0x2d5   :  { %v1783_v42 = vsel %vm1765_vm10, %v1749_v63, %v1256_v3  ;;  %v1750_v18 = vsel %vm64_vm0, %v1717_v32, %v7768_v37  ;;  %v11856_v32 = vld [vmem:[#allocation134_spill] sm:$0xff] }
 0x2d6   :  { %1593 = vrot.lane.b32.xlu1 %v1530_v16, %s6661_s2  ;;  %1488 = vrot.lane.b32.xlu0 %v1425_v6, %s6662_s24  ;;  %v1817_v53 = vsel %vm1799_vm11, %v1783_v42, %v1356_v57 }
 0x2d8   :  { %v1566_v26 = vpop.permute.xlu1 %1565  ;;  %v1461_v61 = vpop.permute.xlu0 %1460 }
 0x2d9   :  { %v1851_v29 = vsel %vm1833_vm12, %v1817_v53, %v1461_v61 }
 0x2da   :  { %1385 = vrot.lane.b32.xlu1 %v453_v23, %s6660_s23  ;;  %1285 = vrot.lane.b32.xlu0 %v1220_v62, %s6657_s29  ;;  %v1885_v38 = vsel %vm1867_vm13, %v1851_v29, %v1566_v26 }
 0x2db   :  { %5749 = vmatmul.mubr.msk.f32.gmra.mxu1 %vm1914_vm14, %v1885_v38 }
 0x2dc   :  { %v1358_v54 = vpop.permute.xlu1 %1357  ;;  %v1258_v9 = vpop.permute.xlu0 %1257  ;;  %5751 = vmatprep.mubr.msk.f32.mxu1 %vm6659_vm6, %v11749_v21 }
 0x2dd   :  { %v1784_v30 = vsel %vm1765_vm10, %v1750_v18, %v1258_v9 }
 0x2de   :  { %1595 = vrot.lane.b32.xlu1 %v1529_v27, %s6661_s2  ;;  %1490 = vrot.lane.b32.xlu0 %v1424_v15, %s6662_s24  ;;  %v1818_v55 = vsel %vm1799_vm11, %v1784_v30, %v1358_v54  ;;  %v1718_v27 = vsel %vm1698_vm9, %v1684_v0, %v7760_v22  ;;  %v1651_v22 = vsel %vm1630_vm7, %v11746_v2, %v7737_v43  ;;  %v11859_v0 = vld [vmem:[#allocation132_spill] sm:$0xff] }
 0x2df   :  { %v1751_v15 = vsel %vm64_vm0, %v1718_v27, %v7766_v41  ;;  %v1685_v41 = vsel %vm1664_vm8, %v1651_v22, %v7752_v44  ;;  %v11860_v27 = vld [vmem:[#allocation133_spill] sm:$0xff] }
 0x2e0   :  { %v1568_v23 = vpop.permute.xlu1 %1567  ;;  %v1463_v13 = vpop.permute.xlu0 %1462  ;;  %v1719_v3 = vsel %vm1698_vm9, %v1685_v41, %v7790_v25  ;;  %v1652_v25 = vsel %vm1630_vm7, %v11757_v45, %v7776_v24  ;;  %v11862_v41 = vld [vmem:[#allocation131_spill] sm:$0xff] }
 0x2e1   :  { %v1852_v37 = vsel %vm1833_vm12, %v1818_v55, %v1463_v13  ;;  %v1752_v42 = vsel %vm64_vm0, %v1719_v3, %v7800_v52  ;;  %v1686_v52 = vsel %vm1664_vm8, %v1652_v25, %v7782_v19  ;;  %v11858_v13 = vld [vmem:[#allocation130_spill] sm:$0xff] }
 0x2e2   :  { %v1886_v28 = vsel %vm1867_vm13, %v1852_v37, %v1568_v23  ;;  %v1720_v61 = vsel %vm1698_vm9, %v1686_v52, %v7792_v31  ;;  %v1653_v31 = vsel %vm1630_vm7, %v11766_v60, %v7774_v20  ;;  %v11857_v23 = vld [vmem:[#allocation129_spill] sm:$0xff]  ;;  %v11865_v52 = vld [vmem:[#allocation136_spill] sm:$0xff] }
 0x2e3   :  { %5752 = vmatmul.mubr.msk.f32.gmra.mxu1 %vm1914_vm14, %v1886_v28  ;;  %v1753_v5 = vsel %vm64_vm0, %v1720_v61, %v7798_v47  ;;  %v1687_v47 = vsel %vm1664_vm8, %v1653_v31, %v7784_v59 }
 0x2e4   :  { %v1360_v39 = vpop.permute.xlu1 %1359  ;;  %v1260_v33 = vpop.permute.xlu0 %1259  ;;  %5754 = vmatprep.mubr.msk.f32.mxu1 %vm6659_vm6, %v11749_v21  ;;  %v1721_v38 = vsel %vm1698_vm9, %v1687_v47, %v7822_v10  ;;  %v1654_v10 = vsel %vm1630_vm7, %v11777_v56, %v11857_v23  ;;  %v11872_v23 = vld [vmem:[#allocation150_spill] sm:$0xff] }
 0x2e5   :  { %v1785_v51 = vsel %vm1765_vm10, %v1751_v15, %v1260_v33  ;;  %v1754_v18 = vsel %vm64_vm0, %v1721_v38, %v11856_v32  ;;  %v1688_v34 = vsel %vm1664_vm8, %v1654_v10, %v11858_v13  ;;  %v11869_v32 = vld [vmem:[#allocation135_spill] sm:$0xff] }
 0x2e6   :  { %v1819_v35 = vsel %vm1799_vm11, %v1785_v51, %v1360_v39  ;;  %v1722_v28 = vsel %vm1698_vm9, %v1688_v34, %v11859_v0  ;;  %v3478_v0 = vld [vmem:[%s11467_s3 + $0x70] sm:$0xff] }
 0x2e7   :  { %v1755_v15 = vsel %vm64_vm0, %v1722_v28, %v11860_v27 }
 0x2e8   :  { %v1570_v7 = vpop.permute.xlu1 %1569  ;;  %v1465_v12 = vpop.permute.xlu0 %1464 }
 0x2e9   :  { %v1853_v63 = vsel %vm1833_vm12, %v1819_v35, %v1465_v12  ;;  %v11861_v12 = vld [vmem:[#allocation128_spill] sm:$0xff] }
 0x2ea   :  { %v1887_v57 = vsel %vm1867_vm13, %v1853_v63, %v1570_v7  ;;  %v1655_v22 = vsel %vm1630_vm7, %v11786_v50, %v11861_v12 }
 0x2eb   :  { %5755 = vmatmul.mubr.msk.f32.gmra.mxu1 %vm1914_vm14, %v1887_v57  ;;  %v1689_v57 = vsel %vm1664_vm8, %v1655_v22, %v11862_v41  ;;  %v11876_v22 = vld [vmem:[#allocation148_spill] sm:$0xff] }
 0x2ec   :  { %v1362_v16 = vpop.permute.xlu1 %1361  ;;  %v1262_v6 = vpop.permute.xlu0 %1261  ;;  %5757 = vmatprep.mubr.msk.f32.mxu1 %vm6659_vm6, %v11749_v21 }
 0x2ed   :  { %v1786_v43 = vsel %vm1765_vm10, %v1752_v42, %v1262_v6  ;;  %v11863_v42 = vld [vmem:[#allocation139_spill] sm:$0xff]  ;;  %v11864_v6 = vld [vmem:[#allocation142_spill] sm:$0xff] }
 0x2ee   :  { %v1820_v44 = vsel %vm1799_vm11, %v1786_v43, %v1362_v16  ;;  %v1723_v16 = vsel %vm1698_vm9, %v1689_v57, %v11863_v42  ;;  %v11877_v57 = vld [vmem:[#allocation149_spill] sm:$0xff] }
 0x2ef   :  { %v1756_v43 = vsel %vm64_vm0, %v1723_v16, %v11864_v6  ;;  %v23_v6 = vld [vmem:[%s11468_s5] sm:$0x7] }
 0x2f0   :  { %v1572_v2 = vpop.permute.xlu1 %1571  ;;  %v1467_v46 = vpop.permute.xlu0 %1466 }
 0x2f1   :  { %v1854_v26 = vsel %vm1833_vm12, %v1820_v44, %v1467_v46 }
 0x2f2   :  { %v1888_v53 = vsel %vm1867_vm13, %v1854_v26, %v1572_v2 }
 0x2f3   :  { %5758 = vmatmul.mubr.msk.f32.gmra.mxu1 %vm1914_vm14, %v1888_v53  ;;  %v1656_v53 = vsel %vm1630_vm7, %v11795_v4, %v11865_v52 }
 0x2f4   :  { %v1364_v17 = vpop.permute.xlu1 %1363  ;;  %v1264_v29 = vpop.permute.xlu0 %1263  ;;  %5760 = vmatprep.mubr.msk.f32.mxu1 %vm6659_vm6, %v11749_v21 }
 0x2f5   :  { %v1787_v24 = vsel %vm1765_vm10, %v1753_v5, %v1264_v29  ;;  %v11866_v5 = vld [vmem:[#allocation137_spill] sm:$0xff] }
 0x2f6   :  { %v1821_v19 = vsel %vm1799_vm11, %v1787_v24, %v1364_v17  ;;  %v1690_v17 = vsel %vm1664_vm8, %v1656_v53, %v11866_v5  ;;  %v11867_v24 = vld [vmem:[#allocation140_spill] sm:$0xff]  ;;  %v3475_v53 = vld [vmem:[%s11467_s3 + $0x58] sm:$0xff] }
 0x2f8   :  { %v1574_v45 = vpop.permute.xlu1 %1573  ;;  %v1469_v62 = vpop.permute.xlu0 %1468 }
 0x2f9   :  { %v1855_v58 = vsel %vm1833_vm12, %v1821_v19, %v1469_v62  ;;  %v11868_v19 = vld [vmem:[#allocation141_spill] sm:$0xff] }
 0x2fa   :  { %v1889_v1 = vsel %vm1867_vm13, %v1855_v58, %v1574_v45  ;;  %v1724_v45 = vsel %vm1698_vm9, %v1690_v17, %v11867_v24 }
 0x2fb   :  { %5761 = vmatmul.mubr.msk.f32.gmra.mxu1 %vm1914_vm14, %v1889_v1  ;;  %v1757_v62 = vsel %vm64_vm0, %v1724_v45, %v11868_v19  ;;  %v3474_v19 = vld [vmem:[%s11467_s3 + $0x50] sm:$0xff] }
 0x2fc   :  { %v1366_v54 = vpop.permute.xlu1 %1365  ;;  %v1266_v9 = vpop.permute.xlu0 %1265  ;;  %5763 = vmatprep.mubr.msk.f32.mxu1 %vm6659_vm6, %v11749_v21 }
 0x2fd   :  { %v1788_v20 = vsel %vm1765_vm10, %v1754_v18, %v1266_v9  ;;  %v1657_v18 = vsel %vm1630_vm7, %v11804_v40, %v11869_v32  ;;  %v11870_v9 = vld [vmem:[#allocation138_spill] sm:$0xff]  ;;  %v1910_v40 = vlaneseq }
 0x2fe   :  { %v1822_v59 = vsel %vm1799_vm11, %v1788_v20, %v1366_v54  ;;  %v1691_v20 = vsel %vm1664_vm8, %v1657_v18, %v11870_v9  ;;  %v3473_v18 = vld [vmem:[%s11467_s3 + $0x48] sm:$0xff] }
 0x300   :  { %v1576_v60 = vpop.permute.xlu1 %1575  ;;  %v1471_v30 = vpop.permute.xlu0 %1470 }
 0x301   :  { %v1856_v55 = vsel %vm1833_vm12, %v1822_v59, %v1471_v30  ;;  %v11871_v59 = vld [vmem:[#allocation147_spill] sm:$0xff] }
 0x302   :  { %v1890_v37 = vsel %vm1867_vm13, %v1856_v55, %v1576_v60  ;;  %v1725_v30 = vsel %vm1698_vm9, %v1691_v20, %v11871_v59 }
 0x303   :  { %5764 = vmatmul.mubr.msk.f32.gmra.mxu1 %vm1914_vm14, %v1890_v37  ;;  %v1758_v10 = vsel %vm64_vm0, %v1725_v30, %v11872_v23  ;;  %v3479_v37 = vld [vmem:[%s11467_s3 + $0x78] sm:$0xff]  ;;  %v3472_v23 = vld [vmem:[%s11467_s3 + $0x40] sm:$0xff] }
 0x304   :  { %v1368_v39 = vpop.permute.xlu1 %1367  ;;  %v1268_v33 = vpop.permute.xlu0 %1267  ;;  %5766 = vmatprep.mubr.msk.f32.mxu1 %vm6659_vm6, %v11749_v21  ;;  %3547 = vmatpush1.msra.mxu0 %v3479_v37 }
 0x305   :  { %v1789_v56 = vsel %vm1765_vm10, %v1755_v15, %v1268_v33  ;;  %v11874_v33 = vld [vmem:[#allocation144_spill] sm:$0xff]  ;;  %3548 = vmatprep.subr.mxu0 %v11749_v21 }
 0x306   :  { %v1823_v7 = vsel %vm1799_vm11, %v1789_v56, %v1368_v39  ;;  %v8580_v39 = vshrl.u32 %v1910_v40, 7  ;;  %v1658_v56 = vsel %vm1630_vm7, %v11811_v8, %v11874_v33  ;;  %3549 = vmatpush1.msra.mxu0 %v3478_v0 }
 0x307   :  { %3550 = vmatprep.subr.mxu0 %v11749_v21 }
 0x308   :  { %v1578_v51 = vpop.permute.xlu1 %1577  ;;  %v1473_v35 = vpop.permute.xlu0 %1472  ;;  %11873 = vst [vmem:[#allocation6_spill] sm:$0xff] %v8580_v39 }
 0x309   :  { %v1857_v63 = vsel %vm1833_vm12, %v1823_v7, %v1473_v35  ;;  %v11875_v7 = vld [vmem:[#allocation145_spill] sm:$0xff] }
 0x30a   :  { %v1891_v3 = vsel %vm1867_vm13, %v1857_v63, %v1578_v51  ;;  %v1692_v35 = vsel %vm1664_vm8, %v1658_v56, %v11875_v7 }
 0x30b   :  { %5767 = vmatmul.mubr.msk.f32.gmra.mxu1 %vm1914_vm14, %v1891_v3  ;;  %v1726_v63 = vsel %vm1698_vm9, %v1692_v35, %v11876_v22  ;;  %v1912_v3 = vsub.s32 0, %v8580_v39  ;;  %v11885_v22 = vld [vmem:[#allocation157_spill] sm:$0xff] }
 0x30c   :  { %v1370_v2 = vpop.permute.xlu1 %1369  ;;  %v1270_v44 = vpop.permute.xlu0 %1269  ;;  %5769 = vmatprep.mubr.msk.f32.mxu1 %vm6659_vm6, %v11749_v21  ;;  %v1759_v8 = vsel %vm64_vm0, %v1726_v63, %v11877_v57 }
 0x30d   :  { %v1790_v50 = vsel %vm1765_vm10, %v1756_v43, %v1270_v44  ;;  %v3477_v44 = vld [vmem:[%s11467_s3 + $0x68] sm:$0xff] }
 0x30e   :  { %v1824_v25 = vsel %vm1799_vm11, %v1790_v50, %v1370_v2  ;;  %v3476_v50 = vld [vmem:[%s11467_s3 + $0x60] sm:$0xff]  ;;  %3551 = vmatpush1.msra.mxu0 %v3477_v44 }
 0x30f   :  { %3552 = vmatprep.subr.mxu0 %v11749_v21 }
 0x310   :  { %v1580_v46 = vpop.permute.xlu1 %1579  ;;  %v1475_v26 = vpop.permute.xlu0 %1474  ;;  %3553 = vmatpush1.msra.mxu0 %v3476_v50 }
 0x311   :  { %v1858_v61 = vsel %vm1833_vm12, %v1824_v25, %v1475_v26  ;;  %3554 = vmatprep.subr.mxu0 %v11749_v21 }
 0x312   :  { %v1892_v29 = vsel %vm1867_vm13, %v1858_v61, %v1580_v46  ;;  %v8609_v46 = vrot.slane %v23_v6, %v1912_v3  ;;  %v11878_v61 = vld [vmem:[#allocation143_spill] sm:$0xff]  ;;  %3555 = vmatpush1.msra.mxu0 %v3475_v53 }
 0x313   :  { %5770 = vmatmul.mubr.msk.f32.gmra.mxu1 %vm1914_vm14, %v1892_v29  ;;  %v1659_v5 = vsel %vm1630_vm7, %v7508_v49, %v11878_v61  ;;  %v11879_v29 = vld [vmem:[#allocation146_spill] sm:$0xff]  ;;  %3556 = vmatprep.subr.mxu0 %v11749_v21  ;;  %v3469_v53 = vld [vmem:[%s11467_s3 + $0x28] sm:$0xff] }
 0x314   :  { %v1372_v31 = vpop.permute.xlu1 %1371  ;;  %v1272_v58 = vpop.permute.xlu0 %1271  ;;  %5772 = vmatprep.mubr.msk.f32.mxu1 %vm6659_vm6, %v11749_v21  ;;  %v1693_v24 = vsel %vm1664_vm8, %v1659_v5, %v11879_v29  ;;  %v11881_v49 = vld [vmem:[#allocation158_spill] sm:$0xff]  ;;  %3557 = vmatpush1.msra.mxu0 %v3474_v19  ;;  %v11886_v61 = vld [vmem:[#allocation151_spill] sm:$0xff] }
 0x315   :  { %v1791_v4 = vsel %vm1765_vm10, %v1757_v62, %v1272_v58  ;;  %v11880_v62 = vld [vmem:[#allocation155_spill] sm:$0xff]  ;;  %3558 = vmatprep.subr.mxu0 %v11749_v21  ;;  %v1661_v5 = vsel %vm1630_vm7, %v7564_v48, %v11886_v61  ;;  %v3468_v19 = vld [vmem:[%s11467_s3 + $0x20] sm:$0xff] }
 0x316   :  { %v1825_v1 = vsel %vm1799_vm11, %v1791_v4, %v1372_v31  ;;  %v1727_v31 = vsel %vm1698_vm9, %v1693_v24, %v11880_v62  ;;  %3559 = vmatpush1.msra.mxu0 %v3473_v18  ;;  %v11887_v62 = vld [vmem:[#allocation154_spill] sm:$0xff]  ;;  %v3467_v18 = vld [vmem:[%s11467_s3 + $0x18] sm:$0xff] }
 0x317   :  { %v1760_v4 = vsel %vm64_vm0, %v1727_v31, %v11881_v49  ;;  %3560 = vmatprep.subr.mxu0 %v11749_v21  ;;  %v1695_v31 = vsel %vm1664_vm8, %v1661_v5, %v11887_v62 }
 0x318   :  { %v1582_v47 = vpop.permute.xlu1 %1581  ;;  %v1477_v38 = vpop.permute.xlu0 %1476  ;;  %3561 = vmatpush1.msra.mxu0 %v3472_v23 }
 0x319   :  { %v1859_v54 = vsel %vm1833_vm12, %v1825_v1, %v1477_v38  ;;  %3562 = vmatprep.subr.mxu0 %v11749_v21 }
 0x31a   :  { %v1893_v60 = vsel %vm1867_vm13, %v1859_v54, %v1582_v47 }
 0x31b   :  { %5773 = vmatmul.mubr.msk.f32.gmra.mxu1 %vm1914_vm14, %v1893_v60  ;;  %v11882_v60 = vld [vmem:[#allocation152_spill] sm:$0xff] }
 0x31c   :  { %v1374_v55 = vpop.permute.xlu1 %1373  ;;  %v1274_v13 = vpop.permute.xlu0 %1273  ;;  %5775 = vmatprep.mubr.msk.f32.mxu1 %vm6659_vm6, %v11749_v21  ;;  %v1660_v59 = vsel %vm1630_vm7, %v11823_v11, %v11882_v60  ;;  %v3471_v11 = vld [vmem:[%s11467_s3 + $0x38] sm:$0xff]  ;;  %v11890_v60 = vld [vmem:[#allocation164_spill] sm:$0xff] }
 0x31d   :  { %v1792_v34 = vsel %vm1765_vm10, %v1758_v10, %v1274_v13  ;;  %v11883_v10 = vld [vmem:[#allocation153_spill] sm:$0xff]  ;;  %3563 = vmatpush1.msra.mxu0 %v3471_v11 }
 0x31e   :  { %v1826_v27 = vsel %vm1799_vm11, %v1792_v34, %v1374_v55  ;;  %v1694_v55 = vsel %vm1664_vm8, %v1660_v59, %v11883_v10  ;;  %3564 = vmatprep.subr.mxu0 %v11749_v21 }
 0x320   :  { %v1584_v28 = vpop.permute.xlu1 %1583  ;;  %v1479_v15 = vpop.permute.xlu0 %1478 }
 0x321   :  { %v1860_v51 = vsel %vm1833_vm12, %v1826_v27, %v1479_v15 }
 0x322   :  { %v1894_v12 = vsel %vm1867_vm13, %v1860_v51, %v1584_v28  ;;  %v11884_v28 = vld [vmem:[#allocation156_spill] sm:$0xff] }
 0x323   :  { %v2080_v41 = vpop.f32.mrf.mxu1  ;;  %5776 = vmatmul.mubr.msk.f32.gmra.mxu1 %vm1914_vm14, %v1894_v12  ;;  %v1728_v27 = vsel %vm1698_vm9, %v1694_v55, %v11884_v28  ;;  %v3470_v12 = vld [vmem:[%s11467_s3 + $0x30] sm:$0xff] }
 0x324   :  { %v1376_v42 = vpop.permute.xlu1 %1375  ;;  %v1276_v16 = vpop.permute.xlu0 %1275  ;;  %5778 = vmatprep.mubr.msk.f32.mxu1 %vm6659_vm6, %v11749_v21  ;;  %v2081_v47 = vadd.f32 %v2080_v41, %v8609_v46  ;;  %v1761_v63 = vsel %vm64_vm0, %v1728_v27, %v11885_v22  ;;  %3565 = vmatpush1.msra.mxu0 %v3470_v12 }
 0x325   :  { %v1793_v43 = vsel %vm1765_vm10, %v1759_v8, %v1276_v16  ;;  %v5699_v2 = vpop.f32.mrf.mxu1  ;;  %3566 = vmatprep.subr.mxu0 %v11749_v21 }
 0x326   :  { %v1827_v26 = vsel %vm1799_vm11, %v1793_v43, %v1376_v42  ;;  %v8652_v13 = vmax.f32 %v2081_v47, 0.0  ;;  %3567 = vmatpush1.msra.mxu0 %v3469_v53 }
 0x327   :  { %3568 = vmatprep.subr.mxu0 %v11749_v21 }
 0x328   :  { %v1586_v25 = vpop.permute.xlu1 %1585  ;;  %v1481_v52 = vpop.permute.xlu0 %1480  ;;  %v2307_v41 = vrot.slane %v8652_v13, 1  ;;  %v2456_v57 = vrot.slane %v8652_v13, 2  ;;  %3569 = vmatpush1.msra.mxu0 %v3468_v19 }
 0x329   :  { %v1861_v17 = vsel %vm1833_vm12, %v1827_v26, %v1481_v52  ;;  %3570 = vmatprep.subr.mxu0 %v11749_v21 }
 0x32a   :  { %v1895_v45 = vsel %vm1867_vm13, %v1861_v17, %v1586_v25  ;;  %3571 = vmatpush1.msra.mxu0 %v3467_v18  ;;  %v3464_v18 = vld [vmem:[%s11467_s3] sm:$0xff] }
 0x32b   :  { %v2085_v58 = vpop.f32.mrf.mxu1  ;;  %5779 = vmatmul.mubr.msk.f32.gmra.mxu1 %vm1914_vm14, %v1895_v45  ;;  %3572 = vmatprep.subr.mxu0 %v11749_v21 }
 0x32c   :  { %v2086_v1 = vadd.f32 %v2085_v58, %v8609_v46  ;;  %v1378_v38 = vpop.permute.xlu1 %1377  ;;  %v1278_v32 = vpop.permute.xlu0 %1277  ;;  %5781 = vmatprep.mubr.msk.f32.mxu1 %vm6659_vm6, %v11749_v21 }
 0x32d   :  { %v5702_v54 = vpop.f32.mrf.mxu1  ;;  %v1794_v9 = vsel %vm1765_vm10, %v1760_v4, %v1278_v32  ;;  %v11888_v4 = vld [vmem:[#allocation26_spill] sm:$0xff] }
 0x32e   :  { %v8641_v20 = vmax.f32 %v2086_v1, 0.0  ;;  %v1828_v37 = vsel %vm1799_vm11, %v1794_v9, %v1378_v38  ;;  %v1729_v47 = vsel %vm1698_vm9, %v1695_v31, %v11888_v4  ;;  %v11889_v54 = vld [vmem:[#allocation162_spill] sm:$0xff]  ;;  %v11893_v31 = vld [vmem:[#allocation160_spill] sm:$0xff] }
 0x32f   :  { %v2090_v30 = vpop.f32.mrf.mxu1  ;;  %v1662_v9 = vsel %vm1630_vm7, %v11836_v14, %v11889_v54  ;;  %v1762_v59 = vsel %vm64_vm0, %v1729_v47, %v11890_v60  ;;  %v3466_v14 = vld [vmem:[%s11467_s3 + $0x10] sm:$0xff] }
 0x330   :  { %v2091_v40 = vadd.f32 %v2090_v30, %v8609_v46  ;;  %v1588_v34 = vpop.permute.xlu1 %1587  ;;  %v1483_v0 = vpop.permute.xlu0 %1482  ;;  %v2457_v7 = vrot.slane %v8641_v20, 2  ;;  %v2308_v35 = vrot.slane %v8641_v20, 1  ;;  %v2756_v23 = vrot.slane %v8641_v20, 5  ;;  %3573 = vmatpush1.msra.mxu0 %v3466_v14 }
 0x331   :  { %v1862_v15 = vsel %vm1833_vm12, %v1828_v37, %v1483_v0  ;;  %v5705_v33 = vpop.f32.mrf.mxu1  ;;  %v2606_v37 = vrot.slane %v8641_v20, 4  ;;  %3574 = vmatprep.subr.mxu0 %v11749_v21 }
 0x332   :  { %v8663_v56 = vmax.f32 %v2091_v40, 0.0  ;;  %v1896_v51 = vsel %vm1867_vm13, %v1862_v15, %v1588_v34  ;;  %v2458_v43 = vsel %vm652_vm1, %v2456_v57, %v2457_v7  ;;  %v2309_v44 = vsel %vm487_vm2, %v2307_v41, %v2308_v35  ;;  %v3465_v57 = vld [vmem:[%s11467_s3 + $0x8] sm:$0xff] }
 0x333   :  { %5782 = vmatmul.mubr.msk.f32.gmra.mxu1 %vm1914_vm14, %v1896_v51  ;;  %v2907_v41 = vrot.slane %v8641_v20, 6  ;;  %3575 = vmatpush1.msra.mxu0 %v3465_v57 }
 0x334   :  { %v1380_v8 = vpop.permute.xlu1 %1379  ;;  %v1280_v3 = vpop.permute.xlu0 %1279  ;;  %v2459_v42 = vrot.slane %v8663_v56, 2  ;;  %v2310_v16 = vrot.slane %v8663_v56, 1  ;;  %5784 = vmatprep.mubr.msk.f32.mxu1 %vm6659_vm6, %v11749_v21  ;;  %v2757_v48 = vrot.slane %v8663_v56, 5  ;;  %v2607_v32 = vrot.slane %v8663_v56, 4  ;;  %3576 = vmatprep.subr.mxu0 %v11749_v21 }
 0x335   :  { %v1795_v6 = vsel %vm1765_vm10, %v1761_v63, %v1280_v3  ;;  %v2908_v15 = vrot.slane %v8663_v56, 6  ;;  %3577 = vmatpush1.msra.mxu0 %v3464_v18 }
 0x336   :  { %v2460_v2 = vsel %vm652_vm1, %v2457_v7, %v2459_v42  ;;  %v2311_v50 = vsel %vm487_vm2, %v2308_v35, %v2310_v16  ;;  %v1829_v24 = vsel %vm1799_vm11, %v1795_v6, %v1380_v8  ;;  %v2758_v27 = vsel %vm986_vm4, %v2756_v23, %v2757_v48  ;;  %3606 = vmatprep.subr.mxu0 %v11749_v21 }
 0x337   :  { %v2095_v25 = vpop.f32.mrf.mxu1  ;;  %v5846_v26 = vpack.i.bf16 %v2460_v2, %v2458_v43  ;;  %v5841_v52 = vpack.i.bf16 %v2311_v50, %v2309_v44  ;;  %v2608_v35 = vsel %vm819_vm3, %v2606_v37, %v2607_v32  ;;  %v11891_v50 = vld [vmem:[#allocation161_spill] sm:$0xff]  ;;  %v2909_v5 = vsel %vm1153_vm5, %v2907_v41, %v2908_v15 }
 0x338   :  { %v2096_v17 = vadd.f32 %v2095_v25, %v8609_v46  ;;  %v1590_v29 = vpop.permute.xlu1 %1589  ;;  %v1485_v45 = vpop.permute.xlu0 %1484  ;;  %v1696_v25 = vsel %vm1664_vm8, %v1662_v9, %v11891_v50  ;;  %v11897_v50 = vld [vmem:[#allocation29_spill] sm:$0xff] }
 0x339   :  { %v5708_v58 = vpop.f32.mrf.mxu1  ;;  %v1863_v49 = vsel %vm1833_vm12, %v1829_v24, %v1485_v45  ;;  %5847 = vrot.lane.b32.xlu1 %v5846_v26, %s6656_s28  ;;  %5842 = vrot.lane.b32.xlu0 %v5841_v52, %s6653_s0 }
 0x33a   :  { %v8711_v1 = vmax.f32 %v2096_v17, 0.0  ;;  %v1897_v38 = vsel %vm1867_vm13, %v1863_v49, %v1590_v29  ;;  %v11892_v29 = vld [vmem:[#allocation163_spill] sm:$0xff]  ;;  %v1663_v58 = vsel %vm1630_vm7, %v7622_v36, %v11893_v31  ;;  %v11894_v49 = vld [vmem:[#allocation18_spill] sm:$0xff]  ;;  %vm3433_vm7 = vcmask 916480  }
 0x33b   :  { %v2100_v30 = vpop.f32.mrf.mxu1  ;;  %5785 = vmatmul.mubr.msk.f32.gmra.mxu1 %vm1914_vm14, %v1897_v38  ;;  %v1730_v24 = vsel %vm1698_vm9, %v1696_v25, %v11892_v29 }
 0x33c   :  { %v2101_v10 = vadd.f32 %v2100_v30, %v8609_v46  ;;  %v1382_v55 = vpop.permute.xlu1 %1381  ;;  %v1282_v40 = vpop.permute.xlu0 %1281  ;;  %v2759_v34 = vrot.slane %v8711_v1, 5  ;;  %v2609_v0 = vrot.slane %v8711_v1, 4  ;;  %5787 = vmatprep.mubr.msk.f32.mxu1 %vm6659_vm6, %v11749_v21  ;;  %v2910_v33 = vrot.slane %v8711_v1, 6  ;;  %v11895_v30 = vld [vmem:[#allocation159_spill] sm:$0xff] }
 0x33d   :  { %v1796_v11 = vsel %vm1765_vm10, %v1762_v59, %v1282_v40  ;;  %v5711_v28 = vpop.f32.mrf.mxu1  ;;  %v2461_v43 = vrot.slane %v8711_v1, 2  ;;  %v2312_v17 = vrot.slane %v8711_v1, 1  ;;  %v3481_v59 = vld [vmem:[%s11467_s3 + $0x88] sm:$0xff]  ;;  %v1697_v23 = vsel %vm1664_vm8, %v1663_v58, %v11895_v30 }
 0x33e   :  { %v8740_v51 = vmax.f32 %v2101_v10, 0.0  ;;  %v2760_v7 = vsel %vm986_vm4, %v2757_v48, %v2759_v34  ;;  %v2610_v12 = vsel %vm819_vm3, %v2607_v32, %v2609_v0  ;;  %v1830_v3 = vsel %vm1799_vm11, %v1796_v11, %v1382_v55  ;;  %3607 = vmatpush2.msra.mxu0 %v3481_v59 }
 0x33f   :  { %v5856_v22 = vpack.i.bf16 %v2760_v7, %v2758_v27  ;;  %v5851_v63 = vpack.i.bf16 %v2610_v12, %v2608_v35  ;;  %v2911_v44 = vsel %vm1153_vm5, %v2908_v15, %v2910_v33  ;;  %v1763_v48 = vsel %vm64_vm0, %v1730_v24, %v11894_v49  ;;  %v11896_v15 = vld [vmem:[#allocation25_spill] sm:$0xff]  ;;  %3608 = vmatprep.subr.mxu0 %v11749_v21 }
 0x340   :  { %v1592_v8 = vpop.permute.xlu1 %1591  ;;  %v1487_v6 = vpop.permute.xlu0 %1486  ;;  %v2463_v2 = vrot.slane %v8740_v51, 2  ;;  %v2314_v52 = vrot.slane %v8740_v51, 1  ;;  %v5866_v19 = vpack.i.bf16 %v8740_v51, %v8711_v1  ;;  %v5861_v62 = vpack.i.bf16 %v2911_v44, %v2909_v5 }
 0x341   :  { %5857 = vrot.lane.b32.xlu1 %v5856_v22, %s6661_s2  ;;  %5852 = vrot.lane.b32.xlu0 %v5851_v63, %s6660_s23  ;;  %v1864_v26 = vsel %vm1833_vm12, %v1830_v3, %v1487_v6  ;;  %v2313_v60 = vsel %vm487_vm2, %v2310_v16, %v2312_v17  ;;  %v1731_v7 = vsel %vm1698_vm9, %v1697_v23, %v11896_v15  ;;  %v2761_v57 = vrot.slane %v8740_v51, 5 }
 0x342   :  { %v1898_v53 = vsel %vm1867_vm13, %v1864_v26, %v1592_v8  ;;  %v8771_v61 = vsel %vm652_vm1, %v2461_v43, %v2463_v2  ;;  %v2315_v32 = vsel %vm487_vm2, %v2312_v17, %v2314_v52  ;;  %v2462_v35 = vsel %vm652_vm1, %v2459_v42, %v2461_v43  ;;  %v3480_v43 = vld [vmem:[%s11467_s3 + $0x80] sm:$0xff]  ;;  %s6665_s3 = smov 112  }
 0x343   :  { %v2105_v45 = vpop.f32.mrf.mxu1  ;;  %5788 = vmatmul.mubr.msk.f32.gmra.mxu1 %vm1914_vm14, %v1898_v53  ;;  %5221 = vmatprep.mubr.msk.f32.mxu0 %vm1664_vm8, %v8771_v61  ;;  %v5871_v55 = vpack.i.bf16 %v2315_v32, %v2313_v60  ;;  %v2611_v8 = vrot.slane %v8740_v51, 4  ;;  %v5876_v3 = vpack.i.bf16 %v8771_v61, %v2462_v35  ;;  %v1764_v25 = vsel %vm64_vm0, %v1731_v7, %v11897_v50 }
 0x344   :  { %v2106_v4 = vadd.f32 %v2105_v45, %v8609_v46  ;;  %v1384_v47 = vpop.permute.xlu1 %1383  ;;  %v1284_v38 = vpop.permute.xlu0 %1283  ;;  %5790 = vmatprep.mubr.msk.f32.mxu1 %vm6659_vm6, %v11749_v21  ;;  %v2762_v17 = vsel %vm986_vm4, %v2759_v34, %v2761_v57  ;;  %v2912_v24 = vrot.slane %v8740_v51, 6  ;;  %3609 = vmatpush2.msra.mxu0 %v3480_v43  ;;  %vm3910_vm9 = vcmask 1044480  }
 0x345   :  { %5867 = vrot.lane.b32.xlu1 %v5866_v19, %s6663_s1  ;;  %v5714_v36 = vpop.f32.mrf.mxu1  ;;  %5862 = vrot.lane.b32.xlu0 %v5861_v62, %s6664_s13  ;;  %v1797_v54 = vsel %vm1765_vm10, %v1763_v48, %v1284_v38  ;;  %v2612_v29 = vsel %vm819_vm3, %v2609_v0, %v2611_v8 }
 0x346   :  { %v8797_v9 = vmax.f32 %v2106_v4, 0.0  ;;  %v1831_v40 = vsel %vm1799_vm11, %v1797_v54, %v1384_v47  ;;  %v2913_v54 = vsel %vm1153_vm5, %v2910_v33, %v2912_v24 }
 0x347   :  { %v2110_v10 = vpop.f32.mrf.mxu1 }
 0x348   :  { %v2111_v37 = vadd.f32 %v2110_v10, %v8609_v46  ;;  %v1594_v14 = vpop.permute.xlu1 %1593  ;;  %v1489_v11 = vpop.permute.xlu0 %1488  ;;  %v2316_v16 = vrot.slane %v8797_v9, 1  ;;  %v2763_v28 = vrot.slane %v8797_v9, 5  ;;  %v2613_v27 = vrot.slane %v8797_v9, 4 }
 0x349   :  { %5872 = vrot.lane.b32.xlu1 %v5871_v55, %s6653_s0  ;;  %v1865_v12 = vsel %vm1833_vm12, %v1831_v40, %v1489_v11  ;;  %v5717_v22 = vpop.f32.mrf.mxu1  ;;  %v2914_v61 = vrot.slane %v8797_v9, 6 }
 0x34a   :  { %v1899_v63 = vsel %vm1867_vm13, %v1865_v12, %v1594_v14  ;;  %v8823_v41 = vsel %vm487_vm2, %v2314_v52, %v2316_v16  ;;  %v8829_v42 = vmax.f32 %v2111_v37, 0.0  ;;  %v2764_v52 = vsel %vm986_vm4, %v2761_v57, %v2763_v28 }
 0x34b   :  { %5791 = vmatmul.mubr.msk.f32.gmra.mxu1 %vm1914_vm14, %v1899_v63  ;;  %v5881_v6 = vpack.i.bf16 %v8823_v41, %v2315_v32  ;;  %v2614_v53 = vsel %vm819_vm3, %v2611_v8, %v2613_v27  ;;  %v5891_v19 = vpack.i.bf16 %v2764_v52, %v2762_v17  ;;  %v2915_v34 = vsel %vm1153_vm5, %v2912_v24, %v2914_v61 }
 0x34c   :  { %v1386_v44 = vpop.permute.xlu1 %1385  ;;  %v1286_v26 = vpop.permute.xlu0 %1285  ;;  %5793 = vmatprep.mubr.msk.f32.mxu1 %vm6659_vm6, %v11749_v21  ;;  %v5886_v62 = vpack.i.bf16 %v2614_v53, %v2612_v29  ;;  %v2467_v31 = vrot.slane %v8829_v42, 2  ;;  %v2318_v0 = vrot.slane %v8829_v42, 1  ;;  %v2465_v32 = vrot.slane %v8797_v9, 2 }
 0x34d   :  { %5877 = vrot.lane.b32.xlu1 %v5876_v3, %s6656_s28  ;;  %5882 = vrot.lane.b32.xlu0 %v5881_v6, %s6665_s3  ;;  %v1798_v5 = vsel %vm1765_vm10, %v1764_v25, %v1286_v26  ;;  %v5901_v59 = vpack.i.bf16 %v8829_v42, %v8797_v9  ;;  %v5896_v30 = vpack.i.bf16 %v2915_v34, %v2913_v54  ;;  %v2765_v15 = vrot.slane %v8829_v42, 5 }
 0x34e   :  { %v1832_v48 = vsel %vm1799_vm11, %v1798_v5, %v1386_v44  ;;  %v8880_v23 = vsel %vm652_vm1, %v2465_v32, %v2467_v31  ;;  %v2319_v55 = vsel %vm487_vm2, %v2316_v16, %v2318_v0  ;;  %v8893_v11 = vsel %vm652_vm1, %v2463_v2, %v2465_v32 }
 0x34f   :  { %v2115_v45 = vpop.f32.mrf.mxu1  ;;  %v5911_v16 = vpack.i.bf16 %v8880_v23, %v8893_v11  ;;  %v5906_v7 = vpack.i.bf16 %v2319_v55, %v8823_v41  ;;  %v2766_v2 = vsel %vm986_vm4, %v2763_v28, %v2765_v15  ;;  %v2615_v57 = vrot.slane %v8829_v42, 4 }
 0x350   :  { %v2116_v58 = vadd.f32 %v2115_v45, %v8609_v46  ;;  %v1596_v49 = vpop.permute.xlu1 %1595  ;;  %v1491_v4 = vpop.permute.xlu0 %1490  ;;  %v2916_v52 = vrot.slane %v8829_v42, 6  ;;  %vm3402_vm6 = vcmask 785408   ;;  %vm4172_vm10 = vcmask 1040384  }
 0x351   :  { %5892 = vrot.lane.b32.xlu1 %v5891_v19, %s6661_s2  ;;  %v5720_v47 = vpop.f32.mrf.mxu1  ;;  %5887 = vrot.lane.b32.xlu0 %v5886_v62, %s6660_s23  ;;  %v1866_v38 = vsel %vm1833_vm12, %v1832_v48, %v1491_v4  ;;  %v2616_v28 = vsel %vm819_vm3, %v2613_v27, %v2615_v57 }
 0x352   :  { %v8868_v18 = vmax.f32 %v2116_v58, 0.0  ;;  %v1900_v36 = vsel %vm1867_vm13, %v1866_v38, %v1596_v49  ;;  %v2917_v45 = vsel %vm1153_vm5, %v2914_v61, %v2916_v52 }
 0x353   :  { %v2120_v60 = vpop.f32.mrf.mxu1  ;;  %5794 = vmatmul.mubr.msk.f32.gmra.mxu1 %vm1914_vm14, %v1900_v36 }
 0x354   :  { %v2121_v10 = vadd.f32 %v2120_v60, %v8609_v46  ;;  %v2767_v40 = vrot.slane %v8868_v18, 5  ;;  %v2320_v33 = vrot.slane %v8868_v18, 1  ;;  %v2617_v63 = vrot.slane %v8868_v18, 4 }
 0x355   :  { %5902 = vrot.lane.b32.xlu1 %v5901_v59, %s6663_s1  ;;  %5897 = vrot.lane.b32.xlu0 %v5896_v30, %s6664_s13  ;;  %v5723_v37 = vpop.f32.mrf.mxu1  ;;  %v2918_v50 = vrot.slane %v8868_v18, 6  ;;  %v2469_v27 = vrot.slane %v8868_v18, 2 }
 0x356   :  { %v8888_v14 = vmax.f32 %v2121_v10, 0.0  ;;  %v2768_v35 = vsel %vm986_vm4, %v2765_v15, %v2767_v40  ;;  %v2321_v12 = vsel %vm487_vm2, %v2318_v0, %v2320_v33  ;;  %v2618_v44 = vsel %vm819_vm3, %v2615_v57, %v2617_v63 }
 0x357   :  { %v5926_v41 = vpack.i.bf16 %v2768_v35, %v2766_v2  ;;  %v5916_v3 = vpack.i.bf16 %v2321_v12, %v2319_v55  ;;  %v5921_v5 = vpack.i.bf16 %v2618_v44, %v2616_v28  ;;  %v2919_v17 = vsel %vm1153_vm5, %v2916_v52, %v2918_v50 }
 0x358   :  { %v2322_v22 = vrot.slane %v8888_v14, 1  ;;  %v2471_v29 = vrot.slane %v8888_v14, 2  ;;  %v5941_v62 = vpack.i.bf16 %v8888_v14, %v8868_v18  ;;  %v5931_v58 = vpack.i.bf16 %v2919_v17, %v2917_v45 }
 0x359   :  { %5912 = vrot.lane.b32.xlu1 %v5911_v16, %s6656_s28  ;;  %5907 = vrot.lane.b32.xlu0 %v5906_v7, %s6653_s0  ;;  %v8947_v47 = vsel %vm652_vm1, %v2467_v31, %v2469_v27  ;;  %v2769_v38 = vrot.slane %v8888_v14, 5  ;;  %v2619_v10 = vrot.slane %v8888_v14, 4 }
 0x35a   :  { %v2323_v43 = vsel %vm487_vm2, %v2320_v33, %v2322_v22  ;;  %v8936_v48 = vsel %vm652_vm1, %v2469_v27, %v2471_v29 }
 0x35b   :  { %v2125_v8 = vpop.f32.mrf.mxu1  ;;  %v5936_v53 = vpack.i.bf16 %v2323_v43, %v2321_v12  ;;  %v5946_v32 = vpack.i.bf16 %v8936_v48, %v8947_v47  ;;  %v2770_v31 = vsel %vm986_vm4, %v2767_v40, %v2769_v38  ;;  %v2620_v12 = vsel %vm819_vm3, %v2617_v63, %v2619_v10 }
 0x35c   :  { %v2126_v6 = vadd.f32 %v2125_v8, %v8609_v46 }
 0x35d   :  { %5927 = vrot.lane.b32.xlu1 %v5926_v41, %s6661_s2  ;;  %5917 = vrot.lane.b32.xlu0 %v5916_v3, %s6665_s3  ;;  %v5726_v25 = vpop.f32.mrf.mxu1 }
 0x35e   :  { %v8915_v26 = vmax.f32 %v2126_v6, 0.0 }
 0x360   :  { %v2324_v24 = vrot.slane %v8915_v26, 1  ;;  %v2771_v34 = vrot.slane %v8915_v26, 5  ;;  %v2621_v59 = vrot.slane %v8915_v26, 4  ;;  %v2922_v7 = vrot.slane %v8915_v26, 6 }
 0x361   :  { %5937 = vrot.lane.b32.xlu1 %v5936_v53, %s6653_s0  ;;  %5922 = vrot.lane.b32.xlu0 %v5921_v5, %s6660_s23  ;;  %v2473_v27 = vrot.slane %v8915_v26, 2 }
 0x362   :  { %v2325_v4 = vsel %vm487_vm2, %v2322_v22, %v2324_v24  ;;  %v2772_v54 = vsel %vm986_vm4, %v2769_v38, %v2771_v34  ;;  %v2622_v16 = vsel %vm819_vm3, %v2619_v10, %v2621_v59  ;;  %v2920_v22 = vrot.slane %v8888_v14, 6 }
 0x363   :  { %v2130_v19 = vpop.f32.mrf.mxu1  ;;  %v5951_v36 = vpack.i.bf16 %v2325_v4, %v2323_v43  ;;  %v5966_v33 = vpack.i.bf16 %v2772_v54, %v2770_v31  ;;  %v5961_v2 = vpack.i.bf16 %v2622_v16, %v2620_v12 }
 0x364   :  { %v2131_v49 = vadd.f32 %v2130_v19, %v8609_v46  ;;  %v2923_v57 = vsel %vm1153_vm5, %v2920_v22, %v2922_v7  ;;  %v2921_v41 = vsel %vm1153_vm5, %v2918_v50, %v2920_v22 }
 0x365   :  { %5942 = vrot.lane.b32.xlu1 %v5941_v62, %s6663_s1  ;;  %5932 = vrot.lane.b32.xlu0 %v5931_v58, %s6664_s13  ;;  %v5729_v61 = vpop.f32.mrf.mxu1  ;;  %v5971_v6 = vpack.i.bf16 %v2923_v57, %v2921_v41 }
 0x366   :  { %v8942_v0 = vmax.f32 %v2131_v49, 0.0 }
 0x368   :  { %v2326_v60 = vrot.slane %v8942_v0, 1  ;;  %v2475_v17 = vrot.slane %v8942_v0, 2  ;;  %v5981_v19 = vpack.i.bf16 %v8942_v0, %v8915_v26  ;;  %v2773_v61 = vrot.slane %v8942_v0, 5 }
 0x369   :  { %5947 = vrot.lane.b32.xlu1 %v5946_v32, %s6656_s28  ;;  %5952 = vrot.lane.b32.xlu0 %v5951_v36, %s6665_s3 }
 0x36a   :  { %v2327_v30 = vsel %vm487_vm2, %v2324_v24, %v2326_v60  ;;  %v8997_v62 = vsel %vm652_vm1, %v2473_v27, %v2475_v17 }
 0x36b   :  { %v2135_v55 = vpop.f32.mrf.mxu1  ;;  %v5956_v37 = vpack.i.bf16 %v2327_v30, %v2325_v4  ;;  %v9006_v4 = vsel %vm652_vm1, %v2471_v29, %v2473_v27  ;;  %v2774_v29 = vsel %vm986_vm4, %v2771_v34, %v2773_v61 }
 0x36c   :  { %v2136_v15 = vadd.f32 %v2135_v55, %v8609_v46  ;;  %v5991_v32 = vpack.i.bf16 %v8997_v62, %v9006_v4 }
 0x36d   :  { %5967 = vrot.lane.b32.xlu1 %v5966_v33, %s6661_s2  ;;  %v5732_v35 = vpop.f32.mrf.mxu1  ;;  %5957 = vrot.lane.b32.xlu0 %v5956_v37, %s6653_s0 }
 0x36e   :  { %v8969_v40 = vmax.f32 %v2136_v15, 0.0  ;;  %v2623_v35 = vrot.slane %v8942_v0, 4 }
 0x370   :  { %v2328_v8 = vrot.slane %v8969_v40, 1  ;;  %v2775_v58 = vrot.slane %v8969_v40, 5  ;;  %v2625_v37 = vrot.slane %v8969_v40, 4  ;;  %v2477_v34 = vrot.slane %v8969_v40, 2 }
 0x371   :  { %5962 = vrot.lane.b32.xlu0 %v5961_v2, %s6660_s23 }
 0x372   :  { %v2329_v44 = vsel %vm487_vm2, %v2326_v60, %v2328_v8  ;;  %v2776_v54 = vsel %vm986_vm4, %v2773_v61, %v2775_v58 }
 0x373   :  { %v2140_v3 = vpop.f32.mrf.mxu1  ;;  %v5986_v28 = vpack.i.bf16 %v2329_v44, %v2327_v30  ;;  %v6006_v10 = vpack.i.bf16 %v2776_v54, %v2774_v29 }
 0x374   :  { %v2141_v43 = vadd.f32 %v2140_v3, %v8609_v46  ;;  %v2926_v3 = vrot.slane %v8969_v40, 6 }
 0x375   :  { %v5735_v63 = vpop.f32.mrf.mxu1  ;;  %5972 = vrot.lane.b32.xlu0 %v5971_v6, %s6664_s13 }
 0x376   :  { %v8982_v25 = vmax.f32 %v2141_v43, 0.0  ;;  %v9044_v43 = vsel %vm652_vm1, %v2475_v17, %v2477_v34 }
 0x378   :  { %v2330_v52 = vrot.slane %v8982_v25, 1  ;;  %v2479_v33 = vrot.slane %v8982_v25, 2  ;;  %v6016_v22 = vpack.i.bf16 %v8982_v25, %v8969_v40  ;;  %v2777_v63 = vrot.slane %v8982_v25, 5 }
 0x379   :  { %5987 = vrot.lane.b32.xlu0 %v5986_v28, %s6665_s3  ;;  %v2924_v28 = vrot.slane %v8942_v0, 6 }
 0x37a   :  { %v8987_v53 = vsel %vm487_vm2, %v2328_v8, %v2330_v52  ;;  %v9036_v57 = vsel %vm652_vm1, %v2477_v34, %v2479_v33  ;;  %v2626_v8 = vsel %vm819_vm3, %v2623_v35, %v2625_v37 }
 0x37b   :  { %v2145_v50 = vpop.f32.mrf.mxu1  ;;  %v5976_v5 = vpack.i.bf16 %v8987_v53, %v2329_v44  ;;  %v2624_v44 = vsel %vm819_vm3, %v2621_v59, %v2623_v35  ;;  %v2778_v59 = vsel %vm986_vm4, %v2775_v58, %v2777_v63  ;;  %v2925_v17 = vsel %vm1153_vm5, %v2922_v7, %v2924_v28 }
 0x37c   :  { %v2146_v45 = vadd.f32 %v2145_v50, %v8609_v46  ;;  %v6001_v50 = vpack.i.bf16 %v2626_v8, %v2624_v44 }
 0x37d   :  { %5977 = vrot.lane.b32.xlu1 %v5976_v5, %s6653_s0  ;;  %v5738_v24 = vpop.f32.mrf.mxu1 }
 0x37e   :  { %v9001_v49 = vmax.f32 %v2146_v45, 0.0  ;;  %v2927_v45 = vsel %vm1153_vm5, %v2924_v28, %v2926_v3 }
 0x37f   :  { %v6011_v61 = vpack.i.bf16 %v2927_v45, %v2925_v17 }
 0x380   :  { %v2332_v30 = vrot.slane %v9001_v49, 1  ;;  %v2779_v41 = vrot.slane %v9001_v49, 5  ;;  %v2481_v58 = vrot.slane %v9001_v49, 2 }
 0x381   :  { %5982 = vrot.lane.b32.xlu1 %v5981_v19, %s6663_s1 }
 0x382   :  { %v2333_v15 = vsel %vm487_vm2, %v2330_v52, %v2332_v30  ;;  %v6026_v52 = vpack.i.bf16 %v9036_v57, %v9044_v43  ;;  %v2780_v24 = vsel %vm986_vm4, %v2777_v63, %v2779_v41 }
 0x383   :  { %v2150_v38 = vpop.f32.mrf.mxu1  ;;  %v6036_v19 = vpack.i.bf16 %v2780_v24, %v2778_v59  ;;  %v6021_v29 = vpack.i.bf16 %v2333_v15, %v8987_v53  ;;  %v9086_v53 = vsel %vm652_vm1, %v2479_v33, %v2481_v58 }
 0x384   :  { %v2151_v36 = vadd.f32 %v2150_v38, %v8609_v46 }
 0x385   :  { %5992 = vrot.lane.b32.xlu1 %v5991_v32, %s6656_s28  ;;  %v5741_v60 = vpop.f32.mrf.mxu1 }
 0x386   :  { %v9014_v31 = vmax.f32 %v2151_v36, 0.0  ;;  %v2629_v36 = vrot.slane %v9001_v49, 4  ;;  %v2627_v60 = vrot.slane %v8982_v25, 4 }
 0x388   :  { %v2334_v55 = vrot.slane %v9014_v31, 1  ;;  %v2483_v32 = vrot.slane %v9014_v31, 2  ;;  %v6046_v7 = vpack.i.bf16 %v9014_v31, %v9001_v49  ;;  %v2630_v35 = vsel %vm819_vm3, %v2627_v60, %v2629_v36 }
 0x389   :  { %6007 = vrot.lane.b32.xlu1 %v6006_v10, %s6661_s2 }
 0x38a   :  { %v9028_v16 = vsel %vm487_vm2, %v2332_v30, %v2334_v55  ;;  %v2930_v30 = vrot.slane %v9001_v49, 6  ;;  %v9078_v34 = vsel %vm652_vm1, %v2481_v58, %v2483_v32 }
 0x38b   :  { %v2155_v12 = vpop.f32.mrf.mxu1  ;;  %v5996_v2 = vpack.i.bf16 %v9028_v16, %v2333_v15  ;;  %v2628_v15 = vsel %vm819_vm3, %v2625_v37, %v2627_v60 }
 0x38c   :  { %v2156_v5 = vadd.f32 %v2155_v12, %v8609_v46  ;;  %v6031_v44 = vpack.i.bf16 %v2630_v35, %v2628_v15 }
 0x38d   :  { %6017 = vrot.lane.b32.xlu1 %v6016_v22, %s6663_s1  ;;  %v5744_v6 = vpop.f32.mrf.mxu1  ;;  %5997 = vrot.lane.b32.xlu0 %v5996_v2, %s6653_s0  ;;  %v2928_v22 = vrot.slane %v8982_v25, 6  ;;  %v2781_v2 = vrot.slane %v9014_v31, 5 }
 0x38e   :  { %v9062_v38 = vmax.f32 %v2156_v5, 0.0  ;;  %v6056_v6 = vpack.i.bf16 %v9078_v34, %v9086_v53 }
 0x38f   :  { %v2931_v63 = vsel %vm1153_vm5, %v2928_v22, %v2930_v30  ;;  %v2782_v5 = vsel %vm986_vm4, %v2779_v41, %v2781_v2  ;;  %v2929_v24 = vsel %vm1153_vm5, %v2926_v3, %v2928_v22  ;;  %v2631_v41 = vrot.slane %v9014_v31, 4 }
 0x390   :  { %v2783_v12 = vrot.slane %v9062_v38, 5  ;;  %v6041_v59 = vpack.i.bf16 %v2931_v63, %v2929_v24 }
 0x391   :  { %6027 = vrot.lane.b32.xlu1 %v6026_v52, %s6656_s28  ;;  %6002 = vrot.lane.b32.xlu0 %v6001_v50, %s6660_s23  ;;  %v2336_v50 = vrot.slane %v9062_v38, 1  ;;  %v2632_v22 = vsel %vm819_vm3, %v2629_v36, %v2631_v41 }
 0x392   :  { %v2784_v33 = vsel %vm986_vm4, %v2781_v2, %v2783_v12 }
 0x393   :  { %v2160_v27 = vpop.f32.mrf.mxu1  ;;  %v6066_v45 = vpack.i.bf16 %v2784_v33, %v2782_v5 }
 0x394   :  { %v2161_v10 = vadd.f32 %v2160_v27, %v8609_v46  ;;  %v2337_v27 = vsel %vm487_vm2, %v2334_v55, %v2336_v50 }
 0x395   :  { %6037 = vrot.lane.b32.xlu1 %v6036_v19, %s6661_s2  ;;  %v5747_v54 = vpop.f32.mrf.mxu1  ;;  %6012 = vrot.lane.b32.xlu0 %v6011_v61, %s6664_s13  ;;  %v2633_v61 = vrot.slane %v9062_v38, 4  ;;  %v6051_v58 = vpack.i.bf16 %v2337_v27, %v9028_v16  ;;  %v2932_v16 = vrot.slane %v9014_v31, 6 }
 0x396   :  { %v9093_v28 = vmax.f32 %v2161_v10, 0.0 }
 0x397   :  { %v2634_v55 = vsel %vm819_vm3, %v2631_v41, %v2633_v61 }
 0x398   :  { %v2338_v19 = vrot.slane %v9093_v28, 1  ;;  %v6076_v3 = vpack.i.bf16 %v9093_v28, %v9062_v38  ;;  %v2635_v15 = vrot.slane %v9093_v28, 4 }
 0x399   :  { %6047 = vrot.lane.b32.xlu1 %v6046_v7, %s6663_s1  ;;  %6022 = vrot.lane.b32.xlu0 %v6021_v29, %s6665_s3  ;;  %v2934_v29 = vrot.slane %v9062_v38, 6 }
 0x39a   :  { %v2339_v60 = vsel %vm487_vm2, %v2336_v50, %v2338_v19  ;;  %v2636_v33 = vsel %vm819_vm3, %v2633_v61, %v2635_v15  ;;  %v2933_v50 = vsel %vm1153_vm5, %v2930_v30, %v2932_v16  ;;  %v2485_v30 = vrot.slane %v9062_v38, 2 }
 0x39b   :  { %v2165_v8 = vpop.f32.mrf.mxu1  ;;  %v6086_v2 = vpack.i.bf16 %v2339_v60, %v2337_v27 }
 0x39c   :  { %v2166_v52 = vadd.f32 %v2165_v8, %v8609_v46  ;;  %v6061_v8 = vpack.i.bf16 %v2634_v55, %v2632_v22 }
 0x39d   :  { %6057 = vrot.lane.b32.xlu1 %v6056_v6, %s6656_s28  ;;  %v5750_v37 = vpop.f32.mrf.mxu1  ;;  %6032 = vrot.lane.b32.xlu0 %v6031_v44, %s6660_s23  ;;  %v2935_v44 = vsel %vm1153_vm5, %v2932_v16, %v2934_v29 }
 0x39e   :  { %v9104_v17 = vmax.f32 %v2166_v52, 0.0  ;;  %v2936_v37 = vrot.slane %v9093_v28, 6 }
 0x3a0   :  { %v11535_v7 = vrot.slane %v9104_v17, 4  ;;  %v11534_v63 = vrot.slane %v9104_v17, 6  ;;  %v2340_v52 = vrot.slane %v9104_v17, 1 }
 0x3a1   :  { %6067 = vrot.lane.b32.xlu1 %v6066_v45, %s6661_s2  ;;  %6042 = vrot.lane.b32.xlu0 %v6041_v59, %s6664_s13  ;;  %v6071_v45 = vpack.i.bf16 %v2935_v44, %v2933_v50  ;;  %v2489_v50 = vrot.slane %v9104_v17, 2 }
 0x3a2   :  { %v2638_v6 = vsel %vm819_vm3, %v2635_v15, %v11535_v7  ;;  %v2939_v27 = vsel %vm1153_vm5, %v2936_v37, %v11534_v63  ;;  %v9145_v41 = vsel %vm487_vm2, %v2338_v19, %v2340_v52 }
 0x3a3   :  { %v2170_v54 = vpop.f32.mrf.mxu1  ;;  %v6096_v24 = vpack.i.bf16 %v2638_v6, %v2636_v33  ;;  %v6081_v22 = vpack.i.bf16 %v9145_v41, %v2339_v60  ;;  %v2785_v60 = vrot.slane %v9093_v28, 5 }
 0x3a4   :  { %v2171_v35 = vadd.f32 %v2170_v54, %v8609_v46  ;;  %v2487_v54 = vrot.slane %v9093_v28, 2 }
 0x3a5   :  { %6077 = vrot.lane.b32.xlu1 %v6076_v3, %s6663_s1  ;;  %v5753_v10 = vpop.f32.mrf.mxu1  ;;  %6052 = vrot.lane.b32.xlu0 %v6051_v58, %s6665_s3  ;;  %v2937_v58 = vsel %vm1153_vm5, %v2934_v29, %v2936_v37  ;;  %v9169_v29 = vsel %vm652_vm1, %v2483_v32, %v2485_v30 }
 0x3a6   :  { %v9135_v36 = vmax.f32 %v2171_v35, 0.0  ;;  %v6106_v19 = vpack.i.bf16 %v2939_v27, %v2937_v58  ;;  %v9160_v16 = vsel %vm652_vm1, %v2485_v30, %v2487_v54  ;;  %v2786_v58 = vsel %vm986_vm4, %v2783_v12, %v2785_v60 }
 0x3a7   :  { %v9205_v63 = vsel %vm652_vm1, %v2487_v54, %v2489_v50 }
 0x3a8   :  { %v2342_v55 = vrot.slane %v9135_v36, 1 }
 0x3a9   :  { %6087 = vrot.lane.b32.xlu1 %v6086_v2, %s6653_s0  ;;  %6062 = vrot.lane.b32.xlu0 %v6061_v8, %s6660_s23  ;;  %v11532_v2 = vrot.slane %v9135_v36, 2  ;;  %v2787_v8 = vrot.slane %v9104_v17, 5 }
 0x3aa   :  { %v9173_v44 = vsel %vm487_vm2, %v2340_v52, %v2342_v55 }
 0x3ab   :  { %v2175_v5 = vpop.f32.mrf.mxu1  ;;  %v9155_v10 = vpop.permute.xlu1 %5847  ;;  %v9190_v52 = vsel %vm652_vm1, %v2489_v50, %v11532_v2 }
 0x3ac   :  { %v2176_v59 = vadd.f32 %v2175_v5, %v8609_v46  ;;  %v5843_v35 = vpop.permute.xlu0 %5842 }
 0x3ad   :  { %6097 = vrot.lane.b32.xlu1 %v6096_v24, %s6660_s23  ;;  %v5756_v61 = vpop.f32.mrf.mxu1  ;;  %6072 = vrot.lane.b32.xlu0 %v6071_v45, %s6664_s13  ;;  %v5844_v6 = vunpack.i.l.bf16 %v5843_v35  ;;  %v6091_v24 = vpack.i.bf16 %v9160_v16, %v9169_v29 }
 0x3ae   :  { %v9151_v3 = vmax.f32 %v2176_v59, 0.0  ;;  %v2788_v59 = vsel %vm986_vm4, %v2785_v60, %v2787_v8  ;;  %v5849_v61 = vunpack.i.l.bf16 %v9155_v10 }
 0x3af   :  { %v6101_v7 = vpack.i.bf16 %v2788_v59, %v2786_v58 }
 0x3b0   :  { %v11533_v15 = vrot.slane %v9151_v3, 1  ;;  %v11536_v27 = vrot.slane %v9151_v3, 5 }
 0x3b1   :  { %6107 = vrot.lane.b32.xlu1 %v6106_v19, %s6664_s13  ;;  %6082 = vrot.lane.b32.xlu0 %v6081_v22, %s6665_s3  ;;  %v5845_v19 = vunpack.i.h.bf16 %v5843_v35  ;;  %v3251_v22 = vsel %vm1664_vm8, %v8652_v13, %v5844_v6  ;;  %v5850_v13 = vunpack.i.h.bf16 %v9155_v10 }
 0x3b2   :  { %v9178_v33 = vsel %vm487_vm2, %v2342_v55, %v11533_v15  ;;  %v2789_v55 = vrot.slane %v9135_v36, 5 }
 0x3b3   :  { %v9181_v37 = vpop.permute.xlu1 %5857  ;;  %v5853_v5 = vpop.permute.xlu0 %5852  ;;  %v6116_v32 = vpack.i.bf16 %v9178_v33, %v9173_v44  ;;  %v3252_v6 = vsel %vm1664_vm8, %v8641_v20, %v5845_v19  ;;  %v6121_v20 = vpack.i.bf16 %v9173_v44, %v9145_v41 }
 0x3b4   :  { %v2180_v45 = vpop.f32.mrf.mxu1  ;;  %v5854_v2 = vunpack.i.l.bf16 %v5853_v5  ;;  %v2792_v35 = vsel %vm986_vm4, %v2789_v55, %v11536_v27  ;;  %v5859_v54 = vunpack.i.l.bf16 %v9181_v37  ;;  %v2790_v60 = vsel %vm986_vm4, %v2787_v8, %v2789_v55 }
 0x3b5   :  { %v2181_v30 = vadd.f32 %v2180_v45, %v8609_v46  ;;  %6117 = vrot.lane.b32.xlu1 %v6116_v32, %s6665_s3  ;;  %6092 = vrot.lane.b32.xlu0 %v6091_v24, %s6656_s28  ;;  %v6126_v24 = vpack.i.bf16 %v9190_v52, %v9205_v63  ;;  %v5855_v50 = vunpack.i.h.bf16 %v5853_v5  ;;  %v6136_v27 = vpack.i.bf16 %v2792_v35, %v2790_v60 }
 0x3b6   :  { %v5759_v15 = vpop.f32.mrf.mxu1  ;;  %v5860_v55 = vunpack.i.h.bf16 %v9181_v37  ;;  %v3282_v19 = vsel %vm64_vm0, %v3252_v6, %v5850_v13  ;;  %v11899_v6 = vrot.slane %v9104_v17, 6 }
 0x3b7   :  { %v9207_v45 = vpop.permute.xlu1 %5867  ;;  %v5863_v32 = vpop.permute.xlu0 %5862  ;;  %v9211_v12 = vmax.f32 %v2181_v30, 0.0  ;;  %v3281_v15 = vsel %vm64_vm0, %v3251_v22, %v5849_v61  ;;  %v6111_v61 = vpack.i.bf16 %v9135_v36, %v9104_v17  ;;  %v2639_v22 = vrot.slane %v9135_v36, 4 }
 0x3b8   :  { %v3311_v59 = vsel %vm1799_vm11, %v3281_v15, %v5854_v2  ;;  %v5864_v30 = vunpack.i.l.bf16 %v5863_v32  ;;  %v2641_v2 = vrot.slane %v9151_v3, 4  ;;  %v3312_v60 = vsel %vm1799_vm11, %v3282_v19, %v5855_v50 }
 0x3b9   :  { %6127 = vrot.lane.b32.xlu1 %v6126_v24, %s6656_s28  ;;  %6102 = vrot.lane.b32.xlu0 %v6101_v7, %s6661_s2  ;;  %v2940_v7 = vrot.slane %v9135_v36, 6  ;;  %v5869_v24 = vunpack.i.l.bf16 %v9207_v45  ;;  %v3341_v35 = vsel %vm1867_vm13, %v3311_v59, %v5859_v54  ;;  %v5865_v41 = vunpack.i.h.bf16 %v5863_v32 }
 0x3ba   :  { %v3372_v44 = vsel %vm3371_vm15, %v3341_v35, %v5864_v30  ;;  %v6146_v13 = vpack.i.bf16 %v9211_v12, %v9151_v3  ;;  %v11898_v54 = vrot.slane %v9104_v17, 4  ;;  %v2942_v32 = vrot.slane %v9151_v3, 6 }
 0x3bb   :  { %v9225_v58 = vpop.permute.xlu1 %5872  ;;  %v2185_v10 = vpop.f32.mrf.mxu1  ;;  %v2941_v59 = vsel %vm1153_vm5, %v11899_v6, %v2940_v7  ;;  %v11900_v30 = vrot.slane %v9211_v12, 1  ;;  %v2642_v19 = vsel %vm819_vm3, %v2639_v22, %v2641_v2  ;;  %v3342_v6 = vsel %vm1867_vm13, %v3312_v60, %v5860_v55 }
 0x3bc   :  { %v2186_v8 = vadd.f32 %v2185_v10, %v8609_v46  ;;  %v2944_v55 = vrot.slane %v9211_v12, 6  ;;  %v5874_v60 = vunpack.i.l.bf16 %v9225_v58 }
 0x3bd   :  { %6137 = vrot.lane.b32.xlu1 %v6136_v27, %s6661_s2  ;;  %v5762_v15 = vpop.f32.mrf.mxu1  ;;  %6112 = vrot.lane.b32.xlu0 %v6111_v61, %s6663_s1  ;;  %v2640_v27 = vsel %vm819_vm3, %v11898_v54, %v2639_v22  ;;  %v11901_v61 = vrot.slane %v9151_v3, 1  ;;  %v3403_v54 = vsel %vm3402_vm6, %v3372_v44, %v5869_v24  ;;  %v2643_v22 = vrot.slane %v9211_v12, 4 }
 0x3be   :  { %v9244_v10 = vmax.f32 %v2186_v8, 0.0  ;;  %v5870_v15 = vunpack.i.h.bf16 %v9207_v45  ;;  %v2943_v24 = vsel %vm1153_vm5, %v2940_v7, %v2942_v32 }
 0x3bf   :  { %v9246_v5 = vpop.permute.xlu1 %5877  ;;  %v5883_v37 = vpop.permute.xlu0 %5882  ;;  %v9262_v8 = vsel %vm487_vm2, %v11901_v61, %v11900_v30  ;;  %v3373_v61 = vsel %vm3371_vm15, %v3342_v6, %v5865_v41 }
 0x3c0   :  { %v5884_v50 = vunpack.i.l.bf16 %v5883_v37  ;;  %v11540_v21 = vrot.slane %v9244_v10, 4  ;;  %v5885_v39 = vunpack.i.h.bf16 %v5883_v37  ;;  %v5879_v7 = vunpack.i.l.bf16 %v9246_v5 }
 0x3c1   :  { %6147 = vrot.lane.b32.xlu1 %v6146_v13, %s6663_s1  ;;  %6122 = vrot.lane.b32.xlu0 %v6121_v20, %s6653_s0  ;;  %v6156_v20 = vpack.i.bf16 %v9262_v8, %v9178_v33  ;;  %v6131_v13 = vpack.i.bf16 %v2642_v19, %v2640_v27  ;;  %v5875_v33 = vunpack.i.h.bf16 %v9225_v58  ;;  %v3404_v27 = vsel %vm3402_vm6, %v3373_v61, %v5870_v15 }
 0x3c2   :  { %v3434_v30 = vsel %vm3433_vm7, %v3403_v54, %v5884_v50  ;;  %v2646_v41 = vsel %vm819_vm3, %v2643_v22, %v11540_v21  ;;  %v5880_v19 = vunpack.i.h.bf16 %v9246_v5  ;;  %v2644_v21 = vsel %vm819_vm3, %v2641_v2, %v2643_v22 }
 0x3c3   :  { %v9275_v35 = vpop.permute.xlu1 %5892  ;;  %v5888_v45 = vpop.permute.xlu0 %5887  ;;  %3611 = vmatmul.mubr.f32.vlgmr.msra.gmra.mxu0 %v3434_v30  ;;  %v3435_v30 = vsel %vm3433_vm7, %v3404_v27, %v5885_v39  ;;  %v2945_v15 = vsel %vm1153_vm5, %v2942_v32, %v2944_v55  ;;  %v3253_v61 = vsel %vm1664_vm8, %v8663_v56, %v5874_v60  ;;  %v11902_v39 = vrot.slane %v9244_v10, 6 }
 0x3c4   :  { %v2190_v44 = vpop.f32.mrf.mxu1  ;;  %5222 = vmatprep.mubr.msk.f32.mxu0 %vm1664_vm8, %v8893_v11  ;;  %v2495_v11 = vrot.slane %v9211_v12, 2  ;;  %v5889_v54 = vunpack.i.l.bf16 %v5888_v45  ;;  %v5890_v5 = vunpack.i.h.bf16 %v5888_v45  ;;  %v11903_v22 = vrot.slane %v9244_v10, 1 }
 0x3c5   :  { %6157 = vrot.lane.b32.xlu1 %v6156_v20, %s6653_s0  ;;  %6132 = vrot.lane.b32.xlu0 %v6131_v13, %s6660_s23  ;;  %v2191_v58 = vadd.f32 %v2190_v44, %v8609_v46  ;;  %v6166_v20 = vpack.i.bf16 %v2646_v41, %v2644_v21  ;;  %v6141_v13 = vpack.i.bf16 %v2943_v24, %v2941_v59  ;;  %v11904_v44 = vrot.slane %v9211_v12, 1 }
 0x3c6   :  { %v5765_v6 = vpop.f32.mrf.mxu1  ;;  %v2947_v2 = vsel %vm1153_vm5, %v2944_v55, %v11902_v39  ;;  %v3254_v59 = vsel %vm1664_vm8, %v8711_v1, %v5875_v33  ;;  %v3283_v56 = vsel %vm64_vm0, %v3253_v61, %v5879_v7  ;;  %v5894_v32 = vunpack.i.l.bf16 %v9275_v35 }
 0x3c7   :  { %v9299_v50 = vpop.permute.xlu1 %5902  ;;  %v5898_v37 = vpop.permute.xlu0 %5897  ;;  %3616 = vmatmul.mubr.f32.gmra.mxu0 %v3435_v30  ;;  %v9314_v21 = vsel %vm487_vm2, %v11904_v44, %v11903_v22  ;;  %v3284_v24 = vsel %vm64_vm0, %v3254_v59, %v5880_v19  ;;  %v3313_v55 = vsel %vm1799_vm11, %v3283_v56, %v5889_v54  ;;  %v11541_v60 = vrot.slane %v9244_v10, 5 }
 0x3c8   :  { %5223 = vmatprep.mubr.msk.f32.mxu0 %vm1664_vm8, %v8880_v23  ;;  %v11905_v23 = vrot.slane %v9151_v3, 2  ;;  %v5899_v1 = vunpack.i.l.bf16 %v5898_v37  ;;  %v5895_v41 = vunpack.i.h.bf16 %v9275_v35  ;;  %v9333_v33 = vmax.f32 %v2191_v58, 0.0 }
 0x3c9   :  { %6167 = vrot.lane.b32.xlu1 %v6166_v20, %s6660_s23  ;;  %6142 = vrot.lane.b32.xlu0 %v6141_v13, %s6664_s13  ;;  %v6176_v6 = vpack.i.bf16 %v2947_v2, %v2945_v15  ;;  %v6151_v30 = vpack.i.bf16 %v9314_v21, %v9262_v8  ;;  %v3314_v20 = vsel %vm1799_vm11, %v3284_v24, %v5890_v5  ;;  %v5900_v13 = vunpack.i.h.bf16 %v5898_v37 }
 0x3ca   :  { %v9327_v45 = vsel %vm652_vm1, %v11905_v23, %v2495_v11  ;;  %v2793_v54 = vrot.slane %v9211_v12, 5  ;;  %v5904_v61 = vunpack.i.l.bf16 %v9299_v50  ;;  %v11906_v35 = vmov %v11905_v23 }
 0x3cb   :  { %v9335_v7 = vpop.permute.xlu1 %5912  ;;  %v5908_v27 = vpop.permute.xlu0 %5907  ;;  %v11907_v58 = vrot.slane %v9135_v36, 2  ;;  %v3343_v37 = vsel %vm1867_vm13, %v3313_v55, %v5894_v32  ;;  %v2350_v24 = vrot.slane %v9333_v33, 1  ;;  %v3344_v32 = vsel %vm1867_vm13, %v3314_v20, %v5895_v41 }
 0x3cc   :  { %v2195_v19 = vpop.f32.mrf.mxu1  ;;  %v5909_v15 = vunpack.i.l.bf16 %v5908_v27  ;;  %v3374_v22 = vsel %vm3371_vm15, %v3343_v37, %v5899_v1  ;;  %v2796_v44 = vsel %vm986_vm4, %v2793_v54, %v11541_v60  ;;  %v2497_v55 = vrot.slane %v9244_v10, 2 }
 0x3cd   :  { %v2196_v39 = vadd.f32 %v2195_v19, %v8609_v46  ;;  %6177 = vrot.lane.b32.xlu1 %v6176_v6, %s6664_s13  ;;  %6152 = vrot.lane.b32.xlu0 %v6151_v30, %s6665_s3  ;;  %v9350_v8 = vsel %vm652_vm1, %v11907_v58, %v11906_v35  ;;  %v5905_v6 = vunpack.i.h.bf16 %v9299_v50  ;;  %v3375_v1 = vsel %vm3371_vm15, %v3344_v32, %v5900_v13 }
 0x3ce   :  { %v5768_v5 = vpop.f32.mrf.mxu1  ;;  %v6161_v2 = vpack.i.bf16 %v9327_v45, %v9350_v8  ;;  %v11542_v19 = vrot.slane %v9333_v33, 2  ;;  %v5914_v35 = vunpack.i.l.bf16 %v9335_v7  ;;  %v3405_v58 = vsel %vm3402_vm6, %v3374_v22, %v5904_v61 }
 0x3cf   :  { %v9359_v59 = vmax.f32 %v2196_v39, 0.0  ;;  %v9361_v56 = vpop.permute.xlu1 %5927  ;;  %v5918_v23 = vpop.permute.xlu0 %5917  ;;  %v5910_v39 = vunpack.i.h.bf16 %v5908_v27  ;;  %v3255_v41 = vsel %vm1664_vm8, %v8740_v51, %v5909_v15  ;;  %v11908_v5 = vrot.slane %v9151_v3, 5 }
 0x3d0   :  { %v5919_v30 = vunpack.i.l.bf16 %v5918_v23  ;;  %v5920_v20 = vunpack.i.h.bf16 %v5918_v23  ;;  %v11909_v27 = vrot.slane %v9244_v10, 1  ;;  %v9392_v15 = vsel %vm652_vm1, %v2495_v11, %v2497_v55 }
 0x3d1   :  { %6162 = vrot.lane.b32.xlu0 %v6161_v2, %s6656_s28  ;;  %v2352_v37 = vrot.slane %v9359_v59, 1  ;;  %v2794_v13 = vsel %vm986_vm4, %v11908_v5, %v2793_v54  ;;  %v5915_v54 = vunpack.i.h.bf16 %v9335_v7  ;;  %v3285_v11 = vsel %vm64_vm0, %v3255_v41, %v5914_v35 }
 0x3d2   :  { %v3436_v50 = vsel %vm3433_vm7, %v3405_v58, %v5919_v30  ;;  %v2351_v61 = vsel %vm487_vm2, %v11909_v27, %v2350_v24  ;;  %v6171_v51 = vpack.i.bf16 %v2796_v44, %v2794_v13  ;;  %v3406_v30 = vsel %vm3402_vm6, %v3375_v1, %v5905_v6 }
 0x3d3   :  { %v9379_v32 = vpop.permute.xlu1 %5937  ;;  %v5923_v60 = vpop.permute.xlu0 %5922  ;;  %3621 = vmatmul.mubr.f32.gmra.mxu0 %v3436_v50  ;;  %v9387_v2 = vsel %vm487_vm2, %v2350_v24, %v2352_v37  ;;  %v9401_v24 = vsel %vm652_vm1, %v2497_v55, %v11542_v19  ;;  %v3256_v44 = vsel %vm1664_vm8, %v8797_v9, %v5910_v39  ;;  %v11543_v7 = vrot.slane %v9359_v59, 5 }
 0x3d4   :  { %v5924_v22 = vunpack.i.l.bf16 %v5923_v60  ;;  %v2200_v23 = vpop.f32.mrf.mxu1  ;;  %5224 = vmatprep.mubr.msk.f32.mxu0 %vm1664_vm8, %v8947_v47  ;;  %v6186_v58 = vpack.i.bf16 %v9387_v2, %v2351_v61  ;;  %v5925_v50 = vunpack.i.h.bf16 %v5923_v60  ;;  %v3437_v55 = vsel %vm3433_vm7, %v3406_v30, %v5920_v20 }
 0x3d5   :  { %6172 = vrot.lane.b32.xlu0 %v6171_v51, %s6661_s2  ;;  %v2201_v6 = vadd.f32 %v2200_v23, %v8609_v46  ;;  %v5929_v5 = vunpack.i.l.bf16 %v9361_v56  ;;  %v6181_v39 = vpack.i.bf16 %v9333_v33, %v9244_v10  ;;  %v2797_v41 = vrot.slane %v9333_v33, 5 }
 0x3d6   :  { %v3315_v47 = vsel %vm1799_vm11, %v3285_v11, %v5924_v22  ;;  %v5771_v1 = vpop.f32.mrf.mxu1  ;;  %6187 = vrot.lane.b32.xlu1 %v6186_v58, %s6665_s3  ;;  %v2647_v60 = vrot.slane %v9333_v33, 4  ;;  %v6196_v20 = vpack.i.bf16 %v9401_v24, %v9392_v15  ;;  %v2649_v27 = vrot.slane %v9359_v59, 4 }
 0x3d7   :  { %v5943_v9 = vpop.permute.xlu1 %5942  ;;  %v5933_v35 = vpop.permute.xlu0 %5932  ;;  %3626 = vmatmul.mubr.f32.gmra.mxu0 %v3437_v55  ;;  %v2948_v51 = vrot.slane %v9333_v33, 6  ;;  %v3286_v22 = vsel %vm64_vm0, %v3256_v44, %v5915_v54  ;;  %v2800_v30 = vsel %vm986_vm4, %v2797_v41, %v11543_v7  ;;  %v3345_v11 = vsel %vm1867_vm13, %v3315_v47, %v5929_v5 }
 0x3d8   :  { %v5934_v13 = vunpack.i.l.bf16 %v5933_v35  ;;  %5225 = vmatprep.mubr.msk.f32.mxu0 %vm1664_vm8, %v8936_v48  ;;  %v5944_v23 = vunpack.i.l.bf16 %v5943_v9  ;;  %v3316_v48 = vsel %vm1799_vm11, %v3286_v22, %v5925_v50  ;;  %v9431_v58 = vmax.f32 %v2201_v6, 0.0 }
 0x3d9   :  { %6182 = vrot.lane.b32.xlu0 %v6181_v39, %s6663_s1  ;;  %v5935_v1 = vunpack.i.h.bf16 %v5933_v35  ;;  %v5930_v19 = vunpack.i.h.bf16 %v9361_v56  ;;  %v11911_v44 = vrot.slane %v9244_v10, 5  ;;  %v6191_v7 = vpack.i.bf16 %v2351_v61, %v9314_v21 }
 0x3da   :  { %11910 = vst [vmem:[#allocation3_spill] sm:$0xff] %v9431_v58  ;;  %v3376_v55 = vsel %vm3371_vm15, %v3345_v11, %v5934_v13  ;;  %6197 = vrot.lane.b32.xlu1 %v6196_v20, %s6656_s28  ;;  %v11912_v47 = vrot.slane %v9244_v10, 4  ;;  %v2650_v56 = vsel %vm819_vm3, %v2647_v60, %v2649_v27  ;;  %v2950_v13 = vrot.slane %v9359_v59, 6 }
 0x3db   :  { %v5953_v54 = vpop.permute.xlu0 %5952  ;;  %v2798_v39 = vsel %vm986_vm4, %v11911_v44, %v2797_v41  ;;  %v2205_v5 = vpop.f32.mrf.mxu1  ;;  %v5945_v20 = vunpack.i.h.bf16 %v5943_v9  ;;  %v3407_v21 = vsel %vm3402_vm6, %v3376_v55, %v5944_v23  ;;  %v3346_v61 = vsel %vm1867_vm13, %v3316_v48, %v5930_v19 }
 0x3dc   :  { %v2648_v50 = vsel %vm819_vm3, %v11912_v47, %v2647_v60  ;;  %v5954_v6 = vunpack.i.l.bf16 %v5953_v54  ;;  %v6206_v35 = vpack.i.bf16 %v2800_v30, %v2798_v39  ;;  %v2206_v22 = vadd.f32 %v2205_v5, %v8609_v46 }
 0x3dd   :  { %6192 = vrot.lane.b32.xlu0 %v6191_v7, %s6653_s0  ;;  %v5955_v41 = vunpack.i.h.bf16 %v5953_v54  ;;  %v5774_v11 = vpop.f32.mrf.mxu1  ;;  %v3377_v30 = vsel %vm3371_vm15, %v3346_v61, %v5935_v1  ;;  %v2354_v39 = vrot.slane %v9431_v58, 1  ;;  %v6201_v9 = vpack.i.bf16 %v2650_v56, %v2648_v50 }
 0x3de   :  { %v3438_v44 = vsel %vm3433_vm7, %v3407_v21, %v5954_v6  ;;  %v9454_v60 = vmax.f32 %v2206_v22, 0.0  ;;  %6207 = vrot.lane.b32.xlu1 %v6206_v35, %s6661_s2  ;;  %v2951_v19 = vsel %vm1153_vm5, %v2948_v51, %v2950_v13  ;;  %v6216_v7 = vpack.i.bf16 %v9431_v58, %v9359_v59 }
 0x3df   :  { %3631 = vmatmul.mubr.f32.gmra.mxu0 %v3438_v44  ;;  %v9457_v47 = vpop.permute.xlu0 %5957  ;;  %v3408_v23 = vsel %vm3402_vm6, %v3377_v30, %v5945_v20  ;;  %v2355_v55 = vsel %vm487_vm2, %v2352_v37, %v2354_v39  ;;  %v2651_v35 = vrot.slane %v9431_v58, 4  ;;  %v2503_v56 = vrot.slane %v9431_v58, 2 }
 0x3e0   :  { %11913 = vst [vmem:[#allocation17_spill] sm:$0xff] %v9454_v60  ;;  %5226 = vmatprep.mubr.msk.f32.mxu0 %vm1664_vm8, %v9006_v4  ;;  %v2356_v48 = vrot.slane %v9454_v60, 1  ;;  %v3439_v1 = vsel %vm3433_vm7, %v3408_v23, %v5955_v41  ;;  %v11914_v4 = vrot.slane %v9244_v10, 6  ;;  %v11545_v50 = vrot.slane %v9454_v60, 4 }
 0x3e1   :  { %6202 = vrot.lane.b32.xlu0 %v6201_v9, %s6660_s23  ;;  %v6226_v20 = vpack.i.bf16 %v2355_v55, %v9387_v2  ;;  %v2501_v21 = vrot.slane %v9359_v59, 2  ;;  %v11544_v11 = vrot.slane %v9454_v60, 6  ;;  %v2652_v2 = vsel %vm819_vm3, %v2649_v27, %v2651_v35 }
 0x3e2   :  { %v2949_v54 = vsel %vm1153_vm5, %v11914_v4, %v2948_v51  ;;  %6217 = vrot.lane.b32.xlu1 %v6216_v7, %s6663_s1  ;;  %v9484_v37 = vsel %vm487_vm2, %v2354_v39, %v2356_v48  ;;  %v5948_v51 = vpop.permute.xlu1 %5947  ;;  %v2654_v41 = vsel %vm819_vm3, %v2651_v35, %v11545_v50  ;;  %v2952_v30 = vrot.slane %v9431_v58, 6 }
 0x3e3   :  { %3636 = vmatmul.mubr.f32.gmra.mxu0 %v3439_v1  ;;  %v2210_v6 = vpop.f32.mrf.mxu1  ;;  %v6211_v5 = vpack.i.bf16 %v2951_v19, %v2949_v54  ;;  %v6221_v44 = vpack.i.bf16 %v9484_v37, %v2355_v55  ;;  %v9504_v39 = vsel %vm652_vm1, %v2501_v21, %v2503_v56  ;;  %v11546_v9 = vrot.slane %v9454_v60, 5 }
 0x3e4   :  { %5227 = vmatprep.mubr.msk.f32.mxu0 %vm1664_vm8, %v8997_v62  ;;  %v2211_v61 = vadd.f32 %v2210_v6, %v8609_v46  ;;  %v5963_v62 = vpop.permute.xlu0 %5962  ;;  %v5939_v19 = vunpack.i.l.bf16 %v9379_v32  ;;  %v6236_v7 = vpack.i.bf16 %v2654_v41, %v2652_v2  ;;  %v11915_v23 = vrot.slane %v9333_v33, 2 }
 0x3e5   :  { %v5777_v22 = vpop.f32.mrf.mxu1  ;;  %6212 = vrot.lane.b32.xlu0 %v6211_v5, %s6664_s13  ;;  %v5949_v27 = vunpack.i.l.bf16 %v5948_v51  ;;  %v2955_v4 = vsel %vm1153_vm5, %v2952_v30, %v11544_v11  ;;  %v2801_v54 = vrot.slane %v9431_v58, 5  ;;  %v5940_v6 = vunpack.i.h.bf16 %v9379_v32 }
 0x3e6   :  { %6227 = vrot.lane.b32.xlu1 %v6226_v20, %s6653_s0  ;;  %v9512_v1 = vsel %vm652_vm1, %v11915_v23, %v2501_v21  ;;  %v9514_v55 = vmax.f32 %v2211_v61, 0.0  ;;  %v5968_v5 = vpop.permute.xlu1 %5967  ;;  %v5964_v35 = vunpack.i.l.bf16 %v5963_v62  ;;  %v5950_v21 = vunpack.i.h.bf16 %v5948_v51 }
 0x3e7   :  { %v6231_v22 = vpack.i.bf16 %v9504_v39, %v9512_v1  ;;  %v2804_v32 = vsel %vm986_vm4, %v2801_v54, %v11546_v9  ;;  %v3257_v2 = vsel %vm1664_vm8, %v8829_v42, %v5939_v19  ;;  %v3258_v9 = vsel %vm1664_vm8, %v8868_v18, %v5940_v6 }
 0x3e8   :  { %11916 = vst [vmem:[#allocation5_spill] sm:$0xff] %v9514_v55  ;;  %v5973_v41 = vpop.permute.xlu0 %5972  ;;  %v3287_v51 = vsel %vm64_vm0, %v3257_v2, %v5949_v27  ;;  %v11547_v19 = vrot.slane %v9514_v55, 2  ;;  %v3288_v27 = vsel %vm64_vm0, %v3258_v9, %v5950_v21  ;;  %v2505_v18 = vrot.slane %v9454_v60, 2 }
 0x3e9   :  { %6222 = vrot.lane.b32.xlu0 %v6221_v44, %s6665_s3  ;;  %v2953_v44 = vsel %vm1153_vm5, %v2950_v13, %v2952_v30  ;;  %v2358_v30 = vrot.slane %v9514_v55, 1  ;;  %v3317_v42 = vsel %vm1799_vm11, %v3287_v51, %v5964_v35  ;;  %v5975_v6 = vunpack.i.h.bf16 %v5973_v41 }
 0x3ea   :  { %6237 = vrot.lane.b32.xlu1 %v6236_v7, %s6660_s23  ;;  %v5965_v7 = vunpack.i.h.bf16 %v5963_v62  ;;  %v6246_v23 = vpack.i.bf16 %v2955_v4, %v2953_v44  ;;  %v5969_v4 = vunpack.i.l.bf16 %v5968_v5  ;;  %v5974_v44 = vunpack.i.l.bf16 %v5973_v41 }
 0x3eb   :  { %v2215_v20 = vpop.f32.mrf.mxu1  ;;  %v9568_v41 = vsel %vm652_vm1, %v2505_v18, %v11547_v19 }
 0x3ec   :  { %v2216_v61 = vadd.f32 %v2215_v20, %v8609_v46  ;;  %v11917_v20 = vrot.slane %v9359_v59, 5  ;;  %v5988_v35 = vpop.permute.xlu0 %5987 }
 0x3ed   :  { %v5780_v11 = vpop.f32.mrf.mxu1  ;;  %6232 = vrot.lane.b32.xlu0 %v6231_v22, %s6656_s28 }
 0x3ee   :  { %v9535_v50 = vmax.f32 %v2216_v61, 0.0  ;;  %v2802_v13 = vsel %vm986_vm4, %v11917_v20, %v2801_v54  ;;  %6247 = vrot.lane.b32.xlu1 %v6246_v23, %s6664_s13  ;;  %v5970_v54 = vunpack.i.h.bf16 %v5968_v5  ;;  %v3318_v61 = vsel %vm1799_vm11, %v3288_v27, %v5965_v7 }
 0x3ef   :  { %v9545_v62 = vpop.permute.xlu1 %5977  ;;  %v6241_v11 = vpack.i.bf16 %v2804_v32, %v2802_v13  ;;  %v2359_v32 = vsel %vm487_vm2, %v2356_v48, %v2358_v30  ;;  %v3347_v5 = vsel %vm1867_vm13, %v3317_v42, %v5969_v4  ;;  %v6251_v23 = vpack.i.bf16 %v9514_v55, %v9454_v60 }
 0x3f0   :  { %v11548_v22 = vrot.slane %v9535_v50, 1  ;;  %v11549_v48 = vrot.slane %v9535_v50, 5  ;;  %v5989_v42 = vunpack.i.l.bf16 %v5988_v35  ;;  %v3378_v27 = vsel %vm3371_vm15, %v3347_v5, %v5974_v44 }
 0x3f1   :  { %6242 = vrot.lane.b32.xlu0 %v6241_v11, %s6661_s2  ;;  %v9579_v4 = vsel %vm652_vm1, %v2503_v56, %v2505_v18  ;;  %v3348_v19 = vsel %vm1867_vm13, %v3318_v61, %v5970_v54  ;;  %v6261_v56 = vpack.i.bf16 %v2359_v32, %v9484_v37  ;;  %v11550_v18 = vrot.slane %v9535_v50, 6 }
 0x3f2   :  { %v9559_v9 = vsel %vm487_vm2, %v2358_v30, %v11548_v22  ;;  %v11551_v30 = vrot.slane %v9535_v50, 4  ;;  %v2805_v22 = vrot.slane %v9514_v55, 5  ;;  %v6266_v44 = vpack.i.bf16 %v9568_v41, %v9579_v4 }
 0x3f3   :  { %v5983_v21 = vpop.permute.xlu1 %5982  ;;  %v2220_v2 = vpop.f32.mrf.mxu1  ;;  %v6256_v7 = vpack.i.bf16 %v9559_v9, %v2359_v32  ;;  %v5990_v5 = vunpack.i.h.bf16 %v5988_v35  ;;  %v11918_v37 = vrot.slane %v9454_v60, 5 }
 0x3f4   :  { %v5985_v51 = vunpack.i.h.bf16 %v5983_v21  ;;  %v5984_v20 = vunpack.i.l.bf16 %v5983_v21  ;;  %v2221_v13 = vadd.f32 %v2220_v2, %v8609_v46  ;;  %v3379_v2 = vsel %vm3371_vm15, %v3348_v19, %v5975_v6 }
 0x3f5   :  { %6257 = vrot.lane.b32.xlu1 %v6256_v7, %s6665_s3  ;;  %v5783_v11 = vpop.f32.mrf.mxu1  ;;  %6252 = vrot.lane.b32.xlu0 %v6251_v23, %s6663_s1  ;;  %v2655_v7 = vrot.slane %v9514_v55, 4  ;;  %v2808_v61 = vsel %vm986_vm4, %v2805_v22, %v11549_v48  ;;  %v2806_v32 = vsel %vm986_vm4, %v11918_v37, %v2805_v22 }
 0x3f6   :  { %v3409_v21 = vsel %vm3402_vm6, %v3378_v27, %v5984_v20  ;;  %v9593_v54 = vmax.f32 %v2221_v13, 0.0  ;;  %v3410_v19 = vsel %vm3402_vm6, %v3379_v2, %v5985_v51  ;;  %v11919_v51 = vrot.slane %v9454_v60, 4 }
 0x3f7   :  { %v9586_v11 = vpop.permute.xlu1 %5992  ;;  %v3440_v23 = vsel %vm3433_vm7, %v3409_v21, %v5989_v42  ;;  %v2658_v6 = vsel %vm819_vm3, %v2655_v7, %v11551_v30  ;;  %v2956_v13 = vrot.slane %v9514_v55, 6  ;;  %v3441_v27 = vsel %vm3433_vm7, %v3410_v19, %v5990_v5 }
 0x3f8   :  { %3641 = vmatmul.mubr.f32.gmra.mxu0 %v3440_v23  ;;  %v2656_v20 = vsel %vm819_vm3, %v11919_v51, %v2655_v7  ;;  %v6276_v21 = vpack.i.bf16 %v2808_v61, %v2806_v32  ;;  %v2362_v22 = vrot.slane %v9593_v54, 1  ;;  %v11920_v19 = vrot.slane %v9454_v60, 6 }
 0x3f9   :  { %6267 = vrot.lane.b32.xlu1 %v6266_v44, %s6656_s28  ;;  %6262 = vrot.lane.b32.xlu0 %v6261_v56, %s6653_s0  ;;  %v6271_v2 = vpack.i.bf16 %v2658_v6, %v2656_v20  ;;  %v5959_v44 = vunpack.i.l.bf16 %v9457_v47  ;;  %v6286_v37 = vpack.i.bf16 %v9593_v54, %v9535_v50  ;;  %v2509_v51 = vrot.slane %v9535_v50, 2 }
 0x3fa   :  { %5228 = vmatprep.mubr.msk.f32.mxu0 %vm1664_vm8, %v9044_v43  ;;  %v2959_v43 = vsel %vm1153_vm5, %v2956_v13, %v11550_v18  ;;  %v2957_v61 = vsel %vm1153_vm5, %v11920_v19, %v2956_v13  ;;  %v11921_v20 = vrot.slane %v9535_v50, 1  ;;  %v5995_v30 = vunpack.i.h.bf16 %v9586_v11 }
 0x3fb   :  { %v9613_v42 = vpop.permute.xlu1 %6007  ;;  %v2225_v35 = vpop.f32.mrf.mxu1  ;;  %v6281_v32 = vpack.i.bf16 %v2959_v43, %v2957_v61  ;;  %v2659_v43 = vrot.slane %v9593_v54, 4 }
 0x3fc   :  { %v2226_v23 = vadd.f32 %v2225_v35, %v8609_v46  ;;  %3646 = vmatmul.mubr.f32.gmra.mxu0 %v3441_v27  ;;  %v2363_v35 = vsel %vm487_vm2, %v11921_v20, %v2362_v22  ;;  %v11922_v20 = vrot.slane %v9514_v55, 2 }
 0x3fd   :  { %6277 = vrot.lane.b32.xlu1 %v6276_v21, %s6661_s2  ;;  %v5786_v7 = vpop.f32.mrf.mxu1  ;;  %6272 = vrot.lane.b32.xlu0 %v6271_v2, %s6660_s23  ;;  %v3259_v2 = vsel %vm1664_vm8, %v8888_v14, %v5959_v44 }
 0x3fe   :  { %v9624_v56 = vmax.f32 %v2226_v23, 0.0  ;;  %5229 = vmatprep.mubr.msk.f32.mxu0 %vm1664_vm8, %v9036_v57  ;;  %v5960_v57 = vunpack.i.h.bf16 %v9457_v47  ;;  %v5994_v23 = vunpack.i.l.bf16 %v9586_v11  ;;  %v5980_v7 = vunpack.i.h.bf16 %v9545_v62 }
 0x3ff   :  { %v9631_v6 = vpop.permute.xlu1 %6017  ;;  %v9633_v5 = vpop.permute.xlu0 %5997  ;;  %v9665_v14 = vsel %vm652_vm1, %v11922_v20, %v2509_v51  ;;  %v11924_v20 = vrot.slane %v9593_v54, 2 }
 0x400   :  { %v9645_v13 = vrot.slane %v9624_v56, 1  ;;  %v11553_v27 = vrot.slane %v9624_v56, 4  ;;  %11923 = vst [vmem:[#allocation12_spill] sm:$0xff] %v9665_v14  ;;  %v11927_v11 = vrot.slane %v9624_v56, 6 }
 0x401   :  { %6287 = vrot.lane.b32.xlu1 %v6286_v37, %s6663_s1  ;;  %6282 = vrot.lane.b32.xlu0 %v6281_v32, %s6664_s13  ;;  %v6296_v37 = vpack.i.bf16 %v2363_v35, %v9559_v9  ;;  %v2960_v9 = vrot.slane %v9593_v54, 6  ;;  %v9678_v55 = vsel %vm652_vm1, %v2509_v51, %v11924_v20 }
 0x402   :  { %v9660_v32 = vsel %vm487_vm2, %v2362_v22, %v9645_v13  ;;  %v2662_v47 = vsel %vm819_vm3, %v2659_v43, %v11553_v27  ;;  %11925 = vst [vmem:[#allocation13_spill] sm:$0xff] %v9678_v55  ;;  %v11926_v27 = vrot.slane %v9535_v50, 4 }
 0x403   :  { %v9655_v19 = vpop.permute.xlu1 %6027  ;;  %v2230_v61 = vpop.f32.mrf.mxu1  ;;  %v6291_v18 = vpack.i.bf16 %v9660_v32, %v2363_v35  ;;  %v3289_v35 = vsel %vm64_vm0, %v3259_v2, %v5994_v23  ;;  %v5979_v23 = vunpack.i.l.bf16 %v9545_v62 }
 0x404   :  { %v2231_v44 = vadd.f32 %v2230_v61, %v8609_v46  ;;  %v6003_v48 = vpop.permute.xlu0 %6002  ;;  %v2660_v60 = vsel %vm819_vm3, %v11926_v27, %v2659_v43  ;;  %v6009_v27 = vunpack.i.l.bf16 %v9613_v42 }
 0x405   :  { %v6004_v22 = vunpack.i.l.bf16 %v6003_v48  ;;  %6297 = vrot.lane.b32.xlu1 %v6296_v37, %s6653_s0  ;;  %v5789_v21 = vpop.f32.mrf.mxu1  ;;  %6292 = vrot.lane.b32.xlu0 %v6291_v18, %s6665_s3  ;;  %v2963_v37 = vsel %vm1153_vm5, %v2960_v9, %v11927_v11  ;;  %v6005_v51 = vunpack.i.h.bf16 %v6003_v48  ;;  %v6306_v2 = vpack.i.bf16 %v2662_v47, %v2660_v60 }
 0x406   :  { %v2809_v21 = vrot.slane %v9593_v54, 5  ;;  %v9690_v58 = vmax.f32 %v2231_v44, 0.0  ;;  %v3260_v18 = vsel %vm1664_vm8, %v8915_v26, %v5960_v57  ;;  %v6301_v11 = vpack.i.bf16 %v9678_v55, %v9665_v14 }
 0x407   :  { %v3319_v20 = vsel %vm1799_vm11, %v3289_v35, %v6004_v22  ;;  %v9693_v61 = vpop.permute.xlu1 %6037  ;;  %v9703_v44 = vsel %vm1664_vm8, %v8969_v40, %v5980_v7  ;;  %v11928_v60 = vrot.slane %v9535_v50, 6  ;;  %v11929_v26 = vrot.slane %v9624_v56, 5 }
 0x408   :  { %v6013_v43 = vpop.permute.xlu0 %6012  ;;  %v3290_v57 = vsel %vm64_vm0, %v3260_v18, %v5995_v30  ;;  %v11930_v35 = vrot.slane %v9535_v50, 5  ;;  %v3349_v7 = vsel %vm1867_vm13, %v3319_v20, %v6009_v27  ;;  %v6010_v30 = vunpack.i.h.bf16 %v9613_v42 }
 0x409   :  { %v6014_v48 = vunpack.i.l.bf16 %v6013_v43  ;;  %6307 = vrot.lane.b32.xlu1 %v6306_v2, %s6660_s23  ;;  %v2961_v47 = vsel %vm1153_vm5, %v11928_v60, %v2960_v9  ;;  %v2812_v62 = vsel %vm986_vm4, %v2809_v21, %v11929_v26  ;;  %6302 = vrot.lane.b32.xlu0 %v6301_v11, %s6656_s28  ;;  %v3320_v2 = vsel %vm1799_vm11, %v3290_v57, %v6005_v51 }
 0x40a   :  { %v6316_v22 = vpack.i.bf16 %v2963_v37, %v2961_v47  ;;  %v2810_v40 = vsel %vm986_vm4, %v11930_v35, %v2809_v21  ;;  %v6015_v55 = vunpack.i.h.bf16 %v6013_v43  ;;  %v3245_v26 = vrot.slane %v9690_v58, 2 }
 0x40b   :  { %v9719_v14 = vpop.permute.xlu1 %6047  ;;  %v2235_v9 = vpop.f32.mrf.mxu1  ;;  %v3380_v60 = vsel %vm3371_vm15, %v3349_v7, %v6014_v48  ;;  %v6019_v37 = vunpack.i.l.bf16 %v9631_v6  ;;  %v6311_v21 = vpack.i.bf16 %v2812_v62, %v2810_v40  ;;  %v3261_v20 = vsel %vm1664_vm8, %v8942_v0, %v5979_v23 }
 0x40c   :  { %v2236_v18 = vadd.f32 %v2235_v9, %v8609_v46  ;;  %v6023_v11 = vpop.permute.xlu0 %6022  ;;  %v6029_v51 = vunpack.i.l.bf16 %v9655_v19  ;;  %v9731_v48 = vrot.slane %v9624_v56, 2  ;;  %v3350_v62 = vsel %vm1867_vm13, %v3320_v2, %v6010_v30 }
 0x40d   :  { %v6024_v27 = vunpack.i.l.bf16 %v6023_v11  ;;  %6317 = vrot.lane.b32.xlu1 %v6316_v22, %s6664_s13  ;;  %v5792_v43 = vpop.f32.mrf.mxu1  ;;  %6312 = vrot.lane.b32.xlu0 %v6311_v21, %s6661_s2  ;;  %v3411_v42 = vsel %vm3402_vm6, %v3380_v60, %v6019_v37  ;;  %v3149_v57 = vrot.slane %v9690_v58, 1  ;;  %v6025_v0 = vunpack.i.h.bf16 %v6023_v11 }
 0x40e   :  { %v9733_v47 = vmax.f32 %v2236_v18, 0.0  ;;  %v3381_v22 = vsel %vm3371_vm15, %v3350_v62, %v6015_v55  ;;  %v9747_v40 = vsel %vm652_vm1, %v9731_v48, %v3245_v26  ;;  %v6020_v7 = vunpack.i.h.bf16 %v9631_v6 }
 0x40f   :  { %v9739_v23 = vpop.permute.xlu1 %6057  ;;  %v3442_v35 = vsel %vm3433_vm7, %v3411_v42, %v6024_v27  ;;  %v5999_v9 = vunpack.i.l.bf16 %v9633_v5  ;;  %v6321_v60 = vpack.i.bf16 %v9690_v58, %v9624_v56  ;;  %v6030_v37 = vunpack.i.h.bf16 %v9655_v19 }
 0x410   :  { %v6033_v2 = vpop.permute.xlu0 %6032  ;;  %3651 = vmatmul.mubr.f32.gmra.mxu0 %v3442_v35  ;;  %v3151_v30 = vrot.slane %v9733_v47, 1  ;;  %v3291_v55 = vsel %vm64_vm0, %v3261_v20, %v6029_v51  ;;  %v2663_v11 = vrot.slane %v9690_v58, 4  ;;  %v3412_v6 = vsel %vm3402_vm6, %v3381_v22, %v6020_v7 }
 0x411   :  { %v6034_v18 = vunpack.i.l.bf16 %v6033_v2  ;;  %5230 = vmatprep.mubr.msk.f32.mxu0 %vm1664_vm8, %v9086_v53  ;;  %6322 = vrot.lane.b32.xlu0 %v6321_v60, %s6663_s1  ;;  %v3150_v21 = vsel %vm487_vm2, %v9645_v13, %v3149_v57  ;;  %v6331_v19 = vpack.i.bf16 %v9645_v13, %v9660_v32  ;;  %v6035_v20 = vunpack.i.h.bf16 %v6033_v2 }
 0x412   :  { %v3152_v27 = vsel %vm487_vm2, %v3149_v57, %v3151_v30  ;;  %v3443_v42 = vsel %vm3433_vm7, %v3412_v6, %v6025_v0  ;;  %v6039_v35 = vunpack.i.l.bf16 %v9693_v61  ;;  %v11931_v57 = vrot.slane %v9593_v54, 2 }
 0x413   :  { %v3321_v51 = vsel %vm1799_vm11, %v3291_v55, %v6034_v18  ;;  %v9769_v53 = vpop.permute.xlu1 %6067  ;;  %v2240_v43 = vpop.f32.mrf.mxu1  ;;  %v6326_v62 = vpack.i.bf16 %v3152_v27, %v3150_v21  ;;  %v2815_v32 = vrot.slane %v9733_v47, 5  ;;  %v3292_v2 = vsel %vm64_vm0, %v9703_v44, %v6030_v37 }
 0x414   :  { %v2241_v22 = vadd.f32 %v2240_v43, %v8609_v46  ;;  %v6043_v7 = vpop.permute.xlu0 %6042  ;;  %3656 = vmatmul.mubr.f32.gmra.mxu0 %v3443_v42  ;;  %v9778_v13 = vsel %vm652_vm1, %v11931_v57, %v9731_v48  ;;  %v11932_v0 = vrot.slane %v9624_v56, 4  ;;  %v2813_v18 = vrot.slane %v9690_v58, 5 }
 0x415   :  { %v6044_v60 = vunpack.i.l.bf16 %v6043_v7  ;;  %5231 = vmatprep.mubr.msk.f32.mxu0 %vm1664_vm8, %v9078_v34  ;;  %6327 = vrot.lane.b32.xlu1 %v6326_v62, %s6665_s3  ;;  %v5795_v46 = vpop.f32.mrf.mxu1  ;;  %v6040_v6 = vunpack.i.h.bf16 %v9693_v61  ;;  %v3351_v44 = vsel %vm1867_vm13, %v3321_v51, %v6039_v35  ;;  %v3247_v37 = vrot.slane %v9733_v47, 2 }
 0x416   :  { %v2664_v55 = vsel %vm819_vm3, %v11932_v0, %v2663_v11  ;;  %v9791_v21 = vmax.f32 %v2241_v22, 0.0  ;;  %6332 = vrot.lane.b32.xlu0 %v6331_v19, %s6653_s0  ;;  %v3322_v34 = vsel %vm1799_vm11, %v3292_v2, %v6035_v20  ;;  %v6045_v27 = vunpack.i.h.bf16 %v6043_v7 }
 0x417   :  { %v9797_v43 = vpop.permute.xlu1 %6077  ;;  %v6336_v42 = vpack.i.bf16 %v9731_v48, %v9778_v13  ;;  %v3382_v62 = vsel %vm3371_vm15, %v3351_v44, %v6044_v60  ;;  %v6049_v61 = vunpack.i.l.bf16 %v9719_v14  ;;  %v6341_v19 = vpack.i.bf16 %v2663_v11, %v2664_v55 }
 0x418   :  { %v3249_v22 = vrot.slane %v9791_v21, 2  ;;  %v6053_v57 = vpop.permute.xlu0 %6052  ;;  %v2816_v51 = vsel %vm986_vm4, %v2813_v18, %v2815_v32  ;;  %v6059_v35 = vunpack.i.l.bf16 %v9739_v23  ;;  %v11933_v20 = vrot.slane %v9624_v56, 5 }
 0x419   :  { %v6054_v46 = vunpack.i.l.bf16 %v6053_v57  ;;  %6337 = vrot.lane.b32.xlu1 %v6336_v42, %s6656_s28  ;;  %v2964_v48 = vrot.slane %v9690_v58, 6  ;;  %v3413_v2 = vsel %vm3402_vm6, %v3382_v62, %v6049_v61  ;;  %v3352_v60 = vsel %vm1867_vm13, %v3322_v34, %v6040_v6 }
 0x41a   :  { %v2814_v7 = vsel %vm986_vm4, %v11933_v20, %v2813_v18  ;;  %6342 = vrot.lane.b32.xlu0 %v6341_v19, %s6660_s23  ;;  %v9817_v11 = vsel %vm652_vm1, %v3245_v26, %v3247_v37  ;;  %v9822_v32 = vsel %vm652_vm1, %v3247_v37, %v3249_v22  ;;  %v6055_v0 = vunpack.i.h.bf16 %v6053_v57 }
 0x41b   :  { %v9824_v55 = vpop.permute.xlu1 %6087  ;;  %v3444_v18 = vsel %vm3433_vm7, %v3413_v2, %v6054_v46  ;;  %v6346_v44 = vpack.i.bf16 %v2816_v51, %v2814_v7  ;;  %v3383_v42 = vsel %vm3371_vm15, %v3352_v60, %v6045_v27  ;;  %v6000_v6 = vunpack.i.h.bf16 %v9633_v5 }
 0x41c   :  { %v6050_v58 = vunpack.i.h.bf16 %v9719_v14  ;;  %v6063_v34 = vpop.permute.xlu0 %6062  ;;  %3661 = vmatmul.mubr.f32.gmra.mxu0 %v3444_v18  ;;  %v3263_v26 = vsel %vm1664_vm8, %v8982_v25, %v5999_v9  ;;  %v3153_v37 = vrot.slane %v9791_v21, 1  ;;  %v11934_v27 = vrot.slane %v9624_v56, 6 }
 0x41d   :  { %v6064_v62 = vunpack.i.l.bf16 %v6063_v34  ;;  %5232 = vmatprep.mubr.msk.f32.mxu0 %vm1664_vm8, %v9169_v29  ;;  %6347 = vrot.lane.b32.xlu1 %v6346_v44, %s6661_s2  ;;  %v6060_v14 = vunpack.i.h.bf16 %v9739_v23  ;;  %v3293_v57 = vsel %vm64_vm0, %v3263_v26, %v6059_v35  ;;  %v6065_v5 = vunpack.i.h.bf16 %v6063_v34 }
 0x41e   :  { %v2965_v61 = vsel %vm1153_vm5, %v11934_v27, %v2964_v48  ;;  %v3414_v25 = vsel %vm3402_vm6, %v3383_v42, %v6050_v58  ;;  %v6069_v51 = vunpack.i.l.bf16 %v9769_v53  ;;  %v2966_v20 = vrot.slane %v9733_v47, 6 }
 0x41f   :  { %3024 = vrot.lane.b32.xlu0 %v2965_v61, %s6664_s13  ;;  %v3323_v9 = vsel %vm1799_vm11, %v3293_v57, %v6064_v62  ;;  %v6098_v19 = vpop.permute.xlu1 %6097  ;;  %v3445_v29 = vsel %vm3433_vm7, %v3414_v25, %v6055_v0  ;;  %v3264_v23 = vsel %vm1664_vm8, %v9001_v49, %v6000_v6  ;;  %v3154_v7 = vsel %vm487_vm2, %v3151_v30, %v3153_v37 }
 0x420   :  { %v6073_v46 = vpop.permute.xlu0 %6072  ;;  %3666 = vmatmul.mubr.f32.gmra.mxu0 %v3445_v29  ;;  %v3294_v2 = vsel %vm64_vm0, %v3264_v23, %v6060_v14  ;;  %v3353_v60 = vsel %vm1867_vm13, %v3323_v9, %v6069_v51  ;;  %v6079_v42 = vunpack.i.l.bf16 %v9797_v43  ;;  %v6089_v58 = vunpack.i.l.bf16 %v9824_v55 }
 0x421   :  { %v6074_v35 = vunpack.i.l.bf16 %v6073_v46  ;;  %5233 = vmatprep.mubr.msk.f32.mxu0 %vm1664_vm8, %v9160_v16  ;;  %3115 = vrot.lane.b32.xlu1 %v9733_v47, %s6663_s1  ;;  %v3324_v0 = vsel %vm1799_vm11, %v3294_v2, %v6065_v5  ;;  %v6075_v49 = vunpack.i.h.bf16 %v6073_v46  ;;  %v6070_v16 = vunpack.i.h.bf16 %v9769_v53 }
 0x422   :  { %v2967_v47 = vsel %vm1153_vm5, %v2964_v48, %v2966_v20  ;;  %v6080_v48 = vunpack.i.h.bf16 %v9797_v43  ;;  %v6090_v14 = vunpack.i.h.bf16 %v9824_v55  ;;  %v3265_v9 = vsel %vm1664_vm8, %v9014_v31, %v6089_v58 }
 0x423   :  { %3211 = vrot.lane.b32.xlu0 %v3154_v7, %s6665_s3  ;;  %v6108_v18 = vpop.permute.xlu1 %6107  ;;  %v3384_v44 = vsel %vm3371_vm15, %v3353_v60, %v6074_v35  ;;  %v3354_v26 = vsel %vm1867_vm13, %v3324_v0, %v6070_v16  ;;  %v6099_v20 = vunpack.i.l.bf16 %v6098_v19  ;;  %v6100_v31 = vunpack.i.h.bf16 %v6098_v19 }
 0x424   :  { %v6083_v6 = vpop.permute.xlu0 %6082  ;;  %v3415_v34 = vsel %vm3402_vm6, %v3384_v44, %v6079_v42  ;;  %v3385_v61 = vsel %vm3371_vm15, %v3354_v26, %v6075_v49  ;;  %v3266_v55 = vsel %vm1664_vm8, %v9062_v38, %v6090_v14  ;;  %v6109_v0 = vunpack.i.l.bf16 %v6108_v18 }
 0x425   :  { %v6084_v30 = vunpack.i.l.bf16 %v6083_v6  ;;  %3026 = vrot.lane.b32.xlu1 %v2967_v47, %s6664_s13  ;;  %v6085_v62 = vunpack.i.h.bf16 %v6083_v6  ;;  %v3416_v29 = vsel %vm3402_vm6, %v3385_v61, %v6080_v48  ;;  %v6110_v6 = vunpack.i.h.bf16 %v6108_v18 }
 0x427   :  { %3117 = vrot.lane.b32.xlu0 %v9791_v21, %s6663_s1  ;;  %v6118_v27 = vpop.permute.xlu1 %6117  ;;  %v3446_v53 = vsel %vm3433_vm7, %v3415_v34, %v6084_v30  ;;  %v3447_v43 = vsel %vm3433_vm7, %v3416_v29, %v6085_v62 }
 0x428   :  { %v6093_v57 = vpop.permute.xlu0 %6092  ;;  %3671 = vmatmul.mubr.f32.gmra.mxu0 %v3446_v53  ;;  %v6119_v47 = vunpack.i.l.bf16 %v6118_v27  ;;  %v6120_v61 = vunpack.i.h.bf16 %v6118_v27 }
 0x429   :  { %v6095_v25 = vunpack.i.h.bf16 %v6093_v57  ;;  %v6094_v5 = vunpack.i.l.bf16 %v6093_v57  ;;  %5234 = vmatprep.mubr.msk.f32.mxu0 %vm1664_vm8, %v9205_v63  ;;  %3213 = vrot.lane.b32.xlu1 %v3153_v37, %s6665_s3 }
 0x42b   :  { %v3295_v51 = vsel %vm64_vm0, %v3265_v9, %v6094_v5  ;;  %v6128_v46 = vpop.permute.xlu1 %6127  ;;  %v3296_v63 = vsel %vm64_vm0, %v3266_v55, %v6095_v25 }
 0x42c   :  { %v6103_v23 = vpop.permute.xlu0 %6102  ;;  %3675 = vmatmul.mubr.f32.gmra.mxu0 %v3447_v43  ;;  %v3325_v7 = vsel %vm1799_vm11, %v3295_v51, %v6099_v20  ;;  %v3326_v49 = vsel %vm1799_vm11, %v3296_v63, %v6100_v31  ;;  %v6129_v14 = vunpack.i.l.bf16 %v6128_v46  ;;  %v6130_v43 = vunpack.i.h.bf16 %v6128_v46 }
 0x42d   :  { %v6105_v35 = vunpack.i.h.bf16 %v6103_v23  ;;  %v6104_v37 = vunpack.i.l.bf16 %v6103_v23  ;;  %5235 = vmatprep.mubr.msk.f32.mxu0 %vm1664_vm8, %v9190_v52 }
 0x42f   :  { %v3355_v2 = vsel %vm1867_vm13, %v3325_v7, %v6104_v37  ;;  %v6138_v60 = vpop.permute.xlu1 %6137  ;;  %v3356_v44 = vsel %vm1867_vm13, %v3326_v49, %v6105_v35 }
 0x430   :  { %v6113_v38 = vpop.permute.xlu0 %6112  ;;  %v3386_v30 = vsel %vm3371_vm15, %v3355_v2, %v6109_v0  ;;  %v3387_v26 = vsel %vm3371_vm15, %v3356_v44, %v6110_v6  ;;  %v6140_v7 = vunpack.i.h.bf16 %v6138_v60 }
 0x431   :  { %v6115_v16 = vunpack.i.h.bf16 %v6113_v38  ;;  %v6114_v42 = vunpack.i.l.bf16 %v6113_v38 }
 0x433   :  { %v6148_v58 = vpop.permute.xlu1 %6147  ;;  %v3417_v52 = vsel %vm3402_vm6, %v3386_v30, %v6114_v42  ;;  %v3418_v53 = vsel %vm3402_vm6, %v3387_v26, %v6115_v16 }
 0x434   :  { %v6123_v19 = vpop.permute.xlu0 %6122  ;;  %v3448_v34 = vsel %vm3433_vm7, %v3417_v52, %v6119_v47  ;;  %v3449_v25 = vsel %vm3433_vm7, %v3418_v53, %v6120_v61  ;;  %v6149_v2 = vunpack.i.l.bf16 %v6148_v58  ;;  %v6150_v6 = vunpack.i.h.bf16 %v6148_v58 }
 0x435   :  { %v6124_v62 = vunpack.i.l.bf16 %v6123_v19  ;;  %3679 = vmatmul.mubr.f32.gmra.mxu0 %v3448_v34  ;;  %v6125_v18 = vunpack.i.h.bf16 %v6123_v19 }
 0x436   :  { %5236 = vmatprep.mubr.msk.f32.mxu0 %vm1664_vm8, %v9350_v8 }
 0x437   :  { %v3267_v48 = vsel %vm1664_vm8, %v9093_v28, %v6124_v62  ;;  %v6158_v5 = vpop.permute.xlu1 %6157  ;;  %v3268_v27 = vsel %vm1664_vm8, %v9104_v17, %v6125_v18  ;;  %v6139_v28 = vunpack.i.l.bf16 %v6138_v60 }
 0x438   :  { %v6133_v57 = vpop.permute.xlu0 %6132  ;;  %v3297_v29 = vsel %vm64_vm0, %v3267_v48, %v6129_v14  ;;  %v3298_v23 = vsel %vm64_vm0, %v3268_v27, %v6130_v43  ;;  %v6159_v49 = vunpack.i.l.bf16 %v6158_v5  ;;  %v6160_v47 = vunpack.i.h.bf16 %v6158_v5 }
 0x439   :  { %v6134_v9 = vunpack.i.l.bf16 %v6133_v57  ;;  %3683 = vmatmul.mubr.f32.gmra.mxu0 %v3449_v25  ;;  %v6135_v8 = vunpack.i.h.bf16 %v6133_v57 }
 0x43a   :  { %5237 = vmatprep.mubr.msk.f32.mxu0 %vm1664_vm8, %v9327_v45  ;;  %v3269_v34 = vsel %vm1664_vm8, %v9135_v36, %v6159_v49  ;;  %v3270_v58 = vsel %vm1664_vm8, %v9151_v3, %v6160_v47 }
 0x43b   :  { %v3327_v51 = vsel %vm1799_vm11, %v3297_v29, %v6134_v9  ;;  %v3328_v35 = vsel %vm1799_vm11, %v3298_v23, %v6135_v8  ;;  %v6168_v37 = vpop.permute.xlu1 %6167 }
 0x43c   :  { %v6143_v55 = vpop.permute.xlu0 %6142  ;;  %v3357_v63 = vsel %vm1867_vm13, %v3327_v51, %v6139_v28  ;;  %v3358_v38 = vsel %vm1867_vm13, %v3328_v35, %v6140_v7  ;;  %v6169_v61 = vunpack.i.l.bf16 %v6168_v37  ;;  %v6170_v36 = vunpack.i.h.bf16 %v6168_v37 }
 0x43d   :  { %v6144_v20 = vunpack.i.l.bf16 %v6143_v55  ;;  %v6145_v31 = vunpack.i.h.bf16 %v6143_v55 }
 0x43f   :  { %v3388_v45 = vsel %vm3371_vm15, %v3357_v63, %v6144_v20  ;;  %v3389_v42 = vsel %vm3371_vm15, %v3358_v38, %v6145_v31  ;;  %v6178_v52 = vpop.permute.xlu1 %6177 }
 0x440   :  { %v6153_v17 = vpop.permute.xlu0 %6152  ;;  %v3419_v46 = vsel %vm3402_vm6, %v3388_v45, %v6149_v2  ;;  %v3420_v26 = vsel %vm3402_vm6, %v3389_v42, %v6150_v6  ;;  %v6179_v9 = vunpack.i.l.bf16 %v6178_v52  ;;  %v6180_v28 = vunpack.i.h.bf16 %v6178_v52 }
 0x441   :  { %v6154_v0 = vunpack.i.l.bf16 %v6153_v17  ;;  %v6155_v44 = vunpack.i.h.bf16 %v6153_v17 }
 0x443   :  { %v3450_v16 = vsel %vm3433_vm7, %v3419_v46, %v6154_v0  ;;  %v3451_v53 = vsel %vm3433_vm7, %v3420_v26, %v6155_v44 }
 0x444   :  { %v6163_v30 = vpop.permute.xlu0 %6162  ;;  %3687 = vmatmul.mubr.f32.gmra.mxu0 %v3450_v16 }
 0x445   :  { %v6165_v19 = vunpack.i.h.bf16 %v6163_v30  ;;  %v6164_v60 = vunpack.i.l.bf16 %v6163_v30  ;;  %5238 = vmatprep.mubr.msk.f32.mxu0 %vm1664_vm8, %v9392_v15 }
 0x447   :  { %v3299_v62 = vsel %vm64_vm0, %v3269_v34, %v6164_v60  ;;  %v3300_v48 = vsel %vm64_vm0, %v3270_v58, %v6165_v19 }
 0x448   :  { %v6173_v18 = vpop.permute.xlu0 %6172  ;;  %3691 = vmatmul.mubr.f32.gmra.mxu0 %v3451_v53  ;;  %v6188_v14 = vpop.permute.xlu1 %6187  ;;  %v3329_v25 = vsel %vm1799_vm11, %v3299_v62, %v6169_v61  ;;  %v3330_v29 = vsel %vm1799_vm11, %v3300_v48, %v6170_v36 }
 0x449   :  { %v6175_v57 = vunpack.i.h.bf16 %v6173_v18  ;;  %v6174_v15 = vunpack.i.l.bf16 %v6173_v18  ;;  %5239 = vmatprep.mubr.msk.f32.mxu0 %vm1664_vm8, %v9401_v24  ;;  %v6189_v55 = vunpack.i.l.bf16 %v6188_v14  ;;  %v6190_v7 = vunpack.i.h.bf16 %v6188_v14 }
 0x44b   :  { %v3359_v5 = vsel %vm1867_vm13, %v3329_v25, %v6174_v15  ;;  %v3360_v27 = vsel %vm1867_vm13, %v3330_v29, %v6175_v57 }
 0x44c   :  { %v6183_v3 = vpop.permute.xlu0 %6182  ;;  %v6198_v8 = vpop.permute.xlu1 %6197  ;;  %v3390_v20 = vsel %vm3371_vm15, %v3359_v5, %v6179_v9  ;;  %v3391_v35 = vsel %vm3371_vm15, %v3360_v27, %v6180_v28 }
 0x44d   :  { %v6185_v51 = vunpack.i.h.bf16 %v6183_v3  ;;  %v6184_v43 = vunpack.i.l.bf16 %v6183_v3  ;;  %v6199_v0 = vunpack.i.l.bf16 %v6198_v8  ;;  %v6200_v47 = vunpack.i.h.bf16 %v6198_v8 }
 0x44f   :  { %v3421_v24 = vsel %vm3402_vm6, %v3390_v20, %v6184_v43  ;;  %v3422_v45 = vsel %vm3402_vm6, %v3391_v35, %v6185_v51 }
 0x450   :  { %v6193_v23 = vpop.permute.xlu0 %6192  ;;  %v3452_v63 = vsel %vm3433_vm7, %v3421_v24, %v6189_v55  ;;  %v6208_v37 = vpop.permute.xlu1 %6207  ;;  %v3453_v46 = vsel %vm3433_vm7, %v3422_v45, %v6190_v7 }
 0x451   :  { %v6194_v31 = vunpack.i.l.bf16 %v6193_v23  ;;  %3695 = vmatmul.mubr.f32.gmra.mxu0 %v3452_v63  ;;  %v6195_v2 = vunpack.i.h.bf16 %v6193_v23  ;;  %v6210_v53 = vunpack.i.h.bf16 %v6208_v37 }
 0x452   :  { %5240 = vmatprep.mubr.msk.f32.mxu0 %vm1664_vm8, %v9512_v1 }
 0x453   :  { %v3271_v17 = vsel %vm1664_vm8, %v9211_v12, %v6194_v31  ;;  %v3272_v42 = vsel %vm1664_vm8, %v9244_v10, %v6195_v2  ;;  %v6209_v12 = vunpack.i.l.bf16 %v6208_v37 }
 0x454   :  { %v6203_v49 = vpop.permute.xlu0 %6202  ;;  %v6218_v38 = vpop.permute.xlu1 %6217  ;;  %v3301_v16 = vsel %vm64_vm0, %v3271_v17, %v6199_v0  ;;  %v3302_v60 = vsel %vm64_vm0, %v3272_v42, %v6200_v47 }
 0x455   :  { %v6204_v44 = vunpack.i.l.bf16 %v6203_v49  ;;  %3700 = vmatmul.mubr.f32.gmra.mxu0 %v3453_v46  ;;  %v6205_v1 = vunpack.i.h.bf16 %v6203_v49  ;;  %v6219_v58 = vunpack.i.l.bf16 %v6218_v38  ;;  %v6220_v5 = vunpack.i.h.bf16 %v6218_v38 }
 0x456   :  { %5241 = vmatprep.mubr.msk.f32.mxu0 %vm1664_vm8, %v9504_v39 }
 0x457   :  { %v3331_v6 = vsel %vm1799_vm11, %v3301_v16, %v6204_v44  ;;  %v3332_v26 = vsel %vm1799_vm11, %v3302_v60, %v6205_v1 }
 0x458   :  { %v6213_v30 = vpop.permute.xlu0 %6212  ;;  %v6228_v52 = vpop.permute.xlu1 %6227  ;;  %v3361_v34 = vsel %vm1867_vm13, %v3331_v6, %v6209_v12  ;;  %v3362_v57 = vsel %vm1867_vm13, %v3332_v26, %v6210_v53 }
 0x459   :  { %v6214_v19 = vunpack.i.l.bf16 %v6213_v30  ;;  %v6215_v62 = vunpack.i.h.bf16 %v6213_v30  ;;  %v6229_v48 = vunpack.i.l.bf16 %v6228_v52  ;;  %v6230_v9 = vunpack.i.h.bf16 %v6228_v52 }
 0x45b   :  { %v3392_v39 = vsel %vm3371_vm15, %v3361_v34, %v6214_v19  ;;  %v3393_v25 = vsel %vm3371_vm15, %v3362_v57, %v6215_v62  ;;  %v3273_v8 = vsel %vm1664_vm8, %v9333_v33, %v6229_v48  ;;  %v3274_v20 = vsel %vm1664_vm8, %v9359_v59, %v6230_v9  ;;  %v11935_v19 = vld [vmem:[#allocation12_spill] sm:$0xff]  ;;  %v11936_v34 = vld [vmem:[#allocation3_spill] sm:$0xff]  ;;  %v11937_v48 = vld [vmem:[#allocation13_spill] sm:$0xff] }
 0x45c   :  { %v6223_v10 = vpop.permute.xlu0 %6222  ;;  %v6238_v61 = vpop.permute.xlu1 %6237  ;;  %v3423_v14 = vsel %vm3402_vm6, %v3392_v39, %v6219_v58  ;;  %v3424_v51 = vsel %vm3402_vm6, %v3393_v25, %v6220_v5 }
 0x45d   :  { %v6224_v18 = vunpack.i.l.bf16 %v6223_v10  ;;  %v6225_v15 = vunpack.i.h.bf16 %v6223_v10  ;;  %v6239_v24 = vunpack.i.l.bf16 %v6238_v61  ;;  %v6240_v33 = vunpack.i.h.bf16 %v6238_v61 }
 0x45f   :  { %v3454_v36 = vsel %vm3433_vm7, %v3423_v14, %v6224_v18  ;;  %v3455_v55 = vsel %vm3433_vm7, %v3424_v51, %v6225_v15  ;;  %v11938_v14 = vld [vmem:[#allocation17_spill] sm:$0xff] }
 0x460   :  { %v6233_v29 = vpop.permute.xlu0 %6232  ;;  %3705 = vmatmul.mubr.f32.gmra.mxu0 %v3454_v36  ;;  %v6248_v43 = vpop.permute.xlu1 %6247  ;;  %v4612_v51 = vld [vmem:[%s11469_s4 + $0xf8] sm:$0xff] }
 0x461   :  { %v6235_v3 = vunpack.i.h.bf16 %v6233_v29  ;;  %v6234_v27 = vunpack.i.l.bf16 %v6233_v29  ;;  %5242 = vmatprep.mubr.msk.f32.mxu0 %vm1664_vm8, %v9579_v4  ;;  %v6249_v7 = vunpack.i.l.bf16 %v6248_v43  ;;  %v6250_v38 = vunpack.i.h.bf16 %v6248_v43  ;;  %5405 = vmatprep.subr.mxu1 %v4612_v51 }
 0x463   :  { %v3303_v28 = vsel %vm64_vm0, %v3273_v8, %v6234_v27  ;;  %v3304_v63 = vsel %vm64_vm0, %v3274_v20, %v6235_v3 }
 0x464   :  { %v6243_v23 = vpop.permute.xlu0 %6242  ;;  %3710 = vmatmul.mubr.f32.gmra.mxu0 %v3455_v55  ;;  %v3333_v37 = vsel %vm1799_vm11, %v3303_v28, %v6239_v24  ;;  %v3334_v2 = vsel %vm1799_vm11, %v3304_v63, %v6240_v33  ;;  %v4596_v24 = vld [vmem:[%s11469_s4 + $0x78] sm:$0xff]  ;;  %v4610_v33 = vld [vmem:[%s11469_s4 + $0xe8] sm:$0xff] }
 0x465   :  { %v6245_v35 = vunpack.i.h.bf16 %v6243_v23  ;;  %v6244_v4 = vunpack.i.l.bf16 %v6243_v23  ;;  %5243 = vmatprep.mubr.msk.f32.mxu0 %vm1664_vm8, %v9568_v41  ;;  %v4611_v23 = vld [vmem:[%s11469_s4 + $0xf0] sm:$0xff]  ;;  %5406 = vmatpush3.msra.mxu1 %v4596_v24 }
 0x466   :  { %5407 = vmatprep.subr.mxu1 %v4611_v23 }
 0x467   :  { %v3363_v31 = vsel %vm1867_vm13, %v3333_v37, %v6244_v4  ;;  %v6258_v45 = vpop.permute.xlu1 %6257  ;;  %v3364_v0 = vsel %vm1867_vm13, %v3334_v2, %v6245_v35  ;;  %v4595_v4 = vld [vmem:[%s11469_s4 + $0x70] sm:$0xff] }
 0x468   :  { %v6259_v59 = vunpack.i.l.bf16 %v6258_v45  ;;  %v6253_v17 = vpop.permute.xlu0 %6252  ;;  %v3394_v44 = vsel %vm3371_vm15, %v3363_v31, %v6249_v7  ;;  %v6260_v42 = vunpack.i.h.bf16 %v6258_v45  ;;  %v3395_v47 = vsel %vm3371_vm15, %v3364_v0, %v6250_v38  ;;  %5408 = vmatpush3.msra.mxu1 %v4595_v4  ;;  %v4594_v0 = vld [vmem:[%s11469_s4 + $0x68] sm:$0xff] }
 0x469   :  { %v6255_v49 = vunpack.i.h.bf16 %v6253_v17  ;;  %v6254_v46 = vunpack.i.l.bf16 %v6253_v17  ;;  %5409 = vmatprep.subr.mxu1 %v4610_v33 }
 0x46a   :  { %5410 = vmatpush3.msra.mxu1 %v4594_v0  ;;  %v4602_v0 = vld [vmem:[%s11469_s4 + $0xa8] sm:$0xff] }
 0x46b   :  { %v6268_v16 = vpop.permute.xlu1 %6267  ;;  %v3425_v41 = vsel %vm3402_vm6, %v3394_v44, %v6254_v46  ;;  %v3426_v30 = vsel %vm3402_vm6, %v3395_v47, %v6255_v49  ;;  %v4609_v49 = vld [vmem:[%s11469_s4 + $0xe0] sm:$0xff] }
 0x46c   :  { %v6263_v1 = vpop.permute.xlu0 %6262  ;;  %v3456_v6 = vsel %vm3433_vm7, %v3425_v41, %v6259_v59  ;;  %v6269_v52 = vunpack.i.l.bf16 %v6268_v16  ;;  %v3457_v53 = vsel %vm3433_vm7, %v3426_v30, %v6260_v42  ;;  %v6270_v10 = vunpack.i.h.bf16 %v6268_v16  ;;  %v4593_v46 = vld [vmem:[%s11469_s4 + $0x60] sm:$0xff]  ;;  %v4608_v16 = vld [vmem:[%s11469_s4 + $0xd8] sm:$0xff]  ;;  %5411 = vmatprep.subr.mxu1 %v4609_v49  ;;  %v4586_v49 = vld [vmem:[%s11469_s4 + $0x28] sm:$0xff] }
 0x46d   :  { %v6264_v12 = vunpack.i.l.bf16 %v6263_v1  ;;  %3715 = vmatmul.mubr.f32.gmra.mxu0 %v3456_v6  ;;  %v6265_v60 = vunpack.i.h.bf16 %v6263_v1  ;;  %v4592_v42 = vld [vmem:[%s11469_s4 + $0x58] sm:$0xff]  ;;  %5412 = vmatpush3.msra.mxu1 %v4593_v46  ;;  %v4607_v6 = vld [vmem:[%s11469_s4 + $0xd0] sm:$0xff]  ;;  %v4601_v46 = vld [vmem:[%s11469_s4 + $0xa0] sm:$0xff] }
 0x46e   :  { %5244 = vmatprep.mubr.msk.f32.mxu0 %vm1664_vm8, %v11935_v19  ;;  %5413 = vmatprep.subr.mxu1 %v4608_v16  ;;  %v11939_v30 = vld [vmem:[#allocation5_spill] sm:$0xff] }
 0x46f   :  { %v3275_v26 = vsel %vm1664_vm8, %v11936_v34, %v6264_v12  ;;  %v6278_v62 = vpop.permute.xlu1 %6277  ;;  %v3276_v57 = vsel %vm1664_vm8, %v11938_v14, %v6265_v60  ;;  %v4591_v12 = vld [vmem:[%s11469_s4 + $0x50] sm:$0xff]  ;;  %5414 = vmatpush3.msra.mxu1 %v4592_v42  ;;  %v4606_v34 = vld [vmem:[%s11469_s4 + $0xc8] sm:$0xff] }
 0x470   :  { %v6273_v39 = vpop.permute.xlu0 %6272  ;;  %v6279_v61 = vunpack.i.l.bf16 %v6278_v62  ;;  %v3305_v18 = vsel %vm64_vm0, %v3275_v26, %v6269_v52  ;;  %v6280_v29 = vunpack.i.h.bf16 %v6278_v62  ;;  %v3306_v3 = vsel %vm64_vm0, %v3276_v57, %v6270_v10  ;;  %5415 = vmatprep.subr.mxu1 %v4607_v6 }
 0x471   :  { %v6274_v58 = vunpack.i.l.bf16 %v6273_v39  ;;  %3720 = vmatmul.mubr.f32.gmra.mxu0 %v3457_v53  ;;  %v6275_v15 = vunpack.i.h.bf16 %v6273_v39  ;;  %5416 = vmatpush3.msra.mxu1 %v4591_v12 }
 0x472   :  { %5245 = vmatprep.mubr.msk.f32.mxu0 %vm1664_vm8, %v11937_v48  ;;  %5417 = vmatprep.subr.mxu1 %v4606_v34 }
 0x473   :  { %v3335_v36 = vsel %vm1799_vm11, %v3305_v18, %v6274_v58  ;;  %v6288_v25 = vpop.permute.xlu1 %6287  ;;  %v3336_v43 = vsel %vm1799_vm11, %v3306_v3, %v6275_v15  ;;  %v4590_v58 = vld [vmem:[%s11469_s4 + $0x48] sm:$0xff]  ;;  %v4589_v15 = vld [vmem:[%s11469_s4 + $0x40] sm:$0xff] }
 0x474   :  { %v6283_v5 = vpop.permute.xlu0 %6282  ;;  %v6289_v27 = vunpack.i.l.bf16 %v6288_v25  ;;  %v3365_v8 = vsel %vm1867_vm13, %v3335_v36, %v6279_v61  ;;  %v6290_v37 = vunpack.i.h.bf16 %v6288_v25  ;;  %v3366_v45 = vsel %vm1867_vm13, %v3336_v43, %v6280_v29  ;;  %5418 = vmatpush3.msra.mxu1 %v4590_v58  ;;  %v11940_v29 = vld [vmem:[#allocation6_spill] sm:$0xff] }
 0x475   :  { %v6284_v9 = vunpack.i.l.bf16 %v6283_v5  ;;  %v6285_v28 = vunpack.i.h.bf16 %v6283_v5  ;;  %v3484_v3 = vsub.s32 1, %v11940_v29 }
 0x477   :  { %v6298_v55 = vpop.permute.xlu1 %6297  ;;  %v3396_v20 = vsel %vm3371_vm15, %v3365_v8, %v6284_v9  ;;  %v3397_v17 = vsel %vm3371_vm15, %v3366_v45, %v6285_v28  ;;  %v4588_v8 = vld [vmem:[%s11469_s4 + $0x38] sm:$0xff] }
 0x478   :  { %v6293_v63 = vpop.permute.xlu0 %6292  ;;  %v3427_v31 = vsel %vm3402_vm6, %v3396_v20, %v6289_v27  ;;  %v6299_v38 = vunpack.i.l.bf16 %v6298_v55  ;;  %v3428_v1 = vsel %vm3402_vm6, %v3397_v17, %v6290_v37  ;;  %v4604_v27 = vld [vmem:[%s11469_s4 + $0xb8] sm:$0xff] }
 0x479   :  { %v6294_v35 = vunpack.i.l.bf16 %v6293_v63  ;;  %v6295_v7 = vunpack.i.h.bf16 %v6293_v63  ;;  %v4603_v63 = vld [vmem:[%s11469_s4 + $0xb0] sm:$0xff] }
 0x47a   :  { %v3277_v52 = vsel %vm1664_vm8, %v11939_v30, %v6299_v38 }
 0x47b   :  { %v10010_v2 = vpop.permute.xlu1 %6307  ;;  %v3458_v59 = vsel %vm3433_vm7, %v3427_v31, %v6294_v35  ;;  %v3459_v47 = vsel %vm3433_vm7, %v3428_v1, %v6295_v7  ;;  %v4587_v35 = vld [vmem:[%s11469_s4 + $0x30] sm:$0xff]  ;;  %v6651_v7 = vld [vmem:[%s11468_s5] sm:$0x7] }
 0x47c   :  { %v6303_v44 = vpop.permute.xlu0 %6302  ;;  %3725 = vmatmul.mubr.f32.gmra.mxu0 %v3458_v59  ;;  %v6309_v19 = vunpack.i.l.bf16 %v10010_v2  ;;  %v6310_v18 = vunpack.i.h.bf16 %v10010_v2  ;;  %v10083_v2 = vrot.slane %v6651_v7, %v3484_v3  ;;  %v4583_v3 = vld [vmem:[%s11469_s4 + $0x10] sm:$0xff] }
 0x47d   :  { %v6304_v41 = vunpack.i.l.bf16 %v6303_v44  ;;  %5246 = vmatprep.mubr.msk.f32.mxu0 %vm1664_vm8, %v9778_v13  ;;  %v6300_v13 = vunpack.i.h.bf16 %v6298_v55  ;;  %v6305_v26 = vunpack.i.h.bf16 %v6303_v44  ;;  %v4585_v44 = vld [vmem:[%s11469_s4 + $0x20] sm:$0xff] }
 0x47f   :  { %v3307_v62 = vsel %vm64_vm0, %v3277_v52, %v6304_v41  ;;  %v6318_v39 = vpop.permute.xlu1 %6317  ;;  %v3278_v61 = vsel %vm1664_vm8, %v9535_v50, %v6300_v13 }
 0x480   :  { %v6313_v60 = vpop.permute.xlu0 %6312  ;;  %3730 = vmatmul.mubr.f32.gmra.mxu0 %v3459_v47  ;;  %v6319_v48 = vunpack.i.l.bf16 %v6318_v39  ;;  %v3337_v14 = vsel %vm1799_vm11, %v3307_v62, %v6309_v19  ;;  %v3308_v36 = vsel %vm64_vm0, %v3278_v61, %v6305_v26  ;;  %v6320_v28 = vunpack.i.h.bf16 %v6318_v39  ;;  %v4584_v62 = vld [vmem:[%s11469_s4 + $0x18] sm:$0xff]  ;;  %v4599_v39 = vld [vmem:[%s11469_s4 + $0x90] sm:$0xff] }
 0x481   :  { %v6314_v53 = vunpack.i.l.bf16 %v6313_v60  ;;  %5247 = vmatprep.mubr.msk.f32.mxu0 %vm1664_vm8, %v9747_v40  ;;  %v4605_v40 = vld [vmem:[%s11469_s4 + $0xc0] sm:$0xff]  ;;  %v6315_v25 = vunpack.i.h.bf16 %v6313_v60  ;;  %v3338_v55 = vsel %vm1799_vm11, %v3308_v36, %v6310_v18 }
 0x482   :  { %5419 = vmatprep.subr.mxu1 %v4605_v40 }
 0x483   :  { %v3612_v10 = vpop.f32.mrf.mxu0  ;;  %v3367_v50 = vsel %vm1867_vm13, %v3337_v14, %v6314_v53  ;;  %5420 = vmatpush3.msra.mxu1 %v4589_v15  ;;  %v3368_v4 = vsel %vm1867_vm13, %v3338_v55, %v6315_v25 }
 0x484   :  { %v6323_v57 = vpop.permute.xlu0 %6322  ;;  %5421 = vmatprep.subr.mxu1 %v4604_v27  ;;  %v3398_v23 = vsel %vm3371_vm15, %v3367_v50, %v6319_v48  ;;  %v3399_v42 = vsel %vm3371_vm15, %v3368_v4, %v6320_v28  ;;  %v10108_v13 = vadd.f32 %v3612_v10, %v10083_v2  ;;  %v4598_v27 = vld [vmem:[%s11469_s4 + $0x88] sm:$0xff] }
 0x485   :  { %v6324_v5 = vunpack.i.l.bf16 %v6323_v57  ;;  %v3614_v9 = vpop.f32.mrf.mxu0  ;;  %5422 = vmatpush3.msra.mxu1 %v4588_v8  ;;  %v6325_v33 = vunpack.i.h.bf16 %v6323_v57  ;;  %v4582_v8 = vld [vmem:[%s11469_s4 + $0x8] sm:$0xff] }
 0x486   :  { %5423 = vmatprep.subr.mxu1 %v4603_v63  ;;  %v3770_v25 = vrot.slane %v10108_v13, 1  ;;  %v3911_v21 = vrot.slane %v10108_v13, 3 }
 0x487   :  { %v3617_v51 = vpop.f32.mrf.mxu0  ;;  %v6328_v43 = vpop.permute.xlu1 %6327  ;;  %v3429_v45 = vsel %vm3402_vm6, %v3398_v23, %v6324_v5  ;;  %5424 = vmatpush3.msra.mxu1 %v4587_v35  ;;  %v3430_v12 = vsel %vm3402_vm6, %v3399_v42, %v6325_v33  ;;  %v4581_v33 = vld [vmem:[%s11469_s4] sm:$0xff] }
 0x488   :  { %v6329_v20 = vunpack.i.l.bf16 %v6328_v43  ;;  %v6333_v24 = vpop.permute.xlu0 %6332  ;;  %v6330_v59 = vunpack.i.h.bf16 %v6328_v43  ;;  %5425 = vmatprep.subr.mxu1 %v4602_v0  ;;  %v10102_v1 = vadd.f32 %v3617_v51, %v10083_v2 }
 0x489   :  { %v6334_v37 = vunpack.i.l.bf16 %v6333_v24  ;;  %v3619_v31 = vpop.f32.mrf.mxu0  ;;  %5426 = vmatpush3.msra.mxu1 %v4586_v49  ;;  %v6335_v30 = vunpack.i.h.bf16 %v6333_v24  ;;  %v4597_v24 = vld [vmem:[%s11469_s4 + $0x80] sm:$0xff] }
 0x48a   :  { %v3460_v17 = vsel %vm3433_vm7, %v3429_v45, %v6329_v20  ;;  %5427 = vmatprep.subr.mxu1 %v4601_v46  ;;  %v3841_v58 = vrot.slane %v10102_v1, 2  ;;  %v3771_v36 = vrot.slane %v10102_v1, 1  ;;  %v4100_v9 = vrot.slane %v10102_v1, 6 }
 0x48b   :  { %v6338_v38 = vpop.permute.xlu1 %6337  ;;  %3735 = vmatmul.mubr.f32.gmra.mxu0 %v3460_v17  ;;  %v3279_v6 = vsel %vm1664_vm8, %v9593_v54, %v6334_v37  ;;  %5428 = vmatpush3.msra.mxu1 %v4585_v44  ;;  %v4600_v54 = vld [vmem:[%s11469_s4 + $0x98] sm:$0xff]  ;;  %v3280_v10 = vsel %vm1664_vm8, %v9624_v56, %v6335_v30  ;;  %v4028_v55 = vrot.slane %v10102_v1, 5  ;;  %v3912_v20 = vrot.slane %v10102_v1, 3 }
 0x48c   :  { %v6339_v16 = vunpack.i.l.bf16 %v6338_v38  ;;  %v6343_v41 = vpop.permute.xlu0 %6342  ;;  %5248 = vmatprep.mubr.msk.f32.mxu0 %vm1664_vm8, %v9817_v11  ;;  %v3461_v11 = vsel %vm3433_vm7, %v3430_v12, %v6330_v59  ;;  %v6340_v19 = vunpack.i.h.bf16 %v6338_v38  ;;  %5429 = vmatprep.subr.mxu1 %v4600_v54  ;;  %v3772_v7 = vsel %vm487_vm2, %v3770_v25, %v3771_v36 }
 0x48d   :  { %v6344_v47 = vunpack.i.l.bf16 %v6343_v41  ;;  %v6345_v61 = vunpack.i.h.bf16 %v6343_v41  ;;  %5430 = vmatpush3.msra.mxu1 %v4584_v62  ;;  %v4173_v17 = vrot.slane %v10102_v1, 7 }
 0x48e   :  { %v3309_v52 = vsel %vm64_vm0, %v3279_v6, %v6339_v16  ;;  %v3310_v48 = vsel %vm64_vm0, %v3280_v10, %v6340_v19  ;;  %5431 = vmatprep.subr.mxu1 %v4599_v39 }
 0x48f   :  { %v6348_v60 = vpop.permute.xlu1 %6347  ;;  %3740 = vmatmul.mubr.f32.gmra.mxu0 %v3461_v11  ;;  %v3339_v53 = vsel %vm1799_vm11, %v3309_v52, %v6344_v47  ;;  %5432 = vmatpush3.msra.mxu1 %v4583_v3  ;;  %v3340_v23 = vsel %vm1799_vm11, %v3310_v48, %v6345_v61  ;;  %v3913_v52 = vsel %vm3910_vm9, %v3911_v21, %v3912_v20 }
 0x490   :  { %v6349_v34 = vunpack.i.l.bf16 %v6348_v60  ;;  %5249 = vmatprep.mubr.msk.f32.mxu0 %vm1664_vm8, %v9822_v32  ;;  %v3840_v32 = vrot.slane %v10108_v13, 2  ;;  %v6350_v14 = vunpack.i.h.bf16 %v6348_v60  ;;  %5433 = vmatprep.subr.mxu1 %v4598_v27 }
 0x491   :  { %v3025_v26 = vpop.permute.xlu0 %3024  ;;  %5434 = vmatpush3.msra.mxu1 %v4582_v8 }
 0x492   :  { %v3369_v18 = vsel %vm1867_vm13, %v3339_v53, %v6349_v34  ;;  %v3842_v28 = vsel %vm652_vm1, %v3840_v32, %v3841_v58  ;;  %v3370_v45 = vsel %vm1867_vm13, %v3340_v23, %v6350_v14  ;;  %5435 = vmatprep.subr.mxu1 %v4597_v24 }
 0x493   :  { %v3400_v57 = vsel %vm3371_vm15, %v3369_v18, %v3025_v26  ;;  %v3622_v40 = vpop.f32.mrf.mxu0  ;;  %v3116_v15 = vpop.permute.xlu1 %3115  ;;  %5436 = vmatpush3.msra.mxu1 %v4581_v33 }
 0x494   :  { %v10134_v50 = vadd.f32 %v3622_v40, %v10083_v2  ;;  %v3431_v56 = vsel %vm3402_vm6, %v3400_v57, %v3116_v15 }
 0x495   :  { %v3212_v5 = vpop.permute.xlu0 %3211  ;;  %v3624_v51 = vpop.f32.mrf.mxu0 }
 0x496   :  { %v3462_v43 = vsel %vm3433_vm7, %v3431_v56, %v3212_v5  ;;  %v4101_v63 = vrot.slane %v10134_v50, 6  ;;  %v4029_v35 = vrot.slane %v10134_v50, 5  ;;  %v4174_v4 = vrot.slane %v10134_v50, 7 }
 0x497   :  { %3745 = vmatmul.mubr.f32.gmra.mxu0 %v3462_v43  ;;  %v3627_v37 = vpop.f32.mrf.mxu0  ;;  %v3027_v31 = vpop.permute.xlu1 %3026  ;;  %v3773_v59 = vrot.slane %v10134_v50, 1  ;;  %v3914_v11 = vrot.slane %v10134_v50, 3  ;;  %v3843_v54 = vrot.slane %v10134_v50, 2 }
 0x498   :  { %5250 = vmatprep.mubr.msk.f32.mxu0 %vm1664_vm8, %v3249_v22  ;;  %v10171_v0 = vadd.f32 %v3627_v37, %v10083_v2  ;;  %v3401_v49 = vsel %vm3371_vm15, %v3370_v45, %v3027_v31  ;;  %v4102_v38 = vsel %vm1153_vm5, %v4100_v9, %v4101_v63  ;;  %v4030_v44 = vsel %vm986_vm4, %v4028_v55, %v4029_v35 }
 0x499   :  { %v3118_v46 = vpop.permute.xlu0 %3117  ;;  %v3629_v22 = vpop.f32.mrf.mxu0  ;;  %v6356_v16 = vpack.i.bf16 %v3842_v28, %v4102_v38  ;;  %v6351_v41 = vpack.i.bf16 %v3772_v7, %v4030_v44  ;;  %v4175_v6 = vsel %vm4172_vm10, %v4173_v17, %v4174_v4  ;;  %v3774_v34 = vsel %vm487_vm2, %v3771_v36, %v3773_v59 }
 0x49a   :  { %v4031_v42 = vrot.slane %v10171_v0, 5  ;;  %v4176_v47 = vrot.slane %v10171_v0, 7  ;;  %v3432_v12 = vsel %vm3402_vm6, %v3401_v49, %v3118_v46  ;;  %v4103_v19 = vrot.slane %v10171_v0, 6 }
 0x49b   :  { %6357 = vrot.lane.b32.xlu1 %v6356_v16, %s6661_s2  ;;  %6352 = vrot.lane.b32.xlu0 %v6351_v41, %s6656_s28  ;;  %v3214_v30 = vpop.permute.xlu1 %3213  ;;  %v6361_v39 = vpack.i.bf16 %v3913_v52, %v4175_v6  ;;  %v3845_v61 = vrot.slane %v10171_v0, 2  ;;  %v3775_v18 = vrot.slane %v10171_v0, 1  ;;  %v3915_v14 = vsel %vm3910_vm9, %v3912_v20, %v3914_v11  ;;  %v4644_v16 = vld [vmem:[%s11469_s4 + $0x1f8] sm:$0xff] }
 0x49c   :  { %v3463_v60 = vsel %vm3433_vm7, %v3432_v12, %v3214_v30  ;;  %v4032_v26 = vsel %vm986_vm4, %v4029_v35, %v4031_v42  ;;  %v4177_v53 = vsel %vm4172_vm10, %v4174_v4, %v4176_v47  ;;  %v4104_v32 = vsel %vm1153_vm5, %v4101_v63, %v4103_v19  ;;  %5458 = vmatprep.subr.mxu1 %v4644_v16 }
 0x49d   :  { %3750 = vmatmul.mubr.f32.gmra.mxu0 %v3463_v60  ;;  %v6366_v62 = vpack.i.bf16 %v3774_v34, %v4032_v26  ;;  %v3844_v57 = vsel %vm652_vm1, %v3841_v58, %v3843_v54  ;;  %v6376_v15 = vpack.i.bf16 %v3915_v14, %v4177_v53  ;;  %v3846_v3 = vsel %vm652_vm1, %v3843_v54, %v3845_v61 }
 0x49e   :  { %v6371_v36 = vpack.i.bf16 %v3844_v57, %v4104_v32  ;;  %v3776_v27 = vsel %vm487_vm2, %v3773_v59, %v3775_v18  ;;  %v3916_v58 = vrot.slane %v10171_v0, 3 }
 0x49f   :  { %v3632_v10 = vpop.f32.mrf.mxu0  ;;  %6367 = vrot.lane.b32.xlu1 %v6366_v62, %s6656_s28  ;;  %6362 = vrot.lane.b32.xlu0 %v6361_v39, %s6663_s1 }
 0x4a0   :  { %v10197_v48 = vadd.f32 %v3632_v10, %v10083_v2  ;;  %v3917_v4 = vsel %vm3910_vm9, %v3914_v11, %v3916_v58 }
 0x4a1   :  { %v3634_v40 = vpop.f32.mrf.mxu0 }
 0x4a2   :  { %v4105_v25 = vrot.slane %v10197_v48, 6  ;;  %v4033_v56 = vrot.slane %v10197_v48, 5  ;;  %v4178_v5 = vrot.slane %v10197_v48, 7  ;;  %v3777_v28 = vrot.slane %v10197_v48, 1 }
 0x4a3   :  { %v3637_v9 = vpop.f32.mrf.mxu0  ;;  %6377 = vrot.lane.b32.xlu1 %v6376_v15, %s6663_s1  ;;  %6372 = vrot.lane.b32.xlu0 %v6371_v36, %s6661_s2  ;;  %v3918_v45 = vrot.slane %v10197_v48, 3  ;;  %v3847_v7 = vrot.slane %v10197_v48, 2 }
 0x4a4   :  { %v10212_v8 = vadd.f32 %v3637_v9, %v10083_v2  ;;  %v4106_v51 = vsel %vm1153_vm5, %v4103_v19, %v4105_v25  ;;  %v4034_v43 = vsel %vm986_vm4, %v4031_v42, %v4033_v56  ;;  %v4179_v63 = vsel %vm4172_vm10, %v4176_v47, %v4178_v5 }
 0x4a5   :  { %v3639_v55 = vpop.f32.mrf.mxu0  ;;  %v6386_v20 = vpack.i.bf16 %v3846_v3, %v4106_v51  ;;  %v6381_v24 = vpack.i.bf16 %v3776_v27, %v4034_v43  ;;  %v3778_v37 = vsel %vm487_vm2, %v3775_v18, %v3777_v28  ;;  %v6391_v17 = vpack.i.bf16 %v3917_v4, %v4179_v63 }
 0x4a6   :  { %v4035_v23 = vrot.slane %v10212_v8, 5  ;;  %v4180_v35 = vrot.slane %v10212_v8, 7  ;;  %v4107_v33 = vrot.slane %v10212_v8, 6  ;;  %v3919_v38 = vsel %vm3910_vm9, %v3916_v58, %v3918_v45 }
 0x4a7   :  { %6387 = vrot.lane.b32.xlu1 %v6386_v20, %s6661_s2  ;;  %6382 = vrot.lane.b32.xlu0 %v6381_v24, %s6656_s28  ;;  %v3848_v44 = vsel %vm652_vm1, %v3845_v61, %v3847_v7  ;;  %v3849_v42 = vrot.slane %v10212_v8, 2  ;;  %v3779_v6 = vrot.slane %v10212_v8, 1  ;;  %v3920_v26 = vrot.slane %v10212_v8, 3 }
 0x4a8   :  { %v4036_v31 = vsel %vm986_vm4, %v4033_v56, %v4035_v23  ;;  %v4181_v49 = vsel %vm4172_vm10, %v4178_v5, %v4180_v35  ;;  %v4108_v46 = vsel %vm1153_vm5, %v4105_v25, %v4107_v33 }
 0x4a9   :  { %v6396_v59 = vpack.i.bf16 %v3778_v37, %v4036_v31  ;;  %v6406_v21 = vpack.i.bf16 %v3919_v38, %v4181_v49  ;;  %v6401_v22 = vpack.i.bf16 %v3848_v44, %v4108_v46  ;;  %v3850_v60 = vsel %vm652_vm1, %v3847_v7, %v3849_v42 }
 0x4aa   :  { %v3780_v34 = vsel %vm487_vm2, %v3777_v28, %v3779_v6  ;;  %v3921_v40 = vsel %vm3910_vm9, %v3918_v45, %v3920_v26 }
 0x4ab   :  { %6397 = vrot.lane.b32.xlu1 %v6396_v59, %s6656_s28  ;;  %6392 = vrot.lane.b32.xlu0 %v6391_v17, %s6663_s1 }
 0x4af   :  { %6407 = vrot.lane.b32.xlu1 %v6406_v21, %s6663_s1  ;;  %6402 = vrot.lane.b32.xlu0 %v6401_v22, %s6661_s2 }
 0x4b8   :  { %v3642_v41 = vpop.f32.mrf.mxu0 }
 0x4b9   :  { %v10242_v47 = vadd.f32 %v3642_v41, %v10083_v2 }
 0x4ba   :  { %v3644_v12 = vpop.f32.mrf.mxu0 }
 0x4bb   :  { %v4109_v30 = vrot.slane %v10242_v47, 6  ;;  %v4037_v52 = vrot.slane %v10242_v47, 5  ;;  %v4182_v11 = vrot.slane %v10242_v47, 7  ;;  %v3781_v53 = vrot.slane %v10242_v47, 1 }
 0x4bc   :  { %v3647_v19 = vpop.f32.mrf.mxu0  ;;  %v3922_v56 = vrot.slane %v10242_v47, 3  ;;  %v3851_v5 = vrot.slane %v10242_v47, 2 }
 0x4bd   :  { %v10251_v54 = vadd.f32 %v3647_v19, %v10083_v2  ;;  %v4110_v62 = vsel %vm1153_vm5, %v4107_v33, %v4109_v30  ;;  %v4038_v39 = vsel %vm986_vm4, %v4035_v23, %v4037_v52  ;;  %v4183_v14 = vsel %vm4172_vm10, %v4180_v35, %v4182_v11 }
 0x4be   :  { %v3649_v32 = vpop.f32.mrf.mxu0  ;;  %v6416_v10 = vpack.i.bf16 %v3850_v60, %v4110_v62  ;;  %v6411_v61 = vpack.i.bf16 %v3780_v34, %v4038_v39  ;;  %v3782_v36 = vsel %vm487_vm2, %v3779_v6, %v3781_v53  ;;  %v6421_v3 = vpack.i.bf16 %v3921_v40, %v4183_v14  ;;  %v5266_v62 = vld [vmem:[%s11469_s4 + $0x278] sm:$0xff] }
 0x4bf   :  { %v4039_v18 = vrot.slane %v10251_v54, 5  ;;  %v4184_v57 = vrot.slane %v10251_v54, 7  ;;  %v4111_v15 = vrot.slane %v10251_v54, 6  ;;  %v3923_v51 = vsel %vm3910_vm9, %v3920_v26, %v3922_v56  ;;  %v5282_v26 = vld [vmem:[%s11469_s4 + $0x2f8] sm:$0xff] }
 0x4c0   :  { %6417 = vrot.lane.b32.xlu1 %v6416_v10, %s6661_s2  ;;  %6412 = vrot.lane.b32.xlu0 %v6411_v61, %s6656_s28  ;;  %v3852_v43 = vsel %vm652_vm1, %v3849_v42, %v3851_v5  ;;  %v3853_v24 = vrot.slane %v10251_v54, 2  ;;  %v3783_v23 = vrot.slane %v10251_v54, 1  ;;  %v3924_v59 = vrot.slane %v10251_v54, 3 }
 0x4c1   :  { %v4040_v25 = vsel %vm986_vm4, %v4037_v52, %v4039_v18  ;;  %v4185_v27 = vsel %vm4172_vm10, %v4182_v11, %v4184_v57  ;;  %v4112_v58 = vsel %vm1153_vm5, %v4109_v30, %v4111_v15  ;;  %5511 = vmatprep.subr.mxu0 %v5282_v26  ;;  %v5263_v26 = vld [vmem:[%s11469_s4 + $0x260] sm:$0xff] }
 0x4c2   :  { %v6426_v9 = vpack.i.bf16 %v3782_v36, %v4040_v25  ;;  %v6436_v28 = vpack.i.bf16 %v3923_v51, %v4185_v27  ;;  %v6431_v55 = vpack.i.bf16 %v3852_v43, %v4112_v58  ;;  %v3854_v45 = vsel %vm652_vm1, %v3851_v5, %v3853_v24  ;;  %5512 = vmatpush3.msra.mxu0 %v5266_v62 }
 0x4c3   :  { %v3784_v7 = vsel %vm487_vm2, %v3781_v53, %v3783_v23  ;;  %v3925_v30 = vsel %vm3910_vm9, %v3922_v56, %v3924_v59 }
 0x4c4   :  { %6427 = vrot.lane.b32.xlu1 %v6426_v9, %s6656_s28  ;;  %6422 = vrot.lane.b32.xlu0 %v6421_v3, %s6663_s1 }
 0x4c8   :  { %6437 = vrot.lane.b32.xlu1 %v6436_v28, %s6663_s1  ;;  %6432 = vrot.lane.b32.xlu0 %v6431_v55, %s6661_s2  ;;  %v5281_v28 = vld [vmem:[%s11469_s4 + $0x2f0] sm:$0xff] }
 0x4c9   :  { %v5265_v55 = vld [vmem:[%s11469_s4 + $0x270] sm:$0xff]  ;;  %5513 = vmatprep.subr.mxu0 %v5281_v28 }
 0x4ca   :  { %5514 = vmatpush3.msra.mxu0 %v5265_v55 }
 0x4d0   :  { %v3652_v20 = vpop.f32.mrf.mxu0 }
 0x4d1   :  { %v10278_v63 = vadd.f32 %v3652_v20, %v10083_v2 }
 0x4d2   :  { %v3654_v35 = vpop.f32.mrf.mxu0 }
 0x4d3   :  { %v4113_v4 = vrot.slane %v10278_v63, 6  ;;  %v4041_v33 = vrot.slane %v10278_v63, 5  ;;  %v4186_v37 = vrot.slane %v10278_v63, 7  ;;  %v4248_v38 = vrot.slane %v10278_v63, 1 }
 0x4d4   :  { %v3657_v31 = vpop.f32.mrf.mxu0  ;;  %v4281_v52 = vrot.slane %v10278_v63, 2  ;;  %v4314_v60 = vrot.slane %v10278_v63, 3 }
 0x4d5   :  { %v10287_v17 = vadd.f32 %v3657_v31, %v10083_v2  ;;  %v4114_v49 = vsel %vm1153_vm5, %v4111_v15, %v4113_v4  ;;  %v4042_v46 = vsel %vm986_vm4, %v4039_v18, %v4041_v33  ;;  %v4187_v41 = vsel %vm4172_vm10, %v4184_v57, %v4186_v37 }
 0x4d6   :  { %v3659_v44 = vpop.f32.mrf.mxu0  ;;  %v6446_v21 = vpack.i.bf16 %v3854_v45, %v4114_v49  ;;  %v6441_v22 = vpack.i.bf16 %v3784_v7, %v4042_v46  ;;  %v4249_v6 = vsel %vm487_vm2, %v3783_v23, %v4248_v38  ;;  %v6451_v19 = vpack.i.bf16 %v3925_v30, %v4187_v41 }
 0x4d7   :  { %v4368_v16 = vrot.slane %v10287_v17, 5  ;;  %v4398_v42 = vrot.slane %v10287_v17, 6  ;;  %v4428_v34 = vrot.slane %v10287_v17, 7  ;;  %v4250_v32 = vrot.slane %v10287_v17, 1 }
 0x4d8   :  { %6447 = vrot.lane.b32.xlu1 %v6446_v21, %s6661_s2  ;;  %6442 = vrot.lane.b32.xlu0 %v6441_v22, %s6656_s28  ;;  %v4316_v10 = vrot.slane %v10287_v17, 3  ;;  %v4282_v18 = vsel %vm652_vm1, %v3853_v24, %v4281_v52  ;;  %v4315_v40 = vsel %vm3910_vm9, %v3924_v59, %v4314_v60  ;;  %v4283_v36 = vrot.slane %v10287_v17, 2 }
 0x4d9   :  { %v4369_v12 = vsel %vm986_vm4, %v4041_v33, %v4368_v16  ;;  %v4399_v39 = vsel %vm1153_vm5, %v4113_v4, %v4398_v42  ;;  %v4429_v15 = vsel %vm4172_vm10, %v4186_v37, %v4428_v34  ;;  %v4251_v27 = vsel %vm487_vm2, %v4248_v38, %v4250_v32 }
 0x4da   :  { %v6456_v11 = vpack.i.bf16 %v4249_v6, %v4369_v12  ;;  %v6461_v57 = vpack.i.bf16 %v4282_v18, %v4399_v39  ;;  %v4317_v58 = vsel %vm3910_vm9, %v4314_v60, %v4316_v10  ;;  %v6466_v23 = vpack.i.bf16 %v4315_v40, %v4429_v15  ;;  %v5278_v39 = vld [vmem:[%s11469_s4 + $0x2d8] sm:$0xff]  ;;  %v5277_v18 = vld [vmem:[%s11469_s4 + $0x2d0] sm:$0xff]  ;;  %v5260_v15 = vld [vmem:[%s11469_s4 + $0x248] sm:$0xff] }
 0x4db   :  { %v4284_v38 = vsel %vm652_vm1, %v4281_v52, %v4283_v36  ;;  %v5264_v52 = vld [vmem:[%s11469_s4 + $0x268] sm:$0xff] }
 0x4dc   :  { %v3662_v53 = vpop.f32.mrf.mxu0  ;;  %6457 = vrot.lane.b32.xlu1 %v6456_v11, %s6656_s28  ;;  %6452 = vrot.lane.b32.xlu0 %v6451_v19, %s6663_s1 }
 0x4dd   :  { %v10315_v61 = vadd.f32 %v3662_v53, %v10083_v2  ;;  %v5262_v53 = vld [vmem:[%s11469_s4 + $0x258] sm:$0xff] }
 0x4de   :  { %v3664_v14 = vpop.f32.mrf.mxu0 }
 0x4df   :  { %v4370_v25 = vrot.slane %v10315_v61, 5  ;;  %v4430_v56 = vrot.slane %v10315_v61, 7  ;;  %v4400_v5 = vrot.slane %v10315_v61, 6  ;;  %v4252_v9 = vrot.slane %v10315_v61, 1  ;;  %v5261_v14 = vld [vmem:[%s11469_s4 + $0x250] sm:$0xff] }
 0x4e0   :  { %v3667_v3 = vpop.f32.mrf.mxu0  ;;  %6462 = vrot.lane.b32.xlu0 %v6461_v57, %s6661_s2  ;;  %v4285_v51 = vrot.slane %v10315_v61, 2  ;;  %v4318_v43 = vrot.slane %v10315_v61, 3  ;;  %v4352_v35 = vrot.slane %v10315_v61, 4  ;;  %v5276_v57 = vld [vmem:[%s11469_s4 + $0x2c8] sm:$0xff] }
 0x4e1   :  { %v3668_v20 = vadd.f32 %v3667_v3, %v10083_v2  ;;  %v4371_v24 = vsel %vm986_vm4, %v4368_v16, %v4370_v25  ;;  %v4431_v37 = vsel %vm4172_vm10, %v4428_v34, %v4430_v56  ;;  %v4401_v31 = vsel %vm1153_vm5, %v4398_v42, %v4400_v5  ;;  %v5280_v42 = vld [vmem:[%s11469_s4 + $0x2e8] sm:$0xff]  ;;  %v5279_v34 = vld [vmem:[%s11469_s4 + $0x2e0] sm:$0xff]  ;;  %v5273_v3 = vld [vmem:[%s11469_s4 + $0x2b0] sm:$0xff] }
 0x4e2   :  { %v3669_v4 = vpop.f32.mrf.mxu0  ;;  %v6471_v33 = vpack.i.bf16 %v4251_v27, %v4371_v24  ;;  %v10342_v45 = vsel %vm487_vm2, %v4250_v32, %v4252_v9  ;;  %v10348_v44 = vsel %vm652_vm1, %v4283_v36, %v4285_v51  ;;  %v10351_v21 = vsel %vm3910_vm9, %v4316_v10, %v4318_v43  ;;  %5515 = vmatprep.subr.mxu0 %v5280_v42  ;;  %v5275_v36 = vld [vmem:[%s11469_s4 + $0x2c0] sm:$0xff]  ;;  %v5258_v9 = vld [vmem:[%s11469_s4 + $0x238] sm:$0xff]  ;;  %v5257_v27 = vld [vmem:[%s11469_s4 + $0x230] sm:$0xff] }
 0x4e3   :  { %v4354_v7 = vrot.slane %v3668_v20, 4  ;;  %v4372_v59 = vrot.slane %v3668_v20, 5  ;;  %v4402_v49 = vrot.slane %v3668_v20, 6  ;;  %v4432_v46 = vrot.slane %v3668_v20, 7  ;;  %5516 = vmatpush3.msra.mxu0 %v5264_v52  ;;  %v5256_v51 = vld [vmem:[%s11469_s4 + $0x228] sm:$0xff]  ;;  %v5271_v43 = vld [vmem:[%s11469_s4 + $0x2a0] sm:$0xff] }
 0x4e4   :  { %6472 = vrot.lane.b32.xlu1 %v6471_v33, %s6656_s28  ;;  %6467 = vrot.lane.b32.xlu0 %v6466_v23, %s6663_s1  ;;  %v6481_v12 = vpack.i.bf16 %v4317_v58, %v4431_v37  ;;  %v6476_v30 = vpack.i.bf16 %v4284_v38, %v4401_v31  ;;  %v5272_v58 = vld [vmem:[%s11469_s4 + $0x2a8] sm:$0xff]  ;;  %v3985_v23 = vrot.slane %v10134_v50, 4 }
 0x4e5   :  { %v10354_v22 = vsel %vm986_vm4, %v4370_v25, %v4372_v59  ;;  %v10357_v16 = vsel %vm1153_vm5, %v4400_v5, %v4402_v49  ;;  %v10360_v41 = vsel %vm4172_vm10, %v4430_v56, %v4432_v46  ;;  %v10368_v6 = vsel %vm819_vm3, %v4352_v35, %v4354_v7  ;;  %5517 = vmatprep.subr.mxu0 %v5279_v34  ;;  %v5259_v56 = vld [vmem:[%s11469_s4 + $0x240] sm:$0xff]  ;;  %v5274_v5 = vld [vmem:[%s11469_s4 + $0x2b8] sm:$0xff] }
 0x4e6   :  { %5518 = vmatpush3.msra.mxu0 %v5263_v26  ;;  %v3984_v7 = vrot.slane %v10102_v1, 4  ;;  %v3987_v34 = vrot.slane %v10171_v0, 4 }
 0x4e7   :  { %5519 = vmatprep.subr.mxu0 %v5278_v39 }
 0x4e8   :  { %v3672_v11 = vpop.f32.mrf.mxu0  ;;  %6482 = vrot.lane.b32.xlu1 %v6481_v12, %s6663_s1  ;;  %6477 = vrot.lane.b32.xlu0 %v6476_v30, %s6661_s2  ;;  %v3986_v46 = vsel %vm819_vm3, %v3984_v7, %v3985_v23 }
 0x4e9   :  { %5520 = vmatpush3.msra.mxu0 %v5262_v53 }
 0x4ea   :  { %v3673_v19 = vpop.f32.mrf.mxu0  ;;  %5521 = vmatprep.subr.mxu0 %v5277_v18 }
 0x4eb   :  { %5522 = vmatpush3.msra.mxu0 %v5261_v14  ;;  %v4628_v14 = vld [vmem:[%s11469_s4 + $0x178] sm:$0xff] }
 0x4ec   :  { %v3676_v60 = vpop.f32.mrf.mxu0  ;;  %5523 = vmatprep.subr.mxu0 %v5276_v57 }
 0x4ed   :  { %5524 = vmatpush3.msra.mxu0 %v5260_v15 }
 0x4ee   :  { %v3677_v62 = vpop.f32.mrf.mxu0  ;;  %5525 = vmatprep.subr.mxu0 %v5275_v36  ;;  %v4643_v36 = vld [vmem:[%s11469_s4 + $0x1f0] sm:$0xff] }
 0x4ef   :  { %5526 = vmatpush3.msra.mxu0 %v5259_v56 }
 0x4f0   :  { %5527 = vmatprep.subr.mxu0 %v5274_v5 }
 0x4f1   :  { %5528 = vmatpush3.msra.mxu0 %v5258_v9  ;;  %v3988_v9 = vsel %vm819_vm3, %v3985_v23, %v3987_v34  ;;  %v3991_v23 = vrot.slane %v10212_v8, 4 }
 0x4f2   :  { %5529 = vmatprep.subr.mxu0 %v5273_v3  ;;  %v4627_v3 = vld [vmem:[%s11469_s4 + $0x170] sm:$0xff] }
 0x4f3   :  { %5530 = vmatpush3.msra.mxu0 %v5257_v27 }
 0x4f4   :  { %5531 = vmatprep.subr.mxu0 %v5272_v58 }
 0x4f5   :  { %v3680_v32 = vpop.f32.mrf.mxu0  ;;  %5532 = vmatpush3.msra.mxu0 %v5256_v51  ;;  %v3989_v51 = vrot.slane %v10197_v48, 4 }
 0x4f6   :  { %5533 = vmatprep.subr.mxu0 %v5271_v43  ;;  %v4642_v43 = vld [vmem:[%s11469_s4 + $0x1e8] sm:$0xff] }
 0x4f7   :  { %v3681_v10 = vpop.f32.mrf.mxu0 }
 0x4f9   :  { %v3684_v40 = vpop.f32.mrf.mxu0 }
 0x4fb   :  { %v3685_v25 = vpop.f32.mrf.mxu0 }
 0x504   :  { %v3688_v28 = vpop.f32.mrf.mxu0 }
 0x506   :  { %v3689_v55 = vpop.f32.mrf.mxu0 }
 0x508   :  { %v3692_v20 = vpop.f32.mrf.mxu0 }
 0x50a   :  { %v3693_v24 = vpop.f32.mrf.mxu0 }
 0x50d   :  { %v6358_v4 = vpop.permute.xlu1 %6357  ;;  %v6353_v33 = vpop.permute.xlu0 %6352 }
 0x50e   :  { %v6355_v37 = vunpack.i.h.bf16 %v6353_v33  ;;  %v6354_v31 = vunpack.i.l.bf16 %v6353_v33  ;;  %v6360_v59 = vunpack.i.h.bf16 %v6358_v4  ;;  %v6359_v49 = vunpack.i.l.bf16 %v6358_v4 }
 0x510   :  { %v4458_v38 = vsel %vm64_vm0, %v10108_v13, %v6355_v37  ;;  %v4500_v30 = vsel %vm64_vm0, %v3986_v46, %v6354_v31  ;;  %v4626_v31 = vld [vmem:[%s11469_s4 + $0x168] sm:$0xff] }
 0x511   :  { %v3696_v42 = vpop.f32.mrf.mxu0  ;;  %v6368_v12 = vpop.permute.xlu1 %6367  ;;  %v4514_v39 = vsel %vm1867_vm13, %v4500_v30, %v6359_v49  ;;  %v4472_v53 = vsel %vm1867_vm13, %v4458_v38, %v6360_v59  ;;  %v4641_v49 = vld [vmem:[%s11469_s4 + $0x1e0] sm:$0xff]  ;;  %v4640_v30 = vld [vmem:[%s11469_s4 + $0x1d8] sm:$0xff] }
 0x512   :  { %v6363_v52 = vpop.permute.xlu0 %6362  ;;  %v6370_v26 = vunpack.i.h.bf16 %v6368_v12  ;;  %v6369_v62 = vunpack.i.l.bf16 %v6368_v12  ;;  %v10455_v28 = vadd.f32 %v3696_v42, %v10083_v2  ;;  %v3990_v42 = vsel %vm819_vm3, %v3987_v34, %v3989_v51  ;;  %v4625_v12 = vld [vmem:[%s11469_s4 + $0x160] sm:$0xff] }
 0x513   :  { %v6365_v11 = vunpack.i.h.bf16 %v6363_v52  ;;  %v6364_v19 = vunpack.i.l.bf16 %v6363_v52  ;;  %v3698_v60 = vpop.f32.mrf.mxu0  ;;  %v3992_v34 = vsel %vm819_vm3, %v3989_v51, %v3991_v23 }
 0x514   :  { %v4501_v27 = vsel %vm64_vm0, %v3988_v9, %v6369_v62  ;;  %v4459_v58 = vsel %vm64_vm0, %v10102_v1, %v6370_v26  ;;  %v3785_v52 = vrot.slane %v10455_v28, 1  ;;  %v5255_v26 = vld [vmem:[%s11469_s4 + $0x220] sm:$0xff]  ;;  %v5270_v62 = vld [vmem:[%s11469_s4 + $0x298] sm:$0xff] }
 0x515   :  { %v3701_v32 = vpop.f32.mrf.mxu0  ;;  %v6378_v10 = vpop.permute.xlu1 %6377  ;;  %v4528_v13 = vsel %vm3402_vm6, %v4514_v39, %v6364_v19  ;;  %v4486_v18 = vsel %vm3402_vm6, %v4472_v53, %v6365_v11  ;;  %v5254_v39 = vld [vmem:[%s11469_s4 + $0x218] sm:$0xff]  ;;  %v3855_v53 = vrot.slane %v10455_v28, 2  ;;  %5534 = vmatpush3.msra.mxu0 %v5255_v26 }
 0x516   :  { %v6380_v57 = vunpack.i.h.bf16 %v6378_v10  ;;  %v6379_v40 = vunpack.i.l.bf16 %v6378_v10  ;;  %v6373_v15 = vpop.permute.xlu0 %6372  ;;  %4713 = vmatprep.mubr.f32.mxu1 %v4528_v13  ;;  %v10461_v1 = vadd.f32 %v3701_v32, %v10083_v2  ;;  %5535 = vmatprep.subr.mxu0 %v5270_v62 }
 0x517   :  { %v6375_v25 = vunpack.i.h.bf16 %v6373_v15  ;;  %v6374_v56 = vunpack.i.l.bf16 %v6373_v15  ;;  %4714 = vmatmul.mubr.f32.vlgmr.msra.gmra.mxu1 %v4486_v18  ;;  %v3703_v5 = vpop.f32.mrf.mxu0  ;;  %v4624_v18 = vld [vmem:[%s11469_s4 + $0x158] sm:$0xff]  ;;  %5536 = vmatpush3.msra.mxu0 %v5254_v39 }
 0x518   :  { %5459 = vmatpush3.msra.mxu1 %v4628_v14  ;;  %v3786_v10 = vrot.slane %v10461_v1, 1  ;;  %v4043_v13 = vrot.slane %v10461_v1, 5  ;;  %v5269_v14 = vld [vmem:[%s11469_s4 + $0x290] sm:$0xff]  ;;  %v3927_v15 = vrot.slane %v10461_v1, 3 }
 0x519   :  { %v6388_v55 = vpop.permute.xlu1 %6387  ;;  %v4515_v20 = vsel %vm1867_vm13, %v4501_v27, %v6374_v56  ;;  %v4473_v24 = vsel %vm1867_vm13, %v4459_v58, %v6375_v25  ;;  %5460 = vmatprep.subr.mxu1 %v4643_v36  ;;  %v4188_v36 = vrot.slane %v10461_v1, 7  ;;  %v4639_v25 = vld [vmem:[%s11469_s4 + $0x1d0] sm:$0xff]  ;;  %5537 = vmatprep.subr.mxu0 %v5269_v14 }
 0x51a   :  { %v6383_v4 = vpop.permute.xlu0 %6382  ;;  %v4529_v33 = vsel %vm3402_vm6, %v4515_v20, %v6379_v40  ;;  %v4487_v37 = vsel %vm3402_vm6, %v4473_v24, %v6380_v57  ;;  %5461 = vmatpush3.msra.mxu1 %v4627_v3  ;;  %v6390_v46 = vunpack.i.h.bf16 %v6388_v55  ;;  %v6389_v38 = vunpack.i.l.bf16 %v6388_v55  ;;  %v4623_v24 = vld [vmem:[%s11469_s4 + $0x150] sm:$0xff] }
 0x51b   :  { %v6385_v7 = vunpack.i.h.bf16 %v6383_v4  ;;  %v6384_v59 = vunpack.i.l.bf16 %v6383_v4  ;;  %4718 = vmatprep.mubr.f32.mxu1 %v4529_v33  ;;  %5462 = vmatprep.subr.mxu1 %v4642_v43  ;;  %v3856_v20 = vrot.slane %v10461_v1, 2  ;;  %v5253_v4 = vld [vmem:[%s11469_s4 + $0x210] sm:$0xff]  ;;  %v5268_v33 = vld [vmem:[%s11469_s4 + $0x288] sm:$0xff] }
 0x51c   :  { %4719 = vmatmul.mubr.f32.gmra.mxu1 %v4487_v37  ;;  %5538 = vmatpush3.msra.mxu0 %v5253_v4 }
 0x51d   :  { %v6398_v11 = vpop.permute.xlu1 %6397  ;;  %v4502_v19 = vsel %vm64_vm0, %v3990_v42, %v6384_v59  ;;  %v4460_v60 = vsel %vm64_vm0, %v10134_v50, %v6385_v7  ;;  %5463 = vmatpush3.msra.mxu1 %v4626_v31  ;;  %v3926_v50 = vrot.slane %v10455_v28, 3  ;;  %5539 = vmatprep.subr.mxu0 %v5268_v33  ;;  %v3857_v4 = vsel %vm652_vm1, %v3855_v53, %v3856_v20 }
 0x51e   :  { %v6393_v32 = vpop.permute.xlu0 %6392  ;;  %5464 = vmatprep.subr.mxu1 %v4641_v49  ;;  %v6400_v56 = vunpack.i.h.bf16 %v6398_v11  ;;  %v6399_v5 = vunpack.i.l.bf16 %v6398_v11  ;;  %v4516_v3 = vsel %vm1867_vm13, %v4502_v19, %v6389_v38  ;;  %v4474_v27 = vsel %vm1867_vm13, %v4460_v60, %v6390_v46  ;;  %v4638_v38 = vld [vmem:[%s11469_s4 + $0x1c8] sm:$0xff] }
 0x51f   :  { %v6395_v57 = vunpack.i.h.bf16 %v6393_v32  ;;  %v6394_v40 = vunpack.i.l.bf16 %v6393_v32  ;;  %5465 = vmatpush3.msra.mxu1 %v4625_v12  ;;  %v3787_v49 = vsel %vm487_vm2, %v3785_v52, %v3786_v10  ;;  %v4115_v46 = vrot.slane %v10461_v1, 6  ;;  %v4622_v19 = vld [vmem:[%s11469_s4 + $0x148] sm:$0xff]  ;;  %v4637_v32 = vld [vmem:[%s11469_s4 + $0x1c0] sm:$0xff] }
 0x520   :  { %v3706_v9 = vpop.f32.mrf.mxu0  ;;  %5466 = vmatprep.subr.mxu1 %v4640_v30  ;;  %v4503_v60 = vsel %vm64_vm0, %v3992_v34, %v6399_v5  ;;  %v4461_v26 = vsel %vm64_vm0, %v10171_v0, %v6400_v56  ;;  %v3928_v62 = vsel %vm3910_vm9, %v3926_v50, %v3927_v15  ;;  %v4621_v5 = vld [vmem:[%s11469_s4 + $0x140] sm:$0xff] }
 0x521   :  { %v10512_v58 = vadd.f32 %v3706_v9, %v10083_v2  ;;  %v6408_v51 = vpop.permute.xlu1 %6407  ;;  %v4530_v43 = vsel %vm3402_vm6, %v4516_v3, %v6394_v40  ;;  %v4488_v55 = vsel %vm3402_vm6, %v4474_v27, %v6395_v57  ;;  %5467 = vmatpush3.msra.mxu1 %v4624_v18 }
 0x522   :  { %v6410_v37 = vunpack.i.h.bf16 %v6408_v51  ;;  %v6409_v31 = vunpack.i.l.bf16 %v6408_v51  ;;  %v6403_v7 = vpop.permute.xlu0 %6402  ;;  %4723 = vmatprep.mubr.f32.mxu1 %v4530_v43  ;;  %v3708_v59 = vpop.f32.mrf.mxu0  ;;  %5468 = vmatprep.subr.mxu1 %v4639_v25  ;;  %v4636_v51 = vld [vmem:[%s11469_s4 + $0x1b8] sm:$0xff] }
 0x523   :  { %v6405_v42 = vunpack.i.h.bf16 %v6403_v7  ;;  %v6404_v12 = vunpack.i.l.bf16 %v6403_v7  ;;  %4724 = vmatmul.mubr.f32.gmra.mxu1 %v4488_v55  ;;  %v4044_v30 = vrot.slane %v10512_v58, 5  ;;  %v4189_v11 = vrot.slane %v10512_v58, 7  ;;  %v4620_v55 = vld [vmem:[%s11469_s4 + $0x138] sm:$0xff]  ;;  %v4619_v59 = vld [vmem:[%s11469_s4 + $0x130] sm:$0xff] }
 0x524   :  { %v3711_v52 = vpop.f32.mrf.mxu0  ;;  %v4116_v39 = vrot.slane %v10512_v58, 6  ;;  %5469 = vmatpush3.msra.mxu1 %v4623_v24  ;;  %v3788_v27 = vrot.slane %v10512_v58, 1  ;;  %v5267_v24 = vld [vmem:[%s11469_s4 + $0x280] sm:$0xff] }
 0x525   :  { %v10549_v18 = vadd.f32 %v3711_v52, %v10083_v2  ;;  %v4517_v34 = vsel %vm1867_vm13, %v4503_v60, %v6404_v12  ;;  %v4475_v14 = vsel %vm1867_vm13, %v4461_v26, %v6405_v42  ;;  %v4045_v0 = vsel %vm986_vm4, %v4043_v13, %v4044_v30  ;;  %5470 = vmatprep.subr.mxu1 %v4638_v38  ;;  %v4618_v42 = vld [vmem:[%s11469_s4 + $0x128] sm:$0xff]  ;;  %v4617_v60 = vld [vmem:[%s11469_s4 + $0x120] sm:$0xff]  ;;  %v10633_v26 = vld [vmem:[%s11469_s4 + $0x3f8] sm:$0xff] }
 0x526   :  { %v3713_v57 = vpop.f32.mrf.mxu0  ;;  %v10555_v50 = vsel %vm3402_vm6, %v4517_v34, %v6409_v31  ;;  %v10558_v40 = vsel %vm3402_vm6, %v4475_v14, %v6410_v37  ;;  %v6486_v25 = vpack.i.bf16 %v3787_v49, %v4045_v0  ;;  %v4190_v56 = vsel %vm4172_vm10, %v4188_v36, %v4189_v11  ;;  %5471 = vmatpush3.msra.mxu1 %v4622_v19  ;;  %v5252_v36 = vld [vmem:[%s11469_s4 + $0x208] sm:$0xff]  ;;  %v4635_v37 = vld [vmem:[%s11469_s4 + $0x1b0] sm:$0xff]  ;;  %v4632_v34 = vld [vmem:[%s11469_s4 + $0x198] sm:$0xff] }
 0x527   :  { %4728 = vmatprep.mubr.f32.mxu1 %v10555_v50  ;;  %v6496_v13 = vpack.i.bf16 %v3928_v62, %v4190_v56  ;;  %v4117_v9 = vsel %vm1153_vm5, %v4115_v46, %v4116_v39  ;;  %v4046_v3 = vrot.slane %v10549_v18, 5  ;;  %5472 = vmatprep.subr.mxu1 %v4637_v32  ;;  %v4118_v43 = vrot.slane %v10549_v18, 6  ;;  %v4634_v46 = vld [vmem:[%s11469_s4 + $0x1a8] sm:$0xff]  ;;  %v4631_v57 = vld [vmem:[%s11469_s4 + $0x190] sm:$0xff] }
 0x528   :  { %4729 = vmatmul.mubr.f32.gmra.mxu1 %v10558_v40  ;;  %6487 = vrot.lane.b32.xlu1 %v6486_v25, %s6656_s28  ;;  %v6491_v31 = vpack.i.bf16 %v3857_v4, %v4117_v9  ;;  %v3789_v53 = vsel %vm487_vm2, %v3786_v10, %v3788_v27  ;;  %v3858_v49 = vrot.slane %v10512_v58, 2  ;;  %v4191_v10 = vrot.slane %v10549_v18, 7 }
 0x529   :  { %6497 = vrot.lane.b32.xlu0 %v6496_v13, %s6663_s1  ;;  %v4047_v33 = vsel %vm986_vm4, %v4044_v30, %v4046_v3  ;;  %5473 = vmatpush3.msra.mxu1 %v4621_v5  ;;  %v4119_v38 = vsel %vm1153_vm5, %v4116_v39, %v4118_v43  ;;  %v4633_v30 = vld [vmem:[%s11469_s4 + $0x1a0] sm:$0xff]  ;;  %v6501_v19 = vpack.i.bf16 %v3789_v53, %v10342_v45  ;;  %v3929_v52 = vrot.slane %v10512_v58, 3  ;;  %v4615_v13 = vld [vmem:[%s11469_s4 + $0x110] sm:$0xff] }
 0x52a   :  { %v6516_v7 = vpack.i.bf16 %v4047_v33, %v10354_v22  ;;  %5474 = vmatprep.subr.mxu1 %v4636_v51  ;;  %5540 = vmatpush3.msra.mxu0 %v5252_v36  ;;  %v5251_v22 = vld [vmem:[%s11469_s4 + $0x200] sm:$0xff]  ;;  %v6521_v32 = vpack.i.bf16 %v4119_v38, %v10357_v16  ;;  %v3859_v45 = vsel %vm652_vm1, %v3856_v20, %v3858_v49  ;;  %v3993_v14 = vrot.slane %v10242_v47, 4  ;;  %v4616_v20 = vld [vmem:[%s11469_s4 + $0x118] sm:$0xff] }
 0x52b   :  { %5475 = vmatpush3.msra.mxu1 %v4620_v55  ;;  %5541 = vmatprep.subr.mxu0 %v5267_v24  ;;  %v4192_v16 = vsel %vm4172_vm10, %v4189_v11, %v4191_v10  ;;  %v6506_v5 = vpack.i.bf16 %v3859_v45, %v10348_v44  ;;  %v3930_v11 = vsel %vm3910_vm9, %v3927_v15, %v3929_v52  ;;  %v4630_v44 = vld [vmem:[%s11469_s4 + $0x188] sm:$0xff]  ;;  %v3995_v38 = vrot.slane %v10251_v54, 4 }
 0x52c   :  { %6492 = vrot.lane.b32.xlu1 %v6491_v31, %s6661_s2  ;;  %5476 = vmatprep.subr.mxu1 %v4635_v37  ;;  %v6526_v55 = vpack.i.bf16 %v4192_v16, %v10360_v41  ;;  %v3994_v15 = vsel %vm819_vm3, %v3991_v23, %v3993_v14  ;;  %v4614_v41 = vld [vmem:[%s11469_s4 + $0x108] sm:$0xff]  ;;  %v3790_v31 = vrot.slane %v10549_v18, 1 }
 0x52d   :  { %6517 = vrot.lane.b32.xlu0 %v6516_v7, %s6656_s28  ;;  %v3716_v12 = vpop.f32.mrf.mxu0  ;;  %5477 = vmatpush3.msra.mxu1 %v4619_v59  ;;  %v4629_v59 = vld [vmem:[%s11469_s4 + $0x180] sm:$0xff] }
 0x52e   :  { %5478 = vmatprep.subr.mxu1 %v4634_v46  ;;  %5542 = vmatpush3.msra.mxu0 %v5251_v22  ;;  %v10636_v62 = vadd.f32 %v3716_v12, %v10083_v2  ;;  %v6511_v46 = vpack.i.bf16 %v3930_v11, %v10351_v21 }
 0x52f   :  { %v3718_v39 = vpop.f32.mrf.mxu0  ;;  %5479 = vmatpush3.msra.mxu1 %v4618_v42  ;;  %5564 = vmatprep.subr.mxu0 %v10633_v26  ;;  %v4613_v42 = vld [vmem:[%s11469_s4 + $0x100] sm:$0xff] }
 0x530   :  { %6502 = vrot.lane.b32.xlu1 %v6501_v19, %s6656_s28  ;;  %5480 = vmatprep.subr.mxu1 %v4633_v30  ;;  %v4048_v24 = vrot.slane %v10636_v62, 5  ;;  %v4120_v22 = vrot.slane %v10636_v62, 6  ;;  %v3860_v19 = vrot.slane %v10549_v18, 2 }
 0x531   :  { %6522 = vrot.lane.b32.xlu0 %v6521_v32, %s6661_s2  ;;  %v3721_v0 = vpop.f32.mrf.mxu0  ;;  %5481 = vmatpush3.msra.mxu1 %v4617_v60 }
 0x532   :  { %v6418_v25 = vpop.permute.xlu1 %6417  ;;  %v6413_v56 = vpop.permute.xlu0 %6412  ;;  %5482 = vmatprep.subr.mxu1 %v4632_v34  ;;  %v4049_v30 = vsel %vm986_vm4, %v4046_v3, %v4048_v24  ;;  %v10707_v45 = vadd.f32 %v3721_v0, %v10083_v2  ;;  %v3791_v3 = vsel %vm487_vm2, %v3788_v27, %v3790_v31  ;;  %v4121_v0 = vsel %vm1153_vm5, %v4118_v43, %v4120_v22 }
 0x533   :  { %v3723_v9 = vpop.f32.mrf.mxu0  ;;  %v6415_v51 = vunpack.i.h.bf16 %v6413_v56  ;;  %v6414_v36 = vunpack.i.l.bf16 %v6413_v56  ;;  %5483 = vmatpush3.msra.mxu1 %v4616_v20  ;;  %v6420_v4 = vunpack.i.h.bf16 %v6418_v25  ;;  %v6419_v33 = vunpack.i.l.bf16 %v6418_v25 }
 0x534   :  { %6507 = vrot.lane.b32.xlu1 %v6506_v5, %s6661_s2  ;;  %5484 = vmatprep.subr.mxu1 %v4631_v57  ;;  %v6531_v25 = vpack.i.bf16 %v3791_v3, %v4049_v30  ;;  %v3996_v56 = vsel %vm819_vm3, %v3993_v14, %v3995_v38  ;;  %v4193_v27 = vrot.slane %v10636_v62, 7  ;;  %v3861_v43 = vsel %vm652_vm1, %v3858_v49, %v3860_v19 }
 0x535   :  { %6527 = vrot.lane.b32.xlu0 %v6526_v55, %s6663_s1  ;;  %v4504_v37 = vsel %vm64_vm0, %v3994_v15, %v6414_v36  ;;  %v4462_v7 = vsel %vm64_vm0, %v10197_v48, %v6415_v51  ;;  %5485 = vmatpush3.msra.mxu1 %v4615_v13  ;;  %v3931_v36 = vrot.slane %v10549_v18, 3  ;;  %v4122_v30 = vrot.slane %v10707_v45, 6 }
 0x536   :  { %v6428_v23 = vpop.permute.xlu1 %6427  ;;  %v6423_v53 = vpop.permute.xlu0 %6422  ;;  %5486 = vmatprep.subr.mxu1 %v4630_v44  ;;  %v4518_v39 = vsel %vm1867_vm13, %v4504_v37, %v6419_v33  ;;  %v4476_v32 = vsel %vm1867_vm13, %v4462_v7, %v6420_v4  ;;  %v3794_v33 = vrot.slane %v10707_v45, 1  ;;  %v4194_v7 = vsel %vm4172_vm10, %v4191_v10, %v4193_v27 }
 0x537   :  { %v6425_v12 = vunpack.i.h.bf16 %v6423_v53  ;;  %v6424_v48 = vunpack.i.l.bf16 %v6423_v53  ;;  %5487 = vmatpush3.msra.mxu1 %v4614_v41  ;;  %v6430_v21 = vunpack.i.h.bf16 %v6428_v23  ;;  %v6429_v60 = vunpack.i.l.bf16 %v6428_v23 }
 0x538   :  { %6512 = vrot.lane.b32.xlu1 %v6511_v46, %s6663_s1  ;;  %5488 = vmatprep.subr.mxu1 %v4629_v59  ;;  %v6536_v41 = vpack.i.bf16 %v3861_v43, %v4121_v0  ;;  %v4050_v59 = vrot.slane %v10707_v45, 5 }
 0x539   :  { %v10710_v34 = vsel %vm3402_vm6, %v4518_v39, %v6424_v48  ;;  %v10718_v16 = vsel %vm3402_vm6, %v4476_v32, %v6425_v12  ;;  %5489 = vmatpush3.msra.mxu1 %v4613_v42  ;;  %v4505_v14 = vsel %vm64_vm0, %v3996_v56, %v6429_v60  ;;  %v3932_v42 = vsel %vm3910_vm9, %v3929_v52, %v3931_v36 }
 0x53a   :  { %v6438_v20 = vpop.permute.xlu1 %6437  ;;  %v6433_v57 = vpop.permute.xlu0 %6432  ;;  %4733 = vmatprep.mubr.f32.mxu1 %v10710_v34  ;;  %5796 = vmatprep.subr.mxu1 %v10633_v26  ;;  %v4463_v26 = vsel %vm64_vm0, %v10212_v8, %v6430_v21  ;;  %v3792_v8 = vrot.slane %v10636_v62, 1  ;;  %v3864_v48 = vrot.slane %v10707_v45, 2  ;;  %v6541_v60 = vpack.i.bf16 %v3932_v42, %v4194_v7 }
 0x53b   :  { %v6440_v5 = vunpack.i.h.bf16 %v6438_v20  ;;  %v6439_v11 = vunpack.i.l.bf16 %v6438_v20  ;;  %v6435_v13 = vunpack.i.h.bf16 %v6433_v57  ;;  %v6434_v9 = vunpack.i.l.bf16 %v6433_v57  ;;  %4734 = vmatmul.mubr.f32.gmra.mxu1 %v10718_v16 }
 0x53c   :  { %v3726_v51 = vpop.f32.mrf.mxu0  ;;  %6532 = vrot.lane.b32.xlu1 %v6531_v25, %s6656_s28  ;;  %v3795_v12 = vsel %vm487_vm2, %v3792_v8, %v3794_v33  ;;  %v3862_v32 = vrot.slane %v10636_v62, 2  ;;  %v4051_v52 = vsel %vm986_vm4, %v4048_v24, %v4050_v59  ;;  %v3997_v25 = vrot.slane %v10278_v63, 4 }
 0x53d   :  { %v10743_v55 = vadd.f32 %v3726_v51, %v10083_v2  ;;  %v4519_v44 = vsel %vm1867_vm13, %v4505_v14, %v6434_v9  ;;  %v4477_v4 = vsel %vm1867_vm13, %v4463_v26, %v6435_v13  ;;  %v3793_v0 = vsel %vm487_vm2, %v3790_v31, %v3792_v8 }
 0x53e   :  { %v3728_v15 = vpop.f32.mrf.mxu0  ;;  %v10749_v49 = vsel %vm3402_vm6, %v4519_v44, %v6439_v11  ;;  %v10752_v37 = vsel %vm3402_vm6, %v4477_v4, %v6440_v5  ;;  %v3865_v24 = vsel %vm652_vm1, %v3862_v32, %v3864_v48  ;;  %v3935_v56 = vrot.slane %v10707_v45, 3 }
 0x53f   :  { %4738 = vmatprep.mubr.f32.mxu1 %v10749_v49  ;;  %v4052_v23 = vrot.slane %v10743_v55, 5  ;;  %v4124_v53 = vrot.slane %v10743_v55, 6  ;;  %v4197_v57 = vrot.slane %v10743_v55, 7  ;;  %v4195_v5 = vrot.slane %v10707_v45, 7 }
 0x540   :  { %v3731_v46 = vpop.f32.mrf.mxu0  ;;  %6537 = vrot.lane.b32.xlu1 %v6536_v41, %s6661_s2  ;;  %4739 = vmatmul.mubr.f32.gmra.mxu1 %v10752_v37  ;;  %v6546_v11 = vpack.i.bf16 %v3793_v0, %v4051_v52  ;;  %v4123_v9 = vsel %vm1153_vm5, %v4120_v22, %v4122_v30  ;;  %v3933_v51 = vrot.slane %v10636_v62, 3  ;;  %v3863_v14 = vsel %vm652_vm1, %v3860_v19, %v3862_v32 }
 0x541   :  { %v4053_v10 = vsel %vm986_vm4, %v4050_v59, %v4052_v23  ;;  %v10777_v3 = vadd.f32 %v3731_v46, %v10083_v2  ;;  %v4125_v20 = vsel %vm1153_vm5, %v4122_v30, %v4124_v53  ;;  %v4198_v31 = vsel %vm4172_vm10, %v4195_v5, %v4197_v57 }
 0x542   :  { %v3733_v21 = vpop.f32.mrf.mxu0  ;;  %v6561_v39 = vpack.i.bf16 %v3795_v12, %v4053_v10  ;;  %v6566_v13 = vpack.i.bf16 %v3865_v24, %v4125_v20  ;;  %v3998_v22 = vsel %vm819_vm3, %v3995_v38, %v3997_v25  ;;  %v6551_v26 = vpack.i.bf16 %v3863_v14, %v4123_v9 }
 0x543   :  { %v4054_v43 = vrot.slane %v10777_v3, 5  ;;  %v3936_v44 = vsel %vm3910_vm9, %v3933_v51, %v3935_v56  ;;  %v4196_v4 = vsel %vm4172_vm10, %v4193_v27, %v4195_v5  ;;  %v10822_v15 = vrot.slane %v10743_v55, 1 }
 0x544   :  { %6542 = vrot.lane.b32.xlu1 %v6541_v60, %s6663_s1  ;;  %6562 = vrot.lane.b32.xlu0 %v6561_v39, %s6656_s28  ;;  %v6571_v8 = vpack.i.bf16 %v3936_v44, %v4198_v31  ;;  %v3934_v7 = vsel %vm3910_vm9, %v3931_v36, %v3933_v51  ;;  %v4126_v59 = vrot.slane %v10777_v3, 6  ;;  %v4287_v38 = vrot.slane %v10777_v3, 2 }
 0x545   :  { %v4055_v27 = vsel %vm986_vm4, %v4052_v23, %v4054_v43  ;;  %v6556_v36 = vpack.i.bf16 %v3934_v7, %v4196_v4  ;;  %v10836_v60 = vrot.slane %v10743_v55, 2  ;;  %v3797_v32 = vsel %vm487_vm2, %v3794_v33, %v10822_v15 }
 0x546   :  { %v10846_v20 = vrot.slane %v10743_v55, 3  ;;  %v6576_v24 = vpack.i.bf16 %v3797_v32, %v4055_v27 }
 0x548   :  { %6547 = vrot.lane.b32.xlu1 %v6546_v11, %s6656_s28  ;;  %6567 = vrot.lane.b32.xlu0 %v6566_v13, %s6661_s2  ;;  %v4288_v11 = vsel %vm652_vm1, %v10836_v60, %v4287_v38  ;;  %v4199_v13 = vrot.slane %v10777_v3, 7 }
 0x54a   :  { %v6448_v41 = vpop.permute.xlu1 %6447  ;;  %v6443_v19 = vpop.permute.xlu0 %6442 }
 0x54b   :  { %v6449_v46 = vunpack.i.l.bf16 %v6448_v41  ;;  %v6445_v42 = vunpack.i.h.bf16 %v6443_v19  ;;  %v6444_v12 = vunpack.i.l.bf16 %v6443_v19  ;;  %v3736_v10 = vpop.f32.mrf.mxu0  ;;  %v6450_v30 = vunpack.i.h.bf16 %v6448_v41 }
 0x54c   :  { %v10831_v21 = vadd.f32 %v3736_v10, %v10083_v2  ;;  %6552 = vrot.lane.b32.xlu1 %v6551_v26, %s6661_s2  ;;  %6572 = vrot.lane.b32.xlu0 %v6571_v8, %s6663_s1  ;;  %v3867_v8 = vsel %vm652_vm1, %v3864_v48, %v10836_v60  ;;  %v4200_v10 = vsel %vm4172_vm10, %v4197_v57, %v4199_v13 }
 0x54d   :  { %v3738_v39 = vpop.f32.mrf.mxu0  ;;  %v4506_v23 = vsel %vm64_vm0, %v3998_v22, %v6444_v12  ;;  %v4464_v52 = vsel %vm64_vm0, %v10242_v47, %v6445_v42  ;;  %v4127_v47 = vsel %vm1153_vm5, %v4124_v53, %v4126_v59  ;;  %v4254_v42 = vrot.slane %v10777_v3, 1 }
 0x54e   :  { %v6453_v0 = vpop.permute.xlu0 %6452  ;;  %v4128_v5 = vrot.slane %v10831_v21, 6  ;;  %v4520_v31 = vsel %vm1867_vm13, %v4506_v23, %v6449_v46  ;;  %v4478_v22 = vsel %vm1867_vm13, %v4464_v52, %v6450_v30  ;;  %v4256_v44 = vrot.slane %v10831_v21, 1 }
 0x54f   :  { %v6455_v33 = vunpack.i.h.bf16 %v6453_v0  ;;  %v6454_v9 = vunpack.i.l.bf16 %v6453_v0  ;;  %v3741_v51 = vpop.f32.mrf.mxu0  ;;  %v4056_v46 = vrot.slane %v10831_v21, 5  ;;  %v3938_v57 = vsel %vm3910_vm9, %v3935_v56, %v10846_v20  ;;  %v10909_v0 = vpop.permute.xlu1 %6457 }
 0x550   :  { %v10859_v14 = vadd.f32 %v3741_v51, %v10083_v2  ;;  %6557 = vrot.lane.b32.xlu1 %v6556_v36, %s6663_s1  ;;  %6577 = vrot.lane.b32.xlu0 %v6576_v24, %s6656_s28  ;;  %v4129_v26 = vsel %vm1153_vm5, %v4126_v59, %v4128_v5  ;;  %v6581_v59 = vpack.i.bf16 %v3867_v8, %v4127_v47  ;;  %v4201_v39 = vrot.slane %v10831_v21, 7 }
 0x551   :  { %v3743_v4 = vpop.f32.mrf.mxu0  ;;  %v10869_v41 = vsel %vm3402_vm6, %v4520_v31, %v6454_v9  ;;  %v10872_v53 = vsel %vm3402_vm6, %v4478_v22, %v6455_v33  ;;  %v6596_v19 = vpack.i.bf16 %v4288_v11, %v4129_v26  ;;  %v4257_v27 = vsel %vm487_vm2, %v4254_v42, %v4256_v44  ;;  %v10920_v33 = vld [vmem:[%s11469_s4 + $0x378] sm:$0xff]  ;;  %v10935_v31 = vld [vmem:[%s11469_s4 + $0x3f0] sm:$0xff] }
 0x552   :  { %v10878_v7 = vpop.permute.xlu0 %6462  ;;  %4743 = vmatprep.mubr.f32.mxu1 %v10869_v41  ;;  %v4374_v12 = vrot.slane %v10859_v14, 5  ;;  %v4434_v48 = vrot.slane %v10859_v14, 7  ;;  %v4322_v32 = vrot.slane %v10831_v21, 3  ;;  %v6586_v23 = vpack.i.bf16 %v3938_v57, %v4200_v10 }
 0x553   :  { %4744 = vmatmul.mubr.f32.gmra.mxu1 %v10872_v53  ;;  %v4057_v52 = vsel %vm986_vm4, %v4054_v43, %v4056_v46  ;;  %v4350_v11 = vrot.slane %v10287_v17, 4  ;;  %v4291_v51 = vrot.slane %v10859_v14, 2  ;;  %v4289_v8 = vrot.slane %v10831_v21, 2 }
 0x554   :  { %6597 = vrot.lane.b32.xlu1 %v6596_v19, %s6661_s2  ;;  %6582 = vrot.lane.b32.xlu0 %v6581_v59, %s6661_s2  ;;  %v4375_v30 = vsel %vm986_vm4, %v4056_v46, %v4374_v12  ;;  %v4435_v56 = vsel %vm4172_vm10, %v4201_v39, %v4434_v48  ;;  %v4404_v59 = vrot.slane %v10859_v14, 6 }
 0x555   :  { %4813 = vmatprep.mubr.f32.mxu1 %v10555_v50  ;;  %v6606_v36 = vpack.i.bf16 %v4257_v27, %v4375_v30  ;;  %v4320_v50 = vrot.slane %v10777_v3, 3  ;;  %v4351_v10 = vsel %vm819_vm3, %v3997_v25, %v4350_v11  ;;  %v10959_v27 = vld [vmem:[%s11469_s4 + $0x370] sm:$0xff]  ;;  %v6459_v30 = vunpack.i.l.bf16 %v10909_v0 }
 0x556   :  { %v10922_v9 = vpop.permute.xlu0 %6467  ;;  %v10945_v46 = vpop.permute.xlu1 %6472 }
 0x557   :  { %v3746_v24 = vpop.f32.mrf.mxu0  ;;  %4814 = vmatmul.mubr.f32.vlgmr.msra.gmra.mxu1 %v10558_v40  ;;  %v4255_v40 = vsel %vm487_vm2, %v10822_v15, %v4254_v42  ;;  %v4323_v22 = vsel %vm3910_vm9, %v4320_v50, %v4322_v32 }
 0x558   :  { %v10925_v43 = vadd.f32 %v3746_v24, %v10083_v2  ;;  %6607 = vrot.lane.b32.xlu1 %v6606_v36, %s6656_s28  ;;  %6587 = vrot.lane.b32.xlu0 %v6586_v23, %s6663_s1  ;;  %v6591_v26 = vpack.i.bf16 %v4255_v40, %v4057_v52  ;;  %v6616_v19 = vpack.i.bf16 %v4323_v22, %v4435_v56  ;;  %v4324_v23 = vrot.slane %v10859_v14, 3 }
 0x559   :  { %4818 = vmatprep.mubr.f32.mxu1 %v10710_v34  ;;  %v3748_v47 = vpop.f32.mrf.mxu0  ;;  %5812 = vmatpush3.msra.mxu1 %v10920_v33  ;;  %v4202_v34 = vsel %vm4172_vm10, %v4199_v13, %v4201_v39  ;;  %v4353_v13 = vsel %vm819_vm3, %v4350_v11, %v4352_v35  ;;  %v4321_v39 = vsel %vm3910_vm9, %v10846_v20, %v4320_v50  ;;  %v6460_v52 = vunpack.i.h.bf16 %v10909_v0 }
 0x55a   :  { %11941 = vst [vmem:[#allocation42_spill] sm:$0xff] %v10925_v43  ;;  %v4406_v4 = vrot.slane %v10925_v43, 6  ;;  %v4436_v42 = vrot.slane %v10925_v43, 7  ;;  %5797 = vmatprep.subr.mxu1 %v10935_v31  ;;  %v6464_v24 = vunpack.i.l.bf16 %v10878_v7  ;;  %v6478_v56 = vpop.permute.xlu0 %6477  ;;  %v6601_v35 = vpack.i.bf16 %v4321_v39, %v4202_v34  ;;  %v11000_v47 = vld [vmem:[%s11469_s4 + $0x368] sm:$0xff] }
 0x55b   :  { %4819 = vmatmul.mubr.f32.gmra.mxu1 %v10718_v16  ;;  %v4292_v16 = vsel %vm652_vm1, %v4289_v8, %v4291_v51  ;;  %v6465_v50 = vunpack.i.h.bf16 %v10878_v7  ;;  %v6475_v11 = vunpack.i.h.bf16 %v10945_v46  ;;  %v4258_v40 = vrot.slane %v10859_v14, 1 }
 0x55c   :  { %6617 = vrot.lane.b32.xlu1 %v6616_v19, %s6663_s1  ;;  %6592 = vrot.lane.b32.xlu0 %v6591_v26, %s6656_s28  ;;  %v4407_v25 = vsel %vm1153_vm5, %v4404_v59, %v4406_v4  ;;  %v6474_v22 = vunpack.i.l.bf16 %v10945_v46  ;;  %v6470_v7 = vunpack.i.h.bf16 %v10922_v9  ;;  %v6469_v26 = vunpack.i.l.bf16 %v10922_v9  ;;  %v6483_v19 = vpop.permute.xlu1 %6482 }
 0x55d   :  { %4823 = vmatprep.mubr.f32.mxu1 %v10749_v49  ;;  %v3751_v36 = vpop.f32.mrf.mxu0  ;;  %v6626_v57 = vpack.i.bf16 %v4292_v16, %v4407_v25  ;;  %5813 = vmatpush3.msra.mxu1 %v10959_v27  ;;  %v10988_v49 = vld [vmem:[%s11469_s4 + $0x3e8] sm:$0xff]  ;;  %v6479_v34 = vunpack.i.l.bf16 %v6478_v56  ;;  %v4325_v9 = vsel %vm3910_vm9, %v4322_v32, %v4324_v23  ;;  %v4563_v46 = vsel %vm64_vm0, %v4351_v10, %v6459_v30  ;;  %v11032_v32 = vld [vmem:[%s11469_s4 + $0x360] sm:$0xff] }
 0x55e   :  { %v10982_v61 = vadd.f32 %v3751_v36, %v10083_v2  ;;  %v4437_v2 = vsel %vm4172_vm10, %v4434_v48, %v4436_v42  ;;  %v11011_v48 = vld [vmem:[%s11469_s4 + $0x3e0] sm:$0xff]  ;;  %5798 = vmatprep.subr.mxu1 %v10988_v49  ;;  %v4569_v36 = vsel %vm1867_vm13, %v4563_v46, %v6464_v24  ;;  %v11558_v10 = vrot.slane %v10925_v43, 4 }
 0x55f   :  { %4824 = vmatmul.mubr.f32.gmra.mxu1 %v10752_v37  ;;  %v3753_v0 = vpop.f32.mrf.mxu0  ;;  %v6631_v25 = vpack.i.bf16 %v4325_v9, %v4437_v2  ;;  %v4376_v30 = vrot.slane %v10925_v43, 5  ;;  %v6480_v39 = vunpack.i.h.bf16 %v6478_v56  ;;  %v6485_v24 = vunpack.i.h.bf16 %v6483_v19 }
 0x560   :  { %v4438_v37 = vrot.slane %v10982_v61, 7  ;;  %6627 = vrot.lane.b32.xlu1 %v6626_v57, %s6661_s2  ;;  %6602 = vrot.lane.b32.xlu0 %v6601_v35, %s6663_s1  ;;  %v4360_v16 = vrot.slane %v10982_v61, 4  ;;  %v4542_v57 = vsel %vm64_vm0, %v10251_v54, %v6460_v52  ;;  %v4575_v52 = vsel %vm3402_vm6, %v4569_v36, %v6469_v26 }
 0x561   :  { %4828 = vmatprep.mubr.f32.mxu1 %v10869_v41  ;;  %v4405_v41 = vsel %vm1153_vm5, %v4128_v5, %v4404_v59  ;;  %5814 = vmatpush3.msra.mxu1 %v11000_v47  ;;  %v11042_v5 = vld [vmem:[%s11469_s4 + $0x3d8] sm:$0xff]  ;;  %v6484_v59 = vunpack.i.l.bf16 %v6483_v19  ;;  %v4549_v56 = vsel %vm1867_vm13, %v4542_v57, %v6465_v50  ;;  %v4378_v50 = vrot.slane %v10982_v61, 5  ;;  %v11093_v19 = vld [vmem:[%s11469_s4 + $0x350] sm:$0xff] }
 0x562   :  { %v4439_v54 = vsel %vm4172_vm10, %v4436_v42, %v4438_v37  ;;  %5799 = vmatprep.subr.mxu1 %v11011_v48  ;;  %v4564_v42 = vsel %vm64_vm0, %v4353_v13, %v6474_v22  ;;  %v11059_v0 = vsel %vm819_vm3, %v11558_v10, %v4360_v16  ;;  %v4556_v2 = vsel %vm3402_vm6, %v4549_v56, %v6470_v7  ;;  %v11069_v13 = vld [vmem:[%s11469_s4 + $0x358] sm:$0xff]  ;;  %v11151_v57 = vld [vmem:[%s11469_s4 + $0x330] sm:$0xff]  ;;  %v11227_v56 = vld [vmem:[%s11469_s4 + $0x300] sm:$0xff] }
 0x563   :  { %4829 = vmatmul.mubr.f32.gmra.mxu1 %v10872_v53  ;;  %v4290_v53 = vsel %vm652_vm1, %v4287_v38, %v4289_v8  ;;  %v4570_v35 = vsel %vm1867_vm13, %v4564_v42, %v6479_v34  ;;  %11942 = vst [vmem:[#allocation39_spill] sm:$0xff] %v11059_v0  ;;  %v6646_v26 = vpack.i.bf16 %v4439_v54, %v10846_v20  ;;  %v4408_v34 = vrot.slane %v10982_v61, 6  ;;  %v11115_v61 = vld [vmem:[%s11469_s4 + $0x3c0] sm:$0xff]  ;;  %v11182_v54 = vld [vmem:[%s11469_s4 + $0x398] sm:$0xff]  ;;  %v11215_v42 = vld [vmem:[%s11469_s4 + $0x308] sm:$0xff] }
 0x564   :  { %6632 = vrot.lane.b32.xlu1 %v6631_v25, %s6663_s1  ;;  %4272 = vrot.lane.b32.xlu0 %v4258_v40, %s6656_s28  ;;  %v6611_v38 = vpack.i.bf16 %v4290_v53, %v4405_v41  ;;  %v4543_v8 = vsel %vm64_vm0, %v10278_v63, %v6475_v11  ;;  %v4377_v20 = vsel %vm986_vm4, %v4374_v12, %v4376_v30  ;;  %v11079_v63 = vld [vmem:[%s11469_s4 + $0x3d0] sm:$0xff]  ;;  %v11131_v25 = vld [vmem:[%s11469_s4 + $0x3b8] sm:$0xff] }
 0x565   :  { %4833 = vmatprep.mubr.f32.mxu1 %v4575_v52  ;;  %5815 = vmatpush3.msra.mxu1 %v11032_v32  ;;  %v4550_v22 = vsel %vm1867_vm13, %v4543_v8, %v6480_v39  ;;  %v4576_v11 = vsel %vm3402_vm6, %v4570_v35, %v6484_v59  ;;  %v4259_v7 = vsel %vm487_vm2, %v4256_v44, %v4258_v40  ;;  %v11100_v44 = vld [vmem:[%s11469_s4 + $0x3c8] sm:$0xff]  ;;  %v11176_v39 = vld [vmem:[%s11469_s4 + $0x320] sm:$0xff]  ;;  %v11191_v59 = vld [vmem:[%s11469_s4 + $0x318] sm:$0xff]  ;;  %v11943_v35 = vmov 0.0  }
 0x566   :  { %5800 = vmatprep.subr.mxu1 %v11042_v5  ;;  %v4557_v12 = vsel %vm3402_vm6, %v4550_v22, %v6485_v24  ;;  %v6621_v37 = vpack.i.bf16 %v4259_v7, %v4377_v20  ;;  %v4379_v16 = vsel %vm986_vm4, %v4376_v30, %v4378_v50  ;;  %v11109_v40 = vld [vmem:[%s11469_s4 + $0x348] sm:$0xff]  ;;  %v4409_v46 = vsel %vm1153_vm5, %v4406_v4, %v4408_v34  ;;  %v11144_v4 = vld [vmem:[%s11469_s4 + $0x3b0] sm:$0xff]  ;;  %v11170_v30 = vld [vmem:[%s11469_s4 + $0x3a0] sm:$0xff] }
 0x567   :  { %4834 = vmatmul.mubr.f32.gmra.mxu1 %v4556_v2  ;;  %v6636_v9 = vpack.i.bf16 %v4379_v16, %v10822_v15  ;;  %v11138_v15 = vld [vmem:[%s11469_s4 + $0x338] sm:$0xff]  ;;  %v6641_v36 = vpack.i.bf16 %v4409_v46, %v10836_v60  ;;  %v11157_v41 = vld [vmem:[%s11469_s4 + $0x3a8] sm:$0xff]  ;;  %v11197_v52 = vld [vmem:[%s11469_s4 + $0x390] sm:$0xff]  ;;  %4865 = vst [vmem:[%s11470_s6 + $0x38] sm:$0xff] %v11943_v35  ;;  %v3999_v22 = vrot.slane %v10461_v1, 4 }
 0x568   :  { %6647 = vrot.lane.b32.xlu1 %v6646_v26, %s6663_s1  ;;  %6612 = vrot.lane.b32.xlu0 %v6611_v38, %s6661_s2  ;;  %v11164_v60 = vld [vmem:[%s11469_s4 + $0x328] sm:$0xff]  ;;  %v11221_v24 = vld [vmem:[%s11469_s4 + $0x380] sm:$0xff]  ;;  %v4000_v38 = vrot.slane %v10512_v58, 4 }
 0x569   :  { %4838 = vmatprep.mubr.f32.mxu1 %v4576_v11  ;;  %5816 = vmatpush3.msra.mxu1 %v11069_v13  ;;  %v11209_v53 = vld [vmem:[%s11469_s4 + $0x388] sm:$0xff]  ;;  %5322 = vst [vmem:[%s11470_s6 + $0x78] sm:$0xff] %v11943_v35 }
 0x56a   :  { %5801 = vmatprep.subr.mxu1 %v11079_v63 }
 0x56b   :  { %4839 = vmatmul.mubr.f32.gmra.mxu1 %v4557_v12 }
 0x56c   :  { %4305 = vrot.lane.b32.xlu1 %v4291_v51, %s6661_s2  ;;  %6622 = vrot.lane.b32.xlu0 %v6621_v37, %s6656_s28  ;;  %v11122_v51 = vld [vmem:[%s11469_s4 + $0x340] sm:$0xff]  ;;  %v4001_v37 = vsel %vm819_vm3, %v3999_v22, %v4000_v38 }
 0x56d   :  { %5817 = vmatpush3.msra.mxu1 %v11093_v19 }
 0x56e   :  { %5802 = vmatprep.subr.mxu1 %v11100_v44 }
 0x56f   :  { %5818 = vmatpush3.msra.mxu1 %v11109_v40 }
 0x570   :  { %6637 = vrot.lane.b32.xlu0 %v6636_v9, %s6656_s28  ;;  %5803 = vmatprep.subr.mxu1 %v11115_v61 }
 0x571   :  { %5819 = vmatpush3.msra.mxu1 %v11122_v51 }
 0x572   :  { %5804 = vmatprep.subr.mxu1 %v11131_v25 }
 0x573   :  { %5820 = vmatpush3.msra.mxu1 %v11138_v15 }
 0x574   :  { %6642 = vrot.lane.b32.xlu0 %v6641_v36, %s6661_s2  ;;  %5805 = vmatprep.subr.mxu1 %v11144_v4 }
 0x575   :  { %5821 = vmatpush3.msra.mxu1 %v11151_v57 }
 0x576   :  { %5806 = vmatprep.subr.mxu1 %v11157_v41 }
 0x577   :  { %5822 = vmatpush3.msra.mxu1 %v11164_v60 }
 0x578   :  { %4338 = vrot.lane.b32.xlu0 %v4324_v23, %s6663_s1  ;;  %5807 = vmatprep.subr.mxu1 %v11170_v30  ;;  %v11203_v23 = vld [vmem:[%s11469_s4 + $0x310] sm:$0xff] }
 0x579   :  { %5823 = vmatpush3.msra.mxu1 %v11176_v39 }
 0x57a   :  { %5808 = vmatprep.subr.mxu1 %v11182_v54 }
 0x57b   :  { %5824 = vmatpush3.msra.mxu1 %v11191_v59 }
 0x57c   :  { %5809 = vmatprep.subr.mxu1 %v11197_v52 }
 0x57d   :  { %5825 = vmatpush3.msra.mxu1 %v11203_v23 }
 0x57e   :  { %5810 = vmatprep.subr.mxu1 %v11209_v53 }
 0x57f   :  { %5826 = vmatpush3.msra.mxu1 %v11215_v42 }
 0x580   :  { %5811 = vmatprep.subr.mxu1 %v11221_v24 }
 0x581   :  { %5827 = vmatpush3.msra.mxu1 %v11227_v56 }
 0x59a   :  { %v6488_v2 = vpop.permute.xlu1 %6487 }
 0x59b   :  { %v6498_v26 = vpop.permute.xlu0 %6497  ;;  %v6490_v8 = vunpack.i.h.bf16 %v6488_v2  ;;  %v6489_v50 = vunpack.i.l.bf16 %v6488_v2 }
 0x59c   :  { %v6500_v16 = vunpack.i.h.bf16 %v6498_v26  ;;  %v6499_v9 = vunpack.i.l.bf16 %v6498_v26 }
 0x59d   :  { %v4465_v34 = vsel %vm64_vm0, %v10455_v28, %v6490_v8  ;;  %v4507_v46 = vsel %vm64_vm0, %v4001_v37, %v6489_v50 }
 0x59e   :  { %v6493_v20 = vpop.permute.xlu1 %6492 }
 0x59f   :  { %v6495_v11 = vunpack.i.h.bf16 %v6493_v20  ;;  %v6494_v7 = vunpack.i.l.bf16 %v6493_v20  ;;  %v6518_v12 = vpop.permute.xlu0 %6517  ;;  %v4002_v20 = vrot.slane %v10549_v18, 4 }
 0x5a0   :  { %v6520_v0 = vunpack.i.h.bf16 %v6518_v12  ;;  %v6519_v22 = vunpack.i.l.bf16 %v6518_v12 }
 0x5a1   :  { %v4479_v36 = vsel %vm1867_vm13, %v4465_v34, %v6495_v11  ;;  %v4521_v35 = vsel %vm1867_vm13, %v4507_v46, %v6494_v7  ;;  %v4003_v50 = vsel %vm819_vm3, %v4000_v38, %v4002_v20 }
 0x5a2   :  { %v6503_v2 = vpop.permute.xlu1 %6502  ;;  %v4535_v10 = vsel %vm3402_vm6, %v4521_v35, %v6499_v9  ;;  %v4493_v29 = vsel %vm3402_vm6, %v4479_v36, %v6500_v16  ;;  %v4565_v34 = vsel %vm64_vm0, %v10368_v6, %v6519_v22  ;;  %v4508_v12 = vsel %vm64_vm0, %v4003_v50, %v6520_v0 }
 0x5a3   :  { %v6523_v43 = vpop.permute.xlu0 %6522  ;;  %4995 = vmatprep.mubr.f32.mxu0 %v4535_v10  ;;  %v6505_v11 = vunpack.i.h.bf16 %v6503_v2  ;;  %v6504_v7 = vunpack.i.l.bf16 %v6503_v2 }
 0x5a4   :  { %4996 = vmatmul.mubr.f32.vlgmr.msra.gmra.mxu0 %v4493_v29  ;;  %v6525_v28 = vunpack.i.h.bf16 %v6523_v43  ;;  %v6524_v26 = vunpack.i.l.bf16 %v6523_v43 }
 0x5a5   :  { %5565 = vmatpush3.msra.mxu0 %v10920_v33  ;;  %v4466_v46 = vsel %vm64_vm0, %v10461_v1, %v6505_v11  ;;  %v4004_v1 = vrot.slane %v10636_v62, 4 }
 0x5a6   :  { %v6508_v8 = vpop.permute.xlu1 %6507  ;;  %5566 = vmatprep.subr.mxu0 %v10935_v31  ;;  %v4571_v33 = vsel %vm1867_vm13, %v4565_v34, %v6524_v26  ;;  %v4522_v31 = vsel %vm1867_vm13, %v4508_v12, %v6525_v28 }
 0x5a7   :  { %v6528_v37 = vpop.permute.xlu0 %6527  ;;  %5567 = vmatpush3.msra.mxu0 %v10959_v27  ;;  %v6510_v29 = vunpack.i.h.bf16 %v6508_v8  ;;  %v6509_v10 = vunpack.i.l.bf16 %v6508_v8 }
 0x5a8   :  { %v6530_v43 = vunpack.i.h.bf16 %v6528_v37  ;;  %v6529_v16 = vunpack.i.l.bf16 %v6528_v37  ;;  %5568 = vmatprep.subr.mxu0 %v10988_v49  ;;  %v4544_v49 = vsel %vm64_vm0, %v10287_v17, %v6504_v7 }
 0x5a9   :  { %5569 = vmatpush3.msra.mxu0 %v11000_v47  ;;  %v4551_v36 = vsel %vm1867_vm13, %v4544_v49, %v6509_v10  ;;  %v4480_v47 = vsel %vm1867_vm13, %v4466_v46, %v6510_v29 }
 0x5aa   :  { %v6513_v38 = vpop.permute.xlu1 %6512  ;;  %v4577_v9 = vsel %vm3402_vm6, %v4571_v33, %v6529_v16  ;;  %v4536_v6 = vsel %vm3402_vm6, %v4522_v31, %v6530_v43  ;;  %5570 = vmatprep.subr.mxu0 %v11011_v48 }
 0x5ab   :  { %v6515_v27 = vunpack.i.h.bf16 %v6513_v38  ;;  %v6514_v0 = vunpack.i.l.bf16 %v6513_v38  ;;  %4843 = vmatprep.mubr.f32.mxu1 %v4577_v9  ;;  %5000 = vmatprep.mubr.f32.mxu0 %v4536_v6 }
 0x5ac   :  { %5571 = vmatpush3.msra.mxu0 %v11032_v32 }
 0x5ad   :  { %v4558_v35 = vsel %vm3402_vm6, %v4551_v36, %v6514_v0  ;;  %v4494_v48 = vsel %vm3402_vm6, %v4480_v47, %v6515_v27  ;;  %5572 = vmatprep.subr.mxu0 %v11042_v5 }
 0x5ae   :  { %v6533_v2 = vpop.permute.xlu1 %6532  ;;  %4844 = vmatmul.mubr.f32.gmra.mxu1 %v4558_v35  ;;  %5001 = vmatmul.mubr.f32.gmra.mxu0 %v4494_v48 }
 0x5af   :  { %5573 = vmatpush3.msra.mxu0 %v11069_v13  ;;  %v6535_v32 = vunpack.i.h.bf16 %v6533_v2  ;;  %v6534_v22 = vunpack.i.l.bf16 %v6533_v2 }
 0x5b0   :  { %5574 = vmatprep.subr.mxu0 %v11079_v63  ;;  %v4005_v63 = vsel %vm819_vm3, %v4002_v20, %v4004_v1 }
 0x5b1   :  { %5575 = vmatpush3.msra.mxu0 %v11093_v19  ;;  %v4467_v50 = vsel %vm64_vm0, %v10512_v58, %v6535_v32 }
 0x5b2   :  { %v6538_v17 = vpop.permute.xlu1 %6537  ;;  %5576 = vmatprep.subr.mxu0 %v11100_v44  ;;  %v4509_v44 = vsel %vm64_vm0, %v4005_v63, %v6534_v22  ;;  %v4012_v63 = vrot.slane %v10831_v21, 4 }
 0x5b3   :  { %5577 = vmatpush3.msra.mxu0 %v11109_v40  ;;  %v6540_v28 = vunpack.i.h.bf16 %v6538_v17  ;;  %v6539_v5 = vunpack.i.l.bf16 %v6538_v17 }
 0x5b4   :  { %5578 = vmatprep.subr.mxu0 %v11115_v61 }
 0x5b5   :  { %5579 = vmatpush3.msra.mxu0 %v11122_v51  ;;  %v4523_v40 = vsel %vm1867_vm13, %v4509_v44, %v6539_v5  ;;  %v4481_v61 = vsel %vm1867_vm13, %v4467_v50, %v6540_v28 }
 0x5b6   :  { %v6543_v13 = vpop.permute.xlu1 %6542  ;;  %v6563_v26 = vpop.permute.xlu0 %6562  ;;  %5580 = vmatprep.subr.mxu0 %v11131_v25  ;;  %v4008_v25 = vrot.slane %v10743_v55, 4 }
 0x5b7   :  { %v6545_v19 = vunpack.i.h.bf16 %v6543_v13  ;;  %v6544_v8 = vunpack.i.l.bf16 %v6543_v13  ;;  %5581 = vmatpush3.msra.mxu0 %v11138_v15  ;;  %v6565_v11 = vunpack.i.h.bf16 %v6563_v26  ;;  %v6564_v7 = vunpack.i.l.bf16 %v6563_v26 }
 0x5b8   :  { %5582 = vmatprep.subr.mxu0 %v11144_v4  ;;  %v4006_v15 = vrot.slane %v10707_v45, 4 }
 0x5b9   :  { %v4537_v51 = vsel %vm3402_vm6, %v4523_v40, %v6544_v8  ;;  %v4495_v20 = vsel %vm3402_vm6, %v4481_v61, %v6545_v19  ;;  %5583 = vmatpush3.msra.mxu0 %v11151_v57  ;;  %v4469_v57 = vsel %vm64_vm0, %v10636_v62, %v6565_v11 }
 0x5ba   :  { %v6548_v37 = vpop.permute.xlu1 %6547  ;;  %v6568_v58 = vpop.permute.xlu0 %6567  ;;  %5005 = vmatprep.mubr.f32.mxu0 %v4537_v51  ;;  %5584 = vmatprep.subr.mxu0 %v11157_v41  ;;  %v4009_v12 = vsel %vm819_vm3, %v4006_v15, %v4008_v25  ;;  %v4007_v0 = vsel %vm819_vm3, %v4004_v1, %v4006_v15 }
 0x5bb   :  { %5006 = vmatmul.mubr.f32.gmra.mxu0 %v4495_v20  ;;  %v6570_v34 = vunpack.i.h.bf16 %v6568_v58  ;;  %v6569_v4 = vunpack.i.l.bf16 %v6568_v58  ;;  %v4511_v41 = vsel %vm64_vm0, %v4009_v12, %v6564_v7  ;;  %v6550_v43 = vunpack.i.h.bf16 %v6548_v37 }
 0x5bc   :  { %5585 = vmatpush3.msra.mxu0 %v11164_v60  ;;  %v6549_v16 = vunpack.i.l.bf16 %v6548_v37 }
 0x5bd   :  { %5586 = vmatprep.subr.mxu0 %v11170_v30  ;;  %v4483_v60 = vsel %vm1867_vm13, %v4469_v57, %v6570_v34  ;;  %v4525_v30 = vsel %vm1867_vm13, %v4511_v41, %v6569_v4 }
 0x5be   :  { %v6553_v29 = vpop.permute.xlu1 %6552  ;;  %v6573_v10 = vpop.permute.xlu0 %6572  ;;  %5587 = vmatpush3.msra.mxu0 %v11176_v39  ;;  %v4510_v46 = vsel %vm64_vm0, %v4007_v0, %v6549_v16 }
 0x5bf   :  { %v6575_v33 = vunpack.i.h.bf16 %v6573_v10  ;;  %v6574_v31 = vunpack.i.l.bf16 %v6573_v10  ;;  %5588 = vmatprep.subr.mxu0 %v11182_v54  ;;  %v6555_v38 = vunpack.i.h.bf16 %v6553_v29  ;;  %v6554_v9 = vunpack.i.l.bf16 %v6553_v29 }
 0x5c0   :  { %5589 = vmatpush3.msra.mxu0 %v11191_v59  ;;  %v4468_v59 = vsel %vm64_vm0, %v10549_v18, %v6550_v43  ;;  %v4010_v18 = vrot.slane %v10777_v3, 4  ;;  %v4356_v10 = vrot.slane %v10859_v14, 4 }
 0x5c1   :  { %v4539_v62 = vsel %vm3402_vm6, %v4525_v30, %v6574_v31  ;;  %v4497_v6 = vsel %vm3402_vm6, %v4483_v60, %v6575_v33  ;;  %5590 = vmatprep.subr.mxu0 %v11197_v52  ;;  %v4524_v36 = vsel %vm1867_vm13, %v4510_v46, %v6554_v9  ;;  %v4482_v52 = vsel %vm1867_vm13, %v4468_v59, %v6555_v38 }
 0x5c2   :  { %v6558_v39 = vpop.permute.xlu1 %6557  ;;  %v6578_v27 = vpop.permute.xlu0 %6577  ;;  %5100 = vmatprep.mubr.f32.mxu1 %v4539_v62  ;;  %5591 = vmatpush3.msra.mxu0 %v11203_v23  ;;  %v4357_v60 = vsel %vm819_vm3, %v4012_v63, %v4356_v10 }
 0x5c3   :  { %v6560_v54 = vunpack.i.h.bf16 %v6558_v39  ;;  %v6559_v49 = vunpack.i.l.bf16 %v6558_v39  ;;  %5101 = vmatmul.mubr.f32.vlgmr.msra.gmra.mxu1 %v4497_v6  ;;  %5592 = vmatprep.subr.mxu0 %v11209_v53  ;;  %v6580_v53 = vunpack.i.h.bf16 %v6578_v27  ;;  %v6579_v2 = vunpack.i.l.bf16 %v6578_v27 }
 0x5c4   :  { %5593 = vmatpush3.msra.mxu0 %v11215_v42 }
 0x5c5   :  { %v11324_v47 = vsel %vm3402_vm6, %v4524_v36, %v6559_v49  ;;  %v11327_v23 = vsel %vm3402_vm6, %v4482_v52, %v6560_v54  ;;  %5594 = vmatprep.subr.mxu0 %v11221_v24  ;;  %v4011_v24 = vsel %vm819_vm3, %v4008_v25, %v4010_v18 }
 0x5c6   :  { %v6598_v35 = vpop.permute.xlu1 %6597  ;;  %v6583_v48 = vpop.permute.xlu0 %6582  ;;  %5010 = vmatprep.mubr.f32.mxu0 %v11324_v47  ;;  %5595 = vmatpush3.msra.mxu0 %v11227_v56  ;;  %v4512_v5 = vsel %vm64_vm0, %v4011_v24, %v6579_v2  ;;  %v4470_v56 = vsel %vm64_vm0, %v10707_v45, %v6580_v53  ;;  %v4013_v45 = vsel %vm819_vm3, %v4010_v18, %v4012_v63 }
 0x5c7   :  { %5011 = vmatmul.mubr.f32.gmra.mxu0 %v11327_v23  ;;  %v6585_v42 = vunpack.i.h.bf16 %v6583_v48  ;;  %v6584_v17 = vunpack.i.l.bf16 %v6583_v48  ;;  %v6600_v25 = vunpack.i.h.bf16 %v6598_v35  ;;  %v6599_v11 = vunpack.i.l.bf16 %v6598_v35  ;;  %v11944_v35 = vld [vmem:[#allocation42_spill] sm:$0xff] }
 0x5c8   :  { %5015 = vmatprep.mubr.f32.mxu0 %v4539_v62  ;;  %v11945_v48 = vrot.slane %v11944_v35, 4 }
 0x5c9   :  { %v4526_v13 = vsel %vm1867_vm13, %v4512_v5, %v6584_v17  ;;  %v4484_v26 = vsel %vm1867_vm13, %v4470_v56, %v6585_v42 }
 0x5ca   :  { %v6608_v1 = vpop.permute.xlu1 %6607  ;;  %v6588_v32 = vpop.permute.xlu0 %6587  ;;  %v4359_v18 = vsel %vm819_vm3, %v4356_v10, %v11945_v48 }
 0x5cb   :  { %v6590_v22 = vunpack.i.h.bf16 %v6588_v32  ;;  %v6589_v28 = vunpack.i.l.bf16 %v6588_v32  ;;  %5016 = vmatmul.mubr.f32.gmra.mxu0 %v4497_v6  ;;  %v6610_v41 = vunpack.i.h.bf16 %v6608_v1  ;;  %v6609_v43 = vunpack.i.l.bf16 %v6608_v1 }
 0x5cd   :  { %v4540_v19 = vsel %vm3402_vm6, %v4526_v13, %v6589_v28  ;;  %v4498_v8 = vsel %vm3402_vm6, %v4484_v26, %v6590_v22  ;;  %v4566_v62 = vsel %vm64_vm0, %v4357_v60, %v6609_v43  ;;  %v4546_v6 = vsel %vm64_vm0, %v10777_v3, %v6610_v41 }
 0x5ce   :  { %v6593_v44 = vpop.permute.xlu0 %6592  ;;  %5020 = vmatprep.mubr.f32.mxu0 %v4540_v19  ;;  %5105 = vmatprep.mubr.f32.mxu1 %v4540_v19  ;;  %v6618_v61 = vpop.permute.xlu1 %6617 }
 0x5cf   :  { %v6595_v50 = vunpack.i.h.bf16 %v6593_v44  ;;  %v6594_v40 = vunpack.i.l.bf16 %v6593_v44  ;;  %5021 = vmatmul.mubr.f32.gmra.mxu0 %v4498_v8  ;;  %5106 = vmatmul.mubr.f32.gmra.mxu1 %v4498_v8  ;;  %v6620_v38 = vunpack.i.h.bf16 %v6618_v61  ;;  %v6619_v9 = vunpack.i.l.bf16 %v6618_v61 }
 0x5d1   :  { %v4513_v51 = vsel %vm64_vm0, %v4013_v45, %v6594_v40  ;;  %v4545_v20 = vsel %vm64_vm0, %v10743_v55, %v6595_v50  ;;  %v11946_v40 = vld [vmem:[#allocation39_spill] sm:$0xff] }
 0x5d2   :  { %v6603_v7 = vpop.permute.xlu0 %6602  ;;  %v4527_v15 = vsel %vm1867_vm13, %v4513_v51, %v6599_v11  ;;  %v4552_v34 = vsel %vm1867_vm13, %v4545_v20, %v6600_v25  ;;  %v6628_v57 = vpop.permute.xlu1 %6627 }
 0x5d3   :  { %v6605_v37 = vunpack.i.h.bf16 %v6603_v7  ;;  %v6604_v58 = vunpack.i.l.bf16 %v6603_v7  ;;  %v6630_v36 = vunpack.i.h.bf16 %v6628_v57  ;;  %v6629_v52 = vunpack.i.l.bf16 %v6628_v57 }
 0x5d5   :  { %v4541_v4 = vsel %vm3402_vm6, %v4527_v15, %v6604_v58  ;;  %v4559_v12 = vsel %vm3402_vm6, %v4552_v34, %v6605_v37 }
 0x5d6   :  { %v4273_v29 = vpop.permute.xlu0 %4272  ;;  %5025 = vmatprep.mubr.f32.mxu0 %v4541_v4  ;;  %5110 = vmatprep.mubr.f32.mxu1 %v4541_v4  ;;  %v6633_v30 = vpop.permute.xlu1 %6632 }
 0x5d7   :  { %5111 = vmatmul.mubr.f32.gmra.mxu1 %v4559_v12  ;;  %v6635_v3 = vunpack.i.h.bf16 %v6633_v30  ;;  %v6634_v53 = vunpack.i.l.bf16 %v6633_v30  ;;  %v5437_v8 = vpop.f32.mrf.mxu1  ;;  %v4548_v45 = vsel %vm64_vm0, %v10859_v14, %v4273_v29 }
 0x5d9   :  { %v5438_v58 = vpop.f32.mrf.mxu1 }
 0x5da   :  { %v6613_v16 = vpop.permute.xlu0 %6612  ;;  %v6648_v2 = vpop.permute.xlu1 %6647 }
 0x5db   :  { %v6615_v33 = vunpack.i.h.bf16 %v6613_v16  ;;  %v6614_v31 = vunpack.i.l.bf16 %v6613_v16  ;;  %v6650_v44 = vunpack.i.h.bf16 %v6648_v2  ;;  %v11947_v16 = vld [vmem:[#allocation6_spill] sm:$0xff] }
 0x5dc   :  { %v5440_v14 = vpop.f32.mrf.mxu1 }
 0x5dd   :  { %v4572_v39 = vsel %vm1867_vm13, %v4566_v62, %v6614_v31  ;;  %v4553_v27 = vsel %vm1867_vm13, %v4546_v6, %v6615_v33  ;;  %v4647_v33 = vsub.s32 2, %v11947_v16 }
 0x5de   :  { %v4578_v0 = vsel %vm3402_vm6, %v4572_v39, %v6619_v9  ;;  %v4560_v54 = vsel %vm3402_vm6, %v4553_v27, %v6620_v38  ;;  %v6623_v49 = vpop.permute.xlu0 %6622  ;;  %v4306_v26 = vpop.permute.xlu1 %4305 }
 0x5df   :  { %5115 = vmatprep.mubr.f32.mxu1 %v4578_v0  ;;  %v6625_v46 = vunpack.i.h.bf16 %v6623_v49  ;;  %v6624_v59 = vunpack.i.l.bf16 %v6623_v49  ;;  %v4555_v25 = vsel %vm1867_vm13, %v4548_v45, %v4306_v26  ;;  %v5441_v15 = vpop.f32.mrf.mxu1 }
 0x5e0   :  { %5116 = vmatmul.mubr.f32.gmra.mxu1 %v4560_v54  ;;  %v5442_v39 = vadd.f32 %v5441_v15, %v5440_v14 }
 0x5e1   :  { %v4567_v42 = vsel %vm64_vm0, %v4359_v18, %v6624_v59  ;;  %v4547_v17 = vsel %vm64_vm0, %v10831_v21, %v6625_v46  ;;  %v6649_v21 = vunpack.i.l.bf16 %v6648_v2 }
 0x5e2   :  { %v6638_v1 = vpop.permute.xlu0 %6637  ;;  %v4573_v32 = vsel %vm1867_vm13, %v4567_v42, %v6629_v52  ;;  %v4554_v24 = vsel %vm1867_vm13, %v4547_v17, %v6630_v36 }
 0x5e3   :  { %v4579_v22 = vsel %vm3402_vm6, %v4573_v32, %v6634_v53  ;;  %v4561_v28 = vsel %vm3402_vm6, %v4554_v24, %v6635_v3  ;;  %v6640_v5 = vunpack.i.h.bf16 %v6638_v1  ;;  %v6639_v56 = vunpack.i.l.bf16 %v6638_v1  ;;  %v5443_v34 = vpop.f32.mrf.mxu1 }
 0x5e4   :  { %5120 = vmatprep.mubr.f32.mxu1 %v4579_v22 }
 0x5e5   :  { %5121 = vmatmul.mubr.f32.gmra.mxu1 %v4561_v28  ;;  %v4471_v50 = vsel %vm64_vm0, %v10743_v55, %v6639_v56  ;;  %v4568_v61 = vsel %vm64_vm0, %v11946_v40, %v6640_v5  ;;  %v5444_v4 = vpop.f32.mrf.mxu1  ;;  %vm4849_vm0 = vcmask 244736  }
 0x5e6   :  { %v6643_v13 = vpop.permute.xlu0 %6642  ;;  %v5445_v59 = vadd.f32 %v5444_v4, %v5443_v34 }
 0x5e7   :  { %v6645_v63 = vunpack.i.h.bf16 %v6643_v13  ;;  %v6644_v19 = vunpack.i.l.bf16 %v6643_v13 }
 0x5e8   :  { %v5446_v12 = vpop.f32.mrf.mxu1 }
 0x5e9   :  { %v4485_v51 = vsel %vm1867_vm13, %v4471_v50, %v6644_v19  ;;  %v4574_v20 = vsel %vm1867_vm13, %v4568_v61, %v6645_v63 }
 0x5ea   :  { %v4339_v11 = vpop.permute.xlu0 %4338  ;;  %v4499_v7 = vsel %vm3402_vm6, %v4485_v51, %v6649_v21  ;;  %v4580_v37 = vsel %vm3402_vm6, %v4574_v20, %v6650_v44  ;;  %v5447_v57 = vpop.f32.mrf.mxu1 }
 0x5eb   :  { %5026 = vmatmul.mubr.f32.gmra.mxu0 %v4499_v7  ;;  %5125 = vmatprep.mubr.f32.mxu1 %v4580_v37  ;;  %v4562_v55 = vsel %vm3402_vm6, %v4555_v25, %v4339_v11  ;;  %v5448_v53 = vadd.f32 %v5447_v57, %v5446_v12 }
 0x5ec   :  { %5095 = vmatprep.mubr.f32.mxu0 %v11324_v47  ;;  %5126 = vmatmul.mubr.f32.gmra.mxu1 %v4562_v55  ;;  %v6652_v47 = vld [vmem:[%s11468_s5] sm:$0x7] }
 0x5ed   :  { %v11390_v38 = vrot.slane %v6652_v47, %v4647_v33 }
 0x5ef   :  { %5096 = vmatmul.mubr.f32.vlgmr.msra.gmra.mxu0 %v11327_v23  ;;  %v5439_v23 = vadd.f32 %v5438_v58, %v5437_v8  ;;  %v4721_v46 = vadd.f32 %v5442_v39, %v11390_v38  ;;  %v4726_v3 = vadd.f32 %v5445_v59, %v11390_v38  ;;  %v4731_v24 = vadd.f32 %v5448_v53, %v11390_v38 }
 0x5f1   :  { %v4716_v6 = vadd.f32 %v5439_v23, %v11390_v38 }
 0x5fb   :  { %v5449_v29 = vpop.f32.mrf.mxu1 }
 0x5fd   :  { %v5450_v10 = vpop.f32.mrf.mxu1 }
 0x5fe   :  { %v5451_v22 = vadd.f32 %v5450_v10, %v5449_v29 }
 0x600   :  { %v5452_v41 = vpop.f32.mrf.mxu1  ;;  %v4736_v63 = vadd.f32 %v5451_v22, %v11390_v38 }
 0x602   :  { %v5453_v43 = vpop.f32.mrf.mxu1 }
 0x603   :  { %v5454_v19 = vadd.f32 %v5453_v43, %v5452_v41 }
 0x605   :  { %v4741_v61 = vadd.f32 %v5454_v19, %v11390_v38 }
 0x613   :  { %v5455_v31 = vpop.f32.mrf.mxu1 }
 0x615   :  { %v5456_v60 = vpop.f32.mrf.mxu1 }
 0x616   :  { %v5457_v9 = vadd.f32 %v5456_v60, %v5455_v31 }
 0x617   :  { %v5490_v30 = vpop.f32.mrf.mxu1 }
 0x618   :  { %v4746_v37 = vadd.f32 %v5457_v9, %v11390_v38 }
 0x619   :  { %v5491_v62 = vpop.f32.mrf.mxu1 }
 0x61a   :  { %v5492_v27 = vadd.f32 %v5491_v62, %v5490_v30 }
 0x61b   :  { %v5493_v0 = vpop.f32.mrf.mxu1 }
 0x61c   :  { %v4816_v54 = vadd.f32 %v5492_v27, %v4716_v6 }
 0x61d   :  { %v5494_v49 = vpop.f32.mrf.mxu1 }
 0x61e   :  { %v4850_v36 = vsel %vm4849_vm0, %v4816_v54, 0.0  ;;  %v5495_v52 = vadd.f32 %v5494_v49, %v5493_v0 }
 0x61f   :  { %4858 = vst [vmem:[%s11470_s6] sm:$0xff] %v4850_v36  ;;  %v5496_v35 = vpop.f32.mrf.mxu1 }
 0x620   :  { %v4821_v48 = vadd.f32 %v5495_v52, %v4721_v46 }
 0x621   :  { %v5497_v18 = vpop.f32.mrf.mxu1 }
 0x622   :  { %v4851_v2 = vsel %vm4849_vm0, %v4821_v48, 0.0  ;;  %v5498_v42 = vadd.f32 %v5497_v18, %v5496_v35 }
 0x623   :  { %4859 = vst [vmem:[%s11470_s6 + $0x8] sm:$0xff] %v4851_v2  ;;  %v5499_v17 = vpop.f32.mrf.mxu1 }
 0x624   :  { %v4826_v1 = vadd.f32 %v5498_v42, %v4726_v3 }
 0x625   :  { %v5500_v32 = vpop.f32.mrf.mxu1 }
 0x626   :  { %v4852_v28 = vsel %vm4849_vm0, %v4826_v1, 0.0  ;;  %v5501_v5 = vadd.f32 %v5500_v32, %v5499_v17 }
 0x627   :  { %4860 = vst [vmem:[%s11470_s6 + $0x10] sm:$0xff] %v4852_v28  ;;  %v5502_v56 = vpop.f32.mrf.mxu1 }
 0x628   :  { %v4831_v13 = vadd.f32 %v5501_v5, %v4731_v24 }
 0x629   :  { %v5503_v26 = vpop.f32.mrf.mxu1 }
 0x62a   :  { %v4853_v8 = vsel %vm4849_vm0, %v4831_v13, 0.0  ;;  %v5504_v44 = vadd.f32 %v5503_v26, %v5502_v56 }
 0x62b   :  { %4861 = vst [vmem:[%s11470_s6 + $0x18] sm:$0xff] %v4853_v8  ;;  %v5505_v21 = vpop.f32.mrf.mxu1 }
 0x62c   :  { %v4836_v50 = vadd.f32 %v5504_v44, %v4736_v63 }
 0x62d   :  { %v5506_v40 = vpop.f32.mrf.mxu1 }
 0x62e   :  { %v4854_v45 = vsel %vm4849_vm0, %v4836_v50, 0.0  ;;  %v5507_v51 = vadd.f32 %v5506_v40, %v5505_v21 }
 0x62f   :  { %4862 = vst [vmem:[%s11470_s6 + $0x20] sm:$0xff] %v4854_v45 }
 0x630   :  { %v4841_v20 = vadd.f32 %v5507_v51, %v4741_v61 }
 0x632   :  { %v4855_v25 = vsel %vm4849_vm0, %v4841_v20, 0.0 }
 0x633   :  { %4863 = vst [vmem:[%s11470_s6 + $0x28] sm:$0xff] %v4855_v25 }
 0x664   :  { %v5543_v14 = vpop.f32.mrf.mxu0 }
 0x666   :  { %v5544_v4 = vpop.f32.mrf.mxu0 }
 0x667   :  { %v5545_v40 = vadd.f32 %v5544_v4, %v5543_v14 }
 0x66e   :  { %v5508_v11 = vpop.f32.mrf.mxu1  ;;  %v5546_v12 = vpop.f32.mrf.mxu0 }
 0x670   :  { %v5509_v7 = vpop.f32.mrf.mxu1  ;;  %v5547_v57 = vpop.f32.mrf.mxu0 }
 0x671   :  { %v5510_v55 = vadd.f32 %v5509_v7, %v5508_v11  ;;  %v5548_v29 = vadd.f32 %v5547_v57, %v5546_v12  ;;  %v4998_v7 = vadd.f32 %v5545_v40, %v11390_v38 }
 0x673   :  { %v4846_v58 = vadd.f32 %v5510_v55, %v4746_v37  ;;  %v5003_v43 = vadd.f32 %v5548_v29, %v11390_v38 }
 0x675   :  { %v4856_v15 = vsel %vm4849_vm0, %v4846_v58, 0.0 }
 0x676   :  { %v4857_v34 = vsel %vm3910_vm9, %v4856_v15, 0.0 }
 0x677   :  { %4864 = vst [vmem:[%s11470_s6 + $0x30] sm:$0xff] %v4857_v34 }
 0x67b   :  { %v5549_v33 = vpop.f32.mrf.mxu0 }
 0x67d   :  { %v5550_v47 = vpop.f32.mrf.mxu0 }
 0x67e   :  { %v5551_v23 = vadd.f32 %v5550_v47, %v5549_v33 }
 0x680   :  { %v5008_v6 = vadd.f32 %v5551_v23, %v11390_v38 }
 0x683   :  { %v5599_v10 = vpop.f32.mrf.mxu1 }
 0x685   :  { %v5600_v41 = vpop.f32.mrf.mxu1 }
 0x686   :  { %v5601_v16 = vadd.f32 %v5600_v41, %v5599_v10 }
 0x687   :  { %v5552_v9 = vpop.f32.mrf.mxu0 }
 0x688   :  { %v5103_v31 = vadd.f32 %v5601_v16, %v5003_v43 }
 0x689   :  { %v5553_v39 = vpop.f32.mrf.mxu0 }
 0x68a   :  { %v5132_v60 = vsel %vm4849_vm0, %v5103_v31, 0.0  ;;  %v5554_v54 = vadd.f32 %v5553_v39, %v5552_v9 }
 0x68b   :  { %5316 = vst [vmem:[%s11470_s6 + $0x48] sm:$0xff] %v5132_v60  ;;  %v5555_v49 = vpop.f32.mrf.mxu0 }
 0x68c   :  { %v5013_v52 = vadd.f32 %v5554_v54, %v11390_v38 }
 0x68d   :  { %v5556_v35 = vpop.f32.mrf.mxu0 }
 0x68e   :  { %v5557_v2 = vadd.f32 %v5556_v35, %v5555_v49 }
 0x68f   :  { %v5602_v30 = vpop.f32.mrf.mxu1  ;;  %v5558_v3 = vpop.f32.mrf.mxu0 }
 0x690   :  { %v5018_v32 = vadd.f32 %v5557_v2, %v11390_v38 }
 0x691   :  { %v5603_v62 = vpop.f32.mrf.mxu1  ;;  %v5559_v17 = vpop.f32.mrf.mxu0 }
 0x692   :  { %v5604_v27 = vadd.f32 %v5603_v62, %v5602_v30  ;;  %v5560_v22 = vadd.f32 %v5559_v17, %v5558_v3 }
 0x694   :  { %v5108_v0 = vadd.f32 %v5604_v27, %v5008_v6  ;;  %v5023_v26 = vadd.f32 %v5560_v22, %v11390_v38 }
 0x696   :  { %v5133_v46 = vsel %vm4849_vm0, %v5108_v0, 0.0 }
 0x697   :  { %5317 = vst [vmem:[%s11470_s6 + $0x50] sm:$0xff] %v5133_v46  ;;  %v5605_v59 = vpop.f32.mrf.mxu1 }
 0x699   :  { %v5606_v36 = vpop.f32.mrf.mxu1 }
 0x69a   :  { %v5607_v48 = vadd.f32 %v5606_v36, %v5605_v59 }
 0x69c   :  { %v5113_v18 = vadd.f32 %v5607_v48, %v5013_v52 }
 0x69e   :  { %v5134_v53 = vsel %vm4849_vm0, %v5113_v18, 0.0 }
 0x69f   :  { %5318 = vst [vmem:[%s11470_s6 + $0x58] sm:$0xff] %v5134_v53 }
 0x6a0   :  { %v5608_v42 = vpop.f32.mrf.mxu1 }
 0x6a2   :  { %v5609_v1 = vpop.f32.mrf.mxu1 }
 0x6a3   :  { %v5610_v24 = vadd.f32 %v5609_v1, %v5608_v42 }
 0x6a5   :  { %v5118_v28 = vadd.f32 %v5610_v24, %v5018_v32  ;;  %v5611_v5 = vpop.f32.mrf.mxu1 }
 0x6a7   :  { %v5135_v56 = vsel %vm4849_vm0, %v5118_v28, 0.0  ;;  %v5612_v13 = vpop.f32.mrf.mxu1 }
 0x6a8   :  { %5319 = vst [vmem:[%s11470_s6 + $0x60] sm:$0xff] %v5135_v56  ;;  %v5613_v63 = vadd.f32 %v5612_v13, %v5611_v5 }
 0x6aa   :  { %v5123_v19 = vadd.f32 %v5613_v63, %v5023_v26 }
 0x6ab   :  { %v5561_v8 = vpop.f32.mrf.mxu0 }
 0x6ac   :  { %v5136_v44 = vsel %vm4849_vm0, %v5123_v19, 0.0  ;;  %v5614_v21 = vpop.f32.mrf.mxu1 }
 0x6ad   :  { %5320 = vst [vmem:[%s11470_s6 + $0x68] sm:$0xff] %v5136_v44  ;;  %v5562_v50 = vpop.f32.mrf.mxu0 }
 0x6ae   :  { %v5563_v61 = vadd.f32 %v5562_v50, %v5561_v8  ;;  %v5615_v45 = vpop.f32.mrf.mxu1 }
 0x6af   :  { %v5616_v51 = vadd.f32 %v5615_v45, %v5614_v21  ;;  %v5596_v20 = vpop.f32.mrf.mxu0 }
 0x6b0   :  { %v5028_v25 = vadd.f32 %v5563_v61, %v11390_v38 }
 0x6b1   :  { %v5597_v11 = vpop.f32.mrf.mxu0 }
 0x6b2   :  { %v5128_v37 = vadd.f32 %v5616_v51, %v5028_v25  ;;  %v5598_v55 = vadd.f32 %v5597_v11, %v5596_v20 }
 0x6b4   :  { %v5137_v58 = vsel %vm4849_vm0, %v5128_v37, 0.0  ;;  %v5098_v15 = vadd.f32 %v5598_v55, %v4998_v7 }
 0x6b5   :  { %v5138_v34 = vsel %vm3910_vm9, %v5137_v58, 0.0 }
 0x6b6   :  { %5321 = vst [vmem:[%s11470_s6 + $0x70] sm:$0xff] %v5138_v34  ;;  %v5131_v14 = vsel %vm4849_vm0, %v5098_v15, 0.0 }
 0x6b7   :  { %5315 = vst [vmem:[%s11470_s6 + $0x40] sm:$0xff] %v5131_v14 }

</bundles_post_ra>
